<compile_context>
chip_gen: v6e
topology: v6e:2x2x1
jax: 0.10.0
libtpu: 0.0.40
codegen_flags: <defaults>
</compile_context>

<pallas_src>
import jax
import jax.numpy as jnp
from jax.experimental import pallas as pl
from jax.experimental.pallas import tpu as pltpu

BN_EPS = 1e-5


def _conv3x3_bn_relu_pool(x, w_flat, gamma, beta):
    """Conv2d(k=3, pad=0) + BatchNorm2d (train-mode batch stats) + ReLU + MaxPool2d(2).

    x:      [B, H, W, Cin]    (Cin on lanes)
    w_flat: [9*Cin, Cout]     row order di*3*Cin + dj*Cin + ci (matches im2col below)
    gamma/beta: [1, Cout]
    """
    B, H, W, Cin = x.shape
    Cout = w_flat.shape[-1]
    Ho, Wo = H - 2, W - 2

    # im2col along the lane axis -> ONE big-K matmul per layer instead of 9 small ones
    # (K = 1152 / 576 keeps the 256-wide v6e/v7x MXUs full; also fine on v5e's 128x128).
    cols = [x[:, di:di + Ho, dj:dj + Wo, :] for di in range(3) for dj in range(3)]
    patches = jnp.concatenate(cols, axis=-1).reshape(B * Ho * Wo, 9 * Cin)
    y = jnp.dot(patches, w_flat, preferred_element_type=jnp.float32)   # [B*Ho*Wo, Cout]

    # BatchNorm2d (PyTorch default training-mode: biased batch stats over B,H,W) fused
    # with ReLU into a single scale/bias FMA pass; mean and E[y^2] share one sweep.
    inv_n = 1.0 / (B * Ho * Wo)
    mean = jnp.sum(y, axis=0, keepdims=True) * inv_n                   # [1, Cout]
    meansq = jnp.sum(y * y, axis=0, keepdims=True) * inv_n
    var = meansq - mean * mean                                         # f32, values O(1)
    scale = gamma * jax.lax.rsqrt(var + BN_EPS)
    bias = beta - mean * scale
    y = jnp.maximum(y * scale + bias, 0.0).reshape(B, Ho, Wo, Cout)

    # MaxPool2d(2), stride 2, floor.  H-pooling splits an untiled leading dim
    # (relayout-free); W-pooling keeps the tiny pair-reshape form (proven lowering,
    # tensors are <=128 KB so the relayout cost is negligible).
    Hp, Wp = Ho // 2, Wo // 2
    y = y[:, :2 * Hp, :2 * Wp, :]
    y = jnp.max(y.reshape(B, Hp, 2, 2 * Wp, Cout), axis=2)
    y = jnp.max(y.reshape(B, Hp, Wp, 2, Cout), axis=3)
    return y                                                           # [B, Hp, Wp, Cout]


def fc_classifier_kernel(x_ref, w1_ref, g1_ref, be1_ref, w2_ref, g2_ref, be2_ref,
                         fw1_ref, fb1_ref, fw2_ref, fb2_ref, o_ref):
    """Fused FCClassifier forward: layer1 -> layer2 -> flatten -> fc1+ReLU -> fc2."""
    y = _conv3x3_bn_relu_pool(x_ref[...], w1_ref[...], g1_ref[...], be1_ref[...])
    y = _conv3x3_bn_relu_pool(y, w2_ref[...], g2_ref[...], be2_ref[...])   # [B, 3, 3, 64]
    B, Hq, Wq, C = y.shape

    # Flatten without any lane-merging reshape: gather the 9 spatial positions along the
    # lane axis in HWC order.  fc1 weight rows were pre-permuted (CHW -> HWC) in the
    # wrapper, so this matches PyTorch's out.view(B, -1) on NCHW exactly while keeping
    # activations untouched (no transpose, no HBM round-trip).
    pos = [y[:, h:h + 1, w:w + 1, :] for h in range(Hq) for w in range(Wq)]
    flat = jnp.concatenate(pos, axis=-1).reshape(B, Hq * Wq * C)           # [B, 576]

    h = jnp.dot(flat, fw1_ref[...], preferred_element_type=jnp.float32) + fb1_ref[...]
    h = jnp.maximum(h, 0.0)                                                # [B, hidden]
    # fc2 (hidden -> 1) on the VPU: lane reduction instead of an MXU pass + masked store.
    o_ref[...] = jnp.sum(h * fw2_ref[...], axis=-1, keepdims=True) + fb2_ref[...]


def _vmem_spec():
    return pl.BlockSpec(memory_space=pltpu.MemorySpace.VMEM)


def fc_classifier_pallas(x_nhwc, w1f, g1, be1, w2f, g2, be2, fw1, fb1, fw2, fb2):
    B = x_nhwc.shape[0]
    # TODO(synk): a batch grid with dimension_semantics=("parallel",) would engage both
    # v7x TensorCores but would change train-mode BatchNorm batch statistics (stats must
    # span the full batch), so the net is kept as a single fused program (~1 MB / ~0.1
    # GFLOP, launch-overhead bound anyway).
    return pl.pallas_call(
        fc_classifier_kernel,
        out_shape=jax.ShapeDtypeStruct((B, 1), jnp.float32),
        in_specs=[_vmem_spec()] * 11,
        out_specs=_vmem_spec(),
        compiler_params=pltpu.CompilerParams(vmem_limit_bytes=32 * 1024 * 1024),
    )(x_nhwc, w1f, g1, be1, w2f, g2, be2, fw1, fb1, fw2, fb2)


def init_params(key, input_size=64, hidden_size=8):
    """Deterministic synthetic parameters matching FCClassifier's shapes."""
    ks = jax.random.split(key, 8)
    p = {}
    # layer1: Conv2d(64*2 -> 64, k=3) + BatchNorm2d(64)  (conv weight stored HWIO)
    p["w1"] = 0.05 * jax.random.normal(ks[0], (3, 3, 128, 64), jnp.float32)
    p["g1"] = 1.0 + 0.1 * jax.random.normal(ks[1], (1, 64), jnp.float32)
    p["be1"] = 0.1 * jax.random.normal(ks[2], (1, 64), jnp.float32)
    # layer2: Conv2d(64 -> 64, k=3) + BatchNorm2d(64)
    p["w2"] = 0.05 * jax.random.normal(ks[3], (3, 3, 64, 64), jnp.float32)
    p["g2"] = 1.0 + 0.1 * jax.random.normal(ks[4], (1, 64), jnp.float32)
    p["be2"] = 0.1 * jax.random.normal(ks[5], (1, 64), jnp.float32)
    # fc1: Linear(64*3*3 -> hidden) with rows in PyTorch CHW-flatten order, stored [in, out]
    fin1 = input_size * 3 * 3
    p["fw1"] = jax.random.normal(ks[6], (fin1, hidden_size), jnp.float32) / jnp.sqrt(
        jnp.float32(fin1))
    p["fb1"] = 0.01 * jnp.ones((1, hidden_size), jnp.float32)
    # fc2: Linear(hidden -> 1), stored [in, out]
    p["fw2"] = jax.random.normal(ks[7], (hidden_size, 1), jnp.float32) / jnp.sqrt(
        jnp.float32(hidden_size))
    p["fb2"] = 0.01 * jnp.ones((1, 1), jnp.float32)
    return p


@jax.jit
def fc_classifier_forward(params, x_nchw):
    # Glue: NCHW (PyTorch convention) -> NHWC for the TPU kernel.
    x = jnp.transpose(x_nchw, (0, 2, 3, 1)).astype(jnp.float32)
    # Conv weights flattened to [9*Cin, Cout] (row order di*3*Cin + dj*Cin + ci) so each
    # layer is one big-K MXU matmul inside the kernel.
    cout = params["w2"].shape[3]
    w1f = params["w1"].reshape(-1, params["w1"].shape[3])
    w2f = params["w2"].reshape(-1, cout)
    # fc1 rows are in PyTorch CHW-flatten order; permute to HWC so the kernel can flatten
    # the pooled NHWC activation directly (weight permutation is tiny; beats transposing
    # the activation through HBM).  Spatial size after the two pools is 3x3.
    hid = params["fw1"].shape[1]
    fw1 = params["fw1"].reshape(cout, 3, 3, hid).transpose(1, 2, 0, 3).reshape(-1, hid)
    fw2 = params["fw2"].reshape(1, hid)   # row vector for the in-kernel VPU reduction
    return fc_classifier_pallas(x, w1f, params["g1"], params["be1"],
                                w2f, params["g2"], params["be2"],
                                fw1, params["fb1"], fw2, params["fb2"])


if __name__ == "__main__":
    key = jax.random.PRNGKey(0)
    kp, kx = jax.random.split(key)
    params = init_params(kp, input_size=64, hidden_size=8)
    # Spatial size 18 is implied by the module: 18 -conv-> 16 -pool-> 8 -conv-> 6 -pool-> 3,
    # so the flattened feature is 64*3*3 = 576 = fc1 input size.
    x = jax.random.normal(kx, (2, 128, 18, 18), jnp.float32)
    out = fc_classifier_forward(params, x)
    out = jax.block_until_ready(out)
    assert out.shape == (2, 1)
    assert bool(jnp.all(jnp.isfinite(out)))
    print("KERNEL_OK")
</pallas_src>

<mosaic_0001>
module attributes {stable_mosaic.version = 11 : i64} {
  func.func @fc_classifier_kernel(%arg0: memref<2x18x18x128xf32, #tpu.memory_space<vmem>>, %arg1: memref<1152x64xf32, #tpu.memory_space<vmem>>, %arg2: memref<1x64xf32, #tpu.memory_space<vmem>>, %arg3: memref<1x64xf32, #tpu.memory_space<vmem>>, %arg4: memref<576x64xf32, #tpu.memory_space<vmem>>, %arg5: memref<1x64xf32, #tpu.memory_space<vmem>>, %arg6: memref<1x64xf32, #tpu.memory_space<vmem>>, %arg7: memref<576x8xf32, #tpu.memory_space<vmem>>, %arg8: memref<1x8xf32, #tpu.memory_space<vmem>>, %arg9: memref<1x8xf32, #tpu.memory_space<vmem>>, %arg10: memref<1x1xf32, #tpu.memory_space<vmem>>, %arg11: memref<2x1xf32, #tpu.memory_space<vmem>>) attributes {dimension_semantics = [], scalar_prefetch = 0 : i64, scratch_operands = 0 : i64, tpu.core_type = #tpu.core_type<tc>} {
    %c0 = arith.constant 0 : index
    %c0_0 = arith.constant 0 : index
    %c0_1 = arith.constant 0 : index
    %c0_2 = arith.constant 0 : index
    %0 = vector.load %arg0[%c0, %c0_0, %c0_1, %c0_2] : memref<2x18x18x128xf32, #tpu.memory_space<vmem>>, vector<2x18x18x128xf32>
    %c0_3 = arith.constant 0 : index
    %c0_4 = arith.constant 0 : index
    %1 = vector.load %arg1[%c0_3, %c0_4] : memref<1152x64xf32, #tpu.memory_space<vmem>>, vector<1152x64xf32>
    %c0_5 = arith.constant 0 : index
    %c0_6 = arith.constant 0 : index
    %2 = vector.load %arg2[%c0_5, %c0_6] : memref<1x64xf32, #tpu.memory_space<vmem>>, vector<1x64xf32>
    %c0_7 = arith.constant 0 : index
    %c0_8 = arith.constant 0 : index
    %3 = vector.load %arg3[%c0_7, %c0_8] : memref<1x64xf32, #tpu.memory_space<vmem>>, vector<1x64xf32>
    %4 = vector.extract_strided_slice %0 {offsets = [0, 0, 0, 0], sizes = [2, 16, 16, 128], strides = [1, 1, 1, 1]} : vector<2x18x18x128xf32> to vector<2x16x16x128xf32>
    %5 = vector.extract_strided_slice %0 {offsets = [0, 0, 1, 0], sizes = [2, 16, 16, 128], strides = [1, 1, 1, 1]} : vector<2x18x18x128xf32> to vector<2x16x16x128xf32>
    %6 = vector.extract_strided_slice %0 {offsets = [0, 0, 2, 0], sizes = [2, 16, 16, 128], strides = [1, 1, 1, 1]} : vector<2x18x18x128xf32> to vector<2x16x16x128xf32>
    %7 = vector.extract_strided_slice %0 {offsets = [0, 1, 0, 0], sizes = [2, 16, 16, 128], strides = [1, 1, 1, 1]} : vector<2x18x18x128xf32> to vector<2x16x16x128xf32>
    %8 = vector.extract_strided_slice %0 {offsets = [0, 1, 1, 0], sizes = [2, 16, 16, 128], strides = [1, 1, 1, 1]} : vector<2x18x18x128xf32> to vector<2x16x16x128xf32>
    %9 = vector.extract_strided_slice %0 {offsets = [0, 1, 2, 0], sizes = [2, 16, 16, 128], strides = [1, 1, 1, 1]} : vector<2x18x18x128xf32> to vector<2x16x16x128xf32>
    %10 = vector.extract_strided_slice %0 {offsets = [0, 2, 0, 0], sizes = [2, 16, 16, 128], strides = [1, 1, 1, 1]} : vector<2x18x18x128xf32> to vector<2x16x16x128xf32>
    %11 = vector.extract_strided_slice %0 {offsets = [0, 2, 1, 0], sizes = [2, 16, 16, 128], strides = [1, 1, 1, 1]} : vector<2x18x18x128xf32> to vector<2x16x16x128xf32>
    %12 = vector.extract_strided_slice %0 {offsets = [0, 2, 2, 0], sizes = [2, 16, 16, 128], strides = [1, 1, 1, 1]} : vector<2x18x18x128xf32> to vector<2x16x16x128xf32>
    %13 = tpu.concatenate %4, %5, %6, %7, %8, %9, %10, %11, %12 in 3 : vector<2x16x16x128xf32>, vector<2x16x16x128xf32>, vector<2x16x16x128xf32>, vector<2x16x16x128xf32>, vector<2x16x16x128xf32>, vector<2x16x16x128xf32>, vector<2x16x16x128xf32>, vector<2x16x16x128xf32>, vector<2x16x16x128xf32> -> vector<2x16x16x1152xf32>
    %14 = vector.shape_cast %13 : vector<2x16x16x1152xf32> to vector<512x1152xf32>
    %cst = arith.constant dense<0.000000e+00> : vector<512x64xf32>
    %15 = tpu.matmul %14, %1, %cst {dimension_numbers = #tpu.dot_dimension_numbers<[1], [0], [0], [1], [0, 0, 1, 1], [], []>} : vector<512x1152xf32>, vector<1152x64xf32>, vector<512x64xf32> -> vector<512x64xf32>
    %cst_9 = arith.constant dense<0.000000e+00> : vector<64xf32>
    %16 = vector.multi_reduction <add>, %15, %cst_9 [0] : vector<512x64xf32> to vector<64xf32>
    %17 = vector.shape_cast %16 : vector<64xf32> to vector<1x64xf32>
    %cst_10 = arith.constant 0.001953125 : f32
    %18 = vector.broadcast %cst_10 : f32 to vector<1x64xf32>
    %19 = arith.mulf %17, %18 : vector<1x64xf32>
    %20 = arith.mulf %15, %15 : vector<512x64xf32>
    %cst_11 = arith.constant dense<0.000000e+00> : vector<64xf32>
    %21 = vector.multi_reduction <add>, %20, %cst_11 [0] : vector<512x64xf32> to vector<64xf32>
    %22 = vector.shape_cast %21 : vector<64xf32> to vector<1x64xf32>
    %cst_12 = arith.constant 0.001953125 : f32
    %23 = vector.broadcast %cst_12 : f32 to vector<1x64xf32>
    %24 = arith.mulf %22, %23 : vector<1x64xf32>
    %25 = arith.mulf %19, %19 : vector<1x64xf32>
    %26 = arith.subf %24, %25 : vector<1x64xf32>
    %cst_13 = arith.constant 9.99999974E-6 : f32
    %27 = vector.broadcast %cst_13 : f32 to vector<1x64xf32>
    %28 = arith.addf %26, %27 : vector<1x64xf32>
    %29 = math.rsqrt %28 : vector<1x64xf32>
    %30 = arith.mulf %2, %29 : vector<1x64xf32>
    %31 = arith.mulf %19, %30 : vector<1x64xf32>
    %32 = arith.subf %3, %31 : vector<1x64xf32>
    %33 = vector.broadcast %30 : vector<1x64xf32> to vector<512x64xf32>
    %34 = arith.mulf %15, %33 : vector<512x64xf32>
    %35 = vector.broadcast %32 : vector<1x64xf32> to vector<512x64xf32>
    %36 = arith.addf %34, %35 : vector<512x64xf32>
    %cst_14 = arith.constant 0.000000e+00 : f32
    %37 = vector.broadcast %cst_14 : f32 to vector<512x64xf32>
    %38 = arith.maximumf %36, %37 : vector<512x64xf32>
    %39 = vector.shape_cast %38 : vector<512x64xf32> to vector<2x16x16x64xf32>
    %40 = vector.shape_cast %39 : vector<2x16x16x64xf32> to vector<2x8x2x16x64xf32>
    %cst_15 = arith.constant dense<0xFF800000> : vector<2x8x16x64xf32>
    %41 = vector.multi_reduction <maximumf>, %40, %cst_15 [2] : vector<2x8x2x16x64xf32> to vector<2x8x16x64xf32>
    %42 = vector.shape_cast %41 : vector<2x8x16x64xf32> to vector<2x8x8x2x64xf32>
    %cst_16 = arith.constant dense<0xFF800000> : vector<2x8x8x64xf32>
    %43 = vector.multi_reduction <maximumf>, %42, %cst_16 [3] : vector<2x8x8x2x64xf32> to vector<2x8x8x64xf32>
    %c0_17 = arith.constant 0 : index
    %c0_18 = arith.constant 0 : index
    %44 = vector.load %arg4[%c0_17, %c0_18] : memref<576x64xf32, #tpu.memory_space<vmem>>, vector<576x64xf32>
    %c0_19 = arith.constant 0 : index
    %c0_20 = arith.constant 0 : index
    %45 = vector.load %arg5[%c0_19, %c0_20] : memref<1x64xf32, #tpu.memory_space<vmem>>, vector<1x64xf32>
    %c0_21 = arith.constant 0 : index
    %c0_22 = arith.constant 0 : index
    %46 = vector.load %arg6[%c0_21, %c0_22] : memref<1x64xf32, #tpu.memory_space<vmem>>, vector<1x64xf32>
    %47 = vector.extract_strided_slice %43 {offsets = [0, 0, 0, 0], sizes = [2, 6, 6, 64], strides = [1, 1, 1, 1]} : vector<2x8x8x64xf32> to vector<2x6x6x64xf32>
    %48 = vector.extract_strided_slice %43 {offsets = [0, 0, 1, 0], sizes = [2, 6, 6, 64], strides = [1, 1, 1, 1]} : vector<2x8x8x64xf32> to vector<2x6x6x64xf32>
    %49 = vector.extract_strided_slice %43 {offsets = [0, 0, 2, 0], sizes = [2, 6, 6, 64], strides = [1, 1, 1, 1]} : vector<2x8x8x64xf32> to vector<2x6x6x64xf32>
    %50 = vector.extract_strided_slice %43 {offsets = [0, 1, 0, 0], sizes = [2, 6, 6, 64], strides = [1, 1, 1, 1]} : vector<2x8x8x64xf32> to vector<2x6x6x64xf32>
    %51 = vector.extract_strided_slice %43 {offsets = [0, 1, 1, 0], sizes = [2, 6, 6, 64], strides = [1, 1, 1, 1]} : vector<2x8x8x64xf32> to vector<2x6x6x64xf32>
    %52 = vector.extract_strided_slice %43 {offsets = [0, 1, 2, 0], sizes = [2, 6, 6, 64], strides = [1, 1, 1, 1]} : vector<2x8x8x64xf32> to vector<2x6x6x64xf32>
    %53 = vector.extract_strided_slice %43 {offsets = [0, 2, 0, 0], sizes = [2, 6, 6, 64], strides = [1, 1, 1, 1]} : vector<2x8x8x64xf32> to vector<2x6x6x64xf32>
    %54 = vector.extract_strided_slice %43 {offsets = [0, 2, 1, 0], sizes = [2, 6, 6, 64], strides = [1, 1, 1, 1]} : vector<2x8x8x64xf32> to vector<2x6x6x64xf32>
    %55 = vector.extract_strided_slice %43 {offsets = [0, 2, 2, 0], sizes = [2, 6, 6, 64], strides = [1, 1, 1, 1]} : vector<2x8x8x64xf32> to vector<2x6x6x64xf32>
    %56 = tpu.concatenate %47, %48, %49, %50, %51, %52, %53, %54, %55 in 3 : vector<2x6x6x64xf32>, vector<2x6x6x64xf32>, vector<2x6x6x64xf32>, vector<2x6x6x64xf32>, vector<2x6x6x64xf32>, vector<2x6x6x64xf32>, vector<2x6x6x64xf32>, vector<2x6x6x64xf32>, vector<2x6x6x64xf32> -> vector<2x6x6x576xf32>
    %57 = vector.shape_cast %56 : vector<2x6x6x576xf32> to vector<72x576xf32>
    %cst_23 = arith.constant dense<0.000000e+00> : vector<72x64xf32>
    %58 = tpu.matmul %57, %44, %cst_23 {dimension_numbers = #tpu.dot_dimension_numbers<[1], [0], [0], [1], [0, 0, 1, 1], [], []>} : vector<72x576xf32>, vector<576x64xf32>, vector<72x64xf32> -> vector<72x64xf32>
    %cst_24 = arith.constant dense<0.000000e+00> : vector<64xf32>
    %59 = vector.multi_reduction <add>, %58, %cst_24 [0] : vector<72x64xf32> to vector<64xf32>
    %60 = vector.shape_cast %59 : vector<64xf32> to vector<1x64xf32>
    %cst_25 = arith.constant 0.013888889 : f32
    %61 = vector.broadcast %cst_25 : f32 to vector<1x64xf32>
    %62 = arith.mulf %60, %61 : vector<1x64xf32>
    %63 = arith.mulf %58, %58 : vector<72x64xf32>
    %cst_26 = arith.constant dense<0.000000e+00> : vector<64xf32>
    %64 = vector.multi_reduction <add>, %63, %cst_26 [0] : vector<72x64xf32> to vector<64xf32>
    %65 = vector.shape_cast %64 : vector<64xf32> to vector<1x64xf32>
    %cst_27 = arith.constant 0.013888889 : f32
    %66 = vector.broadcast %cst_27 : f32 to vector<1x64xf32>
    %67 = arith.mulf %65, %66 : vector<1x64xf32>
    %68 = arith.mulf %62, %62 : vector<1x64xf32>
    %69 = arith.subf %67, %68 : vector<1x64xf32>
    %cst_28 = arith.constant 9.99999974E-6 : f32
    %70 = vector.broadcast %cst_28 : f32 to vector<1x64xf32>
    %71 = arith.addf %69, %70 : vector<1x64xf32>
    %72 = math.rsqrt %71 : vector<1x64xf32>
    %73 = arith.mulf %45, %72 : vector<1x64xf32>
    %74 = arith.mulf %62, %73 : vector<1x64xf32>
    %75 = arith.subf %46, %74 : vector<1x64xf32>
    %76 = vector.broadcast %73 : vector<1x64xf32> to vector<72x64xf32>
    %77 = arith.mulf %58, %76 : vector<72x64xf32>
    %78 = vector.broadcast %75 : vector<1x64xf32> to vector<72x64xf32>
    %79 = arith.addf %77, %78 : vector<72x64xf32>
    %cst_29 = arith.constant 0.000000e+00 : f32
    %80 = vector.broadcast %cst_29 : f32 to vector<72x64xf32>
    %81 = arith.maximumf %79, %80 : vector<72x64xf32>
    %82 = vector.shape_cast %81 : vector<72x64xf32> to vector<2x6x6x64xf32>
    %83 = vector.shape_cast %82 : vector<2x6x6x64xf32> to vector<2x3x2x6x64xf32>
    %cst_30 = arith.constant dense<0xFF800000> : vector<2x3x6x64xf32>
    %84 = vector.multi_reduction <maximumf>, %83, %cst_30 [2] : vector<2x3x2x6x64xf32> to vector<2x3x6x64xf32>
    %85 = vector.shape_cast %84 : vector<2x3x6x64xf32> to vector<2x3x3x2x64xf32>
    %cst_31 = arith.constant dense<0xFF800000> : vector<2x3x3x64xf32>
    %86 = vector.multi_reduction <maximumf>, %85, %cst_31 [3] : vector<2x3x3x2x64xf32> to vector<2x3x3x64xf32>
    %87 = vector.extract_strided_slice %86 {offsets = [0, 0, 0, 0], sizes = [2, 1, 1, 64], strides = [1, 1, 1, 1]} : vector<2x3x3x64xf32> to vector<2x1x1x64xf32>
    %88 = vector.extract_strided_slice %86 {offsets = [0, 0, 1, 0], sizes = [2, 1, 1, 64], strides = [1, 1, 1, 1]} : vector<2x3x3x64xf32> to vector<2x1x1x64xf32>
    %89 = vector.extract_strided_slice %86 {offsets = [0, 0, 2, 0], sizes = [2, 1, 1, 64], strides = [1, 1, 1, 1]} : vector<2x3x3x64xf32> to vector<2x1x1x64xf32>
    %90 = vector.extract_strided_slice %86 {offsets = [0, 1, 0, 0], sizes = [2, 1, 1, 64], strides = [1, 1, 1, 1]} : vector<2x3x3x64xf32> to vector<2x1x1x64xf32>
    %91 = vector.extract_strided_slice %86 {offsets = [0, 1, 1, 0], sizes = [2, 1, 1, 64], strides = [1, 1, 1, 1]} : vector<2x3x3x64xf32> to vector<2x1x1x64xf32>
    %92 = vector.extract_strided_slice %86 {offsets = [0, 1, 2, 0], sizes = [2, 1, 1, 64], strides = [1, 1, 1, 1]} : vector<2x3x3x64xf32> to vector<2x1x1x64xf32>
    %93 = vector.extract_strided_slice %86 {offsets = [0, 2, 0, 0], sizes = [2, 1, 1, 64], strides = [1, 1, 1, 1]} : vector<2x3x3x64xf32> to vector<2x1x1x64xf32>
    %94 = vector.extract_strided_slice %86 {offsets = [0, 2, 1, 0], sizes = [2, 1, 1, 64], strides = [1, 1, 1, 1]} : vector<2x3x3x64xf32> to vector<2x1x1x64xf32>
    %95 = vector.extract_strided_slice %86 {offsets = [0, 2, 2, 0], sizes = [2, 1, 1, 64], strides = [1, 1, 1, 1]} : vector<2x3x3x64xf32> to vector<2x1x1x64xf32>
    %96 = tpu.concatenate %87, %88, %89, %90, %91, %92, %93, %94, %95 in 3 : vector<2x1x1x64xf32>, vector<2x1x1x64xf32>, vector<2x1x1x64xf32>, vector<2x1x1x64xf32>, vector<2x1x1x64xf32>, vector<2x1x1x64xf32>, vector<2x1x1x64xf32>, vector<2x1x1x64xf32>, vector<2x1x1x64xf32> -> vector<2x1x1x576xf32>
    %97 = vector.shape_cast %96 : vector<2x1x1x576xf32> to vector<2x576xf32>
    %c0_32 = arith.constant 0 : index
    %c0_33 = arith.constant 0 : index
    %98 = vector.load %arg7[%c0_32, %c0_33] : memref<576x8xf32, #tpu.memory_space<vmem>>, vector<576x8xf32>
    %cst_34 = arith.constant dense<0.000000e+00> : vector<2x8xf32>
    %99 = tpu.matmul %97, %98, %cst_34 {dimension_numbers = #tpu.dot_dimension_numbers<[1], [0], [0], [1], [0, 0, 1, 1], [], []>} : vector<2x576xf32>, vector<576x8xf32>, vector<2x8xf32> -> vector<2x8xf32>
    %c0_35 = arith.constant 0 : index
    %c0_36 = arith.constant 0 : index
    %100 = vector.load %arg8[%c0_35, %c0_36] : memref<1x8xf32, #tpu.memory_space<vmem>>, vector<1x8xf32>
    %101 = vector.broadcast %100 : vector<1x8xf32> to vector<2x8xf32>
    %102 = arith.addf %99, %101 : vector<2x8xf32>
    %cst_37 = arith.constant 0.000000e+00 : f32
    %103 = vector.broadcast %cst_37 : f32 to vector<2x8xf32>
    %104 = arith.maximumf %102, %103 : vector<2x8xf32>
    %c0_38 = arith.constant 0 : index
    %c0_39 = arith.constant 0 : index
    %105 = vector.load %arg9[%c0_38, %c0_39] : memref<1x8xf32, #tpu.memory_space<vmem>>, vector<1x8xf32>
    %106 = vector.broadcast %105 : vector<1x8xf32> to vector<2x8xf32>
    %107 = arith.mulf %104, %106 : vector<2x8xf32>
    %cst_40 = arith.constant dense<0.000000e+00> : vector<2xf32>
    %108 = vector.multi_reduction <add>, %107, %cst_40 [1] : vector<2x8xf32> to vector<2xf32>
    %109 = vector.shape_cast %108 : vector<2xf32> to vector<2x1xf32>
    %c0_41 = arith.constant 0 : index
    %c0_42 = arith.constant 0 : index
    %110 = vector.load %arg10[%c0_41, %c0_42] : memref<1x1xf32, #tpu.memory_space<vmem>>, vector<1x1xf32>
    %111 = vector.broadcast %110 : vector<1x1xf32> to vector<2x1xf32>
    %112 = arith.addf %109, %111 : vector<2x1xf32>
    %c0_43 = arith.constant 0 : index
    %c0_44 = arith.constant 0 : index
    %113 = vector.load %arg11[%c0_43, %c0_44] : memref<2x1xf32, #tpu.memory_space<vmem>>, vector<2x1xf32>
    tpu.vector_store %arg11[%c0_43, %c0_44], %112 {strides = array<i32>} : memref<2x1xf32, #tpu.memory_space<vmem>>, vector<2x1xf32>,
    return
  }
}

</mosaic_0001>

<bundles_post_ra>
// kernel: fc_classifier_forward.1
= control target key start
LH: loop header
LB: loop body
LE: loop exit
PB: predicated region body
PF: predicated region fallthrough
CT: control target
= control target key end

     0   :  { %v15583_v0 = vmov 0.0   ;;  %vm390_vm0 = vcmask 1046528   ;;  %vm615_vm1 = vcmask 1045504   ;;  %vm2833_vm2 = vcmask 523264   ;;  %s8708_s23 = smov 64   ;;  %s15565_s1 = inlined_call_operand.vmem [shape: f32[1152,64], index: 1, kind: input, shape index: {}]   ;;  %s15566_s0 = inlined_call_operand.vmem [shape: f32[2,18,18,128], index: 0, kind: input, shape index: {}]   ;;  %s15567_s4 = inlined_call_operand.vmem [shape: f32[576,64], index: 4, kind: input, shape index: {}]   ;;  %s15568_s2 = inlined_call_operand.vmem [shape: f32[1,64], index: 2, kind: input, shape index: {}]   ;;  %s15569_s3 = inlined_call_operand.vmem [shape: f32[1,64], index: 3, kind: input, shape index: {}]   ;;  %s15570_s7 = inlined_call_operand.vmem [shape: f32[576,8], index: 7, kind: input, shape index: {}]   ;;  %s15571_s5 = inlined_call_operand.vmem [shape: f32[1,64], index: 5, kind: input, shape index: {}]   ;;  %s15572_s6 = inlined_call_operand.vmem [shape: f32[1,64], index: 6, kind: input, shape index: {}]   ;;  %s15573_s10 = inlined_call_operand.<no memory space> [shape: f32[1,1], index: 10, kind: input, shape index: {}]   ;;  %s15574_s8 = inlined_call_operand.vmem [shape: f32[1,8], index: 8, kind: input, shape index: {}]   ;;  %s15575_s9 = inlined_call_operand.vmem [shape: f32[1,8], index: 9, kind: input, shape index: {}]   ;;  %s15576_s11 = inlined_call_operand.vmem [shape: f32[2,1], index: 11, kind: output, shape index: {}]  }
   0x1   :  { %908 = vmatprep.subr.mxu0 %v15583_v0  ;;  %v163_v1 = vld [vmem:[%s15565_s1 + $0x78] sm:$0xff]  ;;  %1293 = vmatprep.subr.mxu1 %v15583_v0  ;;  %v162_v3 = vld [vmem:[%s15565_s1 + $0x70] sm:$0xff]  ;;  %v161_v5 = vld [vmem:[%s15565_s1 + $0x68] sm:$0xff]  ;;  %vm4177_vm3 = vcmask 517120   ;;  %vm5220_vm4 = vcmask 1041409   ;;  %vm5222_vm5 = vcmask 1042434  }
   0x2   :  { %v195_v2 = vld [vmem:[%s15565_s1 + $0x178] sm:$0xff]  ;;  %909 = vmatpush1.msra.mxu0 %v163_v1  ;;  %v194_v4 = vld [vmem:[%s15565_s1 + $0x170] sm:$0xff]  ;;  %v193_v6 = vld [vmem:[%s15565_s1 + $0x168] sm:$0xff]  ;;  %vm5224_vm6 = vcmask 1043459   ;;  %vm5226_vm7 = vcmask 1044484   ;;  %vm5228_vm8 = vcmask 1045509  }
   0x3   :  { %1294 = vmatpush1.msra.mxu1 %v195_v2  ;;  %910 = vmatprep.subr.mxu0 %v15583_v0  ;;  %v160_v7 = vld [vmem:[%s15565_s1 + $0x60] sm:$0xff]  ;;  %v159_v9 = vld [vmem:[%s15565_s1 + $0x58] sm:$0xff]  ;;  %v158_v11 = vld [vmem:[%s15565_s1 + $0x50] sm:$0xff]  ;;  %vm8709_vm9 = vmmov 0   ;;  %vm8079_vm10 = vcmask 58368   ;;  %vm8091_vm11 = vcmask 1024  }
   0x4   :  { %1295 = vmatprep.subr.mxu1 %v15583_v0  ;;  %911 = vmatpush1.msra.mxu0 %v162_v3  ;;  %v192_v8 = vld [vmem:[%s15565_s1 + $0x160] sm:$0xff]  ;;  %v191_v10 = vld [vmem:[%s15565_s1 + $0x158] sm:$0xff]  ;;  %v190_v12 = vld [vmem:[%s15565_s1 + $0x150] sm:$0xff] }
   0x5   :  { %1296 = vmatpush1.msra.mxu1 %v194_v4  ;;  %912 = vmatprep.subr.mxu0 %v15583_v0  ;;  %v157_v13 = vld [vmem:[%s15565_s1 + $0x48] sm:$0xff]  ;;  %v156_v15 = vld [vmem:[%s15565_s1 + $0x40] sm:$0xff]  ;;  %v155_v17 = vld [vmem:[%s15565_s1 + $0x38] sm:$0xff] }
   0x6   :  { %1297 = vmatprep.subr.mxu1 %v15583_v0  ;;  %913 = vmatpush1.msra.mxu0 %v161_v5  ;;  %v189_v14 = vld [vmem:[%s15565_s1 + $0x148] sm:$0xff]  ;;  %v188_v16 = vld [vmem:[%s15565_s1 + $0x140] sm:$0xff]  ;;  %v187_v18 = vld [vmem:[%s15565_s1 + $0x138] sm:$0xff] }
   0x7   :  { %1298 = vmatpush1.msra.mxu1 %v193_v6  ;;  %914 = vmatprep.subr.mxu0 %v15583_v0  ;;  %v154_v19 = vld [vmem:[%s15565_s1 + $0x30] sm:$0xff]  ;;  %v153_v21 = vld [vmem:[%s15565_s1 + $0x28] sm:$0xff]  ;;  %v152_v23 = vld [vmem:[%s15565_s1 + $0x20] sm:$0xff] }
   0x8   :  { %1299 = vmatprep.subr.mxu1 %v15583_v0  ;;  %915 = vmatpush1.msra.mxu0 %v160_v7  ;;  %v186_v20 = vld [vmem:[%s15565_s1 + $0x130] sm:$0xff]  ;;  %v185_v22 = vld [vmem:[%s15565_s1 + $0x128] sm:$0xff]  ;;  %v184_v24 = vld [vmem:[%s15565_s1 + $0x120] sm:$0xff] }
   0x9   :  { %1300 = vmatpush1.msra.mxu1 %v192_v8  ;;  %916 = vmatprep.subr.mxu0 %v15583_v0  ;;  %v151_v25 = vld [vmem:[%s15565_s1 + $0x18] sm:$0xff]  ;;  %v150_v27 = vld [vmem:[%s15565_s1 + $0x10] sm:$0xff]  ;;  %v149_v29 = vld [vmem:[%s15565_s1 + $0x8] sm:$0xff] }
   0xa   :  { %1301 = vmatprep.subr.mxu1 %v15583_v0  ;;  %917 = vmatpush1.msra.mxu0 %v159_v9  ;;  %v183_v26 = vld [vmem:[%s15565_s1 + $0x118] sm:$0xff]  ;;  %v182_v28 = vld [vmem:[%s15565_s1 + $0x110] sm:$0xff]  ;;  %v181_v30 = vld [vmem:[%s15565_s1 + $0x108] sm:$0xff] }
   0xb   :  { %1302 = vmatpush1.msra.mxu1 %v191_v10  ;;  %918 = vmatprep.subr.mxu0 %v15583_v0  ;;  %v148_v31 = vld [vmem:[%s15565_s1] sm:$0xff]  ;;  %v179_v33 = vld [vmem:[%s15565_s1 + $0xf8] sm:$0xff]  ;;  %v178_v35 = vld [vmem:[%s15565_s1 + $0xf0] sm:$0xff] }
   0xc   :  { %1303 = vmatprep.subr.mxu1 %v15583_v0  ;;  %919 = vmatpush1.msra.mxu0 %v158_v11  ;;  %v180_v32 = vld [vmem:[%s15565_s1 + $0x100] sm:$0xff]  ;;  %v211_v34 = vld [vmem:[%s15565_s1 + $0x1f8] sm:$0xff]  ;;  %v210_v36 = vld [vmem:[%s15565_s1 + $0x1f0] sm:$0xff] }
   0xd   :  { %1304 = vmatpush1.msra.mxu1 %v190_v12  ;;  %920 = vmatprep.subr.mxu0 %v15583_v0  ;;  %v177_v37 = vld [vmem:[%s15565_s1 + $0xe8] sm:$0xff]  ;;  %v176_v39 = vld [vmem:[%s15565_s1 + $0xe0] sm:$0xff]  ;;  %v175_v41 = vld [vmem:[%s15565_s1 + $0xd8] sm:$0xff] }
   0xe   :  { %1305 = vmatprep.subr.mxu1 %v15583_v0  ;;  %921 = vmatpush1.msra.mxu0 %v157_v13  ;;  %v209_v38 = vld [vmem:[%s15565_s1 + $0x1e8] sm:$0xff]  ;;  %v208_v40 = vld [vmem:[%s15565_s1 + $0x1e0] sm:$0xff]  ;;  %v207_v42 = vld [vmem:[%s15565_s1 + $0x1d8] sm:$0xff] }
   0xf   :  { %1306 = vmatpush1.msra.mxu1 %v189_v14  ;;  %922 = vmatprep.subr.mxu0 %v15583_v0  ;;  %v174_v43 = vld [vmem:[%s15565_s1 + $0xd0] sm:$0xff]  ;;  %v173_v45 = vld [vmem:[%s15565_s1 + $0xc8] sm:$0xff]  ;;  %v172_v47 = vld [vmem:[%s15565_s1 + $0xc0] sm:$0xff] }
  0x10   :  { %1307 = vmatprep.subr.mxu1 %v15583_v0  ;;  %923 = vmatpush1.msra.mxu0 %v156_v15  ;;  %v206_v44 = vld [vmem:[%s15565_s1 + $0x1d0] sm:$0xff]  ;;  %v205_v46 = vld [vmem:[%s15565_s1 + $0x1c8] sm:$0xff]  ;;  %v204_v48 = vld [vmem:[%s15565_s1 + $0x1c0] sm:$0xff] }
  0x11   :  { %1308 = vmatpush1.msra.mxu1 %v188_v16  ;;  %924 = vmatprep.subr.mxu0 %v15583_v0  ;;  %v171_v49 = vld [vmem:[%s15565_s1 + $0xb8] sm:$0xff]  ;;  %v170_v51 = vld [vmem:[%s15565_s1 + $0xb0] sm:$0xff]  ;;  %v169_v53 = vld [vmem:[%s15565_s1 + $0xa8] sm:$0xff] }
  0x12   :  { %1309 = vmatprep.subr.mxu1 %v15583_v0  ;;  %925 = vmatpush1.msra.mxu0 %v155_v17  ;;  %v203_v50 = vld [vmem:[%s15565_s1 + $0x1b8] sm:$0xff]  ;;  %v202_v52 = vld [vmem:[%s15565_s1 + $0x1b0] sm:$0xff]  ;;  %v201_v54 = vld [vmem:[%s15565_s1 + $0x1a8] sm:$0xff] }
  0x13   :  { %1310 = vmatpush1.msra.mxu1 %v187_v18  ;;  %926 = vmatprep.subr.mxu0 %v15583_v0  ;;  %v168_v55 = vld [vmem:[%s15565_s1 + $0xa0] sm:$0xff]  ;;  %v8998_v58 = vld [vmem:[%s15566_s0 + $0x8] sm:$0xff]  ;;  %v167_v59 = vld [vmem:[%s15565_s1 + $0x98] sm:$0xff] }
  0x14   :  { %1311 = vmatprep.subr.mxu1 %v15583_v0  ;;  %927 = vmatpush1.msra.mxu0 %v154_v19  ;;  %v200_v56 = vld [vmem:[%s15565_s1 + $0x1a0] sm:$0xff]  ;;  %v199_v60 = vld [vmem:[%s15565_s1 + $0x198] sm:$0xff]  ;;  %v392_v62 = vrot.slane %v8998_v58, 1  ;;  %v166_v63 = vld [vmem:[%s15565_s1 + $0x90] sm:$0xff]  ;;  %v617_v7 = vrot.slane %v8998_v58, 2 }
  0x15   :  { %1312 = vmatpush1.msra.mxu1 %v186_v20  ;;  %928 = vmatprep.subr.mxu0 %v15583_v0  ;;  %v40_v57 = vld [vmem:[%s15566_s0] sm:$0xff]  ;;  %v198_v1 = vld [vmem:[%s15565_s1 + $0x190] sm:$0xff]  ;;  %v165_v3 = vld [vmem:[%s15565_s1 + $0x88] sm:$0xff] }
  0x16   :  { %1313 = vmatprep.subr.mxu1 %v15583_v0  ;;  %929 = vmatpush1.msra.mxu0 %v153_v21  ;;  %v391_v61 = vrot.slane %v40_v57, 1  ;;  %v42_v2 = vld [vmem:[%s15566_s0 + $0x10] sm:$0x3]  ;;  %v197_v4 = vld [vmem:[%s15565_s1 + $0x188] sm:$0xff]  ;;  %v616_v6 = vrot.slane %v40_v57, 2  ;;  %v9033_v8 = vld [vmem:[%s15566_s0 + $0x20] sm:$0xff] }
  0x17   :  { %1314 = vmatpush1.msra.mxu1 %v185_v22  ;;  %930 = vmatprep.subr.mxu0 %v15583_v0  ;;  %v164_v9 = vld [vmem:[%s15565_s1 + $0x80] sm:$0xff]  ;;  %v394_v10 = vrot.slane %v42_v2, 1  ;;  %v43_v12 = vld [vmem:[%s15566_s0 + $0x18] sm:$0xff]  ;;  %v397_v14 = vrot.slane %v9033_v8, 1  ;;  %v619_v17 = vrot.slane %v42_v2, 2  ;;  %v226_v21 = vld [vmem:[%s15565_s1 + $0x270] sm:$0xff] }
  0x18   :  { %1315 = vmatprep.subr.mxu1 %v15583_v0  ;;  %931 = vmatpush1.msra.mxu0 %v152_v23  ;;  %v393_v5 = vsel %vm390_vm0, %v391_v61, %v392_v62  ;;  %v196_v11 = vld [vmem:[%s15565_s1 + $0x180] sm:$0xff]  ;;  %v396_v13 = vrot.slane %v43_v12, 1  ;;  %v618_v15 = vsel %vm615_vm1, %v616_v6, %v617_v7  ;;  %v227_v16 = vld [vmem:[%s15565_s1 + $0x278] sm:$0xff]  ;;  %v45_v18 = vld [vmem:[%s15566_s0 + $0x28] sm:$0x3] }
  0x19   :  { %1316 = vmatpush1.msra.mxu1 %v184_v24  ;;  %932 = vmatprep.subr.mxu0 %v15583_v0  ;;  %v395_v19 = vsel %vm390_vm0, %v392_v62, %v394_v10  ;;  %v399_v22 = vrot.slane %v45_v18, 1  ;;  %v620_v23 = vsel %vm615_vm1, %v617_v7, %v619_v17  ;;  %v621_v24 = vrot.slane %v43_v12, 2  ;;  %v52_v61 = vld [vmem:[%s15566_s0 + $0x60] sm:$0xff]  ;;  %v217_v62 = vld [vmem:[%s15565_s1 + $0x228] sm:$0xff]  ;;  %v54_v6 = vld [vmem:[%s15566_s0 + $0x70] sm:$0x3] }
  0x1a   :  { %1317 = vmatprep.subr.mxu1 %v15583_v0  ;;  %933 = vmatpush1.msra.mxu0 %v151_v25  ;;  %v9059_v20 = vsel %vm390_vm0, %v396_v13, %v397_v14  ;;  %v622_v25 = vrot.slane %v9033_v8, 2  ;;  %v215_v7 = vld [vmem:[%s15565_s1 + $0x218] sm:$0xff]  ;;  %v214_v10 = vld [vmem:[%s15565_s1 + $0x210] sm:$0xff] }
  0x1b   :  { %1318 = vmatpush1.msra.mxu1 %v183_v26  ;;  %934 = vmatprep.subr.mxu0 %v15583_v0  ;;  %v9070_v26 = vld [vmem:[%s15566_s0 + $0x38] sm:$0xff] }
  0x1c   :  { %1319 = vmatprep.subr.mxu1 %v15583_v0  ;;  %935 = vmatpush1.msra.mxu0 %v150_v27  ;;  %v46_v27 = vld [vmem:[%s15566_s0 + $0x30] sm:$0xff] }
  0x1d   :  { %1320 = vmatpush1.msra.mxu1 %v182_v28  ;;  %936 = vmatprep.subr.mxu0 %v15583_v0  ;;  %v225_v28 = vld [vmem:[%s15565_s1 + $0x268] sm:$0xff] }
  0x1e   :  { %1321 = vmatprep.subr.mxu1 %v15583_v0  ;;  %937 = vmatpush1.msra.mxu0 %v149_v29  ;;  %v9082_v29 = vsel %vm390_vm0, %v397_v14, %v399_v22  ;;  %v9210_v14 = vld [vmem:[%s15566_s0 + $0x80] sm:$0xff] }
  0x1f   :  { %1322 = vmatpush1.msra.mxu1 %v181_v30  ;;  %938 = vmatprep.subr.mxu0 %v15583_v0  ;;  %v401_v30 = vrot.slane %v46_v27, 1 }
  0x20   :  { %1323 = vmatprep.subr.mxu1 %v15583_v0  ;;  %939 = vmatpush1.msra.mxu0 %v148_v31  ;;  %v402_v31 = vrot.slane %v9070_v26, 1 }
  0x21   :  { %1324 = vmatpush1.msra.mxu1 %v180_v32  ;;  %940 = vmatprep.subr.mxu0 %v15583_v0  ;;  %v224_v32 = vld [vmem:[%s15565_s1 + $0x260] sm:$0xff] }
  0x22   :  { %1325 = vmatprep.subr.mxu1 %v15583_v0  ;;  %941 = vmatpush2.msra.mxu0 %v179_v33  ;;  %v9090_v33 = vsel %vm615_vm1, %v621_v24, %v622_v25  ;;  %v57_v24 = vld [vmem:[%s15566_s0 + $0x88] sm:$0x3] }
  0x23   :  { %1326 = vmatpush2.msra.mxu1 %v211_v34  ;;  %942 = vmatprep.subr.mxu0 %v15583_v0  ;;  %v624_v34 = vrot.slane %v45_v18, 2 }
  0x24   :  { %1327 = vmatprep.subr.mxu1 %v15583_v0  ;;  %943 = vmatpush2.msra.mxu0 %v178_v35  ;;  %v48_v35 = vld [vmem:[%s15566_s0 + $0x40] sm:$0x3] }
  0x25   :  { %1328 = vmatpush2.msra.mxu1 %v210_v36  ;;  %944 = vmatprep.subr.mxu0 %v15583_v0  ;;  %v223_v36 = vld [vmem:[%s15565_s1 + $0x258] sm:$0xff] }
  0x26   :  { %1329 = vmatprep.subr.mxu1 %v15583_v0  ;;  %945 = vmatpush2.msra.mxu0 %v177_v37  ;;  %v9102_v37 = vsel %vm390_vm0, %v401_v30, %v402_v31 }
  0x27   :  { %1330 = vmatpush2.msra.mxu1 %v209_v38  ;;  %946 = vmatprep.subr.mxu0 %v15583_v0  ;;  %v404_v38 = vrot.slane %v48_v35, 1 }
  0x28   :  { %1331 = vmatprep.subr.mxu1 %v15583_v0  ;;  %947 = vmatpush2.msra.mxu0 %v176_v39  ;;  %v222_v39 = vld [vmem:[%s15565_s1 + $0x250] sm:$0xff] }
  0x29   :  { %1332 = vmatpush2.msra.mxu1 %v208_v40  ;;  %948 = vmatprep.subr.mxu0 %v15583_v0  ;;  %v9110_v40 = vsel %vm615_vm1, %v622_v25, %v624_v34  ;;  %v243_v25 = vld [vmem:[%s15565_s1 + $0x2f8] sm:$0xff] }
  0x2a   :  { %1333 = vmatprep.subr.mxu1 %v15583_v0  ;;  %949 = vmatpush2.msra.mxu0 %v175_v41  ;;  %v626_v41 = vrot.slane %v46_v27, 2  ;;  %v9257_v34 = vld [vmem:[%s15566_s0 + $0x98] sm:$0xff] }
  0x2b   :  { %1334 = vmatpush2.msra.mxu1 %v207_v42  ;;  %950 = vmatprep.subr.mxu0 %v15583_v0  ;;  %v627_v42 = vrot.slane %v9070_v26, 2 }
  0x2c   :  { %1335 = vmatprep.subr.mxu1 %v15583_v0  ;;  %951 = vmatpush2.msra.mxu0 %v174_v43  ;;  %v9116_v43 = vld [vmem:[%s15566_s0 + $0x50] sm:$0xff] }
  0x2d   :  { %1336 = vmatpush2.msra.mxu1 %v206_v44  ;;  %952 = vmatprep.subr.mxu0 %v15583_v0  ;;  %v49_v44 = vld [vmem:[%s15566_s0 + $0x48] sm:$0xff] }
  0x2e   :  { %1337 = vmatprep.subr.mxu1 %v15583_v0  ;;  %953 = vmatpush2.msra.mxu0 %v173_v45  ;;  %v221_v45 = vld [vmem:[%s15565_s1 + $0x248] sm:$0xff] }
  0x2f   :  { %1338 = vmatpush2.msra.mxu1 %v205_v46  ;;  %954 = vmatprep.subr.mxu0 %v15583_v0  ;;  %v9129_v46 = vsel %vm390_vm0, %v402_v31, %v404_v38 }
  0x30   :  { %1339 = vmatprep.subr.mxu1 %v15583_v0  ;;  %955 = vmatpush2.msra.mxu0 %v172_v47  ;;  %v406_v47 = vrot.slane %v49_v44, 1 }
  0x31   :  { %1340 = vmatpush2.msra.mxu1 %v204_v48  ;;  %956 = vmatprep.subr.mxu0 %v15583_v0  ;;  %v407_v48 = vrot.slane %v9116_v43, 1 }
  0x32   :  { %1341 = vmatprep.subr.mxu1 %v15583_v0  ;;  %957 = vmatpush2.msra.mxu0 %v171_v49  ;;  %v220_v49 = vld [vmem:[%s15565_s1 + $0x240] sm:$0xff] }
  0x33   :  { %1342 = vmatpush2.msra.mxu1 %v203_v50  ;;  %958 = vmatprep.subr.mxu0 %v15583_v0  ;;  %v9137_v50 = vsel %vm615_vm1, %v626_v41, %v627_v42  ;;  %v422_v41 = vrot.slane %v9257_v34, 1 }
  0x34   :  { %1343 = vmatprep.subr.mxu1 %v15583_v0  ;;  %959 = vmatpush2.msra.mxu0 %v170_v51  ;;  %v629_v51 = vrot.slane %v48_v35, 2  ;;  %v58_v35 = vld [vmem:[%s15566_s0 + $0x90] sm:$0xff] }
  0x35   :  { %1344 = vmatpush2.msra.mxu1 %v202_v52  ;;  %960 = vmatprep.subr.mxu0 %v15583_v0  ;;  %v51_v52 = vld [vmem:[%s15566_s0 + $0x58] sm:$0x3] }
  0x36   :  { %1345 = vmatprep.subr.mxu1 %v15583_v0  ;;  %961 = vmatpush2.msra.mxu0 %v169_v53  ;;  %v219_v53 = vld [vmem:[%s15565_s1 + $0x238] sm:$0xff] }
  0x37   :  { %1346 = vmatpush2.msra.mxu1 %v201_v54  ;;  %962 = vmatprep.subr.mxu0 %v15583_v0  ;;  %v9149_v54 = vsel %vm390_vm0, %v406_v47, %v407_v48  ;;  %v241_v47 = vld [vmem:[%s15565_s1 + $0x2e8] sm:$0xff] }
  0x38   :  { %1347 = vmatprep.subr.mxu1 %v15583_v0  ;;  %963 = vmatpush2.msra.mxu0 %v168_v55  ;;  %v409_v55 = vrot.slane %v51_v52, 1 }
  0x39   :  { %1348 = vmatpush2.msra.mxu1 %v200_v56  ;;  %964 = vmatprep.subr.mxu0 %v15583_v0  ;;  %v218_v56 = vld [vmem:[%s15565_s1 + $0x230] sm:$0xff] }
  0x3a   :  { %1349 = vmatprep.subr.mxu1 %v15583_v0  ;;  %965 = vmatpush2.msra.mxu0 %v167_v59  ;;  %v632_v59 = vrot.slane %v9116_v43, 2 }
  0x3b   :  { %1350 = vmatpush2.msra.mxu1 %v199_v60  ;;  %966 = vmatprep.subr.mxu0 %v15583_v0  ;;  %v9163_v60 = vld [vmem:[%s15566_s0 + $0x68] sm:$0xff] }
  0x3c   :  { %1351 = vmatprep.subr.mxu1 %v15583_v0  ;;  %967 = vmatpush2.msra.mxu0 %v166_v63  ;;  %v9176_v63 = vsel %vm390_vm0, %v407_v48, %v409_v55  ;;  %v412_v2 = vrot.slane %v9163_v60, 1  ;;  %v637_v13 = vrot.slane %v9163_v60, 2  ;;  %v647_v55 = vrot.slane %v9257_v34, 2 }
  0x3d   :  { %1352 = vmatpush2.msra.mxu1 %v198_v1  ;;  %968 = vmatprep.subr.mxu0 %v15583_v0  ;;  %v411_v1 = vrot.slane %v52_v61, 1 }
  0x3e   :  { %1353 = vmatprep.subr.mxu1 %v15583_v0  ;;  %969 = vmatpush2.msra.mxu0 %v165_v3  ;;  %v216_v3 = vld [vmem:[%s15565_s1 + $0x220] sm:$0xff] }
  0x3f   :  { %1354 = vmatpush2.msra.mxu1 %v197_v4  ;;  %970 = vmatprep.subr.mxu0 %v15583_v0 }
  0x40   :  { %972 = vmatprep.mubr.f32.mxu0 %v393_v5  ;;  %971 = vmatpush2.msra.mxu0 %v164_v9  ;;  %v634_v5 = vrot.slane %v51_v52, 2  ;;  %v414_v9 = vrot.slane %v54_v6, 1 }
  0x41   :  { %1355 = vmatprep.subr.mxu1 %v15583_v0  ;;  %973 = vmatmul.mubr.f32.vlgmr.msra.gmra.mxu0 %v40_v57  ;;  %v9157_v57 = vsel %vm615_vm1, %v627_v42, %v629_v51  ;;  %v258_v42 = vld [vmem:[%s15565_s1 + $0x370] sm:$0xff]  ;;  %v257_v51 = vld [vmem:[%s15565_s1 + $0x368] sm:$0xff] }
  0x42   :  { %1356 = vmatpush2.msra.mxu1 %v196_v11  ;;  %1357 = vmatprep.mubr.f32.mxu1 %v43_v12  ;;  %v9204_v11 = vsel %vm615_vm1, %v632_v59, %v634_v5  ;;  %v9223_v17 = vsel %vm390_vm0, %v412_v2, %v414_v9  ;;  %v63_v5 = vld [vmem:[%s15566_s0 + $0xb8] sm:$0x3] }
  0x43   :  { %1678 = vmatprep.subr.mxu0 %v15583_v0  ;;  %1358 = vmatmul.mubr.f32.vlgmr.msra.gmra.mxu1 %v618_v15  ;;  %v55_v15 = vld [vmem:[%s15566_s0 + $0x78] sm:$0xff]  ;;  %v429_v9 = vrot.slane %v63_v5, 1 }
  0x44   :  { %1679 = vmatpush1.msra.mxu0 %v227_v16  ;;  %977 = vmatprep.mubr.f32.mxu0 %v395_v19  ;;  %v213_v16 = vld [vmem:[%s15565_s1 + $0x208] sm:$0xff]  ;;  %v416_v18 = vrot.slane %v55_v15, 1  ;;  %v417_v19 = vrot.slane %v9210_v14, 1  ;;  %v641_v31 = vrot.slane %v55_v15, 2 }
  0x45   :  { %1362 = vmatprep.mubr.f32.mxu1 %v9033_v8  ;;  %978 = vmatmul.mubr.f32.gmra.mxu0 %v8998_v58  ;;  %v631_v58 = vrot.slane %v49_v44, 2 }
  0x46   :  { %1680 = vmatprep.subr.mxu0 %v15583_v0  ;;  %982 = vmatprep.mubr.f32.mxu0 %v9059_v20 }
  0x47   :  { %1681 = vmatpush1.msra.mxu0 %v226_v21  ;;  %1363 = vmatmul.mubr.f32.gmra.mxu1 %v620_v23  ;;  %v9184_v4 = vsel %vm615_vm1, %v631_v58, %v632_v59  ;;  %v212_v21 = vld [vmem:[%s15565_s1 + $0x200] sm:$0xff]  ;;  %v639_v23 = vrot.slane %v54_v6, 2  ;;  %v61_v58 = vld [vmem:[%s15566_s0 + $0xa8] sm:$0xff]  ;;  %v239_v6 = vld [vmem:[%s15565_s1 + $0x2d8] sm:$0xff] }
  0x48   :  { %1682 = vmatprep.subr.mxu0 %v15583_v0  ;;  %1367 = vmatprep.mubr.f32.mxu1 %v46_v27  ;;  %v240_v59 = vld [vmem:[%s15565_s1 + $0x2e0] sm:$0xff] }
  0x49   :  { %1683 = vmatpush1.msra.mxu0 %v225_v28  ;;  %v259_v28 = vld [vmem:[%s15565_s1 + $0x378] sm:$0xff]  ;;  %v9251_v30 = vsel %vm615_vm1, %v637_v13, %v639_v23  ;;  %2063 = vmatprep.subr.mxu1 %v15583_v0 }
  0x4a   :  { %983 = vmatmul.mubr.f32.gmra.mxu0 %v43_v12  ;;  %1684 = vmatprep.subr.mxu0 %v15583_v0  ;;  %v636_v12 = vrot.slane %v52_v61, 2 }
  0x4b   :  { %987 = vmatprep.mubr.f32.mxu0 %v9082_v29  ;;  %1685 = vmatpush1.msra.mxu0 %v224_v32  ;;  %v642_v32 = vrot.slane %v9210_v14, 2 }
  0x4c   :  { %1368 = vmatmul.mubr.f32.gmra.mxu1 %v9090_v33  ;;  %1686 = vmatprep.subr.mxu0 %v15583_v0  ;;  %v9231_v22 = vsel %vm615_vm1, %v636_v12, %v637_v13  ;;  %v651_v13 = vrot.slane %v61_v58, 2 }
  0x4d   :  { %1372 = vmatprep.mubr.f32.mxu1 %v9070_v26  ;;  %1687 = vmatpush1.msra.mxu0 %v223_v36  ;;  %v242_v36 = vld [vmem:[%s15565_s1 + $0x2f0] sm:$0xff] }
  0x4e   :  { %988 = vmatmul.mubr.f32.gmra.mxu0 %v9033_v8  ;;  %1688 = vmatprep.subr.mxu0 %v15583_v0  ;;  %v9196_v8 = vsel %vm390_vm0, %v411_v1, %v412_v2  ;;  %v256_v1 = vld [vmem:[%s15565_s1 + $0x360] sm:$0xff] }
  0x4f   :  { %992 = vmatprep.mubr.f32.mxu0 %v9102_v37  ;;  %1689 = vmatpush1.msra.mxu0 %v222_v39  ;;  %v421_v39 = vrot.slane %v58_v35, 1 }
  0x50   :  { %1373 = vmatmul.mubr.f32.gmra.mxu1 %v9110_v40  ;;  %1690 = vmatprep.subr.mxu0 %v15583_v0 }
  0x51   :  { %1377 = vmatprep.mubr.f32.mxu1 %v49_v44  ;;  %1691 = vmatpush1.msra.mxu0 %v221_v45  ;;  %v60_v45 = vld [vmem:[%s15566_s0 + $0xa0] sm:$0x3]  ;;  %v9290_v48 = vsel %vm390_vm0, %v421_v39, %v422_v41 }
  0x52   :  { %993 = vmatmul.mubr.f32.gmra.mxu0 %v46_v27  ;;  %1692 = vmatprep.subr.mxu0 %v15583_v0  ;;  %v419_v27 = vrot.slane %v57_v24, 1 }
  0x53   :  { %997 = vmatprep.mubr.f32.mxu0 %v9129_v46  ;;  %1693 = vmatpush1.msra.mxu0 %v220_v49  ;;  %v424_v49 = vrot.slane %v60_v45, 1 }
  0x54   :  { %1378 = vmatmul.mubr.f32.gmra.mxu1 %v9137_v50  ;;  %1694 = vmatprep.subr.mxu0 %v15583_v0  ;;  %v9270_v38 = vsel %vm390_vm0, %v417_v19, %v419_v27  ;;  %v654_v27 = vrot.slane %v63_v5, 2  ;;  %v71_v5 = vld [vmem:[%s15566_s0 + $0xf8] sm:$0xff] }
  0x55   :  { %1382 = vmatprep.mubr.f32.mxu1 %v9116_v43  ;;  %1695 = vmatpush1.msra.mxu0 %v219_v53  ;;  %v646_v53 = vrot.slane %v58_v35, 2 }
  0x56   :  { %998 = vmatmul.mubr.f32.gmra.mxu0 %v9070_v26  ;;  %1696 = vmatprep.subr.mxu0 %v15583_v0  ;;  %v9243_v26 = vsel %vm390_vm0, %v416_v18, %v417_v19  ;;  %v238_v18 = vld [vmem:[%s15565_s1 + $0x2d0] sm:$0xff] }
  0x57   :  { %1002 = vmatprep.mubr.f32.mxu0 %v9149_v54  ;;  %1697 = vmatpush1.msra.mxu0 %v218_v56  ;;  %v9304_v56 = vld [vmem:[%s15566_s0 + $0xb0] sm:$0xff]  ;;  %v9325_v2 = vsel %vm615_vm1, %v646_v53, %v647_v55  ;;  %v252_v53 = vld [vmem:[%s15565_s1 + $0x340] sm:$0xff] }
  0x58   :  { %1383 = vmatmul.mubr.f32.gmra.mxu1 %v9157_v57  ;;  %1698 = vmatprep.subr.mxu0 %v15583_v0 }
  0x59   :  { %1387 = vmatprep.mubr.f32.mxu1 %v52_v61  ;;  %1699 = vmatpush1.msra.mxu0 %v217_v62  ;;  %v427_v62 = vrot.slane %v9304_v56, 1 }
  0x5a   :  { %1003 = vmatmul.mubr.f32.gmra.mxu0 %v49_v44  ;;  %1700 = vmatprep.subr.mxu0 %v15583_v0  ;;  %v644_v44 = vrot.slane %v57_v24, 2  ;;  %v254_v24 = vld [vmem:[%s15565_s1 + $0x350] sm:$0xff] }
  0x5b   :  { %1007 = vmatprep.mubr.f32.mxu0 %v9176_v63  ;;  %1701 = vmatpush1.msra.mxu0 %v216_v3  ;;  %v649_v3 = vrot.slane %v60_v45, 2  ;;  %v9364_v19 = vsel %vm390_vm0, %v427_v62, %v429_v9  ;;  %v236_v45 = vld [vmem:[%s15565_s1 + $0x2c0] sm:$0xff]  ;;  %v70_v9 = vld [vmem:[%s15566_s0 + $0xf0] sm:$0xff] }
  0x5c   :  { %1388 = vmatmul.mubr.f32.gmra.mxu1 %v9184_v4  ;;  %1702 = vmatprep.subr.mxu0 %v15583_v0  ;;  %v9298_v52 = vsel %vm615_vm1, %v642_v32, %v644_v44  ;;  %v67_v44 = vld [vmem:[%s15566_s0 + $0xd8] sm:$0xff] }
  0x5d   :  { %1392 = vmatprep.mubr.f32.mxu1 %v9163_v60  ;;  %1703 = vmatpush1.msra.mxu0 %v215_v7  ;;  %v9345_v12 = vsel %vm615_vm1, %v647_v55, %v649_v3 }
  0x5e   :  { %1008 = vmatmul.mubr.f32.gmra.mxu0 %v9116_v43  ;;  %1704 = vmatprep.subr.mxu0 %v15583_v0  ;;  %v9278_v43 = vsel %vm615_vm1, %v641_v31, %v642_v32  ;;  %v237_v31 = vld [vmem:[%s15565_s1 + $0x2c8] sm:$0xff] }
  0x5f   :  { %1012 = vmatprep.mubr.f32.mxu0 %v9196_v8  ;;  %1705 = vmatpush1.msra.mxu0 %v214_v10  ;;  %v255_v10 = vld [vmem:[%s15565_s1 + $0x358] sm:$0xff] }
  0x60   :  { %1393 = vmatmul.mubr.f32.gmra.mxu1 %v9204_v11  ;;  %1706 = vmatprep.subr.mxu0 %v15583_v0 }
  0x61   :  { %1397 = vmatprep.mubr.f32.mxu1 %v55_v15  ;;  %1707 = vmatpush1.msra.mxu0 %v213_v16  ;;  %v64_v16 = vld [vmem:[%s15566_s0 + $0xc0] sm:$0xff] }
  0x62   :  { %1013 = vmatmul.mubr.f32.gmra.mxu0 %v52_v61  ;;  %1708 = vmatprep.subr.mxu0 %v15583_v0  ;;  %v426_v61 = vrot.slane %v61_v58, 1  ;;  %v656_v39 = vrot.slane %v64_v16, 2 }
  0x63   :  { %1017 = vmatprep.mubr.f32.mxu0 %v9223_v17  ;;  %1709 = vmatpush1.msra.mxu0 %v212_v21  ;;  %v431_v21 = vrot.slane %v64_v16, 1 }
  0x64   :  { %1398 = vmatmul.mubr.f32.gmra.mxu1 %v9231_v22  ;;  %1710 = vmatprep.subr.mxu0 %v15583_v0  ;;  %v9337_v7 = vsel %vm390_vm0, %v426_v61, %v427_v62 }
  0x65   :  { %1402 = vmatprep.mubr.f32.mxu1 %v9210_v14  ;;  %1711 = vmatpush2.msra.mxu0 %v243_v25 }
  0x66   :  { %1018 = vmatmul.mubr.f32.gmra.mxu0 %v9163_v60  ;;  %2064 = vmatpush1.msra.mxu1 %v259_v28  ;;  %v9317_v60 = vsel %vm390_vm0, %v422_v41, %v424_v49  ;;  %v66_v28 = vld [vmem:[%s15566_s0 + $0xd0] sm:$0x3]  ;;  %v436_v49 = vrot.slane %v67_v44, 1 }
  0x67   :  { %1022 = vmatprep.mubr.f32.mxu0 %v9243_v26  ;;  %1712 = vmatprep.subr.mxu0 %v15583_v0 }
  0x68   :  { %1403 = vmatmul.mubr.f32.gmra.mxu1 %v9251_v30  ;;  %1713 = vmatpush2.msra.mxu0 %v242_v36 }
  0x69   :  { %1407 = vmatprep.mubr.f32.mxu1 %v58_v35  ;;  %2065 = vmatprep.subr.mxu1 %v15583_v0 }
  0x6a   :  { %1023 = vmatmul.mubr.f32.gmra.mxu0 %v55_v15  ;;  %2066 = vmatpush1.msra.mxu1 %v258_v42  ;;  %v9351_v15 = vld [vmem:[%s15566_s0 + $0xc8] sm:$0xff]  ;;  %v68_v42 = vld [vmem:[%s15566_s0 + $0xe0] sm:$0xff] }
  0x6b   :  { %1027 = vmatprep.mubr.f32.mxu0 %v9270_v38  ;;  %1714 = vmatprep.subr.mxu0 %v15583_v0  ;;  %v432_v23 = vrot.slane %v9351_v15, 1  ;;  %v657_v41 = vrot.slane %v9351_v15, 2  ;;  %v662_v3 = vrot.slane %v68_v42, 2 }
  0x6c   :  { %1408 = vmatmul.mubr.f32.gmra.mxu1 %v9278_v43  ;;  %1715 = vmatpush2.msra.mxu0 %v241_v47 }
  0x6d   :  { %1412 = vmatprep.mubr.f32.mxu1 %v9257_v34  ;;  %2067 = vmatprep.subr.mxu1 %v15583_v0  ;;  %v9384_v32 = vsel %vm390_vm0, %v431_v21, %v432_v23  ;;  %v9416_v55 = vsel %vm615_vm1, %v656_v39, %v657_v41  ;;  %v72_v21 = vld [vmem:[%s15566_s0 + $0x100] sm:$0x3]  ;;  %v73_v39 = vld [vmem:[%s15566_s0 + $0x108] sm:$0xff] }
  0x6e   :  { %1028 = vmatmul.mubr.f32.gmra.mxu0 %v9210_v14  ;;  %2068 = vmatpush1.msra.mxu1 %v257_v51  ;;  %v652_v14 = vrot.slane %v9304_v56, 2  ;;  %v437_v51 = vrot.slane %v68_v42, 1 }
  0x6f   :  { %1032 = vmatprep.mubr.f32.mxu0 %v9290_v48  ;;  %1716 = vmatprep.subr.mxu0 %v15583_v0 }
  0x70   :  { %1413 = vmatmul.mubr.f32.gmra.mxu1 %v9298_v52  ;;  %1717 = vmatpush2.msra.mxu0 %v240_v59  ;;  %v9372_v25 = vsel %vm615_vm1, %v651_v13, %v652_v14  ;;  %v9392_v36 = vsel %vm615_vm1, %v652_v14, %v654_v27  ;;  %v9425_v59 = vsel %vm390_vm0, %v436_v49, %v437_v51  ;;  %v441_v14 = vrot.slane %v70_v9, 1 }
  0x71   :  { %1417 = vmatprep.mubr.f32.mxu1 %v61_v58  ;;  %2069 = vmatprep.subr.mxu1 %v15583_v0 }
  0x72   :  { %1033 = vmatmul.mubr.f32.gmra.mxu0 %v58_v35  ;;  %2070 = vmatpush1.msra.mxu1 %v256_v1  ;;  %v253_v35 = vld [vmem:[%s15565_s1 + $0x348] sm:$0xff]  ;;  %v661_v1 = vrot.slane %v67_v44, 2 }
  0x73   :  { %1037 = vmatprep.mubr.f32.mxu0 %v9317_v60  ;;  %1718 = vmatprep.subr.mxu0 %v15583_v0 }
  0x74   :  { %1418 = vmatmul.mubr.f32.gmra.mxu1 %v9325_v2  ;;  %1719 = vmatpush2.msra.mxu0 %v239_v6  ;;  %v235_v6 = vld [vmem:[%s15565_s1 + $0x2b8] sm:$0xff] }
  0x75   :  { %1422 = vmatprep.mubr.f32.mxu1 %v9304_v56  ;;  %2071 = vmatprep.subr.mxu1 %v15583_v0 }
  0x76   :  { %1038 = vmatmul.mubr.f32.gmra.mxu0 %v9257_v34  ;;  %2072 = vmatpush1.msra.mxu1 %v255_v10  ;;  %v434_v34 = vrot.slane %v66_v28, 1  ;;  %v251_v10 = vld [vmem:[%s15565_s1 + $0x338] sm:$0xff] }
  0x77   :  { %1042 = vmatprep.mubr.f32.mxu0 %v9337_v7  ;;  %1720 = vmatprep.subr.mxu0 %v15583_v0 }
  0x78   :  { %1423 = vmatmul.mubr.f32.gmra.mxu1 %v9345_v12  ;;  %1721 = vmatpush2.msra.mxu0 %v238_v18  ;;  %v9409_v47 = vsel %vm390_vm0, %v432_v23, %v434_v34  ;;  %v74_v34 = vld [vmem:[%s15566_s0 + $0x110] sm:$0xff] }
  0x79   :  { %1427 = vmatprep.mubr.f32.mxu1 %v64_v16  ;;  %2073 = vmatprep.subr.mxu1 %v15583_v0  ;;  %v447_v49 = vrot.slane %v74_v34, 1 }
  0x7a   :  { %1043 = vmatmul.mubr.f32.gmra.mxu0 %v61_v58  ;;  %2074 = vmatpush1.msra.mxu1 %v254_v24  ;;  %v69_v58 = vld [vmem:[%s15566_s0 + $0xe8] sm:$0x3]  ;;  %v444_v24 = vrot.slane %v72_v21, 1 }
  0x7b   :  { %1047 = vmatprep.mubr.f32.mxu0 %v9364_v19  ;;  %1722 = vmatprep.subr.mxu0 %v15583_v0  ;;  %v439_v61 = vrot.slane %v69_v58, 1  ;;  %v664_v18 = vrot.slane %v69_v58, 2 }
  0x7c   :  { %1428 = vmatmul.mubr.f32.gmra.mxu1 %v9372_v25  ;;  %1723 = vmatpush2.msra.mxu0 %v237_v31  ;;  %v667_v31 = vrot.slane %v71_v5, 2 }
  0x7d   :  { %1432 = vmatprep.mubr.f32.mxu1 %v9351_v15  ;;  %2075 = vmatprep.subr.mxu1 %v15583_v0  ;;  %v9448_v13 = vsel %vm390_vm0, %v437_v51, %v439_v61  ;;  %v9464_v27 = vsel %vm615_vm1, %v662_v3, %v664_v18  ;;  %v669_v51 = vrot.slane %v72_v21, 2 }
  0x7e   :  { %1048 = vmatmul.mubr.f32.gmra.mxu0 %v9304_v56  ;;  %2076 = vmatpush1.msra.mxu1 %v253_v35  ;;  %v659_v56 = vrot.slane %v66_v28, 2  ;;  %v666_v28 = vrot.slane %v70_v9, 2  ;;  %v234_v35 = vld [vmem:[%s15565_s1 + $0x2b0] sm:$0xff] }
  0x7f   :  { %1052 = vmatprep.mubr.f32.mxu0 %v9384_v32  ;;  %1724 = vmatprep.subr.mxu0 %v15583_v0  ;;  %v9497_v61 = vsel %vm615_vm1, %v667_v31, %v669_v51  ;;  %v9543_v51 = vld [vmem:[%s15566_s0 + $0x140] sm:$0xff] }
  0x80   :  { %1433 = vmatmul.mubr.f32.gmra.mxu1 %v9392_v36  ;;  %1725 = vmatpush2.msra.mxu0 %v236_v45  ;;  %v9429_v62 = vsel %vm615_vm1, %v657_v41, %v659_v56  ;;  %v250_v41 = vld [vmem:[%s15565_s1 + $0x330] sm:$0xff]  ;;  %v446_v45 = vrot.slane %v73_v39, 1 }
  0x81   :  { %1437 = vmatprep.mubr.f32.mxu1 %v67_v44  ;;  %2077 = vmatprep.subr.mxu1 %v15583_v0 }
  0x82   :  { %1053 = vmatmul.mubr.f32.gmra.mxu0 %v64_v16  ;;  %2078 = vmatpush1.msra.mxu1 %v252_v53  ;;  %v442_v16 = vrot.slane %v71_v5, 1  ;;  %v75_v53 = vld [vmem:[%s15566_s0 + $0x118] sm:$0x3]  ;;  %v9494_v56 = vsel %vm390_vm0, %v446_v45, %v447_v49 }
  0x83   :  { %1057 = vmatprep.mubr.f32.mxu0 %v9409_v47  ;;  %1726 = vmatprep.subr.mxu0 %v15583_v0  ;;  %v449_v58 = vrot.slane %v75_v53, 1 }
  0x84   :  { %1438 = vmatmul.mubr.f32.gmra.mxu1 %v9416_v55  ;;  %2079 = vmatprep.subr.mxu1 %v15583_v0  ;;  %v9461_v23 = vsel %vm390_vm0, %v441_v14, %v442_v16  ;;  %v249_v14 = vld [vmem:[%s15565_s1 + $0x328] sm:$0xff] }
  0x85   :  { %1442 = vmatprep.mubr.f32.mxu1 %v68_v42  ;;  %1727 = vmatpush2.msra.mxu0 %v235_v6  ;;  %v9502_v6 = vld [vmem:[%s15566_s0 + $0x128] sm:$0xff] }
  0x86   :  { %1058 = vmatmul.mubr.f32.gmra.mxu0 %v9351_v15  ;;  %1728 = vmatprep.subr.mxu0 %v15583_v0  ;;  %v9452_v15 = vsel %vm615_vm1, %v661_v1, %v662_v3  ;;  %v671_v1 = vrot.slane %v73_v39, 2  ;;  %v672_v3 = vrot.slane %v74_v34, 2  ;;  %v452_v21 = vrot.slane %v9502_v6, 1 }
  0x87   :  { %1062 = vmatprep.mubr.f32.mxu0 %v9425_v59  ;;  %2080 = vmatpush1.msra.mxu1 %v251_v10  ;;  %v76_v10 = vld [vmem:[%s15566_s0 + $0x120] sm:$0xff] }
  0x88   :  { %1443 = vmatmul.mubr.f32.gmra.mxu1 %v9429_v62  ;;  %2081 = vmatprep.subr.mxu1 %v15583_v0  ;;  %v451_v18 = vrot.slane %v76_v10, 1 }
  0x89   :  { %1447 = vmatprep.mubr.f32.mxu1 %v70_v9  ;;  %1729 = vmatpush2.msra.mxu0 %v234_v35 }
  0x8a   :  { %1063 = vmatmul.mubr.f32.gmra.mxu0 %v67_v44  ;;  %v9481_v44 = vsel %vm390_vm0, %v442_v16, %v444_v24  ;;  %1730 = vmatprep.subr.mxu0 %v15583_v0  ;;  %v9516_v16 = vsel %vm390_vm0, %v447_v49, %v449_v58  ;;  %v674_v24 = vrot.slane %v75_v53, 2  ;;  %v677_v49 = vrot.slane %v9502_v6, 2  ;;  %v232_v53 = vld [vmem:[%s15565_s1 + $0x2a0] sm:$0xff]  ;;  %v79_v58 = vld [vmem:[%s15566_s0 + $0x138] sm:$0xff] }
  0x8b   :  { %1067 = vmatprep.mubr.f32.mxu0 %v9448_v13  ;;  %2082 = vmatpush1.msra.mxu1 %v250_v41  ;;  %15945 = vst [vmem:[#allocation3_spill] sm:$0xff] %v9516_v16  ;;  %v248_v41 = vld [vmem:[%s15565_s1 + $0x320] sm:$0xff] }
  0x8c   :  { %1448 = vmatmul.mubr.f32.gmra.mxu1 %v9452_v15  ;;  %2083 = vmatprep.subr.mxu1 %v15583_v0  ;;  %v9537_v45 = vsel %vm615_vm1, %v672_v3, %v674_v24 }
  0x8d   :  { %1452 = vmatprep.mubr.f32.mxu1 %v71_v5  ;;  %2084 = vmatpush1.msra.mxu1 %v249_v14  ;;  %15948 = vst [vmem:[#allocation6_spill] sm:$0xff] %v9537_v45  ;;  %v246_v14 = vld [vmem:[%s15565_s1 + $0x310] sm:$0xff] }
  0x8e   :  { %1068 = vmatmul.mubr.f32.gmra.mxu0 %v68_v42  ;;  %v9485_v42 = vsel %vm615_vm1, %v666_v28, %v667_v31  ;;  %v78_v28 = vld [vmem:[%s15566_s0 + $0x130] sm:$0x3]  ;;  %2085 = vmatprep.subr.mxu1 %v15583_v0  ;;  %v9530_v31 = vsel %vm390_vm0, %v451_v18, %v452_v21 }
  0x8f   :  { %1072 = vmatprep.mubr.f32.mxu0 %v9461_v23  ;;  %15947 = vst [vmem:[#allocation5_spill] sm:$0xff] %v9530_v31  ;;  %v454_v35 = vrot.slane %v78_v28, 1  ;;  %2086 = vmatpush1.msra.mxu1 %v248_v41  ;;  %v679_v24 = vrot.slane %v78_v28, 2  ;;  %v81_v41 = vld [vmem:[%s15566_s0 + $0x148] sm:$0x3] }
  0x90   :  { %1453 = vmatmul.mubr.f32.gmra.mxu1 %v9464_v27  ;;  %2087 = vmatprep.subr.mxu1 %v15583_v0  ;;  %v459_v28 = vrot.slane %v81_v41, 1 }
  0x91   :  { %1457 = vmatprep.mubr.f32.mxu1 %v73_v39 }
  0x92   :  { %1073 = vmatmul.mubr.f32.gmra.mxu0 %v70_v9  ;;  %v233_v9 = vld [vmem:[%s15565_s1 + $0x2a8] sm:$0xff] }
  0x93   :  { %1077 = vmatprep.mubr.f32.mxu0 %v9481_v44  ;;  %1731 = vmatpush2.msra.mxu0 %v233_v9  ;;  %v456_v9 = vrot.slane %v79_v58, 1 }
  0x94   :  { %1458 = vmatmul.mubr.f32.gmra.mxu1 %v9485_v42  ;;  %1732 = vmatprep.subr.mxu0 %v15583_v0 }
  0x95   :  { %1462 = vmatprep.mubr.f32.mxu1 %v74_v34  ;;  %1733 = vmatpush2.msra.mxu0 %v232_v53  ;;  %v682_v53 = vrot.slane %v9543_v51, 2 }
  0x96   :  { %1078 = vmatmul.mubr.f32.gmra.mxu0 %v71_v5  ;;  %v9521_v5 = vsel %vm615_vm1, %v671_v1, %v672_v3  ;;  %v247_v1 = vld [vmem:[%s15565_s1 + $0x318] sm:$0xff]  ;;  %v9558_v3 = vsel %vm390_vm0, %v452_v21, %v454_v35  ;;  %1734 = vmatprep.subr.mxu0 %v15583_v0  ;;  %v245_v21 = vld [vmem:[%s15565_s1 + $0x308] sm:$0xff] }
  0x97   :  { %1082 = vmatprep.mubr.f32.mxu0 %v9494_v56  ;;  %15946 = vst [vmem:[#allocation4_spill] sm:$0xff] %v9521_v5  ;;  %15949 = vst [vmem:[#allocation7_spill] sm:$0xff] %v9558_v3  ;;  %2088 = vmatpush1.msra.mxu1 %v247_v1  ;;  %v9589_v1 = vld [vmem:[%s15566_s0 + $0x158] sm:$0xff] }
  0x98   :  { %1463 = vmatmul.mubr.f32.gmra.mxu1 %v9497_v61  ;;  %2089 = vmatprep.subr.mxu1 %v15583_v0 }
  0x99   :  { %1467 = vmatprep.mubr.f32.mxu1 %v76_v10  ;;  %2090 = vmatpush1.msra.mxu1 %v246_v14  ;;  %v244_v14 = vld [vmem:[%s15565_s1 + $0x300] sm:$0xff] }
  0x9a   :  { %1083 = vmatmul.mubr.f32.gmra.mxu0 %v73_v39  ;;  %v676_v39 = vrot.slane %v76_v10, 2  ;;  %2091 = vmatprep.subr.mxu1 %v15583_v0 }
  0x9b   :  { %1087 = vmatprep.mubr.f32.mxu0 %v9516_v16  ;;  %2092 = vmatpush1.msra.mxu1 %v245_v21 }
  0x9c   :  { %1468 = vmatmul.mubr.f32.gmra.mxu1 %v9521_v5  ;;  %v9566_v18 = vsel %vm615_vm1, %v676_v39, %v677_v49  ;;  %v681_v39 = vrot.slane %v79_v58, 2  ;;  %2093 = vmatprep.subr.mxu1 %v15583_v0 }
  0x9d   :  { %1472 = vmatprep.mubr.f32.mxu1 %v9502_v6  ;;  %15950 = vst [vmem:[#allocation8_spill] sm:$0xff] %v9566_v18  ;;  %2094 = vmatpush1.msra.mxu1 %v244_v14 }
  0x9e   :  { %1088 = vmatmul.mubr.f32.gmra.mxu0 %v74_v34  ;;  %v457_v34 = vrot.slane %v9543_v51, 1  ;;  %2095 = vmatprep.subr.mxu1 %v15583_v0 }
  0x9f   :  { %1092 = vmatprep.mubr.f32.mxu0 %v9530_v31 }
  0xa0   :  { %1473 = vmatmul.mubr.f32.gmra.mxu1 %v9537_v45  ;;  %v9578_v35 = vsel %vm390_vm0, %v456_v9, %v457_v34  ;;  %v231_v9 = vld [vmem:[%s15565_s1 + $0x298] sm:$0xff] }
  0xa1   :  { %1477 = vmatprep.mubr.f32.mxu1 %v79_v58  ;;  %15951 = vst [vmem:[#allocation9_spill] sm:$0xff] %v9578_v35  ;;  %1735 = vmatpush2.msra.mxu0 %v231_v9  ;;  %v84_v9 = vld [vmem:[%s15566_s0 + $0x160] sm:$0x3] }
  0xa2   :  { %1093 = vmatmul.mubr.f32.gmra.mxu0 %v76_v10  ;;  %v9583_v10 = vsel %vm615_vm1, %v677_v49, %v679_v24  ;;  %v82_v49 = vld [vmem:[%s15566_s0 + $0x150] sm:$0xff]  ;;  %v9605_v24 = vsel %vm390_vm0, %v457_v34, %v459_v28  ;;  %1736 = vmatprep.subr.mxu0 %v15583_v0 }
  0xa3   :  { %1097 = vmatprep.mubr.f32.mxu0 %v9558_v3  ;;  %15952 = vst [vmem:[#allocation10_spill] sm:$0xff] %v9583_v10  ;;  %15953 = vst [vmem:[#allocation11_spill] sm:$0xff] %v9605_v24  ;;  %v461_v21 = vrot.slane %v82_v49, 1  ;;  %v9613_v3 = vsel %vm615_vm1, %v681_v39, %v682_v53  ;;  %v274_v34 = vld [vmem:[%s15565_s1 + $0x3f0] sm:$0xff]  ;;  %v686_v14 = vrot.slane %v82_v49, 2 }
  0xa4   :  { %1478 = vmatmul.mubr.f32.gmra.mxu1 %v9566_v18  ;;  %v275_v18 = vld [vmem:[%s15565_s1 + $0x3f8] sm:$0xff]  ;;  %15954 = vst [vmem:[#allocation12_spill] sm:$0xff] %v9613_v3 }
  0xa5   :  { %1482 = vmatprep.mubr.f32.mxu1 %v9543_v51  ;;  %2096 = vmatpush2.msra.mxu1 %v275_v18  ;;  %v687_v18 = vrot.slane %v9589_v1, 2 }
  0xa6   :  { %1098 = vmatmul.mubr.f32.gmra.mxu0 %v9502_v6  ;;  %v462_v6 = vrot.slane %v9589_v1, 1  ;;  %2097 = vmatprep.subr.mxu1 %v15583_v0  ;;  %v85_v0 = vld [vmem:[%s15566_s0 + $0x168] sm:$0xff] }
  0xa7   :  { %1102 = vmatprep.mubr.f32.mxu0 %v9578_v35  ;;  %v684_v35 = vrot.slane %v81_v41, 2  ;;  %v464_v41 = vrot.slane %v84_v9, 1  ;;  %2098 = vmatpush2.msra.mxu1 %v274_v34  ;;  %v466_v34 = vrot.slane %v85_v0, 1 }
  0xa8   :  { %1483 = vmatmul.mubr.f32.gmra.mxu1 %v9583_v10  ;;  %v9625_v28 = vsel %vm390_vm0, %v461_v21, %v462_v6  ;;  %v9639_v21 = vld [vmem:[%s15566_s0 + $0x170] sm:$0xff]  ;;  %v9660_v10 = vsel %vm615_vm1, %v686_v14, %v687_v18 }
  0xa9   :  { %1487 = vmatprep.mubr.f32.mxu1 %v82_v49  ;;  %15955 = vst [vmem:[#allocation13_spill] sm:$0xff] %v9625_v28  ;;  %v9633_v39 = vsel %vm615_vm1, %v682_v53, %v684_v35  ;;  %v230_v35 = vld [vmem:[%s15565_s1 + $0x290] sm:$0xff]  ;;  %v272_v53 = vld [vmem:[%s15565_s1 + $0x3e0] sm:$0xff]  ;;  %15959 = vst [vmem:[#allocation16_spill] sm:$0xff] %v9660_v10 }
  0xaa   :  { %1103 = vmatmul.mubr.f32.gmra.mxu0 %v79_v58  ;;  %v273_v58 = vld [vmem:[%s15565_s1 + $0x3e8] sm:$0xff]  ;;  %15956 = vst [vmem:[#allocation14_spill] sm:$0xff] %v9633_v39  ;;  %v270_v14 = vld [vmem:[%s15565_s1 + $0x3d0] sm:$0xff] }
  0xab   :  { %1107 = vmatprep.mubr.f32.mxu0 %v9605_v24  ;;  %v467_v24 = vrot.slane %v9639_v21, 1  ;;  %1737 = vmatpush2.msra.mxu0 %v230_v35  ;;  %v691_v35 = vrot.slane %v85_v0, 2 }
  0xac   :  { %1488 = vmatmul.mubr.f32.gmra.mxu1 %v9613_v3  ;;  %v15957_v3 = vmov 0.0  }
  0xad   :  { %1492 = vmatprep.mubr.f32.mxu1 %v9589_v1  ;;  %2099 = vmatprep.subr.mxu1 %v15957_v3 }
  0xae   :  { %1108 = vmatmul.mubr.f32.gmra.mxu0 %v9543_v51  ;;  %2100 = vmatpush2.msra.mxu1 %v273_v58  ;;  %v9655_v51 = vsel %vm390_vm0, %v462_v6, %v464_v41  ;;  %v87_v58 = vld [vmem:[%s15566_s0 + $0x178] sm:$0x3]  ;;  %v9672_v41 = vsel %vm390_vm0, %v466_v34, %v467_v24  ;;  %v94_v34 = vld [vmem:[%s15566_s0 + $0x1b0] sm:$0xff] }
  0xaf   :  { %1112 = vmatprep.mubr.f32.mxu0 %v9625_v28  ;;  %15958 = vst [vmem:[#allocation15_spill] sm:$0xff] %v9655_v51  ;;  %2101 = vmatprep.subr.mxu1 %v15957_v3  ;;  %v689_v28 = vrot.slane %v84_v9, 2  ;;  %v271_v6 = vld [vmem:[%s15565_s1 + $0x3d8] sm:$0xff]  ;;  %15960 = vst [vmem:[#allocation17_spill] sm:$0xff] %v9672_v41  ;;  %v469_v9 = vrot.slane %v87_v58, 1 }
  0xb0   :  { %1493 = vmatmul.mubr.f32.gmra.mxu1 %v9633_v39  ;;  %1738 = vmatprep.subr.mxu0 %v15957_v3  ;;  %v229_v39 = vld [vmem:[%s15565_s1 + $0x288] sm:$0xff] }
  0xb1   :  { %1497 = vmatprep.mubr.f32.mxu1 %v85_v0  ;;  %2102 = vmatpush2.msra.mxu1 %v272_v53  ;;  %v692_v53 = vrot.slane %v9639_v21, 2 }
  0xb2   :  { %1113 = vmatmul.mubr.f32.gmra.mxu0 %v82_v49  ;;  %2103 = vmatprep.subr.mxu1 %v15957_v3  ;;  %v9680_v49 = vsel %vm615_vm1, %v687_v18, %v689_v28  ;;  %v88_v28 = vld [vmem:[%s15566_s0 + $0x180] sm:$0xff]  ;;  %v269_v18 = vld [vmem:[%s15565_s1 + $0x3c8] sm:$0xff] }
  0xb3   :  { %1117 = vmatprep.mubr.f32.mxu0 %v9655_v51  ;;  %15961 = vst [vmem:[#allocation18_spill] sm:$0xff] %v9680_v49  ;;  %2104 = vmatpush2.msra.mxu1 %v271_v6  ;;  %v9702_v51 = vsel %vm390_vm0, %v467_v24, %v469_v9  ;;  %v471_v6 = vrot.slane %v94_v34, 1  ;;  %v9710_v45 = vsel %vm615_vm1, %v691_v35, %v692_v53  ;;  %v89_v24 = vld [vmem:[%s15566_s0 + $0x188] sm:$0xff]  ;;  %v268_v9 = vld [vmem:[%s15565_s1 + $0x3c0] sm:$0xff] }
  0xb4   :  { %1498 = vmatmul.mubr.f32.gmra.mxu1 %v9660_v10  ;;  %v9689_v10 = vld [vmem:[%s15566_s0 + $0x1b8] sm:$0xff]  ;;  %2105 = vmatprep.subr.mxu1 %v15957_v3  ;;  %15962 = vst [vmem:[#allocation19_spill] sm:$0xff] %v9702_v51  ;;  %15963 = vst [vmem:[#allocation20_spill] sm:$0xff] %v9710_v45 }
  0xb5   :  { %1502 = vmatprep.mubr.f32.mxu1 %v9639_v21  ;;  %2106 = vmatpush2.msra.mxu1 %v270_v14  ;;  %v96_v14 = vld [vmem:[%s15566_s0 + $0x1c0] sm:$0x3] }
  0xb6   :  { %1118 = vmatmul.mubr.f32.gmra.mxu0 %v9589_v1  ;;  %v472_v1 = vrot.slane %v9689_v10, 1  ;;  %2107 = vmatprep.subr.mxu1 %v15957_v3  ;;  %v474_v35 = vrot.slane %v96_v14, 1 }
  0xb7   :  { %1122 = vmatprep.mubr.f32.mxu0 %v9672_v41  ;;  %v694_v41 = vrot.slane %v87_v58, 2  ;;  %2108 = vmatpush2.msra.mxu1 %v269_v18  ;;  %v696_v18 = vrot.slane %v94_v34, 2 }
  0xb8   :  { %1503 = vmatmul.mubr.f32.gmra.mxu1 %v9680_v49  ;;  %2109 = vmatprep.subr.mxu1 %v15957_v3  ;;  %v473_v58 = vsel %vm390_vm0, %v471_v6, %v472_v1  ;;  %v697_v49 = vrot.slane %v9689_v10, 2  ;;  %v97_v6 = vld [vmem:[%s15566_s0 + $0x1c8] sm:$0xff] }
  0xb9   :  { %1507 = vmatprep.mubr.f32.mxu1 %v88_v28  ;;  %1739 = vmatpush2.msra.mxu0 %v229_v39  ;;  %v9730_v28 = vsel %vm615_vm1, %v692_v53, %v694_v41  ;;  %v9736_v39 = vld [vmem:[%s15566_s0 + $0x1d0] sm:$0xff]  ;;  %v475_v53 = vsel %vm390_vm0, %v472_v1, %v474_v35  ;;  %v228_v1 = vld [vmem:[%s15565_s1 + $0x280] sm:$0xff] }
  0xba   :  { %1123 = vmatmul.mubr.f32.gmra.mxu0 %v85_v0  ;;  %v267_v0 = vld [vmem:[%s15565_s1 + $0x3b8] sm:$0xff]  ;;  %1740 = vmatprep.subr.mxu0 %v15957_v3  ;;  %15964 = vst [vmem:[#allocation21_spill] sm:$0xff] %v9730_v28  ;;  %v266_v41 = vld [vmem:[%s15565_s1 + $0x3b0] sm:$0xff]  ;;  %v264_v35 = vld [vmem:[%s15565_s1 + $0x3a0] sm:$0xff] }
  0xbb   :  { %1127 = vmatprep.mubr.f32.mxu0 %v9702_v51  ;;  %2110 = vmatpush2.msra.mxu1 %v268_v9  ;;  %v477_v9 = vrot.slane %v9736_v39, 1  ;;  %v699_v51 = vrot.slane %v96_v14, 2 }
  0xbc   :  { %1508 = vmatmul.mubr.f32.gmra.mxu1 %v9710_v45  ;;  %2111 = vmatprep.subr.mxu1 %v15957_v3  ;;  %v698_v45 = vsel %vm615_vm1, %v696_v18, %v697_v49  ;;  %v701_v18 = vrot.slane %v97_v6, 2 }
  0xbd   :  { %1512 = vmatprep.mubr.f32.mxu1 %v89_v24  ;;  %2112 = vmatpush2.msra.mxu1 %v267_v0  ;;  %v476_v24 = vrot.slane %v97_v6, 1 }
  0xbe   :  { %1128 = vmatmul.mubr.f32.gmra.mxu0 %v9639_v21  ;;  %2113 = vmatprep.subr.mxu1 %v15957_v3  ;;  %v265_v21 = vld [vmem:[%s15565_s1 + $0x3a8] sm:$0xff] }
  0xbf   :  { %1132 = vmatprep.mubr.f32.mxu0 %v473_v58  ;;  %v99_v58 = vld [vmem:[%s15566_s0 + $0x1d8] sm:$0x3]  ;;  %2114 = vmatpush2.msra.mxu1 %v266_v41  ;;  %v9765_v14 = vsel %vm390_vm0, %v476_v24, %v477_v9  ;;  %v702_v41 = vrot.slane %v9736_v39, 2  ;;  %v100_v24 = vld [vmem:[%s15566_s0 + $0x1e0] sm:$0xff] }
  0xc0   :  { %1513 = vmatmul.mubr.f32.gmra.mxu1 %v9730_v28  ;;  %2115 = vmatprep.subr.mxu1 %v15957_v3  ;;  %15965 = vst [vmem:[#allocation22_spill] sm:$0xff] %v9765_v14  ;;  %v479_v0 = vrot.slane %v99_v58, 1  ;;  %v704_v28 = vrot.slane %v99_v58, 2 }
  0xc1   :  { %1517 = vmatprep.mubr.f32.mxu1 %v97_v6  ;;  %2116 = vmatpush2.msra.mxu1 %v265_v21  ;;  %v481_v21 = vrot.slane %v100_v24, 1 }
  0xc2   :  { %1133 = vmatmul.mubr.f32.gmra.mxu0 %v94_v34  ;;  %2117 = vmatprep.subr.mxu1 %v15957_v3  ;;  %v700_v34 = vsel %vm615_vm1, %v697_v49, %v699_v51  ;;  %v263_v51 = vld [vmem:[%s15565_s1 + $0x398] sm:$0xff]  ;;  %v9789_v49 = vsel %vm390_vm0, %v477_v9, %v479_v0  ;;  %v261_v9 = vld [vmem:[%s15565_s1 + $0x388] sm:$0xff] }
  0xc3   :  { %1137 = vmatprep.mubr.f32.mxu0 %v475_v53  ;;  %v101_v53 = vld [vmem:[%s15566_s0 + $0x1e8] sm:$0xff]  ;;  %1741 = vmatpush2.msra.mxu0 %v228_v1  ;;  %15966 = vst [vmem:[#allocation23_spill] sm:$0xff] %v9789_v49 }
  0xc4   :  { %1518 = vmatmul.mubr.f32.gmra.mxu1 %v698_v45  ;;  %v9777_v45 = vld [vmem:[%s15565_s1 + $0x478] sm:$0xff]  ;;  %v482_v1 = vrot.slane %v101_v53, 1 }
  0xc5   :  { %1522 = vmatprep.mubr.f32.mxu1 %v9736_v39  ;;  %2118 = vmatpush2.msra.mxu1 %v264_v35  ;;  %v9796_v35 = vsel %vm615_vm1, %v701_v18, %v702_v41  ;;  %v9815_v18 = vsel %vm615_vm1, %v702_v41, %v704_v28 }
  0xc6   :  { %1138 = vmatmul.mubr.f32.gmra.mxu0 %v9689_v10  ;;  %2119 = vmatprep.subr.mxu1 %v15957_v3  ;;  %v262_v10 = vld [vmem:[%s15565_s1 + $0x390] sm:$0xff]  ;;  %15967 = vst [vmem:[#allocation24_spill] sm:$0xff] %v9796_v35  ;;  %v9808_v0 = vsel %vm390_vm0, %v481_v21, %v482_v1  ;;  %15969 = vst [vmem:[#allocation26_spill] sm:$0xff] %v9815_v18  ;;  %v103_v21 = vld [vmem:[%s15566_s0 + $0x1f8] sm:$0xff] }
  0xc7   :  { %1142 = vmatprep.mubr.f32.mxu0 %v9765_v14  ;;  %8428 = vmatprep.subr.mxu0 %v9777_v45  ;;  %15968 = vst [vmem:[#allocation25_spill] sm:$0xff] %v9808_v0  ;;  %v707_v14 = vrot.slane %v101_v53, 2  ;;  %v486_v41 = vrot.slane %v103_v21, 1 }
  0xc8   :  { %1523 = vmatmul.mubr.f32.gmra.mxu1 %v700_v34  ;;  %v102_v34 = vld [vmem:[%s15566_s0 + $0x1f0] sm:$0x3] }
  0xc9   :  { %1527 = vmatprep.mubr.f32.mxu1 %v100_v24  ;;  %2120 = vmatpush2.msra.mxu1 %v263_v51  ;;  %v484_v58 = vrot.slane %v102_v34, 1  ;;  %v706_v51 = vrot.slane %v100_v24, 2 }
  0xca   :  { %1143 = vmatmul.mubr.f32.gmra.mxu0 %v97_v6  ;;  %2121 = vmatprep.subr.mxu1 %v15957_v3  ;;  %v260_v6 = vld [vmem:[%s15565_s1 + $0x380] sm:$0xff] }
  0xcb   :  { %1147 = vmatprep.mubr.f32.mxu0 %v9789_v49  ;;  %2122 = vmatpush2.msra.mxu1 %v262_v10  ;;  %v104_v10 = vld [vmem:[%s15566_s0 + $0x200] sm:$0xff]  ;;  %v9828_v28 = vsel %vm390_vm0, %v482_v1, %v484_v58 }
  0xcc   :  { %1528 = vmatmul.mubr.f32.gmra.mxu1 %v9796_v35  ;;  %2123 = vmatprep.subr.mxu1 %v15957_v3  ;;  %15970 = vst [vmem:[#allocation27_spill] sm:$0xff] %v9828_v28  ;;  %v487_v49 = vrot.slane %v104_v10, 1  ;;  %v105_v35 = vld [vmem:[%s15566_s0 + $0x208] sm:$0x3] }
  0xcd   :  { %1532 = vmatprep.mubr.f32.mxu1 %v101_v53  ;;  %2124 = vmatpush2.msra.mxu1 %v261_v9  ;;  %v9831_v9 = vsel %vm615_vm1, %v706_v51, %v707_v14  ;;  %v489_v1 = vrot.slane %v105_v35, 1  ;;  %v711_v51 = vrot.slane %v103_v21, 2 }
  0xce   :  { %1148 = vmatmul.mubr.f32.gmra.mxu0 %v9736_v39  ;;  %2125 = vmatprep.subr.mxu1 %v15957_v3  ;;  %15971 = vst [vmem:[#allocation28_spill] sm:$0xff] %v9831_v9  ;;  %v709_v39 = vrot.slane %v102_v34, 2  ;;  %v712_v3 = vrot.slane %v104_v10, 2  ;;  %v107_v34 = vld [vmem:[%s15566_s0 + $0x218] sm:$0xff] }
  0xcf   :  { %1152 = vmatprep.mubr.f32.mxu0 %v9808_v0  ;;  %2126 = vmatpush2.msra.mxu1 %v260_v6  ;;  %v9839_v6 = vsel %vm390_vm0, %v486_v41, %v487_v49  ;;  %v9853_v41 = vsel %vm390_vm0, %v487_v49, %v489_v1 }
  0xd0   :  { %1533 = vmatmul.mubr.f32.gmra.mxu1 %v9815_v18  ;;  %15972 = vst [vmem:[#allocation29_spill] sm:$0xff] %v9839_v6  ;;  %v9842_v58 = vsel %vm615_vm1, %v707_v14, %v709_v39  ;;  %15974 = vst [vmem:[#allocation31_spill] sm:$0xff] %v9853_v41  ;;  %v492_v39 = vrot.slane %v107_v34, 1 }
  0xd1   :  { %1537 = vmatprep.mubr.f32.mxu1 %v103_v21  ;;  %15973 = vst [vmem:[#allocation30_spill] sm:$0xff] %v9842_v58 }
  0xd2   :  { %1153 = vmatmul.mubr.f32.gmra.mxu0 %v100_v24  ;;  %v106_v24 = vld [vmem:[%s15566_s0 + $0x210] sm:$0xff] }
  0xd3   :  { %1157 = vmatprep.mubr.f32.mxu0 %v9828_v28  ;;  %v491_v14 = vrot.slane %v106_v24, 1  ;;  %v714_v28 = vrot.slane %v105_v35, 2  ;;  %v110_v35 = vld [vmem:[%s15566_s0 + $0x230] sm:$0xff] }
  0xd4   :  { %1538 = vmatmul.mubr.f32.gmra.mxu1 %v9831_v9  ;;  %v9856_v9 = vsel %vm615_vm1, %v711_v51, %v712_v3  ;;  %v716_v51 = vrot.slane %v106_v24, 2 }
  0xd5   :  { %1542 = vmatprep.mubr.f32.mxu1 %v104_v10  ;;  %15975 = vst [vmem:[#allocation32_spill] sm:$0xff] %v9856_v9  ;;  %v9867_v1 = vsel %vm615_vm1, %v712_v3, %v714_v28  ;;  %v497_v28 = vrot.slane %v110_v35, 1 }
  0xd6   :  { %1158 = vmatmul.mubr.f32.gmra.mxu0 %v101_v53  ;;  %v108_v53 = vld [vmem:[%s15566_s0 + $0x220] sm:$0x3]  ;;  %15977 = vst [vmem:[#allocation34_spill] sm:$0xff] %v9867_v1 }
  0xd7   :  { %1162 = vmatprep.mubr.f32.mxu0 %v9839_v6  ;;  %v494_v49 = vrot.slane %v108_v53, 1  ;;  %v717_v6 = vrot.slane %v107_v34, 2 }
  0xd8   :  { %1543 = vmatmul.mubr.f32.gmra.mxu1 %v9842_v58  ;;  %v9864_v58 = vsel %vm390_vm0, %v491_v14, %v492_v39 }
  0xd9   :  { %1547 = vmatprep.mubr.f32.mxu1 %v106_v24  ;;  %15976 = vst [vmem:[#allocation33_spill] sm:$0xff] %v9864_v58  ;;  %v9878_v14 = vsel %vm390_vm0, %v492_v39, %v494_v49 }
  0xda   :  { %1163 = vmatmul.mubr.f32.gmra.mxu0 %v103_v21  ;;  %v109_v21 = vld [vmem:[%s15566_s0 + $0x228] sm:$0xff]  ;;  %15978 = vst [vmem:[#allocation35_spill] sm:$0xff] %v9878_v14 }
  0xdb   :  { %1167 = vmatprep.mubr.f32.mxu0 %v9853_v41  ;;  %v496_v3 = vrot.slane %v109_v21, 1  ;;  %v719_v41 = vrot.slane %v108_v53, 2  ;;  %v113_v53 = vld [vmem:[%s15566_s0 + $0x248] sm:$0xff] }
  0xdc   :  { %1548 = vmatmul.mubr.f32.gmra.mxu1 %v9856_v9  ;;  %v9881_v9 = vsel %vm615_vm1, %v716_v51, %v717_v6  ;;  %v721_v51 = vrot.slane %v109_v21, 2 }
  0xdd   :  { %1552 = vmatprep.mubr.f32.mxu1 %v107_v34  ;;  %15979 = vst [vmem:[#allocation36_spill] sm:$0xff] %v9881_v9  ;;  %v9892_v49 = vsel %vm615_vm1, %v717_v6, %v719_v41  ;;  %v502_v41 = vrot.slane %v113_v53, 1 }
  0xde   :  { %1168 = vmatmul.mubr.f32.gmra.mxu0 %v104_v10  ;;  %v111_v10 = vld [vmem:[%s15566_s0 + $0x238] sm:$0x3]  ;;  %15981 = vst [vmem:[#allocation38_spill] sm:$0xff] %v9892_v49 }
  0xdf   :  { %1172 = vmatprep.mubr.f32.mxu0 %v9864_v58  ;;  %v499_v39 = vrot.slane %v111_v10, 1  ;;  %v722_v58 = vrot.slane %v110_v35, 2 }
  0xe0   :  { %1553 = vmatmul.mubr.f32.gmra.mxu1 %v9867_v1  ;;  %v9889_v1 = vsel %vm390_vm0, %v496_v3, %v497_v28 }
  0xe1   :  { %1557 = vmatprep.mubr.f32.mxu1 %v109_v21  ;;  %15980 = vst [vmem:[#allocation37_spill] sm:$0xff] %v9889_v1  ;;  %v9903_v3 = vsel %vm390_vm0, %v497_v28, %v499_v39 }
  0xe2   :  { %1173 = vmatmul.mubr.f32.gmra.mxu0 %v106_v24  ;;  %v112_v24 = vld [vmem:[%s15566_s0 + $0x240] sm:$0xff]  ;;  %15982 = vst [vmem:[#allocation39_spill] sm:$0xff] %v9903_v3 }
  0xe3   :  { %1177 = vmatprep.mubr.f32.mxu0 %v9878_v14  ;;  %v501_v6 = vrot.slane %v112_v24, 1  ;;  %v724_v14 = vrot.slane %v111_v10, 2  ;;  %v116_v10 = vld [vmem:[%s15566_s0 + $0x260] sm:$0xff] }
  0xe4   :  { %1558 = vmatmul.mubr.f32.gmra.mxu1 %v9881_v9  ;;  %v9906_v9 = vsel %vm615_vm1, %v721_v51, %v722_v58  ;;  %v726_v51 = vrot.slane %v112_v24, 2 }
  0xe5   :  { %1562 = vmatprep.mubr.f32.mxu1 %v110_v35  ;;  %15983 = vst [vmem:[#allocation40_spill] sm:$0xff] %v9906_v9  ;;  %v9917_v39 = vsel %vm615_vm1, %v722_v58, %v724_v14  ;;  %v507_v14 = vrot.slane %v116_v10, 1 }
  0xe6   :  { %1178 = vmatmul.mubr.f32.gmra.mxu0 %v107_v34  ;;  %v114_v34 = vld [vmem:[%s15566_s0 + $0x250] sm:$0x3]  ;;  %15985 = vst [vmem:[#allocation42_spill] sm:$0xff] %v9917_v39 }
  0xe7   :  { %1182 = vmatprep.mubr.f32.mxu0 %v9889_v1  ;;  %v504_v28 = vrot.slane %v114_v34, 1  ;;  %v727_v1 = vrot.slane %v113_v53, 2 }
  0xe8   :  { %1563 = vmatmul.mubr.f32.gmra.mxu1 %v9892_v49  ;;  %v9914_v49 = vsel %vm390_vm0, %v501_v6, %v502_v41 }
  0xe9   :  { %1567 = vmatprep.mubr.f32.mxu1 %v112_v24  ;;  %15984 = vst [vmem:[#allocation41_spill] sm:$0xff] %v9914_v49  ;;  %v9928_v6 = vsel %vm390_vm0, %v502_v41, %v504_v28 }
  0xea   :  { %1183 = vmatmul.mubr.f32.gmra.mxu0 %v109_v21  ;;  %v115_v21 = vld [vmem:[%s15566_s0 + $0x258] sm:$0xff]  ;;  %15986 = vst [vmem:[#allocation43_spill] sm:$0xff] %v9928_v6 }
  0xeb   :  { %1187 = vmatprep.mubr.f32.mxu0 %v9903_v3  ;;  %v506_v58 = vrot.slane %v115_v21, 1  ;;  %v729_v3 = vrot.slane %v114_v34, 2  ;;  %v119_v34 = vld [vmem:[%s15566_s0 + $0x278] sm:$0xff] }
  0xec   :  { %1568 = vmatmul.mubr.f32.gmra.mxu1 %v9906_v9  ;;  %v9931_v9 = vsel %vm615_vm1, %v726_v51, %v727_v1  ;;  %v731_v51 = vrot.slane %v115_v21, 2 }
  0xed   :  { %1572 = vmatprep.mubr.f32.mxu1 %v113_v53  ;;  %15987 = vst [vmem:[#allocation44_spill] sm:$0xff] %v9931_v9  ;;  %v9942_v28 = vsel %vm615_vm1, %v727_v1, %v729_v3  ;;  %v512_v3 = vrot.slane %v119_v34, 1 }
  0xee   :  { %1188 = vmatmul.mubr.f32.gmra.mxu0 %v110_v35  ;;  %v117_v35 = vld [vmem:[%s15566_s0 + $0x268] sm:$0x3]  ;;  %15989 = vst [vmem:[#allocation46_spill] sm:$0xff] %v9942_v28 }
  0xef   :  { %1192 = vmatprep.mubr.f32.mxu0 %v9914_v49  ;;  %v509_v41 = vrot.slane %v117_v35, 1  ;;  %v732_v49 = vrot.slane %v116_v10, 2 }
  0xf0   :  { %1573 = vmatmul.mubr.f32.gmra.mxu1 %v9917_v39  ;;  %v9939_v39 = vsel %vm390_vm0, %v506_v58, %v507_v14 }
  0xf1   :  { %1577 = vmatprep.mubr.f32.mxu1 %v115_v21  ;;  %15988 = vst [vmem:[#allocation45_spill] sm:$0xff] %v9939_v39  ;;  %v9953_v58 = vsel %vm390_vm0, %v507_v14, %v509_v41 }
  0xf2   :  { %1193 = vmatmul.mubr.f32.gmra.mxu0 %v112_v24  ;;  %v118_v24 = vld [vmem:[%s15566_s0 + $0x270] sm:$0xff]  ;;  %15990 = vst [vmem:[#allocation47_spill] sm:$0xff] %v9953_v58 }
  0xf3   :  { %1197 = vmatprep.mubr.f32.mxu0 %v9928_v6  ;;  %v511_v1 = vrot.slane %v118_v24, 1  ;;  %v734_v6 = vrot.slane %v117_v35, 2  ;;  %v122_v35 = vld [vmem:[%s15566_s0 + $0x290] sm:$0xff] }
  0xf4   :  { %1578 = vmatmul.mubr.f32.gmra.mxu1 %v9931_v9  ;;  %v9956_v9 = vsel %vm615_vm1, %v731_v51, %v732_v49  ;;  %v736_v51 = vrot.slane %v118_v24, 2  ;;  %v742_v31 = vrot.slane %v122_v35, 2 }
  0xf5   :  { %1582 = vmatprep.mubr.f32.mxu1 %v116_v10  ;;  %15991 = vst [vmem:[#allocation48_spill] sm:$0xff] %v9956_v9  ;;  %v9967_v41 = vsel %vm615_vm1, %v732_v49, %v734_v6  ;;  %v517_v6 = vrot.slane %v122_v35, 1 }
  0xf6   :  { %1198 = vmatmul.mubr.f32.gmra.mxu0 %v113_v53  ;;  %v120_v53 = vld [vmem:[%s15566_s0 + $0x280] sm:$0x3]  ;;  %15993 = vst [vmem:[#allocation50_spill] sm:$0xff] %v9967_v41 }
  0xf7   :  { %1202 = vmatprep.mubr.f32.mxu0 %v9939_v39  ;;  %v514_v14 = vrot.slane %v120_v53, 1  ;;  %v737_v39 = vrot.slane %v119_v34, 2 }
  0xf8   :  { %1583 = vmatmul.mubr.f32.gmra.mxu1 %v9942_v28  ;;  %v9964_v28 = vsel %vm390_vm0, %v511_v1, %v512_v3 }
  0xf9   :  { %1587 = vmatprep.mubr.f32.mxu1 %v118_v24  ;;  %15992 = vst [vmem:[#allocation49_spill] sm:$0xff] %v9964_v28  ;;  %v9978_v1 = vsel %vm390_vm0, %v512_v3, %v514_v14 }
  0xfa   :  { %1203 = vmatmul.mubr.f32.gmra.mxu0 %v115_v21  ;;  %v121_v21 = vld [vmem:[%s15566_s0 + $0x288] sm:$0xff]  ;;  %15994 = vst [vmem:[#allocation51_spill] sm:$0xff] %v9978_v1 }
  0xfb   :  { %1207 = vmatprep.mubr.f32.mxu0 %v9953_v58  ;;  %v516_v49 = vrot.slane %v121_v21, 1  ;;  %v739_v58 = vrot.slane %v120_v53, 2 }
  0xfc   :  { %1588 = vmatmul.mubr.f32.gmra.mxu1 %v9956_v9  ;;  %v9981_v9 = vsel %vm615_vm1, %v736_v51, %v737_v39  ;;  %v741_v51 = vrot.slane %v121_v21, 2 }
  0xfd   :  { %1592 = vmatprep.mubr.f32.mxu1 %v119_v34  ;;  %15995 = vst [vmem:[#allocation52_spill] sm:$0xff] %v9981_v9  ;;  %v9989_v14 = vsel %vm390_vm0, %v516_v49, %v517_v6  ;;  %v9994_v53 = vsel %vm615_vm1, %v737_v39, %v739_v58  ;;  %v124_v49 = vld [vmem:[%s15566_s0 + $0x2a0] sm:$0xff] }
  0xfe   :  { %1208 = vmatmul.mubr.f32.gmra.mxu0 %v116_v10  ;;  %v123_v10 = vld [vmem:[%s15566_s0 + $0x298] sm:$0x3]  ;;  %15996 = vst [vmem:[#allocation53_spill] sm:$0xff] %v9989_v14  ;;  %15998 = vst [vmem:[#allocation55_spill] sm:$0xff] %v9994_v53  ;;  %v521_v58 = vrot.slane %v124_v49, 1 }
  0xff   :  { %1212 = vmatprep.mubr.f32.mxu0 %v9964_v28 }
 0x100   :  { %1593 = vmatmul.mubr.f32.gmra.mxu1 %v9967_v41  ;;  %v519_v41 = vrot.slane %v123_v10, 1 }
 0x101   :  { %1597 = vmatprep.mubr.f32.mxu1 %v121_v21  ;;  %v974_v18 = vpop.f32.mrf.mxu0 }
 0x102   :  { %1213 = vmatmul.mubr.f32.gmra.mxu0 %v118_v24  ;;  %v9999_v24 = vld [vmem:[%s15566_s0 + $0x2a8] sm:$0xff] }
 0x103   :  { %1217 = vmatprep.mubr.f32.mxu0 %v9978_v1  ;;  %v1359_v28 = vpop.f32.mrf.mxu1  ;;  %v976_v3 = vpop.f32.mrf.mxu0 }
 0x104   :  { %1598 = vmatmul.mubr.f32.gmra.mxu1 %v9981_v9  ;;  %v9991_v0 = vadd.f32 %v1359_v28, %v974_v18  ;;  %v10007_v28 = vsel %vm390_vm0, %v517_v6, %v519_v41  ;;  %v522_v3 = vrot.slane %v9999_v24, 1 }
 0x105   :  { %1602 = vmatprep.mubr.f32.mxu1 %v122_v35  ;;  %v1361_v1 = vpop.f32.mrf.mxu1  ;;  %v979_v9 = vpop.f32.mrf.mxu0  ;;  %15999 = vst [vmem:[#allocation56_spill] sm:$0xff] %v10007_v28 }
 0x106   :  { %15997 = vst [vmem:[#allocation54_spill] sm:$0xff] %v9991_v0  ;;  %1218 = vmatmul.mubr.f32.gmra.mxu0 %v119_v34  ;;  %v10013_v34 = vsel %vm615_vm1, %v741_v51, %v742_v31  ;;  %v744_v1 = vrot.slane %v123_v10, 2 }
 0x107   :  { %1222 = vmatprep.mubr.f32.mxu0 %v9989_v14  ;;  %v1364_v18 = vpop.f32.mrf.mxu1  ;;  %v981_v39 = vpop.f32.mrf.mxu0  ;;  %16001 = vst [vmem:[#allocation58_spill] sm:$0xff] %v10013_v34  ;;  %v126_v14 = vld [vmem:[%s15566_s0 + $0x2b0] sm:$0x3] }
 0x108   :  { %1603 = vmatmul.mubr.f32.gmra.mxu1 %v9994_v53  ;;  %v10010_v0 = vadd.f32 %v1364_v18, %v979_v9  ;;  %v10021_v9 = vsel %vm390_vm0, %v521_v58, %v522_v3  ;;  %v524_v18 = vrot.slane %v126_v14, 1  ;;  %v10027_v10 = vsel %vm615_vm1, %v742_v31, %v744_v1  ;;  %v10033_v39 = vld [vmem:[%s15566_s0 + $0x2c0] sm:$0xff] }
 0x109   :  { %1607 = vmatprep.mubr.f32.mxu1 %v124_v49  ;;  %v1366_v5 = vpop.f32.mrf.mxu1  ;;  %16002 = vst [vmem:[#allocation59_spill] sm:$0xff] %v10021_v9  ;;  %16004 = vst [vmem:[#allocation61_spill] sm:$0xff] %v10027_v10 }
 0x10a   :  { %16000 = vst [vmem:[#allocation57_spill] sm:$0xff] %v10010_v0  ;;  %v984_v53 = vpop.f32.mrf.mxu0  ;;  %1223 = vmatmul.mubr.f32.gmra.mxu0 %v121_v21  ;;  %v746_v5 = vrot.slane %v124_v49, 2  ;;  %v747_v21 = vrot.slane %v9999_v24, 2  ;;  %v10041_v1 = vsel %vm390_vm0, %v522_v3, %v524_v18 }
 0x10b   :  { %1227 = vmatprep.mubr.f32.mxu0 %v10007_v28  ;;  %16005 = vst [vmem:[#allocation62_spill] sm:$0xff] %v10041_v1 }
 0x10c   :  { %v1369_v41 = vpop.f32.mrf.mxu1  ;;  %1608 = vmatmul.mubr.f32.gmra.mxu1 %v10013_v34  ;;  %v986_v6 = vpop.f32.mrf.mxu0 }
 0x10d   :  { %v10023_v51 = vadd.f32 %v1369_v41, %v984_v53  ;;  %1612 = vmatprep.mubr.f32.mxu1 %v9999_v24  ;;  %v127_v53 = vld [vmem:[%s15566_s0 + $0x2b8] sm:$0xff] }
 0x10e   :  { %v1371_v6 = vpop.f32.mrf.mxu1  ;;  %v989_v0 = vpop.f32.mrf.mxu0  ;;  %1228 = vmatmul.mubr.f32.gmra.mxu0 %v122_v35  ;;  %v526_v41 = vrot.slane %v127_v53, 1  ;;  %v10047_v35 = vsel %vm615_vm1, %v746_v5, %v747_v21 }
 0x10f   :  { %16003 = vst [vmem:[#allocation60_spill] sm:$0xff] %v10023_v51  ;;  %1232 = vmatprep.mubr.f32.mxu0 %v10021_v9  ;;  %v527_v51 = vrot.slane %v10033_v39, 1  ;;  %16007 = vst [vmem:[#allocation64_spill] sm:$0xff] %v10047_v35  ;;  %v749_v6 = vrot.slane %v126_v14, 2  ;;  %v129_v9 = vld [vmem:[%s15566_s0 + $0x2c8] sm:$0x3] }
 0x110   :  { %v1374_v58 = vpop.f32.mrf.mxu1  ;;  %1613 = vmatmul.mubr.f32.gmra.mxu1 %v10027_v10  ;;  %v991_v31 = vpop.f32.mrf.mxu0 }
 0x111   :  { %v10044_v34 = vadd.f32 %v1374_v58, %v989_v0  ;;  %1617 = vmatprep.mubr.f32.mxu1 %v127_v53  ;;  %v10055_v0 = vsel %vm390_vm0, %v526_v41, %v527_v51  ;;  %v529_v58 = vrot.slane %v129_v9, 1  ;;  %v10061_v14 = vsel %vm615_vm1, %v747_v21, %v749_v6  ;;  %v10067_v31 = vld [vmem:[%s15566_s0 + $0x2d8] sm:$0xff] }
 0x112   :  { %v1376_v28 = vpop.f32.mrf.mxu1  ;;  %v994_v10 = vpop.f32.mrf.mxu0  ;;  %1233 = vmatmul.mubr.f32.gmra.mxu0 %v124_v49  ;;  %16008 = vst [vmem:[#allocation65_spill] sm:$0xff] %v10055_v0  ;;  %16010 = vst [vmem:[#allocation67_spill] sm:$0xff] %v10061_v14  ;;  %v752_v49 = vrot.slane %v10033_v39, 2 }
 0x113   :  { %16006 = vst [vmem:[#allocation63_spill] sm:$0xff] %v10044_v34  ;;  %1237 = vmatprep.mubr.f32.mxu0 %v10041_v1  ;;  %v751_v28 = vrot.slane %v127_v53, 2  ;;  %v10076_v6 = vsel %vm390_vm0, %v527_v51, %v529_v58 }
 0x114   :  { %v1379_v3 = vpop.f32.mrf.mxu1  ;;  %1618 = vmatmul.mubr.f32.gmra.mxu1 %v10047_v35  ;;  %v996_v18 = vpop.f32.mrf.mxu0  ;;  %16011 = vst [vmem:[#allocation68_spill] sm:$0xff] %v10076_v6  ;;  %v754_v35 = vrot.slane %v129_v9, 2 }
 0x115   :  { %v10057_v5 = vadd.f32 %v1379_v3, %v994_v10  ;;  %1622 = vmatprep.mubr.f32.mxu1 %v10033_v39  ;;  %v130_v10 = vld [vmem:[%s15566_s0 + $0x2d0] sm:$0xff] }
 0x116   :  { %v1381_v18 = vpop.f32.mrf.mxu1  ;;  %v999_v34 = vpop.f32.mrf.mxu0  ;;  %1238 = vmatmul.mubr.f32.gmra.mxu0 %v9999_v24  ;;  %v531_v3 = vrot.slane %v130_v10, 1  ;;  %v10082_v24 = vsel %vm615_vm1, %v751_v28, %v752_v49  ;;  %v10096_v9 = vsel %vm615_vm1, %v752_v49, %v754_v35 }
 0x117   :  { %16009 = vst [vmem:[#allocation66_spill] sm:$0xff] %v10057_v5  ;;  %1242 = vmatprep.mubr.f32.mxu0 %v10055_v0  ;;  %v532_v5 = vrot.slane %v10067_v31, 1  ;;  %16013 = vst [vmem:[#allocation70_spill] sm:$0xff] %v10082_v24  ;;  %v132_v0 = vld [vmem:[%s15566_s0 + $0x2e0] sm:$0x3] }
 0x118   :  { %v1384_v21 = vpop.f32.mrf.mxu1  ;;  %1623 = vmatmul.mubr.f32.gmra.mxu1 %v10061_v14  ;;  %v1001_v41 = vpop.f32.mrf.mxu0  ;;  %16016 = vst [vmem:[#allocation73_spill] sm:$0xff] %v10096_v9 }
 0x119   :  { %v10079_v18 = vadd.f32 %v1384_v21, %v999_v34  ;;  %1627 = vmatprep.mubr.f32.mxu1 %v130_v10  ;;  %v10090_v34 = vsel %vm390_vm0, %v531_v3, %v532_v5  ;;  %v534_v21 = vrot.slane %v132_v0, 1  ;;  %v10102_v41 = vld [vmem:[%s15566_s0 + $0x2f0] sm:$0xff] }
 0x11a   :  { %v1386_v1 = vpop.f32.mrf.mxu1  ;;  %v1004_v14 = vpop.f32.mrf.mxu0  ;;  %1243 = vmatmul.mubr.f32.gmra.mxu0 %v127_v53  ;;  %16014 = vst [vmem:[#allocation71_spill] sm:$0xff] %v10090_v34  ;;  %v757_v53 = vrot.slane %v10067_v31, 2 }
 0x11b   :  { %16012 = vst [vmem:[#allocation69_spill] sm:$0xff] %v10079_v18  ;;  %1247 = vmatprep.mubr.f32.mxu0 %v10076_v6  ;;  %v756_v1 = vrot.slane %v130_v10, 2  ;;  %v10111_v3 = vsel %vm390_vm0, %v532_v5, %v534_v21 }
 0x11c   :  { %v1389_v51 = vpop.f32.mrf.mxu1  ;;  %1628 = vmatmul.mubr.f32.gmra.mxu1 %v10082_v24  ;;  %v1006_v58 = vpop.f32.mrf.mxu0  ;;  %16017 = vst [vmem:[#allocation74_spill] sm:$0xff] %v10111_v3  ;;  %v759_v24 = vrot.slane %v132_v0, 2 }
 0x11d   :  { %v10092_v28 = vadd.f32 %v1389_v51, %v1004_v14  ;;  %1632 = vmatprep.mubr.f32.mxu1 %v10067_v31  ;;  %v133_v14 = vld [vmem:[%s15566_s0 + $0x2e8] sm:$0xff] }
 0x11e   :  { %v1391_v58 = vpop.f32.mrf.mxu1  ;;  %v1009_v18 = vpop.f32.mrf.mxu0  ;;  %1248 = vmatmul.mubr.f32.gmra.mxu0 %v10033_v39  ;;  %v536_v51 = vrot.slane %v133_v14, 1  ;;  %v10117_v39 = vsel %vm615_vm1, %v756_v1, %v757_v53  ;;  %v10131_v0 = vsel %vm615_vm1, %v757_v53, %v759_v24 }
 0x11f   :  { %16015 = vst [vmem:[#allocation72_spill] sm:$0xff] %v10092_v28  ;;  %1252 = vmatprep.mubr.f32.mxu0 %v10090_v34  ;;  %v537_v28 = vrot.slane %v10102_v41, 1  ;;  %16019 = vst [vmem:[#allocation76_spill] sm:$0xff] %v10117_v39  ;;  %v135_v34 = vld [vmem:[%s15566_s0 + $0x2f8] sm:$0x3] }
 0x120   :  { %v1394_v35 = vpop.f32.mrf.mxu1  ;;  %1633 = vmatmul.mubr.f32.gmra.mxu1 %v10096_v9  ;;  %v1011_v49 = vpop.f32.mrf.mxu0  ;;  %16022 = vst [vmem:[#allocation79_spill] sm:$0xff] %v10131_v0 }
 0x121   :  { %v10114_v58 = vadd.f32 %v1394_v35, %v1009_v18  ;;  %1637 = vmatprep.mubr.f32.mxu1 %v133_v14  ;;  %v10125_v18 = vsel %vm390_vm0, %v536_v51, %v537_v28  ;;  %v539_v35 = vrot.slane %v135_v34, 1  ;;  %v10137_v49 = vld [vmem:[%s15566_s0 + $0x308] sm:$0xff] }
 0x122   :  { %v1396_v6 = vpop.f32.mrf.mxu1  ;;  %v1014_v9 = vpop.f32.mrf.mxu0  ;;  %1253 = vmatmul.mubr.f32.gmra.mxu0 %v130_v10  ;;  %16020 = vst [vmem:[#allocation77_spill] sm:$0xff] %v10125_v18  ;;  %v762_v10 = vrot.slane %v10102_v41, 2 }
 0x123   :  { %16018 = vst [vmem:[#allocation75_spill] sm:$0xff] %v10114_v58  ;;  %1257 = vmatprep.mubr.f32.mxu0 %v10111_v3  ;;  %v761_v6 = vrot.slane %v133_v14, 2  ;;  %v10146_v51 = vsel %vm390_vm0, %v537_v28, %v539_v35 }
 0x124   :  { %v1399_v5 = vpop.f32.mrf.mxu1  ;;  %1638 = vmatmul.mubr.f32.gmra.mxu1 %v10117_v39  ;;  %v1016_v21 = vpop.f32.mrf.mxu0  ;;  %16023 = vst [vmem:[#allocation80_spill] sm:$0xff] %v10146_v51  ;;  %v764_v39 = vrot.slane %v135_v34, 2 }
 0x125   :  { %v10127_v1 = vadd.f32 %v1399_v5, %v1014_v9  ;;  %1642 = vmatprep.mubr.f32.mxu1 %v10102_v41  ;;  %v136_v9 = vld [vmem:[%s15566_s0 + $0x300] sm:$0xff] }
 0x126   :  { %v1401_v21 = vpop.f32.mrf.mxu1  ;;  %v1019_v58 = vpop.f32.mrf.mxu0  ;;  %1258 = vmatmul.mubr.f32.gmra.mxu0 %v10067_v31  ;;  %v541_v5 = vrot.slane %v136_v9, 1  ;;  %v10152_v31 = vsel %vm615_vm1, %v761_v6, %v762_v10  ;;  %v10166_v34 = vsel %vm615_vm1, %v762_v10, %v764_v39 }
 0x127   :  { %16021 = vst [vmem:[#allocation78_spill] sm:$0xff] %v10127_v1  ;;  %1262 = vmatprep.mubr.f32.mxu0 %v10125_v18  ;;  %v542_v1 = vrot.slane %v10137_v49, 1  ;;  %16025 = vst [vmem:[#allocation82_spill] sm:$0xff] %v10152_v31  ;;  %v138_v18 = vld [vmem:[%s15566_s0 + $0x310] sm:$0x3] }
 0x128   :  { %v1404_v24 = vpop.f32.mrf.mxu1  ;;  %1643 = vmatmul.mubr.f32.gmra.mxu1 %v10131_v0  ;;  %v1021_v53 = vpop.f32.mrf.mxu0  ;;  %16028 = vst [vmem:[#allocation85_spill] sm:$0xff] %v10166_v34 }
 0x129   :  { %v10149_v21 = vadd.f32 %v1404_v24, %v1019_v58  ;;  %1647 = vmatprep.mubr.f32.mxu1 %v136_v9  ;;  %v10160_v58 = vsel %vm390_vm0, %v541_v5, %v542_v1  ;;  %v544_v24 = vrot.slane %v138_v18, 1  ;;  %v140_v53 = vld [vmem:[%s15566_s0 + $0x320] sm:$0xff] }
 0x12a   :  { %v1406_v3 = vpop.f32.mrf.mxu1  ;;  %v1024_v0 = vpop.f32.mrf.mxu0  ;;  %1263 = vmatmul.mubr.f32.gmra.mxu0 %v133_v14  ;;  %16026 = vst [vmem:[#allocation83_spill] sm:$0xff] %v10160_v58  ;;  %v767_v14 = vrot.slane %v10137_v49, 2 }
 0x12b   :  { %16024 = vst [vmem:[#allocation81_spill] sm:$0xff] %v10149_v21  ;;  %1267 = vmatprep.mubr.f32.mxu0 %v10146_v51  ;;  %v766_v3 = vrot.slane %v136_v9, 2  ;;  %v10179_v10 = vsel %vm390_vm0, %v542_v1, %v544_v24 }
 0x12c   :  { %v1409_v28 = vpop.f32.mrf.mxu1  ;;  %1648 = vmatmul.mubr.f32.gmra.mxu1 %v10152_v31  ;;  %v1026_v35 = vpop.f32.mrf.mxu0 }
 0x12d   :  { %v10162_v6 = vadd.f32 %v1409_v28, %v1024_v0  ;;  %1652 = vmatprep.mubr.f32.mxu1 %v10137_v49  ;;  %v139_v0 = vld [vmem:[%s15566_s0 + $0x318] sm:$0xff] }
 0x12e   :  { %v1411_v21 = vpop.f32.mrf.mxu1  ;;  %v1029_v35 = vpop.f32.mrf.mxu0  ;;  %1268 = vmatmul.mubr.f32.gmra.mxu0 %v10102_v41  ;;  %v546_v28 = vrot.slane %v139_v0, 1  ;;  %v10184_v41 = vsel %vm615_vm1, %v766_v3, %v767_v14 }
 0x12f   :  { %16027 = vst [vmem:[#allocation84_spill] sm:$0xff] %v10162_v6  ;;  %1272 = vmatprep.mubr.f32.mxu0 %v10160_v58  ;;  %v547_v6 = vrot.slane %v140_v53, 1  ;;  %16030 = vst [vmem:[#allocation87_spill] sm:$0xff] %v10184_v41  ;;  %v769_v21 = vrot.slane %v138_v18, 2  ;;  %v141_v58 = vld [vmem:[%s15566_s0 + $0x328] sm:$0x3] }
 0x130   :  { %v1414_v5 = vpop.f32.mrf.mxu1  ;;  %1653 = vmatmul.mubr.f32.gmra.mxu1 %v10166_v34  ;;  %v1031_v39 = vpop.f32.mrf.mxu0 }
 0x131   :  { %v10181_v31 = vadd.f32 %v1414_v5, %v1029_v35  ;;  %1657 = vmatprep.mubr.f32.mxu1 %v139_v0  ;;  %v10192_v35 = vsel %vm390_vm0, %v546_v28, %v547_v6  ;;  %v549_v5 = vrot.slane %v141_v58, 1  ;;  %v10197_v18 = vsel %vm615_vm1, %v767_v14, %v769_v21 }
 0x132   :  { %v1416_v51 = vpop.f32.mrf.mxu1  ;;  %v1034_v16 = vpop.f32.mrf.mxu0  ;;  %1273 = vmatmul.mubr.f32.gmra.mxu0 %v136_v9  ;;  %16031 = vst [vmem:[#allocation88_spill] sm:$0xff] %v10192_v35  ;;  %16033 = vst [vmem:[#allocation90_spill] sm:$0xff] %v10197_v18  ;;  %v771_v39 = vrot.slane %v139_v0, 2 }
 0x133   :  { %16029 = vst [vmem:[#allocation86_spill] sm:$0xff] %v10181_v31  ;;  %1277 = vmatprep.mubr.f32.mxu0 %v10179_v10  ;;  %v772_v51 = vrot.slane %v140_v53, 2 }
 0x134   :  { %v1419_v1 = vpop.f32.mrf.mxu1  ;;  %1658 = vmatmul.mubr.f32.gmra.mxu1 %v10184_v41  ;;  %v1036_v24 = vpop.f32.mrf.mxu0 }
 0x135   :  { %v10194_v3 = vadd.f32 %v1419_v1, %v1034_v16  ;;  %1662 = vmatprep.mubr.f32.mxu1 %v140_v53  ;;  %v142_v24 = vld [vmem:[%s15566_s0 + $0x330] sm:$0xff]  ;;  %v10206_v1 = vsel %vm390_vm0, %v547_v6, %v549_v5 }
 0x136   :  { %v1421_v31 = vpop.f32.mrf.mxu1  ;;  %v1039_v9 = vpop.f32.mrf.mxu0  ;;  %1278 = vmatmul.mubr.f32.gmra.mxu0 %v10137_v49  ;;  %v774_v49 = vrot.slane %v141_v58, 2 }
 0x137   :  { %16032 = vst [vmem:[#allocation89_spill] sm:$0xff] %v10194_v3  ;;  %1282 = vmatprep.mubr.f32.mxu0 %v10192_v35  ;;  %v10211_v31 = vsel %vm615_vm1, %v771_v39, %v772_v51  ;;  %v143_v35 = vld [vmem:[%s15566_s0 + $0x338] sm:$0xff] }
 0x138   :  { %v1424_v28 = vpop.f32.mrf.mxu1  ;;  %1663 = vmatmul.mubr.f32.gmra.mxu1 %v10197_v18  ;;  %v1041_v16 = vpop.f32.mrf.mxu0  ;;  %16034 = vst [vmem:[#allocation91_spill] sm:$0xff] %v10211_v31  ;;  %v10221_v39 = vsel %vm615_vm1, %v772_v51, %v774_v49 }
 0x139   :  { %v10208_v14 = vadd.f32 %v1424_v28, %v1039_v9  ;;  %1667 = vmatprep.mubr.f32.mxu1 %v142_v24  ;;  %16035 = vst [vmem:[#allocation92_spill] sm:$0xff] %v10221_v39 }
 0x13a   :  { %v1426_v21 = vpop.f32.mrf.mxu1  ;;  %v1044_v3 = vpop.f32.mrf.mxu0  ;;  %1283 = vmatmul.mubr.f32.gmra.mxu0 %v139_v0 }
 0x13b   :  { %1287 = vmatprep.mubr.f32.mxu0 %v10206_v1  ;;  %v8646_v21 = vld [vmem:[%s15566_s0 + $0x30] sm:$0xff] }
 0x13c   :  { %v1429_v16 = vpop.f32.mrf.mxu1  ;;  %1668 = vmatmul.mubr.f32.gmra.mxu1 %v10211_v31  ;;  %v1046_v6 = vpop.f32.mrf.mxu0 }
 0x13d   :  { %v10218_v5 = vadd.f32 %v1429_v16, %v1044_v3  ;;  %1672 = vmatprep.mubr.f32.mxu1 %v143_v35  ;;  %v290_v35 = vld [vmem:[%s15565_s1 + $0x470] sm:$0xff]  ;;  %v287_v6 = vld [vmem:[%s15565_s1 + $0x458] sm:$0xff] }
 0x13e   :  { %v1431_v58 = vpop.f32.mrf.mxu1  ;;  %v1049_v9 = vpop.f32.mrf.mxu0  ;;  %1288 = vmatmul.mubr.f32.gmra.mxu0 %v140_v53 }
 0x13f   :  { %1742 = vmatprep.mubr.f32.mxu0 %v9090_v33  ;;  %v289_v33 = vld [vmem:[%s15565_s1 + $0x468] sm:$0xff] }
 0x140   :  { %v1434_v0 = vpop.f32.mrf.mxu1  ;;  %1673 = vmatmul.mubr.f32.gmra.mxu1 %v10221_v39  ;;  %v1051_v24 = vpop.f32.mrf.mxu0 }
 0x141   :  { %v10225_v28 = vadd.f32 %v1434_v0, %v1049_v9  ;;  %2127 = vmatprep.mubr.f32.mxu1 %v9102_v37  ;;  %v8647_v0 = vld [vmem:[%s15566_s0 + $0x38] sm:$0xff] }
 0x142   :  { %v1436_v3 = vpop.f32.mrf.mxu1  ;;  %v1054_v51 = vpop.f32.mrf.mxu0  ;;  %1743 = vmatmul.mubr.f32.vlgmr.msra.gmra.mxu0 %v9059_v20  ;;  %v288_v20 = vld [vmem:[%s15565_s1 + $0x460] sm:$0xff] }
 0x143   :  { %8429 = vmatpush3.msra.mxu0 %v9777_v45  ;;  %1747 = vmatprep.mubr.f32.mxu0 %v9110_v40 }
 0x144   :  { %v1439_v53 = vpop.f32.mrf.mxu1  ;;  %v1056_v49 = vpop.f32.mrf.mxu0  ;;  %2128 = vmatmul.mubr.f32.vlgmr.msra.gmra.mxu1 %v8646_v21  ;;  %8430 = vmatprep.subr.mxu0 %v290_v35 }
 0x145   :  { %v10240_v16 = vadd.f32 %v1439_v53, %v1054_v51  ;;  %2132 = vmatprep.mubr.f32.mxu1 %v9129_v46  ;;  %8431 = vmatpush3.msra.mxu0 %v290_v35  ;;  %v285_v51 = vld [vmem:[%s15565_s1 + $0x448] sm:$0xff] }
 0x146   :  { %v1441_v40 = vpop.f32.mrf.mxu1  ;;  %v1059_v45 = vpop.f32.mrf.mxu0  ;;  %1748 = vmatmul.mubr.f32.gmra.mxu0 %v9082_v29  ;;  %8432 = vmatprep.subr.mxu0 %v289_v33  ;;  %v286_v29 = vld [vmem:[%s15565_s1 + $0x450] sm:$0xff]  ;;  %v8648_v49 = vld [vmem:[%s15566_s0 + $0x48] sm:$0xff] }
 0x147   :  { %1752 = vmatprep.mubr.f32.mxu0 %v9137_v50  ;;  %8433 = vmatpush3.msra.mxu0 %v289_v33 }
 0x148   :  { %v1444_v58 = vpop.f32.mrf.mxu1  ;;  %v1061_v9 = vpop.f32.mrf.mxu0  ;;  %2133 = vmatmul.mubr.f32.gmra.mxu1 %v8647_v0  ;;  %8434 = vmatprep.subr.mxu0 %v288_v20 }
 0x149   :  { %v10254_v24 = vadd.f32 %v1444_v58, %v1059_v45  ;;  %2137 = vmatprep.mubr.f32.mxu1 %v9149_v54  ;;  %8435 = vmatpush3.msra.mxu0 %v288_v20  ;;  %v283_v45 = vld [vmem:[%s15565_s1 + $0x438] sm:$0xff]  ;;  %v8649_v9 = vld [vmem:[%s15566_s0 + $0x50] sm:$0xff] }
 0x14a   :  { %v1446_v35 = vpop.f32.mrf.mxu1  ;;  %v1064_v3 = vpop.f32.mrf.mxu0  ;;  %1753 = vmatmul.mubr.f32.gmra.mxu0 %v9102_v37  ;;  %8436 = vmatprep.subr.mxu0 %v287_v6  ;;  %v284_v37 = vld [vmem:[%s15565_s1 + $0x440] sm:$0xff] }
 0x14b   :  { %1757 = vmatprep.mubr.f32.mxu0 %v9157_v57  ;;  %8437 = vmatpush3.msra.mxu0 %v287_v6  ;;  %v282_v35 = vld [vmem:[%s15565_s1 + $0x430] sm:$0xff] }
 0x14c   :  { %v1449_v33 = vpop.f32.mrf.mxu1  ;;  %v1066_v53 = vpop.f32.mrf.mxu0  ;;  %2138 = vmatmul.mubr.f32.gmra.mxu1 %v8648_v49  ;;  %8438 = vmatprep.subr.mxu0 %v286_v29 }
 0x14d   :  { %v10268_v21 = vadd.f32 %v1449_v33, %v1064_v3  ;;  %2142 = vmatprep.mubr.f32.mxu1 %v9176_v63  ;;  %8439 = vmatpush3.msra.mxu0 %v286_v29  ;;  %v8650_v33 = vld [vmem:[%s15566_s0 + $0x60] sm:$0xff] }
 0x14e   :  { %v1451_v20 = vpop.f32.mrf.mxu1  ;;  %v1069_v40 = vpop.f32.mrf.mxu0  ;;  %1758 = vmatmul.mubr.f32.gmra.mxu0 %v9129_v46  ;;  %8440 = vmatprep.subr.mxu0 %v285_v51 }
 0x14f   :  { %1762 = vmatprep.mubr.f32.mxu0 %v9184_v4  ;;  %8441 = vmatpush3.msra.mxu0 %v285_v51 }
 0x150   :  { %v1454_v6 = vpop.f32.mrf.mxu1  ;;  %v1071_v58 = vpop.f32.mrf.mxu0  ;;  %2143 = vmatmul.mubr.f32.gmra.mxu1 %v8649_v9  ;;  %8442 = vmatprep.subr.mxu0 %v284_v37 }
 0x151   :  { %v10282_v0 = vadd.f32 %v1454_v6, %v1069_v40  ;;  %2147 = vmatprep.mubr.f32.mxu1 %v9196_v8  ;;  %8443 = vmatpush3.msra.mxu0 %v284_v37  ;;  %v8651_v40 = vld [vmem:[%s15566_s0 + $0x68] sm:$0xff] }
 0x152   :  { %v1456_v46 = vpop.f32.mrf.mxu1  ;;  %v1074_v29 = vpop.f32.mrf.mxu0  ;;  %1763 = vmatmul.mubr.f32.gmra.mxu0 %v9149_v54  ;;  %8444 = vmatprep.subr.mxu0 %v283_v45 }
 0x153   :  { %1767 = vmatprep.mubr.f32.mxu0 %v9204_v11  ;;  %8445 = vmatpush3.msra.mxu0 %v283_v45  ;;  %v8652_v46 = vld [vmem:[%s15566_s0 + $0x78] sm:$0xff] }
 0x154   :  { %v1459_v3 = vpop.f32.mrf.mxu1  ;;  %v1076_v51 = vpop.f32.mrf.mxu0  ;;  %2148 = vmatmul.mubr.f32.gmra.mxu1 %v8650_v33  ;;  %8446 = vmatprep.subr.mxu0 %v282_v35  ;;  %v8653_v33 = vld [vmem:[%s15566_s0 + $0x80] sm:$0xff] }
 0x155   :  { %v10293_v53 = vadd.f32 %v1459_v3, %v1074_v29  ;;  %2152 = vmatprep.mubr.f32.mxu1 %v9223_v17  ;;  %8447 = vmatpush3.msra.mxu0 %v282_v35 }
 0x156   :  { %v1461_v54 = vpop.f32.mrf.mxu1  ;;  %v1079_v49 = vpop.f32.mrf.mxu0  ;;  %1768 = vmatmul.mubr.f32.gmra.mxu0 %v9176_v63 }
 0x157   :  { %1772 = vmatprep.mubr.f32.mxu0 %v9231_v22 }
 0x158   :  { %v1464_v37 = vpop.f32.mrf.mxu1  ;;  %v1081_v20 = vpop.f32.mrf.mxu0  ;;  %2153 = vmatmul.mubr.f32.gmra.mxu1 %v8651_v40 }
 0x159   :  { %v10301_v45 = vadd.f32 %v1464_v37, %v1079_v49  ;;  %2157 = vmatprep.mubr.f32.mxu1 %v9243_v26 }
 0x15a   :  { %v1466_v6 = vpop.f32.mrf.mxu1  ;;  %v1084_v58 = vpop.f32.mrf.mxu0  ;;  %1773 = vmatmul.mubr.f32.gmra.mxu0 %v9196_v8 }
 0x15b   :  { %1777 = vmatprep.mubr.f32.mxu0 %v9251_v30  ;;  %v8654_v6 = vld [vmem:[%s15566_s0 + $0x90] sm:$0xff] }
 0x15c   :  { %v1469_v63 = vpop.f32.mrf.mxu1  ;;  %v1086_v9 = vpop.f32.mrf.mxu0  ;;  %2158 = vmatmul.mubr.f32.gmra.mxu1 %v8652_v46 }
 0x15d   :  { %v10309_v29 = vadd.f32 %v1469_v63, %v1084_v58  ;;  %2162 = vmatprep.mubr.f32.mxu1 %v9270_v38 }
 0x15e   :  { %v1471_v35 = vpop.f32.mrf.mxu1  ;;  %v1089_v3 = vpop.f32.mrf.mxu0  ;;  %1778 = vmatmul.mubr.f32.gmra.mxu0 %v9223_v17  ;;  %v281_v17 = vld [vmem:[%s15565_s1 + $0x428] sm:$0xff] }
 0x15f   :  { %1782 = vmatprep.mubr.f32.mxu0 %v9278_v43  ;;  %8448 = vmatprep.subr.mxu0 %v281_v17  ;;  %v8655_v35 = vld [vmem:[%s15566_s0 + $0x98] sm:$0xff] }
 0x160   :  { %v1474_v8 = vpop.f32.mrf.mxu1  ;;  %v1091_v51 = vpop.f32.mrf.mxu0  ;;  %2163 = vmatmul.mubr.f32.gmra.mxu1 %v8653_v33  ;;  %8449 = vmatpush3.msra.mxu0 %v281_v17 }
 0x161   :  { %v10317_v54 = vadd.f32 %v1474_v8, %v1089_v3  ;;  %2167 = vmatprep.mubr.f32.mxu1 %v9290_v48 }
 0x162   :  { %v1476_v49 = vpop.f32.mrf.mxu1  ;;  %v1094_v37 = vpop.f32.mrf.mxu0  ;;  %1783 = vmatmul.mubr.f32.gmra.mxu0 %v9243_v26 }
 0x163   :  { %1787 = vmatprep.mubr.f32.mxu0 %v9298_v52  ;;  %v8656_v49 = vld [vmem:[%s15566_s0 + $0xa8] sm:$0xff] }
 0x164   :  { %v1479_v20 = vpop.f32.mrf.mxu1  ;;  %v1096_v40 = vpop.f32.mrf.mxu0  ;;  %2168 = vmatmul.mubr.f32.gmra.mxu1 %v8654_v6  ;;  %v8657_v6 = vld [vmem:[%s15566_s0 + $0xb0] sm:$0xff] }
 0x165   :  { %v10328_v58 = vadd.f32 %v1479_v20, %v1094_v37  ;;  %2172 = vmatprep.mubr.f32.mxu1 %v9317_v60 }
 0x166   :  { %v1481_v26 = vpop.f32.mrf.mxu1  ;;  %v1099_v63 = vpop.f32.mrf.mxu0  ;;  %1788 = vmatmul.mubr.f32.gmra.mxu0 %v9270_v38 }
 0x167   :  { %1792 = vmatprep.mubr.f32.mxu0 %v9325_v2 }
 0x168   :  { %v1484_v9 = vpop.f32.mrf.mxu1  ;;  %v1101_v46 = vpop.f32.mrf.mxu0  ;;  %2173 = vmatmul.mubr.f32.gmra.mxu1 %v8655_v35 }
 0x169   :  { %v10336_v3 = vadd.f32 %v1484_v9, %v1099_v63  ;;  %2177 = vmatprep.mubr.f32.mxu1 %v9337_v7 }
 0x16a   :  { %v1486_v8 = vpop.f32.mrf.mxu1  ;;  %v1104_v51 = vpop.f32.mrf.mxu0  ;;  %1793 = vmatmul.mubr.f32.gmra.mxu0 %v9290_v48 }
 0x16b   :  { %1797 = vmatprep.mubr.f32.mxu0 %v9345_v12  ;;  %v8658_v8 = vld [vmem:[%s15566_s0 + $0xc0] sm:$0xff] }
 0x16c   :  { %v1489_v38 = vpop.f32.mrf.mxu1  ;;  %v1106_v33 = vpop.f32.mrf.mxu0  ;;  %2178 = vmatmul.mubr.f32.gmra.mxu1 %v8656_v49 }
 0x16d   :  { %v10344_v37 = vadd.f32 %v1489_v38, %v1104_v51  ;;  %2182 = vmatprep.mubr.f32.mxu1 %v9364_v19 }
 0x16e   :  { %v1491_v17 = vpop.f32.mrf.mxu1  ;;  %v1109_v20 = vpop.f32.mrf.mxu0  ;;  %1798 = vmatmul.mubr.f32.gmra.mxu0 %v9317_v60  ;;  %v280_v60 = vld [vmem:[%s15565_s1 + $0x420] sm:$0xff] }
 0x16f   :  { %16036 = vst [vmem:[#allocation93_spill] sm:$0xff] %v10344_v37  ;;  %1802 = vmatprep.mubr.f32.mxu0 %v9372_v25  ;;  %8450 = vmatprep.subr.mxu0 %v280_v60  ;;  %v8659_v17 = vld [vmem:[%s15566_s0 + $0xc8] sm:$0xff]  ;;  %v16072_v37 = vld [vmem:[#allocation21_spill] sm:$0xff] }
 0x170   :  { %v1494_v48 = vpop.f32.mrf.mxu1  ;;  %v1111_v40 = vpop.f32.mrf.mxu0  ;;  %2183 = vmatmul.mubr.f32.gmra.mxu1 %v8657_v6  ;;  %8451 = vmatpush3.msra.mxu0 %v280_v60 }
 0x171   :  { %v10352_v26 = vadd.f32 %v1494_v48, %v1109_v20  ;;  %2187 = vmatprep.mubr.f32.mxu1 %v9384_v32 }
 0x172   :  { %v1496_v63 = vpop.f32.mrf.mxu1  ;;  %v1114_v9 = vpop.f32.mrf.mxu0  ;;  %1803 = vmatmul.mubr.f32.gmra.mxu0 %v9337_v7 }
 0x173   :  { %16037 = vst [vmem:[#allocation94_spill] sm:$0xff] %v10352_v26  ;;  %1807 = vmatprep.mubr.f32.mxu0 %v9392_v36  ;;  %v8660_v63 = vld [vmem:[%s15566_s0 + $0xd8] sm:$0xff] }
 0x174   :  { %v1499_v46 = vpop.f32.mrf.mxu1  ;;  %v1116_v35 = vpop.f32.mrf.mxu0  ;;  %2188 = vmatmul.mubr.f32.gmra.mxu1 %v8658_v8  ;;  %v8661_v8 = vld [vmem:[%s15566_s0 + $0xe0] sm:$0xff] }
 0x175   :  { %v10363_v51 = vadd.f32 %v1499_v46, %v1114_v9  ;;  %2192 = vmatprep.mubr.f32.mxu1 %v9409_v47 }
 0x176   :  { %v1501_v7 = vpop.f32.mrf.mxu1  ;;  %v1119_v38 = vpop.f32.mrf.mxu0  ;;  %1808 = vmatmul.mubr.f32.gmra.mxu0 %v9364_v19 }
 0x177   :  { %16038 = vst [vmem:[#allocation95_spill] sm:$0xff] %v10363_v51  ;;  %1812 = vmatprep.mubr.f32.mxu0 %v9416_v55 }
 0x178   :  { %v1504_v33 = vpop.f32.mrf.mxu1  ;;  %v1121_v49 = vpop.f32.mrf.mxu0  ;;  %2193 = vmatmul.mubr.f32.gmra.mxu1 %v8659_v17 }
 0x179   :  { %v10371_v20 = vadd.f32 %v1504_v33, %v1119_v38  ;;  %2197 = vmatprep.mubr.f32.mxu1 %v9425_v59 }
 0x17a   :  { %v1506_v48 = vpop.f32.mrf.mxu1  ;;  %v1124_v40 = vpop.f32.mrf.mxu0  ;;  %1813 = vmatmul.mubr.f32.gmra.mxu0 %v9384_v32 }
 0x17b   :  { %16039 = vst [vmem:[#allocation96_spill] sm:$0xff] %v10371_v20  ;;  %1817 = vmatprep.mubr.f32.mxu0 %v9429_v62  ;;  %v8662_v48 = vld [vmem:[%s15566_s0 + $0xf0] sm:$0xff] }
 0x17c   :  { %v1509_v19 = vpop.f32.mrf.mxu1  ;;  %v1126_v6 = vpop.f32.mrf.mxu0  ;;  %2198 = vmatmul.mubr.f32.gmra.mxu1 %v8660_v63 }
 0x17d   :  { %v10379_v9 = vadd.f32 %v1509_v19, %v1124_v40  ;;  %2202 = vmatprep.mubr.f32.mxu1 %v9448_v13 }
 0x17e   :  { %v1511_v60 = vpop.f32.mrf.mxu1  ;;  %v1129_v46 = vpop.f32.mrf.mxu0  ;;  %1818 = vmatmul.mubr.f32.gmra.mxu0 %v9409_v47  ;;  %v279_v47 = vld [vmem:[%s15565_s1 + $0x418] sm:$0xff] }
 0x17f   :  { %16040 = vst [vmem:[#allocation97_spill] sm:$0xff] %v10379_v9  ;;  %1822 = vmatprep.mubr.f32.mxu0 %v9452_v15  ;;  %8452 = vmatprep.subr.mxu0 %v279_v47  ;;  %v8663_v60 = vld [vmem:[%s15566_s0 + $0xf8] sm:$0xff] }
 0x180   :  { %v1514_v32 = vpop.f32.mrf.mxu1  ;;  %v1131_v35 = vpop.f32.mrf.mxu0  ;;  %2203 = vmatmul.mubr.f32.gmra.mxu1 %v8661_v8  ;;  %8453 = vmatpush3.msra.mxu0 %v279_v47  ;;  %v16045_v47 = vld [vmem:[#allocation3_spill] sm:$0xff] }
 0x181   :  { %v10387_v7 = vadd.f32 %v1514_v32, %v1129_v46  ;;  %2207 = vmatprep.mubr.f32.mxu1 %v9461_v23 }
 0x182   :  { %v1516_v38 = vpop.f32.mrf.mxu1  ;;  %v1134_v33 = vpop.f32.mrf.mxu0  ;;  %1823 = vmatmul.mubr.f32.gmra.mxu0 %v9425_v59 }
 0x183   :  { %16041 = vst [vmem:[#allocation98_spill] sm:$0xff] %v10387_v7  ;;  %1827 = vmatprep.mubr.f32.mxu0 %v9464_v27  ;;  %v8664_v38 = vld [vmem:[%s15566_s0 + $0x108] sm:$0xff]  ;;  %v16067_v7 = vld [vmem:[#allocation18_spill] sm:$0xff] }
 0x184   :  { %v1519_v49 = vpop.f32.mrf.mxu1  ;;  %v1136_v17 = vpop.f32.mrf.mxu0  ;;  %2208 = vmatmul.mubr.f32.gmra.mxu1 %v8662_v48  ;;  %v16046_v48 = vld [vmem:[#allocation4_spill] sm:$0xff] }
 0x185   :  { %v10398_v40 = vadd.f32 %v1519_v49, %v1134_v33  ;;  %2212 = vmatprep.mubr.f32.mxu1 %v9481_v44 }
 0x186   :  { %v1521_v59 = vpop.f32.mrf.mxu1  ;;  %v1139_v19 = vpop.f32.mrf.mxu0  ;;  %1828 = vmatmul.mubr.f32.gmra.mxu0 %v9448_v13 }
 0x187   :  { %16042 = vst [vmem:[#allocation99_spill] sm:$0xff] %v10398_v40  ;;  %1832 = vmatprep.mubr.f32.mxu0 %v9485_v42 }
 0x188   :  { %v1524_v6 = vpop.f32.mrf.mxu1  ;;  %v1141_v63 = vpop.f32.mrf.mxu0  ;;  %2213 = vmatmul.mubr.f32.gmra.mxu1 %v8663_v60 }
 0x189   :  { %v10406_v46 = vadd.f32 %v1524_v6, %v1139_v19  ;;  %2217 = vmatprep.mubr.f32.mxu1 %v9494_v56  ;;  %v8665_v19 = vld [vmem:[%s15566_s0 + $0x110] sm:$0xff] }
 0x18a   :  { %v1526_v32 = vpop.f32.mrf.mxu1  ;;  %v1144_v35 = vpop.f32.mrf.mxu0  ;;  %1833 = vmatmul.mubr.f32.gmra.mxu0 %v9461_v23  ;;  %v16048_v63 = vld [vmem:[#allocation5_spill] sm:$0xff] }
 0x18b   :  { %16043 = vst [vmem:[#allocation100_spill] sm:$0xff] %v10406_v46  ;;  %1837 = vmatprep.mubr.f32.mxu0 %v9497_v61 }
 0x18c   :  { %v1529_v13 = vpop.f32.mrf.mxu1  ;;  %v1146_v8 = vpop.f32.mrf.mxu0  ;;  %2218 = vmatmul.mubr.f32.gmra.mxu1 %v8664_v38  ;;  %v8666_v38 = vld [vmem:[%s15566_s0 + $0x120] sm:$0xff] }
 0x18d   :  { %v10414_v33 = vadd.f32 %v1529_v13, %v1144_v35  ;;  %2222 = vmatprep.mubr.f32.mxu1 %v16045_v47  ;;  %v16049_v35 = vld [vmem:[#allocation6_spill] sm:$0xff] }
 0x18e   :  { %v1531_v49 = vpop.f32.mrf.mxu1  ;;  %v1149_v17 = vpop.f32.mrf.mxu0  ;;  %1838 = vmatmul.mubr.f32.gmra.mxu0 %v9481_v44  ;;  %v278_v44 = vld [vmem:[%s15565_s1 + $0x410] sm:$0xff] }
 0x18f   :  { %16044 = vst [vmem:[#allocation101_spill] sm:$0xff] %v10414_v33  ;;  %1842 = vmatprep.mubr.f32.mxu0 %v16046_v48  ;;  %8454 = vmatprep.subr.mxu0 %v278_v44 }
 0x190   :  { %v1534_v23 = vpop.f32.mrf.mxu1  ;;  %v1151_v59 = vpop.f32.mrf.mxu0  ;;  %2223 = vmatmul.mubr.f32.gmra.mxu1 %v8665_v19  ;;  %8455 = vmatpush3.msra.mxu0 %v278_v44  ;;  %v16055_v44 = vld [vmem:[#allocation10_spill] sm:$0xff] }
 0x191   :  { %v10422_v6 = vadd.f32 %v1534_v23, %v1149_v17  ;;  %2227 = vmatprep.mubr.f32.mxu1 %v16048_v63  ;;  %v16051_v17 = vld [vmem:[#allocation7_spill] sm:$0xff]  ;;  %v16052_v59 = vld [vmem:[#allocation8_spill] sm:$0xff] }
 0x192   :  { %v1536_v60 = vpop.f32.mrf.mxu1  ;;  %v1154_v32 = vpop.f32.mrf.mxu0  ;;  %1843 = vmatmul.mubr.f32.gmra.mxu0 %v9494_v56 }
 0x193   :  { %16047 = vst [vmem:[#allocation3_spill] sm:$0xff] %v10422_v6  ;;  %1847 = vmatprep.mubr.f32.mxu0 %v16049_v35 }
 0x194   :  { %v1539_v13 = vpop.f32.mrf.mxu1  ;;  %v1156_v8 = vpop.f32.mrf.mxu0  ;;  %2228 = vmatmul.mubr.f32.gmra.mxu1 %v8666_v38 }
 0x195   :  { %v10433_v49 = vadd.f32 %v1539_v13, %v1154_v32  ;;  %2232 = vmatprep.mubr.f32.mxu1 %v16051_v17  ;;  %v8667_v8 = vld [vmem:[%s15566_s0 + $0x128] sm:$0xff]  ;;  %v16054_v32 = vld [vmem:[#allocation9_spill] sm:$0xff] }
 0x196   :  { %v1541_v56 = vpop.f32.mrf.mxu1  ;;  %v1159_v23 = vpop.f32.mrf.mxu0  ;;  %1848 = vmatmul.mubr.f32.gmra.mxu0 %v16045_v47 }
 0x197   :  { %16050 = vst [vmem:[#allocation4_spill] sm:$0xff] %v10433_v49  ;;  %1852 = vmatprep.mubr.f32.mxu0 %v16052_v59 }
 0x198   :  { %v1544_v19 = vpop.f32.mrf.mxu1  ;;  %v1161_v60 = vpop.f32.mrf.mxu0  ;;  %2233 = vmatmul.mubr.f32.gmra.mxu1 %v8667_v8  ;;  %v16057_v8 = vld [vmem:[#allocation11_spill] sm:$0xff] }
 0x199   :  { %v10441_v38 = vadd.f32 %v1544_v19, %v1159_v23  ;;  %2237 = vmatprep.mubr.f32.mxu1 %v16054_v32  ;;  %v8668_v60 = vld [vmem:[%s15566_s0 + $0x138] sm:$0xff] }
 0x19a   :  { %v1546_v13 = vpop.f32.mrf.mxu1  ;;  %v1164_v49 = vpop.f32.mrf.mxu0  ;;  %1853 = vmatmul.mubr.f32.gmra.mxu0 %v16048_v63 }
 0x19b   :  { %16053 = vst [vmem:[#allocation5_spill] sm:$0xff] %v10441_v38  ;;  %1857 = vmatprep.mubr.f32.mxu0 %v16055_v44  ;;  %v16058_v13 = vld [vmem:[#allocation12_spill] sm:$0xff] }
 0x19c   :  { %v1549_v47 = vpop.f32.mrf.mxu1  ;;  %v1166_v56 = vpop.f32.mrf.mxu0  ;;  %2238 = vmatmul.mubr.f32.gmra.mxu1 %v8668_v60  ;;  %v16060_v60 = vld [vmem:[#allocation13_spill] sm:$0xff] }
 0x19d   :  { %v10449_v6 = vadd.f32 %v1549_v47, %v1164_v49  ;;  %2242 = vmatprep.mubr.f32.mxu1 %v16057_v8  ;;  %v8669_v56 = vld [vmem:[%s15566_s0 + $0x140] sm:$0xff] }
 0x19e   :  { %v1551_v23 = vpop.f32.mrf.mxu1  ;;  %v1169_v19 = vpop.f32.mrf.mxu0  ;;  %1858 = vmatmul.mubr.f32.gmra.mxu0 %v16051_v17  ;;  %v277_v17 = vld [vmem:[%s15565_s1 + $0x408] sm:$0xff] }
 0x19f   :  { %16056 = vst [vmem:[#allocation6_spill] sm:$0xff] %v10449_v6  ;;  %1862 = vmatprep.mubr.f32.mxu0 %v16058_v13  ;;  %v16061_v23 = vld [vmem:[#allocation14_spill] sm:$0xff]  ;;  %8456 = vmatprep.subr.mxu0 %v277_v17 }
 0x1a0   :  { %v1554_v63 = vpop.f32.mrf.mxu1  ;;  %v1171_v38 = vpop.f32.mrf.mxu0  ;;  %2243 = vmatmul.mubr.f32.gmra.mxu1 %v8669_v56  ;;  %v8670_v56 = vld [vmem:[%s15566_s0 + $0x150] sm:$0xff]  ;;  %8457 = vmatpush3.msra.mxu0 %v277_v17 }
 0x1a1   :  { %v10457_v33 = vadd.f32 %v1554_v63, %v1169_v19  ;;  %2247 = vmatprep.mubr.f32.mxu1 %v16060_v60  ;;  %v16063_v63 = vld [vmem:[#allocation15_spill] sm:$0xff] }
 0x1a2   :  { %v1556_v49 = vpop.f32.mrf.mxu1  ;;  %v1174_v47 = vpop.f32.mrf.mxu0  ;;  %1863 = vmatmul.mubr.f32.gmra.mxu0 %v16054_v32 }
 0x1a3   :  { %16059 = vst [vmem:[#allocation7_spill] sm:$0xff] %v10457_v33  ;;  %1867 = vmatprep.mubr.f32.mxu0 %v16061_v23  ;;  %v16064_v33 = vld [vmem:[#allocation16_spill] sm:$0xff] }
 0x1a4   :  { %v1559_v38 = vpop.f32.mrf.mxu1  ;;  %v1176_v6 = vpop.f32.mrf.mxu0  ;;  %2248 = vmatmul.mubr.f32.gmra.mxu1 %v8670_v56 }
 0x1a5   :  { %v10468_v19 = vadd.f32 %v1559_v38, %v1174_v47  ;;  %2252 = vmatprep.mubr.f32.mxu1 %v16063_v63  ;;  %v8671_v6 = vld [vmem:[%s15566_s0 + $0x158] sm:$0xff] }
 0x1a6   :  { %v1561_v32 = vpop.f32.mrf.mxu1  ;;  %v1179_v49 = vpop.f32.mrf.mxu0  ;;  %1868 = vmatmul.mubr.f32.gmra.mxu0 %v16057_v8  ;;  %v16066_v47 = vld [vmem:[#allocation17_spill] sm:$0xff]  ;;  %v8672_v8 = vld [vmem:[%s15566_s0 + $0x180] sm:$0xff] }
 0x1a7   :  { %16062 = vst [vmem:[#allocation9_spill] sm:$0xff] %v10468_v19  ;;  %1872 = vmatprep.mubr.f32.mxu0 %v16064_v33  ;;  %v846_v17 = vrot.slane %v8672_v8, 1  ;;  %v16070_v33 = vld [vmem:[#allocation20_spill] sm:$0xff] }
 0x1a8   :  { %v1564_v46 = vpop.f32.mrf.mxu1  ;;  %v1181_v40 = vpop.f32.mrf.mxu0  ;;  %2253 = vmatmul.mubr.f32.gmra.mxu1 %v8671_v6 }
 0x1a9   :  { %v10476_v56 = vadd.f32 %v1564_v46, %v1179_v49  ;;  %2257 = vmatprep.mubr.f32.mxu1 %v16066_v47  ;;  %v8673_v40 = vld [vmem:[%s15566_s0 + $0x188] sm:$0xff]  ;;  %v90_v46 = vld [vmem:[%s15566_s0 + $0x190] sm:$0x3] }
 0x1aa   :  { %v1566_v38 = vpop.f32.mrf.mxu1  ;;  %v1184_v19 = vpop.f32.mrf.mxu0  ;;  %1873 = vmatmul.mubr.f32.gmra.mxu0 %v16060_v60  ;;  %v847_v32 = vrot.slane %v8673_v40, 1  ;;  %v8674_v60 = vld [vmem:[%s15566_s0 + $0x168] sm:$0xff] }
 0x1ab   :  { %16065 = vst [vmem:[#allocation11_spill] sm:$0xff] %v10476_v56  ;;  %1877 = vmatprep.mubr.f32.mxu0 %v16067_v7  ;;  %v16069_v56 = vld [vmem:[#allocation19_spill] sm:$0xff]  ;;  %v849_v7 = vrot.slane %v90_v46, 1 }
 0x1ac   :  { %v1569_v49 = vpop.f32.mrf.mxu1  ;;  %v1186_v6 = vpop.f32.mrf.mxu0  ;;  %2258 = vmatmul.mubr.f32.gmra.mxu1 %v8674_v60  ;;  %v848_v51 = vsel %vm390_vm0, %v846_v17, %v847_v32  ;;  %v860_v17 = vrot.slane %v8672_v8, 2  ;;  %v861_v60 = vrot.slane %v8673_v40, 2 }
 0x1ad   :  { %v10493_v38 = vadd.f32 %v1569_v49, %v1184_v19  ;;  %2262 = vmatprep.mubr.f32.mxu1 %v16069_v56  ;;  %v10502_v6 = vld [vmem:[%s15566_s0 + $0x198] sm:$0xff]  ;;  %v10507_v19 = vld [vmem:[%s15566_s0 + $0x1a0] sm:$0xff]  ;;  %v850_v23 = vsel %vm390_vm0, %v847_v32, %v849_v7 }
 0x1ae   :  { %v1571_v9 = vpop.f32.mrf.mxu1  ;;  %v1189_v20 = vpop.f32.mrf.mxu0  ;;  %1878 = vmatmul.mubr.f32.gmra.mxu0 %v16063_v63  ;;  %v8675_v63 = vld [vmem:[%s15566_s0 + $0x170] sm:$0xff]  ;;  %v880_v13 = vrot.slane %v10502_v6, 1  ;;  %v10528_v7 = vsel %vm615_vm1, %v860_v17, %v861_v60 }
 0x1af   :  { %16068 = vst [vmem:[#allocation13_spill] sm:$0xff] %v10493_v38  ;;  %1882 = vmatprep.mubr.f32.mxu0 %v16070_v33 }
 0x1b0   :  { %v1574_v49 = vpop.f32.mrf.mxu1  ;;  %v1191_v9 = vpop.f32.mrf.mxu0  ;;  %2263 = vmatmul.mubr.f32.gmra.mxu1 %v8675_v63  ;;  %v10522_v63 = vld [vmem:[%s15566_s0 + $0x1a8] sm:$0x3] }
 0x1b1   :  { %v10512_v38 = vadd.f32 %v1574_v49, %v1189_v20  ;;  %2267 = vmatprep.mubr.f32.mxu1 %v848_v51  ;;  %v881_v9 = vrot.slane %v10507_v19, 1  ;;  %v276_v20 = vld [vmem:[%s15565_s1 + $0x400] sm:$0xff]  ;;  %v883_v59 = vrot.slane %v10522_v63, 1 }
 0x1b2   :  { %v1576_v33 = vpop.f32.mrf.mxu1  ;;  %v1194_v26 = vpop.f32.mrf.mxu0  ;;  %1883 = vmatmul.mubr.f32.gmra.mxu0 %v16066_v47  ;;  %v863_v47 = vrot.slane %v90_v46, 2  ;;  %8458 = vmatprep.subr.mxu0 %v276_v20 }
 0x1b3   :  { %16071 = vst [vmem:[#allocation15_spill] sm:$0xff] %v10512_v38  ;;  %1887 = vmatprep.mubr.f32.mxu0 %v16072_v37  ;;  %8459 = vmatpush3.msra.mxu0 %v276_v20  ;;  %v882_v44 = vsel %vm390_vm0, %v880_v13, %v881_v9 }
 0x1b4   :  { %v1579_v33 = vpop.f32.mrf.mxu1  ;;  %v1196_v49 = vpop.f32.mrf.mxu0  ;;  %2268 = vmatmul.mubr.f32.gmra.mxu1 %v8672_v8  ;;  %v10537_v46 = vsel %vm615_vm1, %v861_v60, %v863_v47 }
 0x1b5   :  { %v10530_v32 = vadd.f32 %v1579_v33, %v1194_v26  ;;  %2272 = vmatprep.mubr.f32.mxu1 %v850_v23 }
 0x1b6   :  { %v1581_v38 = vpop.f32.mrf.mxu1  ;;  %v1199_v37 = vpop.f32.mrf.mxu0  ;;  %1888 = vmatmul.mubr.f32.gmra.mxu0 %v16069_v56  ;;  %v884_v56 = vsel %vm390_vm0, %v881_v9, %v883_v59  ;;  %v16078_v59 = vld [vmem:[#allocation25_spill] sm:$0xff] }
 0x1b7   :  { %16073 = vst [vmem:[#allocation17_spill] sm:$0xff] %v10530_v32  ;;  %1892 = vmatprep.mubr.f32.mxu0 %v10528_v7 }
 0x1b8   :  { %v1584_v8 = vpop.f32.mrf.mxu1  ;;  %v1201_v49 = vpop.f32.mrf.mxu0  ;;  %2273 = vmatmul.mubr.f32.gmra.mxu1 %v8673_v40 }
 0x1b9   :  { %v10539_v26 = vadd.f32 %v1584_v8, %v1199_v37  ;;  %2277 = vmatprep.mubr.f32.mxu1 %v882_v44  ;;  %v16076_v37 = vld [vmem:[#allocation24_spill] sm:$0xff]  ;;  %v16079_v49 = vld [vmem:[#allocation22_spill] sm:$0xff] }
 0x1ba   :  { %v1586_v17 = vpop.f32.mrf.mxu1  ;;  %v1204_v38 = vpop.f32.mrf.mxu0  ;;  %1893 = vmatmul.mubr.f32.gmra.mxu0 %v848_v51 }
 0x1bb   :  { %16074 = vst [vmem:[#allocation19_spill] sm:$0xff] %v10539_v26  ;;  %1897 = vmatprep.mubr.f32.mxu0 %v10537_v46  ;;  %v16080_v17 = vld [vmem:[#allocation26_spill] sm:$0xff] }
 0x1bc   :  { %v1589_v13 = vpop.f32.mrf.mxu1  ;;  %v1206_v20 = vpop.f32.mrf.mxu0  ;;  %2278 = vmatmul.mubr.f32.gmra.mxu1 %v10502_v6 }
 0x1bd   :  { %v10544_v33 = vadd.f32 %v1589_v13, %v1204_v38  ;;  %2282 = vmatprep.mubr.f32.mxu1 %v884_v56  ;;  %v16082_v20 = vld [vmem:[#allocation27_spill] sm:$0xff] }
 0x1be   :  { %v1591_v40 = vpop.f32.mrf.mxu1  ;;  %v1209_v60 = vpop.f32.mrf.mxu0  ;;  %1898 = vmatmul.mubr.f32.gmra.mxu0 %v850_v23  ;;  %v8676_v23 = vld [vmem:[%s15566_s0 + $0x1e0] sm:$0xff] }
 0x1bf   :  { %16075 = vst [vmem:[#allocation102_spill] sm:$0xff] %v10544_v33  ;;  %1902 = vmatprep.mubr.f32.mxu0 %v16076_v37  ;;  %v16083_v37 = vld [vmem:[#allocation23_spill] sm:$0xff] }
 0x1c0   :  { %v1594_v44 = vpop.f32.mrf.mxu1  ;;  %v1211_v47 = vpop.f32.mrf.mxu0  ;;  %2283 = vmatmul.mubr.f32.gmra.mxu1 %v10507_v19 }
 0x1c1   :  { %v10548_v51 = vadd.f32 %v1594_v44, %v1209_v60  ;;  %2287 = vmatprep.mubr.f32.mxu1 %v16078_v59  ;;  %v16084_v44 = vld [vmem:[#allocation28_spill] sm:$0xff] }
 0x1c2   :  { %v1596_v9 = vpop.f32.mrf.mxu1  ;;  %v1214_v8 = vpop.f32.mrf.mxu0  ;;  %1903 = vmatmul.mubr.f32.gmra.mxu0 %v16079_v49  ;;  %v8677_v49 = vld [vmem:[%s15566_s0 + $0x1e8] sm:$0xff] }
 0x1c3   :  { %16077 = vst [vmem:[#allocation24_spill] sm:$0xff] %v10548_v51  ;;  %1907 = vmatprep.mubr.f32.mxu0 %v16080_v17 }
 0x1c4   :  { %v1599_v38 = vpop.f32.mrf.mxu1  ;;  %v1216_v56 = vpop.f32.mrf.mxu0  ;;  %2288 = vmatmul.mubr.f32.gmra.mxu1 %v8676_v23  ;;  %v16087_v23 = vld [vmem:[#allocation30_spill] sm:$0xff] }
 0x1c5   :  { %v10556_v13 = vadd.f32 %v1599_v38, %v1214_v8  ;;  %2292 = vmatprep.mubr.f32.mxu1 %v16082_v20  ;;  %v16086_v56 = vld [vmem:[#allocation29_spill] sm:$0xff] }
 0x1c6   :  { %v1601_v40 = vpop.f32.mrf.mxu1  ;;  %v1219_v60 = vpop.f32.mrf.mxu0  ;;  %1908 = vmatmul.mubr.f32.gmra.mxu0 %v16083_v37 }
 0x1c7   :  { %16081 = vst [vmem:[#allocation25_spill] sm:$0xff] %v10556_v13  ;;  %1912 = vmatprep.mubr.f32.mxu0 %v16084_v44 }
 0x1c8   :  { %v1604_v47 = vpop.f32.mrf.mxu1  ;;  %v1221_v9 = vpop.f32.mrf.mxu0  ;;  %2293 = vmatmul.mubr.f32.gmra.mxu1 %v8677_v49  ;;  %v16089_v49 = vld [vmem:[#allocation31_spill] sm:$0xff] }
 0x1c9   :  { %v10564_v17 = vadd.f32 %v1604_v47, %v1219_v60  ;;  %2297 = vmatprep.mubr.f32.mxu1 %v16086_v56  ;;  %v8678_v9 = vld [vmem:[%s15566_s0 + $0x1f8] sm:$0xff] }
 0x1ca   :  { %v1606_v8 = vpop.f32.mrf.mxu1  ;;  %v1224_v38 = vpop.f32.mrf.mxu0  ;;  %1913 = vmatmul.mubr.f32.gmra.mxu0 %v16078_v59 }
 0x1cb   :  { %16085 = vst [vmem:[#allocation22_spill] sm:$0xff] %v10564_v17  ;;  %1917 = vmatprep.mubr.f32.mxu0 %v16087_v23  ;;  %v16090_v8 = vld [vmem:[#allocation32_spill] sm:$0xff] }
 0x1cc   :  { %v1609_v40 = vpop.f32.mrf.mxu1  ;;  %v1226_v37 = vpop.f32.mrf.mxu0  ;;  %2298 = vmatmul.mubr.f32.gmra.mxu1 %v8678_v9  ;;  %v16092_v9 = vld [vmem:[#allocation33_spill] sm:$0xff] }
 0x1cd   :  { %v10572_v13 = vadd.f32 %v1609_v40, %v1224_v38  ;;  %2302 = vmatprep.mubr.f32.mxu1 %v16089_v49  ;;  %v8679_v37 = vld [vmem:[%s15566_s0 + $0x200] sm:$0xff] }
 0x1ce   :  { %v1611_v60 = vpop.f32.mrf.mxu1  ;;  %v1229_v47 = vpop.f32.mrf.mxu0  ;;  %1918 = vmatmul.mubr.f32.gmra.mxu0 %v16082_v20 }
 0x1cf   :  { %16088 = vst [vmem:[#allocation26_spill] sm:$0xff] %v10572_v13  ;;  %1922 = vmatprep.mubr.f32.mxu0 %v16090_v8  ;;  %v16093_v60 = vld [vmem:[#allocation34_spill] sm:$0xff] }
 0x1d0   :  { %v1614_v59 = vpop.f32.mrf.mxu1  ;;  %v1231_v17 = vpop.f32.mrf.mxu0  ;;  %2303 = vmatmul.mubr.f32.gmra.mxu1 %v8679_v37  ;;  %v16095_v37 = vld [vmem:[#allocation35_spill] sm:$0xff] }
 0x1d1   :  { %v10580_v51 = vadd.f32 %v1614_v59, %v1229_v47  ;;  %2307 = vmatprep.mubr.f32.mxu1 %v16092_v9  ;;  %v8680_v17 = vld [vmem:[%s15566_s0 + $0x210] sm:$0xff] }
 0x1d2   :  { %v1616_v38 = vpop.f32.mrf.mxu1  ;;  %v1234_v40 = vpop.f32.mrf.mxu0  ;;  %1923 = vmatmul.mubr.f32.gmra.mxu0 %v16086_v56 }
 0x1d3   :  { %16091 = vst [vmem:[#allocation27_spill] sm:$0xff] %v10580_v51  ;;  %1927 = vmatprep.mubr.f32.mxu0 %v16093_v60  ;;  %v16096_v38 = vld [vmem:[#allocation36_spill] sm:$0xff]  ;;  %v16170_v60 = vld [vmem:[#allocation89_spill] sm:$0xff] }
 0x1d4   :  { %v1619_v20 = vpop.f32.mrf.mxu1  ;;  %v1236_v13 = vpop.f32.mrf.mxu0  ;;  %2308 = vmatmul.mubr.f32.gmra.mxu1 %v8680_v17  ;;  %v16098_v17 = vld [vmem:[#allocation37_spill] sm:$0xff] }
 0x1d5   :  { %v10588_v33 = vadd.f32 %v1619_v20, %v1234_v40  ;;  %2312 = vmatprep.mubr.f32.mxu1 %v16095_v37  ;;  %v8681_v13 = vld [vmem:[%s15566_s0 + $0x218] sm:$0xff] }
 0x1d6   :  { %v1621_v47 = vpop.f32.mrf.mxu1  ;;  %v1239_v59 = vpop.f32.mrf.mxu0  ;;  %1928 = vmatmul.mubr.f32.gmra.mxu0 %v16089_v49 }
 0x1d7   :  { %16094 = vst [vmem:[#allocation23_spill] sm:$0xff] %v10588_v33  ;;  %1932 = vmatprep.mubr.f32.mxu0 %v16096_v38  ;;  %v16099_v47 = vld [vmem:[#allocation38_spill] sm:$0xff] }
 0x1d8   :  { %v1624_v56 = vpop.f32.mrf.mxu1  ;;  %v1241_v51 = vpop.f32.mrf.mxu0  ;;  %2313 = vmatmul.mubr.f32.gmra.mxu1 %v8681_v13  ;;  %v16101_v13 = vld [vmem:[#allocation39_spill] sm:$0xff] }
 0x1d9   :  { %v10596_v26 = vadd.f32 %v1624_v56, %v1239_v59  ;;  %2317 = vmatprep.mubr.f32.mxu1 %v16098_v17  ;;  %v8682_v51 = vld [vmem:[%s15566_s0 + $0x228] sm:$0xff] }
 0x1da   :  { %v1626_v40 = vpop.f32.mrf.mxu1  ;;  %v1244_v20 = vpop.f32.mrf.mxu0  ;;  %1933 = vmatmul.mubr.f32.gmra.mxu0 %v16092_v9 }
 0x1db   :  { %16097 = vst [vmem:[#allocation28_spill] sm:$0xff] %v10596_v26  ;;  %1937 = vmatprep.mubr.f32.mxu0 %v16099_v47  ;;  %v16102_v40 = vld [vmem:[#allocation40_spill] sm:$0xff] }
 0x1dc   :  { %v1629_v49 = vpop.f32.mrf.mxu1  ;;  %v1246_v33 = vpop.f32.mrf.mxu0  ;;  %2318 = vmatmul.mubr.f32.gmra.mxu1 %v8682_v51  ;;  %v16104_v51 = vld [vmem:[#allocation41_spill] sm:$0xff] }
 0x1dd   :  { %v10604_v32 = vadd.f32 %v1629_v49, %v1244_v20  ;;  %2322 = vmatprep.mubr.f32.mxu1 %v16101_v13  ;;  %v8683_v33 = vld [vmem:[%s15566_s0 + $0x230] sm:$0xff] }
 0x1de   :  { %v1631_v59 = vpop.f32.mrf.mxu1  ;;  %v1249_v56 = vpop.f32.mrf.mxu0  ;;  %1938 = vmatmul.mubr.f32.gmra.mxu0 %v16095_v37 }
 0x1df   :  { %16100 = vst [vmem:[#allocation29_spill] sm:$0xff] %v10604_v32  ;;  %1942 = vmatprep.mubr.f32.mxu0 %v16102_v40  ;;  %v16105_v59 = vld [vmem:[#allocation42_spill] sm:$0xff] }
 0x1e0   :  { %v1634_v9 = vpop.f32.mrf.mxu1  ;;  %v1251_v26 = vpop.f32.mrf.mxu0  ;;  %2323 = vmatmul.mubr.f32.gmra.mxu1 %v8683_v33  ;;  %v16107_v33 = vld [vmem:[#allocation43_spill] sm:$0xff] }
 0x1e1   :  { %v10612_v47 = vadd.f32 %v1634_v9, %v1249_v56  ;;  %2327 = vmatprep.mubr.f32.mxu1 %v16104_v51  ;;  %v8684_v26 = vld [vmem:[%s15566_s0 + $0x240] sm:$0xff] }
 0x1e2   :  { %v1636_v20 = vpop.f32.mrf.mxu1  ;;  %v1254_v49 = vpop.f32.mrf.mxu0  ;;  %1943 = vmatmul.mubr.f32.gmra.mxu0 %v16098_v17 }
 0x1e3   :  { %16103 = vst [vmem:[#allocation30_spill] sm:$0xff] %v10612_v47  ;;  %1947 = vmatprep.mubr.f32.mxu0 %v16105_v59  ;;  %v16108_v20 = vld [vmem:[#allocation44_spill] sm:$0xff] }
 0x1e4   :  { %v1639_v37 = vpop.f32.mrf.mxu1  ;;  %v1256_v32 = vpop.f32.mrf.mxu0  ;;  %2328 = vmatmul.mubr.f32.gmra.mxu1 %v8684_v26  ;;  %v16110_v26 = vld [vmem:[#allocation45_spill] sm:$0xff] }
 0x1e5   :  { %v10620_v40 = vadd.f32 %v1639_v37, %v1254_v49  ;;  %2332 = vmatprep.mubr.f32.mxu1 %v16107_v33  ;;  %v8685_v32 = vld [vmem:[%s15566_s0 + $0x248] sm:$0xff] }
 0x1e6   :  { %v1641_v56 = vpop.f32.mrf.mxu1  ;;  %v1259_v9 = vpop.f32.mrf.mxu0  ;;  %1948 = vmatmul.mubr.f32.gmra.mxu0 %v16101_v13 }
 0x1e7   :  { %16106 = vst [vmem:[#allocation31_spill] sm:$0xff] %v10620_v40  ;;  %1952 = vmatprep.mubr.f32.mxu0 %v16108_v20  ;;  %v16111_v56 = vld [vmem:[#allocation46_spill] sm:$0xff] }
 0x1e8   :  { %v1644_v17 = vpop.f32.mrf.mxu1  ;;  %v1261_v47 = vpop.f32.mrf.mxu0  ;;  %2333 = vmatmul.mubr.f32.gmra.mxu1 %v8685_v32  ;;  %v16113_v32 = vld [vmem:[#allocation47_spill] sm:$0xff] }
 0x1e9   :  { %v10628_v59 = vadd.f32 %v1644_v17, %v1259_v9  ;;  %2337 = vmatprep.mubr.f32.mxu1 %v16110_v26  ;;  %v8686_v47 = vld [vmem:[%s15566_s0 + $0x258] sm:$0xff] }
 0x1ea   :  { %v1646_v49 = vpop.f32.mrf.mxu1  ;;  %v1264_v37 = vpop.f32.mrf.mxu0  ;;  %1953 = vmatmul.mubr.f32.gmra.mxu0 %v16104_v51 }
 0x1eb   :  { %16109 = vst [vmem:[#allocation33_spill] sm:$0xff] %v10628_v59  ;;  %1957 = vmatprep.mubr.f32.mxu0 %v16111_v56  ;;  %v16114_v49 = vld [vmem:[#allocation48_spill] sm:$0xff] }
 0x1ec   :  { %v1649_v13 = vpop.f32.mrf.mxu1  ;;  %v1266_v40 = vpop.f32.mrf.mxu0  ;;  %2338 = vmatmul.mubr.f32.gmra.mxu1 %v8686_v47  ;;  %v16116_v47 = vld [vmem:[#allocation49_spill] sm:$0xff] }
 0x1ed   :  { %v10636_v20 = vadd.f32 %v1649_v13, %v1264_v37  ;;  %2342 = vmatprep.mubr.f32.mxu1 %v16113_v32  ;;  %v8687_v40 = vld [vmem:[%s15566_s0 + $0x260] sm:$0xff] }
 0x1ee   :  { %v1651_v9 = vpop.f32.mrf.mxu1  ;;  %v1269_v17 = vpop.f32.mrf.mxu0  ;;  %1958 = vmatmul.mubr.f32.gmra.mxu0 %v16107_v33 }
 0x1ef   :  { %16112 = vst [vmem:[#allocation35_spill] sm:$0xff] %v10636_v20  ;;  %1962 = vmatprep.mubr.f32.mxu0 %v16114_v49  ;;  %v16117_v9 = vld [vmem:[#allocation50_spill] sm:$0xff] }
 0x1f0   :  { %v1654_v51 = vpop.f32.mrf.mxu1  ;;  %v1271_v59 = vpop.f32.mrf.mxu0  ;;  %2343 = vmatmul.mubr.f32.gmra.mxu1 %v8687_v40  ;;  %v16119_v40 = vld [vmem:[#allocation51_spill] sm:$0xff] }
 0x1f1   :  { %v10644_v56 = vadd.f32 %v1654_v51, %v1269_v17  ;;  %2347 = vmatprep.mubr.f32.mxu1 %v16116_v47  ;;  %v8688_v59 = vld [vmem:[%s15566_s0 + $0x270] sm:$0xff] }
 0x1f2   :  { %v1656_v37 = vpop.f32.mrf.mxu1  ;;  %v1274_v13 = vpop.f32.mrf.mxu0  ;;  %1963 = vmatmul.mubr.f32.gmra.mxu0 %v16110_v26 }
 0x1f3   :  { %16115 = vst [vmem:[#allocation37_spill] sm:$0xff] %v10644_v56  ;;  %1967 = vmatprep.mubr.f32.mxu0 %v16117_v9  ;;  %v16120_v37 = vld [vmem:[#allocation52_spill] sm:$0xff] }
 0x1f4   :  { %v1659_v33 = vpop.f32.mrf.mxu1  ;;  %v1276_v20 = vpop.f32.mrf.mxu0  ;;  %2348 = vmatmul.mubr.f32.gmra.mxu1 %v8688_v59  ;;  %v16122_v59 = vld [vmem:[#allocation53_spill] sm:$0xff] }
 0x1f5   :  { %v10652_v49 = vadd.f32 %v1659_v33, %v1274_v13  ;;  %2352 = vmatprep.mubr.f32.mxu1 %v16119_v40  ;;  %v8689_v20 = vld [vmem:[%s15566_s0 + $0x278] sm:$0xff] }
 0x1f6   :  { %v1661_v17 = vpop.f32.mrf.mxu1  ;;  %v1279_v51 = vpop.f32.mrf.mxu0  ;;  %1968 = vmatmul.mubr.f32.gmra.mxu0 %v16113_v32 }
 0x1f7   :  { %16118 = vst [vmem:[#allocation39_spill] sm:$0xff] %v10652_v49  ;;  %1972 = vmatprep.mubr.f32.mxu0 %v16120_v37  ;;  %v16123_v17 = vld [vmem:[#allocation55_spill] sm:$0xff] }
 0x1f8   :  { %v1664_v26 = vpop.f32.mrf.mxu1  ;;  %v1281_v56 = vpop.f32.mrf.mxu0  ;;  %2353 = vmatmul.mubr.f32.gmra.mxu1 %v8689_v20  ;;  %v16125_v20 = vld [vmem:[#allocation56_spill] sm:$0xff] }
 0x1f9   :  { %v10660_v9 = vadd.f32 %v1664_v26, %v1279_v51  ;;  %2357 = vmatprep.mubr.f32.mxu1 %v16122_v59  ;;  %v8690_v56 = vld [vmem:[%s15566_s0 + $0x288] sm:$0xff] }
 0x1fa   :  { %v1666_v13 = vpop.f32.mrf.mxu1  ;;  %v1284_v33 = vpop.f32.mrf.mxu0  ;;  %1973 = vmatmul.mubr.f32.gmra.mxu0 %v16116_v47 }
 0x1fb   :  { %16121 = vst [vmem:[#allocation41_spill] sm:$0xff] %v10660_v9  ;;  %1977 = vmatprep.mubr.f32.mxu0 %v16123_v17  ;;  %v16126_v13 = vld [vmem:[#allocation58_spill] sm:$0xff] }
 0x1fc   :  { %v1669_v32 = vpop.f32.mrf.mxu1  ;;  %v1286_v49 = vpop.f32.mrf.mxu0  ;;  %2358 = vmatmul.mubr.f32.gmra.mxu1 %v8690_v56  ;;  %v16128_v56 = vld [vmem:[#allocation59_spill] sm:$0xff] }
 0x1fd   :  { %v10668_v37 = vadd.f32 %v1669_v32, %v1284_v33  ;;  %2362 = vmatprep.mubr.f32.mxu1 %v16125_v20  ;;  %v8691_v49 = vld [vmem:[%s15566_s0 + $0x290] sm:$0xff] }
 0x1fe   :  { %v1671_v51 = vpop.f32.mrf.mxu1  ;;  %v1289_v26 = vpop.f32.mrf.mxu0  ;;  %1978 = vmatmul.mubr.f32.gmra.mxu0 %v16119_v40  ;;  %v16130_v40 = vld [vmem:[#allocation61_spill] sm:$0xff] }
 0x1ff   :  { %16124 = vst [vmem:[#allocation43_spill] sm:$0xff] %v10668_v37  ;;  %1982 = vmatprep.mubr.f32.mxu0 %v16126_v13  ;;  %v16129_v51 = vld [vmem:[#allocation54_spill] sm:$0xff] }
 0x200   :  { %v1674_v47 = vpop.f32.mrf.mxu1  ;;  %v1291_v9 = vpop.f32.mrf.mxu0  ;;  %2363 = vmatmul.mubr.f32.gmra.mxu1 %v8691_v49 }
 0x201   :  { %v10676_v17 = vadd.f32 %v1674_v47, %v1289_v26  ;;  %2367 = vmatprep.mubr.f32.mxu1 %v16128_v56  ;;  %v8692_v9 = vld [vmem:[%s15566_s0 + $0x2a0] sm:$0xff] }
 0x202   :  { %v1676_v33 = vpop.f32.mrf.mxu1  ;;  %v1744_v32 = vpop.f32.mrf.mxu0  ;;  %1983 = vmatmul.mubr.f32.gmra.mxu0 %v16122_v59  ;;  %v16132_v26 = vld [vmem:[#allocation62_spill] sm:$0xff]  ;;  %v16133_v59 = vld [vmem:[#allocation57_spill] sm:$0xff] }
 0x203   :  { %16127 = vst [vmem:[#allocation45_spill] sm:$0xff] %v10676_v17  ;;  %v1745_v37 = vadd.f32 %v1744_v32, %v16129_v51  ;;  %1987 = vmatprep.mubr.f32.mxu0 %v16130_v40  ;;  %v16134_v32 = vld [vmem:[#allocation64_spill] sm:$0xff] }
 0x204   :  { %v1746_v13 = vpop.f32.mrf.mxu0  ;;  %v2129_v38 = vpop.f32.mrf.mxu1  ;;  %2368 = vmatmul.mubr.f32.gmra.mxu1 %v8692_v9  ;;  %v8693_v40 = vld [vmem:[%s15566_s0 + $0x2a8] sm:$0xff] }
 0x205   :  { %v10685_v49 = vadd.f32 %v2129_v38, %v1745_v37  ;;  %2372 = vmatprep.mubr.f32.mxu1 %v16132_v26  ;;  %v16136_v38 = vld [vmem:[#allocation65_spill] sm:$0xff] }
 0x206   :  { %v1749_v47 = vpop.f32.mrf.mxu0  ;;  %1988 = vmatmul.mubr.f32.gmra.mxu0 %v16125_v20  ;;  %v2131_v33 = vpop.f32.mrf.mxu1 }
 0x207   :  { %16131 = vst [vmem:[#allocation47_spill] sm:$0xff] %v10685_v49  ;;  %v1750_v17 = vadd.f32 %v1749_v47, %v16133_v59  ;;  %1992 = vmatprep.mubr.f32.mxu0 %v16134_v32  ;;  %v16137_v33 = vld [vmem:[#allocation60_spill] sm:$0xff]  ;;  %v16138_v47 = vld [vmem:[#allocation67_spill] sm:$0xff]  ;;  %v8694_v32 = vld [vmem:[%s15566_s0 + $0x2b8] sm:$0xff] }
 0x208   :  { %v1751_v51 = vpop.f32.mrf.mxu0  ;;  %v2134_v13 = vpop.f32.mrf.mxu1  ;;  %2373 = vmatmul.mubr.f32.gmra.mxu1 %v8693_v40 }
 0x209   :  { %v10694_v9 = vadd.f32 %v2134_v13, %v1750_v17  ;;  %2377 = vmatprep.mubr.f32.mxu1 %v16136_v38  ;;  %v16140_v17 = vld [vmem:[#allocation68_spill] sm:$0xff] }
 0x20a   :  { %v1754_v37 = vpop.f32.mrf.mxu0  ;;  %1993 = vmatmul.mubr.f32.gmra.mxu0 %v16128_v56  ;;  %v2136_v20 = vpop.f32.mrf.mxu1 }
 0x20b   :  { %16135 = vst [vmem:[#allocation49_spill] sm:$0xff] %v10694_v9  ;;  %v1755_v49 = vadd.f32 %v1754_v37, %v16137_v33  ;;  %1997 = vmatprep.mubr.f32.mxu0 %v16138_v47  ;;  %v16141_v20 = vld [vmem:[#allocation63_spill] sm:$0xff]  ;;  %v16142_v37 = vld [vmem:[#allocation70_spill] sm:$0xff] }
 0x20c   :  { %v1756_v59 = vpop.f32.mrf.mxu0  ;;  %v2139_v51 = vpop.f32.mrf.mxu1  ;;  %2378 = vmatmul.mubr.f32.gmra.mxu1 %v8694_v32  ;;  %v8695_v47 = vld [vmem:[%s15566_s0 + $0x2c0] sm:$0xff] }
 0x20d   :  { %v10703_v40 = vadd.f32 %v2139_v51, %v1755_v49  ;;  %2382 = vmatprep.mubr.f32.mxu1 %v16140_v17  ;;  %v16144_v49 = vld [vmem:[#allocation71_spill] sm:$0xff] }
 0x20e   :  { %v1759_v13 = vpop.f32.mrf.mxu0  ;;  %1998 = vmatmul.mubr.f32.gmra.mxu0 %v16132_v26  ;;  %v2141_v56 = vpop.f32.mrf.mxu1 }
 0x20f   :  { %16139 = vst [vmem:[#allocation51_spill] sm:$0xff] %v10703_v40  ;;  %v1760_v9 = vadd.f32 %v1759_v13, %v16141_v20  ;;  %2002 = vmatprep.mubr.f32.mxu0 %v16142_v37  ;;  %v16145_v56 = vld [vmem:[#allocation66_spill] sm:$0xff]  ;;  %v16146_v13 = vld [vmem:[#allocation73_spill] sm:$0xff] }
 0x210   :  { %v1761_v33 = vpop.f32.mrf.mxu0  ;;  %v2144_v59 = vpop.f32.mrf.mxu1  ;;  %2383 = vmatmul.mubr.f32.gmra.mxu1 %v8695_v47  ;;  %v8696_v37 = vld [vmem:[%s15566_s0 + $0x2d0] sm:$0xff] }
 0x211   :  { %v10712_v32 = vadd.f32 %v2144_v59, %v1760_v9  ;;  %2387 = vmatprep.mubr.f32.mxu1 %v16144_v49  ;;  %v16148_v9 = vld [vmem:[#allocation74_spill] sm:$0xff] }
 0x212   :  { %v1764_v51 = vpop.f32.mrf.mxu0  ;;  %2003 = vmatmul.mubr.f32.gmra.mxu0 %v16136_v38  ;;  %v2146_v26 = vpop.f32.mrf.mxu1 }
 0x213   :  { %16143 = vst [vmem:[#allocation53_spill] sm:$0xff] %v10712_v32  ;;  %v1765_v40 = vadd.f32 %v1764_v51, %v16145_v56  ;;  %2007 = vmatprep.mubr.f32.mxu0 %v16146_v13  ;;  %v16149_v26 = vld [vmem:[#allocation69_spill] sm:$0xff]  ;;  %v16150_v51 = vld [vmem:[#allocation76_spill] sm:$0xff] }
 0x214   :  { %v1766_v20 = vpop.f32.mrf.mxu0  ;;  %v2149_v33 = vpop.f32.mrf.mxu1  ;;  %2388 = vmatmul.mubr.f32.gmra.mxu1 %v8696_v37  ;;  %v8697_v13 = vld [vmem:[%s15566_s0 + $0x2d8] sm:$0xff] }
 0x215   :  { %v10721_v47 = vadd.f32 %v2149_v33, %v1765_v40  ;;  %2392 = vmatprep.mubr.f32.mxu1 %v16148_v9  ;;  %v16152_v40 = vld [vmem:[#allocation77_spill] sm:$0xff] }
 0x216   :  { %v1769_v59 = vpop.f32.mrf.mxu0  ;;  %2008 = vmatmul.mubr.f32.gmra.mxu0 %v16140_v17  ;;  %v2151_v38 = vpop.f32.mrf.mxu1 }
 0x217   :  { %16147 = vst [vmem:[#allocation56_spill] sm:$0xff] %v10721_v47  ;;  %v1770_v32 = vadd.f32 %v1769_v59, %v16149_v26  ;;  %2012 = vmatprep.mubr.f32.mxu0 %v16150_v51  ;;  %v16153_v38 = vld [vmem:[#allocation72_spill] sm:$0xff]  ;;  %v16154_v59 = vld [vmem:[#allocation79_spill] sm:$0xff] }
 0x218   :  { %v1771_v56 = vpop.f32.mrf.mxu0  ;;  %v2154_v20 = vpop.f32.mrf.mxu1  ;;  %2393 = vmatmul.mubr.f32.gmra.mxu1 %v8697_v13  ;;  %v8698_v51 = vld [vmem:[%s15566_s0 + $0x2e8] sm:$0xff] }
 0x219   :  { %v10730_v37 = vadd.f32 %v2154_v20, %v1770_v32  ;;  %2397 = vmatprep.mubr.f32.mxu1 %v16152_v40  ;;  %v16156_v32 = vld [vmem:[#allocation80_spill] sm:$0xff] }
 0x21a   :  { %v1774_v33 = vpop.f32.mrf.mxu0  ;;  %2013 = vmatmul.mubr.f32.gmra.mxu0 %v16144_v49  ;;  %v2156_v17 = vpop.f32.mrf.mxu1 }
 0x21b   :  { %16151 = vst [vmem:[#allocation59_spill] sm:$0xff] %v10730_v37  ;;  %v1775_v47 = vadd.f32 %v1774_v33, %v16153_v38  ;;  %2017 = vmatprep.mubr.f32.mxu0 %v16154_v59  ;;  %v16157_v17 = vld [vmem:[#allocation75_spill] sm:$0xff]  ;;  %v16158_v33 = vld [vmem:[#allocation82_spill] sm:$0xff]  ;;  %v8699_v59 = vld [vmem:[%s15566_s0 + $0x2f0] sm:$0xff] }
 0x21c   :  { %v1776_v26 = vpop.f32.mrf.mxu0  ;;  %v2159_v56 = vpop.f32.mrf.mxu1  ;;  %2398 = vmatmul.mubr.f32.gmra.mxu1 %v8698_v51 }
 0x21d   :  { %v10739_v13 = vadd.f32 %v2159_v56, %v1775_v47  ;;  %2402 = vmatprep.mubr.f32.mxu1 %v16156_v32  ;;  %v16160_v47 = vld [vmem:[#allocation83_spill] sm:$0xff] }
 0x21e   :  { %v1779_v20 = vpop.f32.mrf.mxu0  ;;  %2018 = vmatmul.mubr.f32.gmra.mxu0 %v16148_v9  ;;  %v2161_v49 = vpop.f32.mrf.mxu1 }
 0x21f   :  { %16155 = vst [vmem:[#allocation54_spill] sm:$0xff] %v10739_v13  ;;  %v1780_v37 = vadd.f32 %v1779_v20, %v16157_v17  ;;  %2022 = vmatprep.mubr.f32.mxu0 %v16158_v33  ;;  %v16161_v49 = vld [vmem:[#allocation78_spill] sm:$0xff] }
 0x220   :  { %v1781_v38 = vpop.f32.mrf.mxu0  ;;  %v2164_v26 = vpop.f32.mrf.mxu1  ;;  %2403 = vmatmul.mubr.f32.gmra.mxu1 %v8699_v59 }
 0x221   :  { %v10748_v51 = vadd.f32 %v2164_v26, %v1780_v37  ;;  %2407 = vmatprep.mubr.f32.mxu1 %v16160_v47  ;;  %v8700_v38 = vld [vmem:[%s15566_s0 + $0x300] sm:$0xff]  ;;  %v16163_v26 = vld [vmem:[#allocation81_spill] sm:$0xff] }
 0x222   :  { %v1784_v56 = vpop.f32.mrf.mxu0  ;;  %2023 = vmatmul.mubr.f32.gmra.mxu0 %v16152_v40  ;;  %v2166_v9 = vpop.f32.mrf.mxu1 }
 0x223   :  { %16159 = vst [vmem:[#allocation62_spill] sm:$0xff] %v10748_v51  ;;  %v1785_v13 = vadd.f32 %v1784_v56, %v16161_v49  ;;  %2027 = vmatprep.mubr.f32.mxu0 %v10166_v34 }
 0x224   :  { %v1786_v20 = vpop.f32.mrf.mxu0  ;;  %v2169_v17 = vpop.f32.mrf.mxu1  ;;  %2408 = vmatmul.mubr.f32.gmra.mxu1 %v8700_v38 }
 0x225   :  { %v10757_v59 = vadd.f32 %v2169_v17, %v1785_v13  ;;  %2412 = vmatprep.mubr.f32.mxu1 %v10179_v10  ;;  %v8701_v20 = vld [vmem:[%s15566_s0 + $0x308] sm:$0xff] }
 0x226   :  { %v1789_v37 = vpop.f32.mrf.mxu0  ;;  %2028 = vmatmul.mubr.f32.gmra.mxu0 %v16156_v32  ;;  %v2171_v40 = vpop.f32.mrf.mxu1  ;;  %v16165_v13 = vld [vmem:[#allocation88_spill] sm:$0xff] }
 0x227   :  { %16162 = vst [vmem:[#allocation57_spill] sm:$0xff] %v10757_v59  ;;  %v1790_v9 = vadd.f32 %v1789_v37, %v16163_v26  ;;  %2032 = vmatprep.mubr.f32.mxu0 %v10184_v41  ;;  %v8702_v37 = vld [vmem:[%s15566_s0 + $0x330] sm:$0xff]  ;;  %v8703_v26 = vld [vmem:[%s15566_s0 + $0x338] sm:$0xff] }
 0x228   :  { %v1791_v56 = vpop.f32.mrf.mxu0  ;;  %v2174_v49 = vpop.f32.mrf.mxu1  ;;  %2413 = vmatmul.mubr.f32.gmra.mxu1 %v8701_v20  ;;  %v851_v40 = vrot.slane %v8702_v37, 1  ;;  %v16166_v59 = vld [vmem:[#allocation84_spill] sm:$0xff]  ;;  %v16168_v41 = vld [vmem:[#allocation86_spill] sm:$0xff] }
 0x229   :  { %v10766_v38 = vadd.f32 %v2174_v49, %v1790_v9  ;;  %2417 = vmatprep.mubr.f32.mxu1 %v16165_v13  ;;  %v852_v56 = vrot.slane %v8703_v26, 1  ;;  %v144_v9 = vld [vmem:[%s15566_s0 + $0x340] sm:$0x3] }
 0x22a   :  { %v1794_v17 = vpop.f32.mrf.mxu0  ;;  %2033 = vmatmul.mubr.f32.gmra.mxu0 %v16160_v47  ;;  %v2176_v32 = vpop.f32.mrf.mxu1 }
 0x22b   :  { %16164 = vst [vmem:[#allocation65_spill] sm:$0xff] %v10766_v38  ;;  %v1795_v20 = vadd.f32 %v1794_v17, %v16166_v59  ;;  %2037 = vmatprep.mubr.f32.mxu0 %v10197_v18  ;;  %v8704_v32 = vld [vmem:[%s15566_s0 + $0x318] sm:$0xff]  ;;  %v853_v17 = vsel %vm390_vm0, %v851_v40, %v852_v56  ;;  %v854_v18 = vrot.slane %v144_v9, 1  ;;  %v8705_v40 = vld [vmem:[%s15566_s0 + $0x320] sm:$0xff] }
 0x22c   :  { %v1796_v47 = vpop.f32.mrf.mxu0  ;;  %v2179_v49 = vpop.f32.mrf.mxu1  ;;  %2418 = vmatmul.mubr.f32.gmra.mxu1 %v8704_v32 }
 0x22d   :  { %v10784_v38 = vadd.f32 %v2179_v49, %v1795_v20  ;;  %2422 = vmatprep.mubr.f32.mxu1 %v10206_v1  ;;  %v10794_v47 = vld [vmem:[%s15566_s0 + $0x348] sm:$0xff]  ;;  %v10799_v20 = vld [vmem:[%s15566_s0 + $0x350] sm:$0xff] }
 0x22e   :  { %v1799_v51 = vpop.f32.mrf.mxu0  ;;  %2038 = vmatmul.mubr.f32.gmra.mxu0 %v10179_v10  ;;  %v2181_v59 = vpop.f32.mrf.mxu1  ;;  %v885_v33 = vrot.slane %v10794_v47, 1 }
 0x22f   :  { %16167 = vst [vmem:[#allocation60_spill] sm:$0xff] %v10784_v38  ;;  %v1800_v34 = vadd.f32 %v1799_v51, %v16168_v41  ;;  %2042 = vmatprep.mubr.f32.mxu0 %v10211_v31  ;;  %v865_v41 = vrot.slane %v8702_v37, 2  ;;  %v866_v51 = vrot.slane %v8703_v26, 2  ;;  %v855_v31 = vsel %vm390_vm0, %v852_v56, %v854_v18 }
 0x230   :  { %v1801_v49 = vpop.f32.mrf.mxu0  ;;  %v2184_v10 = vpop.f32.mrf.mxu1  ;;  %2423 = vmatmul.mubr.f32.gmra.mxu1 %v8705_v40  ;;  %v868_v18 = vrot.slane %v144_v9, 2 }
 0x231   :  { %v10804_v32 = vadd.f32 %v2184_v10, %v1800_v34  ;;  %2427 = vmatprep.mubr.f32.mxu1 %v853_v17  ;;  %v886_v49 = vrot.slane %v10799_v20, 1  ;;  %v10815_v34 = vld [vmem:[%s15566_s0 + $0x358] sm:$0x3] }
 0x232   :  { %v1804_v59 = vpop.f32.mrf.mxu0  ;;  %2043 = vmatmul.mubr.f32.gmra.mxu0 %v16165_v13  ;;  %v2186_v38 = vpop.f32.mrf.mxu1  ;;  %v10828_v9 = vsel %vm615_vm1, %v866_v51, %v868_v18 }
 0x233   :  { %16169 = vst [vmem:[#allocation68_spill] sm:$0xff] %v10804_v32  ;;  %v1805_v8 = vadd.f32 %v1804_v59, %v16170_v60  ;;  %2047 = vmatprep.mubr.f32.mxu0 %v10221_v39  ;;  %v10818_v38 = vsel %vm615_vm1, %v865_v41, %v866_v51  ;;  %v887_v59 = vsel %vm390_vm0, %v885_v33, %v886_v49  ;;  %v888_v32 = vrot.slane %v10815_v34, 1 }
 0x234   :  { %v1806_v10 = vpop.f32.mrf.mxu0  ;;  %v2189_v40 = vpop.f32.mrf.mxu1  ;;  %2428 = vmatmul.mubr.f32.gmra.mxu1 %v8702_v37 }
 0x235   :  { %v10820_v13 = vadd.f32 %v2189_v40, %v1805_v8  ;;  %2432 = vmatprep.mubr.f32.mxu1 %v855_v31  ;;  %v889_v33 = vsel %vm390_vm0, %v886_v49, %v888_v32 }
 0x236   :  { %v1809_v56 = vpop.f32.mrf.mxu0  ;;  %2048 = vmatmul.mubr.f32.gmra.mxu0 %v10206_v1  ;;  %v2191_v60 = vpop.f32.mrf.mxu1 }
 0x237   :  { %v1810_v39 = vadd.f32 %v1809_v56, %v10208_v14  ;;  %2052 = vmatprep.mubr.f32.mxu0 %v10818_v38 }
 0x238   :  { %v1811_v37 = vpop.f32.mrf.mxu0  ;;  %v2194_v10 = vpop.f32.mrf.mxu1  ;;  %2433 = vmatmul.mubr.f32.gmra.mxu1 %v8703_v26 }
 0x239   :  { %v10830_v8 = vadd.f32 %v2194_v10, %v1810_v39  ;;  %2437 = vmatprep.mubr.f32.mxu1 %v887_v59 }
 0x23a   :  { %v1814_v41 = vpop.f32.mrf.mxu0  ;;  %2053 = vmatmul.mubr.f32.gmra.mxu0 %v853_v17  ;;  %v2196_v1 = vpop.f32.mrf.mxu1 }
 0x23b   :  { %v1815_v40 = vadd.f32 %v1814_v41, %v10218_v5  ;;  %2057 = vmatprep.mubr.f32.mxu0 %v10828_v9 }
 0x23c   :  { %v1816_v14 = vpop.f32.mrf.mxu0  ;;  %v2199_v56 = vpop.f32.mrf.mxu1  ;;  %2438 = vmatmul.mubr.f32.gmra.mxu1 %v10794_v47 }
 0x23d   :  { %v10836_v26 = vadd.f32 %v2199_v56, %v1815_v40  ;;  %2442 = vmatprep.mubr.f32.mxu1 %v889_v33 }
 0x23e   :  { %v1819_v51 = vpop.f32.mrf.mxu0  ;;  %2058 = vmatmul.mubr.f32.gmra.mxu0 %v855_v31  ;;  %v2201_v39 = vpop.f32.mrf.mxu1 }
 0x23f   :  { %v1820_v18 = vadd.f32 %v1819_v51, %v10225_v28  ;;  %8460 = vmatprep.mubr.f32.mxu0 %v9137_v50 }
 0x240   :  { %v1821_v17 = vpop.f32.mrf.mxu0  ;;  %v2204_v32 = vpop.f32.mrf.mxu1  ;;  %2443 = vmatmul.mubr.f32.gmra.mxu1 %v10799_v20 }
 0x241   :  { %v10841_v5 = vadd.f32 %v2204_v32, %v1820_v18 }
 0x242   :  { %v1824_v49 = vpop.f32.mrf.mxu0  ;;  %v2206_v60 = vpop.f32.mrf.mxu1  ;;  %8461 = vmatmul.mubr.f32.vlgmr.msra.gmra.mxu0 %v9157_v57 }
 0x243   :  { %v1825_v59 = vadd.f32 %v1824_v49, %v10240_v16  ;;  %8463 = vmatprep.mubr.f32.mxu0 %v9184_v4 }
 0x244   :  { %v1826_v31 = vpop.f32.mrf.mxu0  ;;  %v2209_v37 = vpop.f32.mrf.mxu1 }
 0x245   :  { %v10846_v10 = vadd.f32 %v2209_v37, %v1825_v59 }
 0x246   :  { %v1829_v28 = vpop.f32.mrf.mxu0  ;;  %v2211_v50 = vpop.f32.mrf.mxu1  ;;  %8464 = vmatmul.mubr.f32.gmra.mxu0 %v9204_v11 }
 0x247   :  { %v1830_v41 = vadd.f32 %v1829_v28, %v10254_v24  ;;  %8466 = vmatprep.mubr.f32.mxu0 %v9231_v22 }
 0x248   :  { %v1831_v1 = vpop.f32.mrf.mxu0  ;;  %v2214_v33 = vpop.f32.mrf.mxu1 }
 0x249   :  { %v10851_v40 = vadd.f32 %v2214_v33, %v1830_v41 }
 0x24a   :  { %v1834_v57 = vpop.f32.mrf.mxu0  ;;  %v2216_v16 = vpop.f32.mrf.mxu1  ;;  %8467 = vmatmul.mubr.f32.gmra.mxu0 %v9251_v30 }
 0x24b   :  { %v1835_v4 = vadd.f32 %v1834_v57, %v10268_v21  ;;  %8469 = vmatprep.mubr.f32.mxu0 %v9278_v43 }
 0x24c   :  { %v1836_v14 = vpop.f32.mrf.mxu0  ;;  %v2219_v56 = vpop.f32.mrf.mxu1 }
 0x24d   :  { %v10856_v51 = vadd.f32 %v2219_v56, %v1835_v4  ;;  %v16171_v56 = vld [vmem:[#allocation8_spill] sm:$0xff] }
 0x24e   :  { %v1839_v11 = vpop.f32.mrf.mxu0  ;;  %v2221_v24 = vpop.f32.mrf.mxu1  ;;  %8470 = vmatmul.mubr.f32.gmra.mxu0 %v9298_v52 }
 0x24f   :  { %v1840_v22 = vadd.f32 %v1839_v11, %v10282_v0  ;;  %8472 = vmatprep.mubr.f32.mxu0 %v9325_v2 }
 0x250   :  { %v1841_v39 = vpop.f32.mrf.mxu0  ;;  %v2224_v18 = vpop.f32.mrf.mxu1 }
 0x251   :  { %v10861_v17 = vadd.f32 %v2224_v18, %v1840_v22  ;;  %v16172_v39 = vld [vmem:[#allocation10_spill] sm:$0xff] }
 0x252   :  { %v1844_v30 = vpop.f32.mrf.mxu0  ;;  %v2226_v21 = vpop.f32.mrf.mxu1  ;;  %8473 = vmatmul.mubr.f32.gmra.mxu0 %v9345_v12 }
 0x253   :  { %v1845_v43 = vadd.f32 %v1844_v30, %v10293_v53  ;;  %8475 = vmatprep.mubr.f32.mxu0 %v9372_v25  ;;  %v16174_v30 = vld [vmem:[#allocation12_spill] sm:$0xff] }
 0x254   :  { %v1846_v32 = vpop.f32.mrf.mxu0  ;;  %v2229_v49 = vpop.f32.mrf.mxu1 }
 0x255   :  { %v10866_v60 = vadd.f32 %v2229_v49, %v1845_v43  ;;  %v16175_v49 = vld [vmem:[#allocation14_spill] sm:$0xff] }
 0x256   :  { %v1849_v52 = vpop.f32.mrf.mxu0  ;;  %v2231_v0 = vpop.f32.mrf.mxu1  ;;  %8476 = vmatmul.mubr.f32.gmra.mxu0 %v9392_v36 }
 0x257   :  { %v1850_v2 = vadd.f32 %v1849_v52, %v10301_v45  ;;  %8478 = vmatprep.mubr.f32.mxu0 %v9416_v55  ;;  %v16176_v52 = vld [vmem:[#allocation94_spill] sm:$0xff] }
 0x258   :  { %v1851_v59 = vpop.f32.mrf.mxu0  ;;  %v2234_v31 = vpop.f32.mrf.mxu1 }
 0x259   :  { %v10871_v37 = vadd.f32 %v2234_v31, %v1850_v2  ;;  %v16177_v2 = vld [vmem:[#allocation16_spill] sm:$0xff] }
 0x25a   :  { %v1854_v12 = vpop.f32.mrf.mxu0  ;;  %v2236_v53 = vpop.f32.mrf.mxu1  ;;  %8479 = vmatmul.mubr.f32.gmra.mxu0 %v9429_v62 }
 0x25b   :  { %v1855_v25 = vadd.f32 %v1854_v12, %v10309_v29  ;;  %8481 = vmatprep.mubr.f32.mxu0 %v9452_v15 }
 0x25c   :  { %v1856_v28 = vpop.f32.mrf.mxu0  ;;  %v2239_v50 = vpop.f32.mrf.mxu1 }
 0x25d   :  { %v10876_v41 = vadd.f32 %v2239_v50, %v1855_v25  ;;  %v16178_v28 = vld [vmem:[#allocation18_spill] sm:$0xff]  ;;  %v16179_v50 = vld [vmem:[#allocation95_spill] sm:$0xff] }
 0x25e   :  { %v1859_v36 = vpop.f32.mrf.mxu0  ;;  %v2241_v45 = vpop.f32.mrf.mxu1  ;;  %8482 = vmatmul.mubr.f32.gmra.mxu0 %v9464_v27 }
 0x25f   :  { %v1860_v55 = vadd.f32 %v1859_v36, %v10317_v54  ;;  %8484 = vmatprep.mubr.f32.mxu0 %v9485_v42  ;;  %v16180_v45 = vld [vmem:[#allocation20_spill] sm:$0xff] }
 0x260   :  { %v1861_v1 = vpop.f32.mrf.mxu0  ;;  %v2244_v33 = vpop.f32.mrf.mxu1 }
 0x261   :  { %v10881_v57 = vadd.f32 %v2244_v33, %v1860_v55  ;;  %v894_v33 = vrot.slane %v10502_v6, 2 }
 0x262   :  { %v1864_v62 = vpop.f32.mrf.mxu0  ;;  %v2246_v29 = vpop.f32.mrf.mxu1  ;;  %8485 = vmatmul.mubr.f32.gmra.mxu0 %v9497_v61 }
 0x263   :  { %v1865_v15 = vadd.f32 %v1864_v62, %v10328_v58  ;;  %8487 = vmatprep.mubr.f32.mxu0 %v16046_v48  ;;  %v16173_v48 = vld [vmem:[#allocation93_spill] sm:$0xff]  ;;  %v895_v62 = vrot.slane %v10507_v19, 2 }
 0x264   :  { %v1866_v16 = vpop.f32.mrf.mxu0  ;;  %v2249_v4 = vpop.f32.mrf.mxu1 }
 0x265   :  { %v10886_v14 = vadd.f32 %v2249_v4, %v1865_v15  ;;  %v16181_v4 = vld [vmem:[#allocation21_spill] sm:$0xff] }
 0x266   :  { %v1869_v27 = vpop.f32.mrf.mxu0  ;;  %v2251_v54 = vpop.f32.mrf.mxu1  ;;  %8488 = vmatmul.mubr.f32.gmra.mxu0 %v16049_v35 }
 0x267   :  { %v1870_v42 = vadd.f32 %v1869_v27, %v10336_v3  ;;  %8490 = vmatprep.mubr.f32.mxu0 %v16171_v56  ;;  %v16182_v27 = vld [vmem:[#allocation96_spill] sm:$0xff] }
 0x268   :  { %v1871_v11 = vpop.f32.mrf.mxu0  ;;  %v2254_v24 = vpop.f32.mrf.mxu1 }
 0x269   :  { %v10891_v22 = vadd.f32 %v2254_v24, %v1870_v42  ;;  %v897_v42 = vrot.slane %v10522_v63, 2  ;;  %v896_v24 = vsel %vm615_vm1, %v894_v33, %v895_v62 }
 0x26a   :  { %v1874_v61 = vpop.f32.mrf.mxu0  ;;  %v2256_v58 = vpop.f32.mrf.mxu1  ;;  %8491 = vmatmul.mubr.f32.gmra.mxu0 %v16172_v39 }
 0x26b   :  { %v1875_v18 = vadd.f32 %v1874_v61, %v16173_v48  ;;  %8493 = vmatprep.mubr.f32.mxu0 %v16174_v30  ;;  %v16183_v58 = vld [vmem:[#allocation97_spill] sm:$0xff]  ;;  %v898_v48 = vsel %vm615_vm1, %v895_v62, %v897_v42  ;;  %v16192_v42 = vld [vmem:[#allocation40_spill] sm:$0xff] }
 0x26c   :  { %v1876_v21 = vpop.f32.mrf.mxu0  ;;  %v2259_v43 = vpop.f32.mrf.mxu1 }
 0x26d   :  { %v10896_v32 = vadd.f32 %v2259_v43, %v1875_v18  ;;  %v16184_v43 = vld [vmem:[#allocation98_spill] sm:$0xff] }
 0x26e   :  { %v1879_v35 = vpop.f32.mrf.mxu0  ;;  %v2261_v3 = vpop.f32.mrf.mxu1  ;;  %8494 = vmatmul.mubr.f32.gmra.mxu0 %v16175_v49 }
 0x26f   :  { %v1880_v0 = vadd.f32 %v1879_v35, %v16176_v52  ;;  %8496 = vmatprep.mubr.f32.mxu0 %v16177_v2  ;;  %v16185_v2 = vld [vmem:[#allocation99_spill] sm:$0xff] }
 0x270   :  { %v1881_v59 = vpop.f32.mrf.mxu0  ;;  %v2264_v31 = vpop.f32.mrf.mxu1 }
 0x271   :  { %v10901_v12 = vadd.f32 %v2264_v31, %v1880_v0  ;;  %v16186_v31 = vld [vmem:[#allocation32_spill] sm:$0xff] }
 0x272   :  { %v1884_v53 = vpop.f32.mrf.mxu0  ;;  %v2266_v25 = vpop.f32.mrf.mxu1  ;;  %8497 = vmatmul.mubr.f32.gmra.mxu0 %v16178_v28 }
 0x273   :  { %v1885_v36 = vadd.f32 %v1884_v53, %v16179_v50  ;;  %8499 = vmatprep.mubr.f32.mxu0 %v16180_v45  ;;  %v16187_v45 = vld [vmem:[#allocation34_spill] sm:$0xff] }
 0x274   :  { %v1886_v55 = vpop.f32.mrf.mxu0  ;;  %v2269_v1 = vpop.f32.mrf.mxu1 }
 0x275   :  { %v10908_v29 = vadd.f32 %v2269_v1, %v1885_v36  ;;  %v16189_v1 = vld [vmem:[#allocation36_spill] sm:$0xff] }
 0x276   :  { %v1889_v15 = vpop.f32.mrf.mxu0  ;;  %v2271_v16 = vpop.f32.mrf.mxu1  ;;  %8500 = vmatmul.mubr.f32.gmra.mxu0 %v16181_v4  ;;  %v16190_v4 = vld [vmem:[#allocation38_spill] sm:$0xff] }
 0x277   :  { %v1890_v54 = vadd.f32 %v1889_v15, %v16182_v27  ;;  %8502 = vmatprep.mubr.f32.mxu0 %v10528_v7  ;;  %v16191_v27 = vld [vmem:[#allocation101_spill] sm:$0xff] }
 0x278   :  { %v1891_v56 = vpop.f32.mrf.mxu0  ;;  %v2274_v11 = vpop.f32.mrf.mxu1 }
 0x279   :  { %v10915_v61 = vadd.f32 %v2274_v11, %v1890_v54 }
 0x27a   :  { %v1894_v6 = vpop.f32.mrf.mxu0  ;;  %v2276_v19 = vpop.f32.mrf.mxu1  ;;  %8503 = vmatmul.mubr.f32.gmra.mxu0 %v10537_v46 }
 0x27b   :  { %v1895_v39 = vadd.f32 %v1894_v6, %v16183_v58  ;;  %8505 = vmatprep.mubr.f32.mxu0 %v896_v24  ;;  %v16193_v58 = vld [vmem:[#allocation42_spill] sm:$0xff] }
 0x27c   :  { %v1896_v18 = vpop.f32.mrf.mxu0  ;;  %v2279_v30 = vpop.f32.mrf.mxu1 }
 0x27d   :  { %v10920_v7 = vadd.f32 %v2279_v30, %v1895_v39  ;;  %v16194_v39 = vld [vmem:[#allocation3_spill] sm:$0xff]  ;;  %v16195_v18 = vld [vmem:[#allocation44_spill] sm:$0xff] }
 0x27e   :  { %v1899_v63 = vpop.f32.mrf.mxu0  ;;  %v2281_v21 = vpop.f32.mrf.mxu1  ;;  %8506 = vmatmul.mubr.f32.gmra.mxu0 %v898_v48 }
 0x27f   :  { %v1900_v35 = vadd.f32 %v1899_v63, %v16184_v43  ;;  %8508 = vmatprep.mubr.f32.mxu0 %v16084_v44  ;;  %v16188_v44 = vld [vmem:[#allocation100_spill] sm:$0xff] }
 0x280   :  { %v1901_v3 = vpop.f32.mrf.mxu0  ;;  %v2284_v49 = vpop.f32.mrf.mxu1 }
 0x281   :  { %v10924_v52 = vadd.f32 %v2284_v49, %v1900_v35  ;;  %v16196_v3 = vld [vmem:[#allocation46_spill] sm:$0xff]  ;;  %v16197_v49 = vld [vmem:[#allocation4_spill] sm:$0xff] }
 0x282   :  { %v1904_v46 = vpop.f32.mrf.mxu0  ;;  %v2286_v0 = vpop.f32.mrf.mxu1  ;;  %8509 = vmatmul.mubr.f32.gmra.mxu0 %v16087_v23 }
 0x283   :  { %v1905_v59 = vadd.f32 %v1904_v46, %v16185_v2  ;;  %8511 = vmatprep.mubr.f32.mxu0 %v16186_v31  ;;  %v16198_v0 = vld [vmem:[#allocation48_spill] sm:$0xff] }
 0x284   :  { %v1906_v53 = vpop.f32.mrf.mxu0  ;;  %v2289_v25 = vpop.f32.mrf.mxu1 }
 0x285   :  { %v10929_v28 = vadd.f32 %v2289_v25, %v1905_v59 }
 0x286   :  { %v1909_v50 = vpop.f32.mrf.mxu0  ;;  %v2291_v36 = vpop.f32.mrf.mxu1  ;;  %8512 = vmatmul.mubr.f32.gmra.mxu0 %v16187_v45 }
 0x287   :  { %v1910_v55 = vadd.f32 %v1909_v50, %v16188_v44  ;;  %8514 = vmatprep.mubr.f32.mxu0 %v16189_v1  ;;  %v16199_v50 = vld [vmem:[#allocation50_spill] sm:$0xff]  ;;  %v16200_v36 = vld [vmem:[#allocation5_spill] sm:$0xff]  ;;  %v16201_v44 = vld [vmem:[#allocation52_spill] sm:$0xff] }
 0x288   :  { %v1911_v33 = vpop.f32.mrf.mxu0  ;;  %v2294_v62 = vpop.f32.mrf.mxu1 }
 0x289   :  { %v10934_v15 = vadd.f32 %v2294_v62, %v1910_v55 }
 0x28a   :  { %v1914_v23 = vpop.f32.mrf.mxu0  ;;  %v2296_v16 = vpop.f32.mrf.mxu1  ;;  %8515 = vmatmul.mubr.f32.gmra.mxu0 %v16190_v4  ;;  %v16203_v4 = vld [vmem:[#allocation6_spill] sm:$0xff] }
 0x28b   :  { %v1915_v54 = vadd.f32 %v1914_v23, %v16191_v27  ;;  %8517 = vmatprep.mubr.f32.mxu0 %v16192_v42  ;;  %v16202_v16 = vld [vmem:[#allocation55_spill] sm:$0xff] }
 0x28c   :  { %v1916_v56 = vpop.f32.mrf.mxu0  ;;  %v2299_v11 = vpop.f32.mrf.mxu1 }
 0x28d   :  { %v10939_v24 = vadd.f32 %v2299_v11, %v1915_v54  ;;  %v16204_v54 = vld [vmem:[#allocation58_spill] sm:$0xff] }
 0x28e   :  { %v1919_v6 = vpop.f32.mrf.mxu0  ;;  %v2301_v19 = vpop.f32.mrf.mxu1  ;;  %8518 = vmatmul.mubr.f32.gmra.mxu0 %v16193_v58  ;;  %v16205_v58 = vld [vmem:[#allocation61_spill] sm:$0xff] }
 0x28f   :  { %v1920_v48 = vadd.f32 %v1919_v6, %v16194_v39  ;;  %8520 = vmatprep.mubr.f32.mxu0 %v16195_v18  ;;  %v16206_v39 = vld [vmem:[#allocation7_spill] sm:$0xff]  ;;  %v16207_v18 = vld [vmem:[#allocation64_spill] sm:$0xff] }
 0x290   :  { %v1921_v30 = vpop.f32.mrf.mxu0  ;;  %v2304_v63 = vpop.f32.mrf.mxu1 }
 0x291   :  { %v10944_v21 = vadd.f32 %v2304_v63, %v1920_v48 }
 0x292   :  { %v1924_v43 = vpop.f32.mrf.mxu0  ;;  %v2306_v35 = vpop.f32.mrf.mxu1  ;;  %8521 = vmatmul.mubr.f32.gmra.mxu0 %v16196_v3 }
 0x293   :  { %v1925_v46 = vadd.f32 %v1924_v43, %v16197_v49  ;;  %8523 = vmatprep.mubr.f32.mxu0 %v16198_v0  ;;  %v16208_v49 = vld [vmem:[#allocation67_spill] sm:$0xff] }
 0x294   :  { %v1926_v2 = vpop.f32.mrf.mxu0  ;;  %v2309_v59 = vpop.f32.mrf.mxu1 }
 0x295   :  { %v10949_v31 = vadd.f32 %v2309_v59, %v1925_v46  ;;  %v16209_v46 = vld [vmem:[#allocation9_spill] sm:$0xff]  ;;  %v16210_v2 = vld [vmem:[#allocation70_spill] sm:$0xff] }
 0x296   :  { %v1929_v53 = vpop.f32.mrf.mxu0  ;;  %v2311_v25 = vpop.f32.mrf.mxu1  ;;  %8524 = vmatmul.mubr.f32.gmra.mxu0 %v16199_v50 }
 0x297   :  { %v1930_v45 = vadd.f32 %v1929_v53, %v16200_v36  ;;  %8526 = vmatprep.mubr.f32.mxu0 %v16201_v44  ;;  %v16212_v44 = vld [vmem:[#allocation11_spill] sm:$0xff] }
 0x298   :  { %v1931_v55 = vpop.f32.mrf.mxu0  ;;  %v2314_v1 = vpop.f32.mrf.mxu1 }
 0x299   :  { %v10954_v33 = vadd.f32 %v2314_v1, %v1930_v45  ;;  %v16211_v45 = vld [vmem:[#allocation73_spill] sm:$0xff]  ;;  %v16213_v1 = vld [vmem:[#allocation76_spill] sm:$0xff] }
 0x29a   :  { %v1934_v62 = vpop.f32.mrf.mxu0  ;;  %v2316_v23 = vpop.f32.mrf.mxu1  ;;  %8527 = vmatmul.mubr.f32.gmra.mxu0 %v16202_v16 }
 0x29b   :  { %v1935_v27 = vadd.f32 %v1934_v62, %v16203_v4  ;;  %8529 = vmatprep.mubr.f32.mxu0 %v16204_v54  ;;  %v16214_v54 = vld [vmem:[#allocation79_spill] sm:$0xff] }
 0x29c   :  { %v1936_v42 = vpop.f32.mrf.mxu0  ;;  %v2319_v56 = vpop.f32.mrf.mxu1 }
 0x29d   :  { %v10959_v11 = vadd.f32 %v2319_v56, %v1935_v27  ;;  %v16215_v42 = vld [vmem:[#allocation13_spill] sm:$0xff] }
 0x29e   :  { %v1939_v6 = vpop.f32.mrf.mxu0  ;;  %v2321_v19 = vpop.f32.mrf.mxu1  ;;  %8530 = vmatmul.mubr.f32.gmra.mxu0 %v16205_v58 }
 0x29f   :  { %v1940_v48 = vadd.f32 %v1939_v6, %v16206_v39  ;;  %8532 = vmatprep.mubr.f32.mxu0 %v16207_v18  ;;  %v16216_v6 = vld [vmem:[#allocation82_spill] sm:$0xff] }
 0x2a0   :  { %v1941_v30 = vpop.f32.mrf.mxu0  ;;  %v2324_v63 = vpop.f32.mrf.mxu1 }
 0x2a1   :  { %v10964_v43 = vadd.f32 %v2324_v63, %v1940_v48  ;;  %v16217_v30 = vld [vmem:[#allocation85_spill] sm:$0xff]  ;;  %v16218_v63 = vld [vmem:[#allocation15_spill] sm:$0xff] }
 0x2a2   :  { %v1944_v35 = vpop.f32.mrf.mxu0  ;;  %v2326_v3 = vpop.f32.mrf.mxu1  ;;  %8533 = vmatmul.mubr.f32.gmra.mxu0 %v16208_v49 }
 0x2a3   :  { %v1945_v0 = vadd.f32 %v1944_v35, %v16209_v46  ;;  %8535 = vmatprep.mubr.f32.mxu0 %v16210_v2  ;;  %v16219_v3 = vld [vmem:[#allocation87_spill] sm:$0xff] }
 0x2a4   :  { %v1946_v59 = vpop.f32.mrf.mxu0  ;;  %v2329_v53 = vpop.f32.mrf.mxu1 }
 0x2a5   :  { %v10969_v25 = vadd.f32 %v2329_v53, %v1945_v0  ;;  %v16220_v53 = vld [vmem:[#allocation90_spill] sm:$0xff] }
 0x2a6   :  { %v1949_v50 = vpop.f32.mrf.mxu0  ;;  %v2331_v36 = vpop.f32.mrf.mxu1  ;;  %8536 = vmatmul.mubr.f32.gmra.mxu0 %v16211_v45  ;;  %v16222_v45 = vld [vmem:[#allocation91_spill] sm:$0xff] }
 0x2a7   :  { %v1950_v55 = vadd.f32 %v1949_v50, %v16212_v44  ;;  %8538 = vmatprep.mubr.f32.mxu0 %v16213_v1  ;;  %v16221_v50 = vld [vmem:[#allocation17_spill] sm:$0xff]  ;;  %v899_v1 = vrot.slane %v10794_v47, 2 }
 0x2a8   :  { %v1951_v62 = vpop.f32.mrf.mxu0  ;;  %v2334_v23 = vpop.f32.mrf.mxu1 }
 0x2a9   :  { %v10974_v16 = vadd.f32 %v2334_v23, %v1950_v55  ;;  %v900_v62 = vrot.slane %v10799_v20, 2 }
 0x2aa   :  { %v1954_v4 = vpop.f32.mrf.mxu0  ;;  %v2336_v27 = vpop.f32.mrf.mxu1  ;;  %8539 = vmatmul.mubr.f32.gmra.mxu0 %v16214_v54  ;;  %v16223_v54 = vld [vmem:[#allocation92_spill] sm:$0xff] }
 0x2ab   :  { %v1955_v56 = vadd.f32 %v1954_v4, %v16215_v42  ;;  %8541 = vmatprep.mubr.f32.mxu0 %v16216_v6  ;;  %v16224_v42 = vld [vmem:[#allocation19_spill] sm:$0xff]  ;;  %v902_v6 = vrot.slane %v10815_v34, 2 }
 0x2ac   :  { %v1956_v19 = vpop.f32.mrf.mxu0  ;;  %v2339_v58 = vpop.f32.mrf.mxu1 }
 0x2ad   :  { %v10979_v39 = vadd.f32 %v2339_v58, %v1955_v56 }
 0x2ae   :  { %v1959_v48 = vpop.f32.mrf.mxu0  ;;  %v2341_v18 = vpop.f32.mrf.mxu1  ;;  %8542 = vmatmul.mubr.f32.gmra.mxu0 %v16217_v30  ;;  %v16225_v30 = vld [vmem:[#allocation102_spill] sm:$0xff] }
 0x2af   :  { %v1960_v35 = vadd.f32 %v1959_v48, %v16218_v63  ;;  %8544 = vmatprep.mubr.f32.mxu0 %v16219_v3  ;;  %v901_v48 = vsel %vm615_vm1, %v899_v1, %v900_v62 }
 0x2b0   :  { %v1961_v49 = vpop.f32.mrf.mxu0  ;;  %v2344_v46 = vpop.f32.mrf.mxu1 }
 0x2b1   :  { %v10984_v0 = vadd.f32 %v2344_v46, %v1960_v35  ;;  %v903_v35 = vsel %vm615_vm1, %v900_v62, %v902_v6 }
 0x2b2   :  { %v1964_v2 = vpop.f32.mrf.mxu0  ;;  %v2346_v59 = vpop.f32.mrf.mxu1  ;;  %8545 = vmatmul.mubr.f32.gmra.mxu0 %v16220_v53 }
 0x2b3   :  { %v1965_v36 = vadd.f32 %v1964_v2, %v16221_v50  ;;  %8547 = vmatprep.mubr.f32.mxu0 %v16222_v45  ;;  %v16226_v2 = vld [vmem:[#allocation24_spill] sm:$0xff] }
 0x2b4   :  { %v1966_v44 = vpop.f32.mrf.mxu0  ;;  %v2349_v55 = vpop.f32.mrf.mxu1 }
 0x2b5   :  { %v10991_v23 = vadd.f32 %v2349_v55, %v1965_v36  ;;  %v16227_v44 = vld [vmem:[#allocation25_spill] sm:$0xff] }
 0x2b6   :  { %v1969_v4 = vpop.f32.mrf.mxu0  ;;  %v2351_v27 = vpop.f32.mrf.mxu1  ;;  %8548 = vmatmul.mubr.f32.gmra.mxu0 %v16223_v54 }
 0x2b7   :  { %v1970_v56 = vadd.f32 %v1969_v4, %v16224_v42  ;;  %8550 = vmatprep.mubr.f32.mxu0 %v10818_v38  ;;  %v16228_v42 = vld [vmem:[#allocation22_spill] sm:$0xff] }
 0x2b8   :  { %v1971_v19 = vpop.f32.mrf.mxu0  ;;  %v2354_v58 = vpop.f32.mrf.mxu1 }
 0x2b9   :  { %v10998_v18 = vadd.f32 %v2354_v58, %v1970_v56 }
 0x2ba   :  { %v1974_v47 = vpop.f32.mrf.mxu0  ;;  %v2356_v20 = vpop.f32.mrf.mxu1  ;;  %8551 = vmatmul.mubr.f32.gmra.mxu0 %v10828_v9 }
 0x2bb   :  { %v1975_v63 = vadd.f32 %v1974_v47, %v16225_v30  ;;  %8553 = vmatprep.mubr.f32.mxu0 %v901_v48  ;;  %v16229_v20 = vld [vmem:[#allocation26_spill] sm:$0xff] }
 0x2bc   :  { %v1976_v3 = vpop.f32.mrf.mxu0  ;;  %v2359_v49 = vpop.f32.mrf.mxu1 }
 0x2bd   :  { %v11003_v38 = vadd.f32 %v2359_v49, %v1975_v63 }
 0x2be   :  { %v1979_v34 = vpop.f32.mrf.mxu0  ;;  %v2361_v46 = vpop.f32.mrf.mxu1  ;;  %8554 = vmatmul.mubr.f32.gmra.mxu0 %v903_v35 }
 0x2bf   :  { %v1980_v59 = vadd.f32 %v1979_v34, %v16226_v2  ;;  %v16230_v46 = vld [vmem:[#allocation27_spill] sm:$0xff] }
 0x2c0   :  { %v1981_v53 = vpop.f32.mrf.mxu0  ;;  %v2364_v50 = vpop.f32.mrf.mxu1 }
 0x2c1   :  { %v11006_v36 = vadd.f32 %v2364_v50, %v1980_v59 }
 0x2c2   :  { %v1984_v45 = vpop.f32.mrf.mxu0  ;;  %v2366_v9 = vpop.f32.mrf.mxu1 }
 0x2c3   :  { %v1985_v55 = vadd.f32 %v1984_v45, %v16227_v44  ;;  %v16231_v44 = vld [vmem:[#allocation23_spill] sm:$0xff] }
 0x2c4   :  { %v1986_v1 = vpop.f32.mrf.mxu0  ;;  %v2369_v4 = vpop.f32.mrf.mxu1 }
 0x2c5   :  { %v11009_v62 = vadd.f32 %v2369_v4, %v1985_v55 }
 0x2c6   :  { %v1989_v27 = vpop.f32.mrf.mxu0  ;;  %v2371_v54 = vpop.f32.mrf.mxu1 }
 0x2c7   :  { %v1990_v56 = vadd.f32 %v1989_v27, %v16228_v42 }
 0x2c8   :  { %v1991_v6 = vpop.f32.mrf.mxu0  ;;  %v2374_v19 = vpop.f32.mrf.mxu1 }
 0x2c9   :  { %v11012_v58 = vadd.f32 %v2374_v19, %v1990_v56  ;;  %v16232_v56 = vld [vmem:[#allocation28_spill] sm:$0xff] }
 0x2ca   :  { %v1994_v48 = vpop.f32.mrf.mxu0  ;;  %v2376_v47 = vpop.f32.mrf.mxu1 }
 0x2cb   :  { %v1995_v30 = vadd.f32 %v1994_v48, %v16229_v20 }
 0x2cc   :  { %v1996_v63 = vpop.f32.mrf.mxu0  ;;  %v2379_v35 = vpop.f32.mrf.mxu1 }
 0x2cd   :  { %v11015_v3 = vadd.f32 %v2379_v35, %v1995_v30  ;;  %v16233_v63 = vld [vmem:[#allocation29_spill] sm:$0xff] }
 0x2ce   :  { %v1999_v49 = vpop.f32.mrf.mxu0  ;;  %v2381_v34 = vpop.f32.mrf.mxu1 }
 0x2cf   :  { %v2000_v2 = vadd.f32 %v1999_v49, %v16230_v46 }
 0x2d0   :  { %v2001_v59 = vpop.f32.mrf.mxu0  ;;  %v2384_v53 = vpop.f32.mrf.mxu1 }
 0x2d1   :  { %v11018_v50 = vadd.f32 %v2384_v53, %v2000_v2  ;;  %v16235_v53 = vld [vmem:[#allocation30_spill] sm:$0xff] }
 0x2d2   :  { %v2004_v45 = vpop.f32.mrf.mxu0  ;;  %v2386_v9 = vpop.f32.mrf.mxu1 }
 0x2d3   :  { %v2005_v55 = vadd.f32 %v2004_v45, %v16231_v44 }
 0x2d4   :  { %v2006_v1 = vpop.f32.mrf.mxu0  ;;  %v2389_v4 = vpop.f32.mrf.mxu1 }
 0x2d5   :  { %v11021_v27 = vadd.f32 %v2389_v4, %v2005_v55 }
 0x2d6   :  { %v2009_v54 = vpop.f32.mrf.mxu0  ;;  %v2391_v42 = vpop.f32.mrf.mxu1 }
 0x2d7   :  { %v2010_v6 = vadd.f32 %v2009_v54, %v16232_v56  ;;  %v16237_v54 = vld [vmem:[#allocation31_spill] sm:$0xff] }
 0x2d8   :  { %v2011_v19 = vpop.f32.mrf.mxu0  ;;  %v2394_v48 = vpop.f32.mrf.mxu1 }
 0x2d9   :  { %v11024_v47 = vadd.f32 %v2394_v48, %v2010_v6 }
 0x2da   :  { %v2014_v20 = vpop.f32.mrf.mxu0  ;;  %v2396_v30 = vpop.f32.mrf.mxu1 }
 0x2db   :  { %v2015_v35 = vadd.f32 %v2014_v20, %v16233_v63  ;;  %v16239_v30 = vld [vmem:[#allocation33_spill] sm:$0xff] }
 0x2dc   :  { %v2016_v49 = vpop.f32.mrf.mxu0  ;;  %v2399_v34 = vpop.f32.mrf.mxu1 }
 0x2dd   :  { %v11027_v46 = vadd.f32 %v2399_v34, %v2015_v35 }
 0x2de   :  { %v2019_v2 = vpop.f32.mrf.mxu0  ;;  %v2401_v59 = vpop.f32.mrf.mxu1 }
 0x2df   :  { %16234 = vst [vmem:[#allocation63_spill] sm:$0xff] %v11027_v46  ;;  %v2020_v45 = vadd.f32 %v2019_v2, %v16235_v53  ;;  %v16241_v53 = vld [vmem:[#allocation35_spill] sm:$0xff] }
 0x2e0   :  { %v2021_v9 = vpop.f32.mrf.mxu0  ;;  %v2404_v44 = vpop.f32.mrf.mxu1 }
 0x2e1   :  { %v11030_v55 = vadd.f32 %v2404_v44, %v2020_v45 }
 0x2e2   :  { %v2024_v1 = vpop.f32.mrf.mxu0  ;;  %v2406_v4 = vpop.f32.mrf.mxu1 }
 0x2e3   :  { %16236 = vst [vmem:[#allocation71_spill] sm:$0xff] %v11030_v55  ;;  %v2025_v42 = vadd.f32 %v2024_v1, %v16237_v54 }
 0x2e4   :  { %v2026_v56 = vpop.f32.mrf.mxu0  ;;  %v2409_v6 = vpop.f32.mrf.mxu1 }
 0x2e5   :  { %v11033_v19 = vadd.f32 %v2409_v6, %v2025_v42  ;;  %v16243_v42 = vld [vmem:[#allocation37_spill] sm:$0xff] }
 0x2e6   :  { %v2029_v48 = vpop.f32.mrf.mxu0  ;;  %v2411_v20 = vpop.f32.mrf.mxu1 }
 0x2e7   :  { %16238 = vst [vmem:[#allocation66_spill] sm:$0xff] %v11033_v19  ;;  %v2030_v63 = vadd.f32 %v2029_v48, %v16239_v30 }
 0x2e8   :  { %v2031_v35 = vpop.f32.mrf.mxu0  ;;  %v2414_v49 = vpop.f32.mrf.mxu1 }
 0x2e9   :  { %v11036_v34 = vadd.f32 %v2414_v49, %v2030_v63  ;;  %v16245_v63 = vld [vmem:[#allocation39_spill] sm:$0xff]  ;;  %v5105_v49 = vld [vmem:[%s15567_s4 + $0xf8] sm:$0xff] }
 0x2ea   :  { %v2034_v2 = vpop.f32.mrf.mxu0  ;;  %v2416_v59 = vpop.f32.mrf.mxu1  ;;  %8214 = vmatprep.subr.mxu1 %v5105_v49 }
 0x2eb   :  { %16240 = vst [vmem:[#allocation74_spill] sm:$0xff] %v11036_v34  ;;  %v2035_v45 = vadd.f32 %v2034_v2, %v16241_v53  ;;  %v5089_v2 = vld [vmem:[%s15567_s4 + $0x78] sm:$0xff] }
 0x2ec   :  { %v2036_v9 = vpop.f32.mrf.mxu0  ;;  %v2419_v44 = vpop.f32.mrf.mxu1  ;;  %8215 = vmatpush3.msra.mxu1 %v5089_v2 }
 0x2ed   :  { %v11039_v4 = vadd.f32 %v2419_v44, %v2035_v45 }
 0x2ee   :  { %v2039_v1 = vpop.f32.mrf.mxu0  ;;  %v2421_v54 = vpop.f32.mrf.mxu1 }
 0x2ef   :  { %16242 = vst [vmem:[#allocation69_spill] sm:$0xff] %v11039_v4  ;;  %v2040_v56 = vadd.f32 %v2039_v1, %v16243_v42  ;;  %v16247_v1 = vld [vmem:[#allocation41_spill] sm:$0xff] }
 0x2f0   :  { %v2041_v6 = vpop.f32.mrf.mxu0  ;;  %v2424_v20 = vpop.f32.mrf.mxu1 }
 0x2f1   :  { %v11042_v19 = vadd.f32 %v2424_v20, %v2040_v56 }
 0x2f2   :  { %v2044_v48 = vpop.f32.mrf.mxu0  ;;  %v2426_v30 = vpop.f32.mrf.mxu1 }
 0x2f3   :  { %16244 = vst [vmem:[#allocation77_spill] sm:$0xff] %v11042_v19  ;;  %v2045_v35 = vadd.f32 %v2044_v48, %v16245_v63  ;;  %v16249_v30 = vld [vmem:[#allocation43_spill] sm:$0xff] }
 0x2f4   :  { %v2046_v59 = vpop.f32.mrf.mxu0  ;;  %v2429_v53 = vpop.f32.mrf.mxu1 }
 0x2f5   :  { %v11051_v45 = vadd.f32 %v2429_v53, %v2045_v35  ;;  %v16251_v53 = vld [vmem:[#allocation45_spill] sm:$0xff] }
 0x2f6   :  { %v2049_v9 = vpop.f32.mrf.mxu0  ;;  %v2431_v44 = vpop.f32.mrf.mxu1 }
 0x2f7   :  { %16246 = vst [vmem:[#allocation72_spill] sm:$0xff] %v11051_v45  ;;  %v2050_v54 = vadd.f32 %v2049_v9, %v16247_v1  ;;  %v5104_v1 = vld [vmem:[%s15567_s4 + $0xf0] sm:$0xff] }
 0x2f8   :  { %v2051_v42 = vpop.f32.mrf.mxu0  ;;  %v2434_v56 = vpop.f32.mrf.mxu1  ;;  %8216 = vmatprep.subr.mxu1 %v5104_v1  ;;  %v16259_v1 = vld [vmem:[#allocation51_spill] sm:$0xff] }
 0x2f9   :  { %v11054_v6 = vadd.f32 %v2434_v56, %v2050_v54 }
 0x2fa   :  { %v2054_v20 = vpop.f32.mrf.mxu0  ;;  %v2436_v48 = vpop.f32.mrf.mxu1 }
 0x2fb   :  { %16248 = vst [vmem:[#allocation80_spill] sm:$0xff] %v11054_v6  ;;  %v2055_v63 = vadd.f32 %v2054_v20, %v16249_v30 }
 0x2fc   :  { %v2056_v4 = vpop.f32.mrf.mxu0  ;;  %v2439_v19 = vpop.f32.mrf.mxu1 }
 0x2fd   :  { %v11057_v59 = vadd.f32 %v2439_v19, %v2055_v63  ;;  %v5088_v4 = vld [vmem:[%s15567_s4 + $0x70] sm:$0xff] }
 0x2fe   :  { %v2059_v49 = vpop.f32.mrf.mxu0  ;;  %v2441_v35 = vpop.f32.mrf.mxu1  ;;  %v16253_v19 = vld [vmem:[#allocation49_spill] sm:$0xff]  ;;  %8217 = vmatpush3.msra.mxu1 %v5088_v4 }
 0x2ff   :  { %16250 = vst [vmem:[#allocation75_spill] sm:$0xff] %v11057_v59  ;;  %v2060_v2 = vadd.f32 %v2059_v49, %v16251_v53  ;;  %v16257_v35 = vld [vmem:[#allocation53_spill] sm:$0xff] }
 0x300   :  { %v2061_v45 = vpop.f32.mrf.mxu0  ;;  %v2444_v44 = vpop.f32.mrf.mxu1 }
 0x301   :  { %v11060_v34 = vadd.f32 %v2444_v44, %v2060_v2  ;;  %v16255_v45 = vld [vmem:[#allocation47_spill] sm:$0xff] }
 0x302   :  { %v8462_v9 = vpop.f32.mrf.mxu0  ;;  %v2446_v54 = vpop.f32.mrf.mxu1 }
 0x303   :  { %16252 = vst [vmem:[#allocation83_spill] sm:$0xff] %v11060_v34  ;;  %v11069_v42 = vadd.f32 %v8462_v9, %v16253_v19 }
 0x304   :  { %v2514_v56 = vpop.f32.mrf.mxu0 }
 0x305   :  { %16254 = vst [vmem:[#allocation78_spill] sm:$0xff] %v11069_v42  ;;  %v11072_v20 = vadd.f32 %v2514_v56, %v16255_v45  ;;  %v2969_v30 = vmul.f32 %v11069_v42, %v11069_v42  ;;  %v2835_v44 = vsel %vm2833_vm2, %v11069_v42, 0.0 }
 0x306   :  { %v8465_v48 = vpop.f32.mrf.mxu0 }
 0x307   :  { %16256 = vst [vmem:[#allocation81_spill] sm:$0xff] %v11072_v20  ;;  %v2834_v63 = vsel %vm2833_vm2, %v11072_v20, 0.0  ;;  %v2968_v49 = vmul.f32 %v11072_v20, %v11072_v20  ;;  %v11081_v53 = vadd.f32 %v8465_v48, %v16257_v35  ;;  %v3033_v45 = vsel %vm2833_vm2, %v2969_v30, 0.0  ;;  %v16261_v20 = vld [vmem:[#allocation59_spill] sm:$0xff] }
 0x308   :  { %v2524_v2 = vpop.f32.mrf.mxu0  ;;  %v2836_v54 = vadd.f32 %v2835_v44, %v2834_v63 }
 0x309   :  { %16258 = vst [vmem:[#allocation88_spill] sm:$0xff] %v11081_v53  ;;  %v3032_v9 = vsel %vm2833_vm2, %v2968_v49, 0.0  ;;  %v11087_v4 = vadd.f32 %v2524_v2, %v16259_v1  ;;  %v2971_v19 = vmul.f32 %v11081_v53, %v11081_v53  ;;  %v2839_v63 = vsel %vm2833_vm2, %v11081_v53, 0.0  ;;  %v16263_v1 = vld [vmem:[#allocation56_spill] sm:$0xff] }
 0x30a   :  { %v8468_v56 = vpop.f32.mrf.mxu0  ;;  %v3034_v49 = vadd.f32 %v3033_v45, %v3032_v9 }
 0x30b   :  { %16260 = vst [vmem:[#allocation84_spill] sm:$0xff] %v11087_v4  ;;  %v2837_v48 = vsel %vm2833_vm2, %v11087_v4, 0.0  ;;  %v2970_v35 = vmul.f32 %v11087_v4, %v11087_v4  ;;  %v11097_v42 = vadd.f32 %v8468_v56, %v16261_v20  ;;  %v3037_v30 = vsel %vm2833_vm2, %v2971_v19, 0.0  ;;  %v16265_v56 = vld [vmem:[#allocation62_spill] sm:$0xff] }
 0x30c   :  { %v2838_v59 = vadd.f32 %v2837_v48, %v2836_v54  ;;  %v2534_v2 = vpop.f32.mrf.mxu0 }
 0x30d   :  { %16262 = vst [vmem:[#allocation86_spill] sm:$0xff] %v11097_v42  ;;  %v3035_v44 = vsel %vm2833_vm2, %v2970_v35, 0.0  ;;  %v11103_v34 = vadd.f32 %v2534_v2, %v16263_v1  ;;  %v2973_v20 = vmul.f32 %v11097_v42, %v11097_v42 }
 0x30e   :  { %v2840_v6 = vadd.f32 %v2839_v63, %v2838_v59  ;;  %v3036_v46 = vadd.f32 %v3035_v44, %v3034_v49  ;;  %v8471_v55 = vpop.f32.mrf.mxu0  ;;  %v2843_v59 = vsel %vm2833_vm2, %v11097_v42, 0.0  ;;  %v16267_v49 = vld [vmem:[#allocation54_spill] sm:$0xff] }
 0x30f   :  { %16264 = vst [vmem:[#allocation89_spill] sm:$0xff] %v11103_v34  ;;  %v2841_v9 = vsel %vm2833_vm2, %v11103_v34, 0.0  ;;  %v2972_v54 = vmul.f32 %v11103_v34, %v11103_v34  ;;  %v11113_v45 = vadd.f32 %v8471_v55, %v16265_v56  ;;  %v3041_v55 = vsel %vm2833_vm2, %v2973_v20, 0.0 }
 0x310   :  { %v3038_v48 = vadd.f32 %v3037_v30, %v3036_v46  ;;  %v2842_v35 = vadd.f32 %v2841_v9, %v2840_v6  ;;  %v2544_v2 = vpop.f32.mrf.mxu0  ;;  %v16268_v30 = vld [vmem:[#allocation65_spill] sm:$0xff] }
 0x311   :  { %16266 = vst [vmem:[#allocation8_spill] sm:$0xff] %v11113_v45  ;;  %v3039_v19 = vsel %vm2833_vm2, %v2972_v54, 0.0  ;;  %v11119_v63 = vadd.f32 %v2544_v2, %v16267_v49  ;;  %v2975_v1 = vmul.f32 %v11113_v45, %v11113_v45 }
 0x312   :  { %v3040_v44 = vadd.f32 %v3039_v19, %v3038_v48  ;;  %v2844_v53 = vadd.f32 %v2843_v59, %v2842_v35  ;;  %v8474_v34 = vpop.f32.mrf.mxu0  ;;  %v2847_v48 = vsel %vm2833_vm2, %v11113_v45, 0.0  ;;  %v16269_v59 = vld [vmem:[#allocation57_spill] sm:$0xff] }
 0x313   :  { %v2845_v46 = vsel %vm2833_vm2, %v11119_v63, 0.0  ;;  %v2974_v6 = vmul.f32 %v11119_v63, %v11119_v63  ;;  %v11129_v9 = vadd.f32 %v8474_v34, %v16268_v30  ;;  %v3045_v20 = vsel %vm2833_vm2, %v2975_v1, 0.0 }
 0x314   :  { %v2846_v54 = vadd.f32 %v2845_v46, %v2844_v53  ;;  %v3042_v56 = vadd.f32 %v3041_v55, %v3040_v44  ;;  %v2554_v2 = vpop.f32.mrf.mxu0  ;;  %v16271_v55 = vld [vmem:[#allocation68_spill] sm:$0xff] }
 0x315   :  { %v3043_v35 = vsel %vm2833_vm2, %v2974_v6, 0.0  ;;  %v11135_v19 = vadd.f32 %v2554_v2, %v16269_v59  ;;  %v2977_v34 = vmul.f32 %v11129_v9, %v11129_v9  ;;  %v2851_v1 = vsel %vm2833_vm2, %v11129_v9, 0.0 }
 0x316   :  { %v3044_v49 = vadd.f32 %v3043_v35, %v3042_v56  ;;  %v2848_v42 = vadd.f32 %v2847_v48, %v2846_v54  ;;  %v8477_v4 = vpop.f32.mrf.mxu0  ;;  %v16272_v56 = vld [vmem:[#allocation60_spill] sm:$0xff] }
 0x317   :  { %16270 = vst [vmem:[#allocation10_spill] sm:$0xff] %v11135_v19  ;;  %v2849_v53 = vsel %vm2833_vm2, %v11135_v19, 0.0  ;;  %v2976_v44 = vmul.f32 %v11135_v19, %v11135_v19  ;;  %v11145_v46 = vadd.f32 %v8477_v4, %v16271_v55  ;;  %v3049_v4 = vsel %vm2833_vm2, %v2977_v34, 0.0 }
 0x318   :  { %v2850_v6 = vadd.f32 %v2849_v53, %v2848_v42  ;;  %v3046_v30 = vadd.f32 %v3045_v20, %v3044_v49  ;;  %v2564_v2 = vpop.f32.mrf.mxu0 }
 0x319   :  { %v3047_v54 = vsel %vm2833_vm2, %v2976_v44, 0.0  ;;  %v11151_v48 = vadd.f32 %v2564_v2, %v16272_v56  ;;  %v2979_v59 = vmul.f32 %v11145_v46, %v11145_v46 }
 0x31a   :  { %v3048_v35 = vadd.f32 %v3047_v54, %v3046_v30  ;;  %v2852_v45 = vadd.f32 %v2851_v1, %v2850_v6  ;;  %v8480_v19 = vpop.f32.mrf.mxu0  ;;  %v2855_v30 = vsel %vm2833_vm2, %v11145_v46, 0.0 }
 0x31b   :  { %v2853_v42 = vsel %vm2833_vm2, %v11151_v48, 0.0  ;;  %v2978_v20 = vmul.f32 %v11151_v48, %v11151_v48  ;;  %v11161_v49 = vadd.f32 %v8480_v19, %v10830_v8  ;;  %v3053_v34 = vsel %vm2833_vm2, %v2979_v59, 0.0 }
 0x31c   :  { %v2854_v53 = vadd.f32 %v2853_v42, %v2852_v45  ;;  %v3050_v44 = vadd.f32 %v3049_v4, %v3048_v35  ;;  %v2574_v55 = vpop.f32.mrf.mxu0 }
 0x31d   :  { %v3051_v6 = vsel %vm2833_vm2, %v2978_v20, 0.0  ;;  %v11167_v2 = vadd.f32 %v2574_v55, %v10820_v13  ;;  %v2981_v8 = vmul.f32 %v11161_v49, %v11161_v49  ;;  %v2859_v59 = vsel %vm2833_vm2, %v11161_v49, 0.0 }
 0x31e   :  { %v3052_v1 = vadd.f32 %v3051_v6, %v3050_v44  ;;  %v2856_v54 = vadd.f32 %v2855_v30, %v2854_v53  ;;  %v8483_v56 = vpop.f32.mrf.mxu0 }
 0x31f   :  { %v2857_v45 = vsel %vm2833_vm2, %v11167_v2, 0.0  ;;  %v2980_v19 = vmul.f32 %v11167_v2, %v11167_v2  ;;  %v11177_v35 = vadd.f32 %v8483_v56, %v10841_v5  ;;  %v3057_v5 = vsel %vm2833_vm2, %v2981_v8, 0.0 }
 0x320   :  { %v2858_v4 = vadd.f32 %v2857_v45, %v2856_v54  ;;  %v3054_v13 = vadd.f32 %v3053_v34, %v3052_v1  ;;  %v2584_v42 = vpop.f32.mrf.mxu0 }
 0x321   :  { %v3055_v20 = vsel %vm2833_vm2, %v2980_v19, 0.0  ;;  %v11183_v53 = vadd.f32 %v2584_v42, %v10836_v26  ;;  %v2983_v55 = vmul.f32 %v11177_v35, %v11177_v35  ;;  %v2863_v19 = vsel %vm2833_vm2, %v11177_v35, 0.0 }
 0x322   :  { %v3056_v44 = vadd.f32 %v3055_v20, %v3054_v13  ;;  %v2860_v30 = vadd.f32 %v2859_v59, %v2858_v4  ;;  %v8486_v6 = vpop.f32.mrf.mxu0 }
 0x323   :  { %v2861_v34 = vsel %vm2833_vm2, %v11183_v53, 0.0  ;;  %v2982_v1 = vmul.f32 %v11183_v53, %v11183_v53  ;;  %v11193_v54 = vadd.f32 %v8486_v6, %v10851_v40  ;;  %v3061_v8 = vsel %vm2833_vm2, %v2983_v55, 0.0 }
 0x324   :  { %v2862_v56 = vadd.f32 %v2861_v34, %v2860_v30  ;;  %v3058_v26 = vadd.f32 %v3057_v5, %v3056_v44  ;;  %v2594_v45 = vpop.f32.mrf.mxu0 }
 0x325   :  { %v3059_v4 = vsel %vm2833_vm2, %v2982_v1, 0.0  ;;  %v11199_v13 = vadd.f32 %v2594_v45, %v10846_v10  ;;  %v2985_v40 = vmul.f32 %v11193_v54, %v11193_v54  ;;  %v2867_v55 = vsel %vm2833_vm2, %v11193_v54, 0.0 }
 0x326   :  { %v3060_v42 = vadd.f32 %v3059_v4, %v3058_v26  ;;  %v2864_v59 = vadd.f32 %v2863_v19, %v2862_v56  ;;  %v8489_v20 = vpop.f32.mrf.mxu0 }
 0x327   :  { %v2865_v44 = vsel %vm2833_vm2, %v11199_v13, 0.0  ;;  %v2984_v30 = vmul.f32 %v11199_v13, %v11199_v13  ;;  %v11209_v6 = vadd.f32 %v8489_v20, %v10861_v17  ;;  %v3065_v17 = vsel %vm2833_vm2, %v2985_v40, 0.0 }
 0x328   :  { %v2866_v5 = vadd.f32 %v2865_v44, %v2864_v59  ;;  %v3062_v10 = vadd.f32 %v3061_v8, %v3060_v42  ;;  %v2604_v34 = vpop.f32.mrf.mxu0 }
 0x329   :  { %v3063_v1 = vsel %vm2833_vm2, %v2984_v30, 0.0  ;;  %v11215_v56 = vadd.f32 %v2604_v34, %v10856_v51  ;;  %v2987_v45 = vmul.f32 %v11209_v6, %v11209_v6  ;;  %v2871_v30 = vsel %vm2833_vm2, %v11209_v6, 0.0 }
 0x32a   :  { %v3064_v26 = vadd.f32 %v3063_v1, %v3062_v10  ;;  %v2868_v19 = vadd.f32 %v2867_v55, %v2866_v5  ;;  %v8492_v4 = vpop.f32.mrf.mxu0 }
 0x32b   :  { %v2869_v8 = vsel %vm2833_vm2, %v11215_v56, 0.0  ;;  %v2986_v42 = vmul.f32 %v11215_v56, %v11215_v56  ;;  %v11225_v59 = vadd.f32 %v8492_v4, %v10871_v37  ;;  %v3069_v40 = vsel %vm2833_vm2, %v2987_v45, 0.0 }
 0x32c   :  { %v2870_v20 = vadd.f32 %v2869_v8, %v2868_v19  ;;  %v3066_v51 = vadd.f32 %v3065_v17, %v3064_v26  ;;  %v2614_v44 = vpop.f32.mrf.mxu0 }
 0x32d   :  { %v3067_v5 = vsel %vm2833_vm2, %v2986_v42, 0.0  ;;  %v11231_v10 = vadd.f32 %v2614_v44, %v10866_v60  ;;  %v2989_v37 = vmul.f32 %v11225_v59, %v11225_v59  ;;  %v2875_v45 = vsel %vm2833_vm2, %v11225_v59, 0.0 }
 0x32e   :  { %v3068_v34 = vadd.f32 %v3067_v5, %v3066_v51  ;;  %v2872_v55 = vadd.f32 %v2871_v30, %v2870_v20  ;;  %v8495_v1 = vpop.f32.mrf.mxu0 }
 0x32f   :  { %v2873_v26 = vsel %vm2833_vm2, %v11231_v10, 0.0  ;;  %v2988_v19 = vmul.f32 %v11231_v10, %v11231_v10  ;;  %v11241_v4 = vadd.f32 %v8495_v1, %v10881_v57  ;;  %v3073_v57 = vsel %vm2833_vm2, %v2989_v37, 0.0 }
 0x330   :  { %v2874_v17 = vadd.f32 %v2873_v26, %v2872_v55  ;;  %v3070_v60 = vadd.f32 %v3069_v40, %v3068_v34  ;;  %v2624_v8 = vpop.f32.mrf.mxu0 }
 0x331   :  { %v3071_v42 = vsel %vm2833_vm2, %v2988_v19, 0.0  ;;  %v11247_v20 = vadd.f32 %v2624_v8, %v10876_v41  ;;  %v2991_v44 = vmul.f32 %v11241_v4, %v11241_v4  ;;  %v2879_v19 = vsel %vm2833_vm2, %v11241_v4, 0.0 }
 0x332   :  { %v3072_v51 = vadd.f32 %v3071_v42, %v3070_v60  ;;  %v2876_v30 = vadd.f32 %v2875_v45, %v2874_v17  ;;  %v8498_v5 = vpop.f32.mrf.mxu0 }
 0x333   :  { %v2877_v40 = vsel %vm2833_vm2, %v11247_v20, 0.0  ;;  %v2990_v34 = vmul.f32 %v11247_v20, %v11247_v20  ;;  %v11257_v55 = vadd.f32 %v8498_v5, %v10891_v22  ;;  %v3077_v37 = vsel %vm2833_vm2, %v2991_v44, 0.0 }
 0x334   :  { %v2878_v1 = vadd.f32 %v2877_v40, %v2876_v30  ;;  %v3074_v41 = vadd.f32 %v3073_v57, %v3072_v51  ;;  %v2634_v26 = vpop.f32.mrf.mxu0 }
 0x335   :  { %v3075_v17 = vsel %vm2833_vm2, %v2990_v34, 0.0  ;;  %v11263_v60 = vadd.f32 %v2634_v26, %v10886_v14  ;;  %v2993_v22 = vmul.f32 %v11257_v55, %v11257_v55  ;;  %v2883_v44 = vsel %vm2833_vm2, %v11257_v55, 0.0 }
 0x336   :  { %v3076_v8 = vadd.f32 %v3075_v17, %v3074_v41  ;;  %v2880_v45 = vadd.f32 %v2879_v19, %v2878_v1  ;;  %v8501_v42 = vpop.f32.mrf.mxu0 }
 0x337   :  { %v2881_v51 = vsel %vm2833_vm2, %v11263_v60, 0.0  ;;  %v2992_v30 = vmul.f32 %v11263_v60, %v11263_v60  ;;  %v11273_v5 = vadd.f32 %v8501_v42, %v10901_v12  ;;  %v3081_v12 = vsel %vm2833_vm2, %v2993_v22, 0.0 }
 0x338   :  { %v2882_v57 = vadd.f32 %v2881_v51, %v2880_v45  ;;  %v3078_v14 = vadd.f32 %v3077_v37, %v3076_v8  ;;  %v2644_v40 = vpop.f32.mrf.mxu0 }
 0x339   :  { %v3079_v34 = vsel %vm2833_vm2, %v2992_v30, 0.0  ;;  %v11279_v1 = vadd.f32 %v2644_v40, %v10896_v32  ;;  %v2995_v26 = vmul.f32 %v11273_v5, %v11273_v5  ;;  %v2887_v30 = vsel %vm2833_vm2, %v11273_v5, 0.0 }
 0x33a   :  { %v3080_v41 = vadd.f32 %v3079_v34, %v3078_v14  ;;  %v2884_v19 = vadd.f32 %v2883_v44, %v2882_v57  ;;  %v8504_v17 = vpop.f32.mrf.mxu0 }
 0x33b   :  { %v2885_v37 = vsel %vm2833_vm2, %v11279_v1, 0.0  ;;  %v2994_v8 = vmul.f32 %v11279_v1, %v11279_v1  ;;  %v11289_v45 = vadd.f32 %v8504_v17, %v10915_v61  ;;  %v3085_v22 = vsel %vm2833_vm2, %v2995_v26, 0.0 }
 0x33c   :  { %v2886_v42 = vadd.f32 %v2885_v37, %v2884_v19  ;;  %v3082_v32 = vadd.f32 %v3081_v12, %v3080_v41  ;;  %v2654_v51 = vpop.f32.mrf.mxu0 }
 0x33d   :  { %v3083_v57 = vsel %vm2833_vm2, %v2994_v8, 0.0  ;;  %v11295_v14 = vadd.f32 %v2654_v51, %v10908_v29  ;;  %v2997_v61 = vmul.f32 %v11289_v45, %v11289_v45  ;;  %v2891_v26 = vsel %vm2833_vm2, %v11289_v45, 0.0 }
 0x33e   :  { %v3084_v40 = vadd.f32 %v3083_v57, %v3082_v32  ;;  %v2888_v44 = vadd.f32 %v2887_v30, %v2886_v42  ;;  %v8507_v34 = vpop.f32.mrf.mxu0 }
 0x33f   :  { %v2889_v41 = vsel %vm2833_vm2, %v11295_v14, 0.0  ;;  %v2996_v19 = vmul.f32 %v11295_v14, %v11295_v14  ;;  %v11305_v17 = vadd.f32 %v8507_v34, %v10924_v52  ;;  %v3089_v52 = vsel %vm2833_vm2, %v2997_v61, 0.0 }
 0x340   :  { %v2890_v12 = vadd.f32 %v2889_v41, %v2888_v44  ;;  %v3086_v29 = vadd.f32 %v3085_v22, %v3084_v40  ;;  %v2664_v37 = vpop.f32.mrf.mxu0 }
 0x341   :  { %v3087_v8 = vsel %vm2833_vm2, %v2996_v19, 0.0  ;;  %v11311_v42 = vadd.f32 %v2664_v37, %v10920_v7  ;;  %v2999_v51 = vmul.f32 %v11305_v17, %v11305_v17  ;;  %v2895_v19 = vsel %vm2833_vm2, %v11305_v17, 0.0 }
 0x342   :  { %v3088_v32 = vadd.f32 %v3087_v8, %v3086_v29  ;;  %v2892_v30 = vadd.f32 %v2891_v26, %v2890_v12  ;;  %v8510_v57 = vpop.f32.mrf.mxu0 }
 0x343   :  { %v2893_v22 = vsel %vm2833_vm2, %v11311_v42, 0.0  ;;  %v2998_v40 = vmul.f32 %v11311_v42, %v11311_v42  ;;  %v11321_v44 = vadd.f32 %v8510_v57, %v10934_v15  ;;  %v3093_v61 = vsel %vm2833_vm2, %v2999_v51, 0.0 }
 0x344   :  { %v2894_v34 = vadd.f32 %v2893_v22, %v2892_v30  ;;  %v3090_v7 = vadd.f32 %v3089_v52, %v3088_v32  ;;  %v2674_v41 = vpop.f32.mrf.mxu0 }
 0x345   :  { %v3091_v12 = vsel %vm2833_vm2, %v2998_v40, 0.0  ;;  %v11327_v29 = vadd.f32 %v2674_v41, %v10929_v28  ;;  %v3001_v15 = vmul.f32 %v11321_v44, %v11321_v44  ;;  %v2899_v51 = vsel %vm2833_vm2, %v11321_v44, 0.0 }
 0x346   :  { %v3092_v37 = vadd.f32 %v3091_v12, %v3090_v7  ;;  %v2896_v26 = vadd.f32 %v2895_v19, %v2894_v34  ;;  %v8513_v8 = vpop.f32.mrf.mxu0 }
 0x347   :  { %v2897_v32 = vsel %vm2833_vm2, %v11327_v29, 0.0  ;;  %v3000_v30 = vmul.f32 %v11327_v29, %v11327_v29  ;;  %v11337_v57 = vadd.f32 %v8513_v8, %v10944_v21  ;;  %v3097_v21 = vsel %vm2833_vm2, %v3001_v15, 0.0 }
 0x348   :  { %v2898_v52 = vadd.f32 %v2897_v32, %v2896_v26  ;;  %v3094_v28 = vadd.f32 %v3093_v61, %v3092_v37  ;;  %v2684_v22 = vpop.f32.mrf.mxu0 }
 0x349   :  { %v3095_v40 = vsel %vm2833_vm2, %v3000_v30, 0.0  ;;  %v11343_v34 = vadd.f32 %v2684_v22, %v10939_v24  ;;  %v3003_v41 = vmul.f32 %v11337_v57, %v11337_v57  ;;  %v2903_v30 = vsel %vm2833_vm2, %v11337_v57, 0.0 }
 0x34a   :  { %v3096_v7 = vadd.f32 %v3095_v40, %v3094_v28  ;;  %v2900_v19 = vadd.f32 %v2899_v51, %v2898_v52  ;;  %v8516_v12 = vpop.f32.mrf.mxu0 }
 0x34b   :  { %v2901_v61 = vsel %vm2833_vm2, %v11343_v34, 0.0  ;;  %v3002_v37 = vmul.f32 %v11343_v34, %v11343_v34  ;;  %v11353_v26 = vadd.f32 %v8516_v12, %v10954_v33  ;;  %v3101_v15 = vsel %vm2833_vm2, %v3003_v41, 0.0 }
 0x34c   :  { %v2902_v8 = vadd.f32 %v2901_v61, %v2900_v19  ;;  %v3098_v24 = vadd.f32 %v3097_v21, %v3096_v7  ;;  %v2694_v32 = vpop.f32.mrf.mxu0 }
 0x34d   :  { %v3099_v52 = vsel %vm2833_vm2, %v3002_v37, 0.0  ;;  %v11359_v28 = vadd.f32 %v2694_v32, %v10949_v31  ;;  %v3005_v33 = vmul.f32 %v11353_v26, %v11353_v26  ;;  %v2907_v41 = vsel %vm2833_vm2, %v11353_v26, 0.0 }
 0x34e   :  { %v3100_v22 = vadd.f32 %v3099_v52, %v3098_v24  ;;  %v2904_v51 = vadd.f32 %v2903_v30, %v2902_v8  ;;  %v8519_v40 = vpop.f32.mrf.mxu0 }
 0x34f   :  { %v2905_v7 = vsel %vm2833_vm2, %v11359_v28, 0.0  ;;  %v3004_v19 = vmul.f32 %v11359_v28, %v11359_v28  ;;  %v11369_v12 = vadd.f32 %v8519_v40, %v10964_v43  ;;  %v3105_v43 = vsel %vm2833_vm2, %v3005_v33, 0.0 }
 0x350   :  { %v2906_v21 = vadd.f32 %v2905_v7, %v2904_v51  ;;  %v3102_v31 = vadd.f32 %v3101_v15, %v3100_v22  ;;  %v2704_v61 = vpop.f32.mrf.mxu0 }
 0x351   :  { %v3103_v37 = vsel %vm2833_vm2, %v3004_v19, 0.0  ;;  %v11375_v8 = vadd.f32 %v2704_v61, %v10959_v11  ;;  %v3007_v32 = vmul.f32 %v11369_v12, %v11369_v12  ;;  %v2911_v19 = vsel %vm2833_vm2, %v11369_v12, 0.0 }
 0x352   :  { %v3104_v24 = vadd.f32 %v3103_v37, %v3102_v31  ;;  %v2908_v30 = vadd.f32 %v2907_v41, %v2906_v21  ;;  %v8522_v52 = vpop.f32.mrf.mxu0 }
 0x353   :  { %v2909_v15 = vsel %vm2833_vm2, %v11375_v8, 0.0  ;;  %v3006_v22 = vmul.f32 %v11375_v8, %v11375_v8  ;;  %v11385_v51 = vadd.f32 %v8522_v52, %v10974_v16  ;;  %v3109_v33 = vsel %vm2833_vm2, %v3007_v32, 0.0 }
 0x354   :  { %v2910_v40 = vadd.f32 %v2909_v15, %v2908_v30  ;;  %v3106_v11 = vadd.f32 %v3105_v43, %v3104_v24  ;;  %v2714_v7 = vpop.f32.mrf.mxu0 }
 0x355   :  { %v3107_v21 = vsel %vm2833_vm2, %v3006_v22, 0.0  ;;  %v11391_v31 = vadd.f32 %v2714_v7, %v10969_v25  ;;  %v3009_v16 = vmul.f32 %v11385_v51, %v11385_v51  ;;  %v2915_v32 = vsel %vm2833_vm2, %v11385_v51, 0.0 }
 0x356   :  { %v3108_v61 = vadd.f32 %v3107_v21, %v3106_v11  ;;  %v2912_v41 = vadd.f32 %v2911_v19, %v2910_v40  ;;  %v8525_v37 = vpop.f32.mrf.mxu0 }
 0x357   :  { %v2913_v24 = vsel %vm2833_vm2, %v11391_v31, 0.0  ;;  %v3008_v30 = vmul.f32 %v11391_v31, %v11391_v31  ;;  %v11401_v52 = vadd.f32 %v8525_v37, %v10984_v0  ;;  %v3113_v0 = vsel %vm2833_vm2, %v3009_v16, 0.0 }
 0x358   :  { %v2914_v43 = vadd.f32 %v2913_v24, %v2912_v41  ;;  %v3110_v25 = vadd.f32 %v3109_v33, %v3108_v61  ;;  %v2724_v15 = vpop.f32.mrf.mxu0 }
 0x359   :  { %v3111_v22 = vsel %vm2833_vm2, %v3008_v30, 0.0  ;;  %v11407_v40 = vadd.f32 %v2724_v15, %v10979_v39  ;;  %v3011_v7 = vmul.f32 %v11401_v52, %v11401_v52  ;;  %v2919_v30 = vsel %vm2833_vm2, %v11401_v52, 0.0 }
 0x35a   :  { %v3112_v11 = vadd.f32 %v3111_v22, %v3110_v25  ;;  %v2916_v19 = vadd.f32 %v2915_v32, %v2914_v43  ;;  %v8528_v21 = vpop.f32.mrf.mxu0 }
 0x35b   :  { %v2917_v33 = vsel %vm2833_vm2, %v11407_v40, 0.0  ;;  %v3010_v61 = vmul.f32 %v11407_v40, %v11407_v40  ;;  %v11417_v41 = vadd.f32 %v8528_v21, %v10998_v18  ;;  %v3117_v16 = vsel %vm2833_vm2, %v3011_v7, 0.0 }
 0x35c   :  { %v2918_v37 = vadd.f32 %v2917_v33, %v2916_v19  ;;  %v3114_v39 = vadd.f32 %v3113_v0, %v3112_v11  ;;  %v2734_v24 = vpop.f32.mrf.mxu0 }
 0x35d   :  { %v3115_v43 = vsel %vm2833_vm2, %v3010_v61, 0.0  ;;  %v11423_v25 = vadd.f32 %v2734_v24, %v10991_v23  ;;  %v3013_v18 = vmul.f32 %v11417_v41, %v11417_v41  ;;  %v2923_v7 = vsel %vm2833_vm2, %v11417_v41, 0.0 }
 0x35e   :  { %v3116_v15 = vadd.f32 %v3115_v43, %v3114_v39  ;;  %v2920_v32 = vadd.f32 %v2919_v30, %v2918_v37  ;;  %v8531_v22 = vpop.f32.mrf.mxu0 }
 0x35f   :  { %v2921_v11 = vsel %vm2833_vm2, %v11423_v25, 0.0  ;;  %v3012_v19 = vmul.f32 %v11423_v25, %v11423_v25  ;;  %v11433_v21 = vadd.f32 %v8531_v22, %v11006_v36  ;;  %v3121_v36 = vsel %vm2833_vm2, %v3013_v18, 0.0 }
 0x360   :  { %v2922_v0 = vadd.f32 %v2921_v11, %v2920_v32  ;;  %v3118_v23 = vadd.f32 %v3117_v16, %v3116_v15  ;;  %v2744_v33 = vpop.f32.mrf.mxu0 }
 0x361   :  { %16273 = vst [vmem:[#allocation93_spill] sm:$0xff] %v11433_v21  ;;  %v3119_v61 = vsel %vm2833_vm2, %v3012_v19, 0.0  ;;  %v11439_v37 = vadd.f32 %v2744_v33, %v11003_v38  ;;  %v3015_v24 = vmul.f32 %v11433_v21, %v11433_v21  ;;  %v2927_v19 = vsel %vm2833_vm2, %v11433_v21, 0.0 }
 0x362   :  { %v3120_v39 = vadd.f32 %v3119_v61, %v3118_v23  ;;  %v2924_v30 = vadd.f32 %v2923_v7, %v2922_v0  ;;  %v8534_v43 = vpop.f32.mrf.mxu0 }
 0x363   :  { %16274 = vst [vmem:[#allocation12_spill] sm:$0xff] %v11439_v37  ;;  %v2925_v16 = vsel %vm2833_vm2, %v11439_v37, 0.0  ;;  %v3014_v15 = vmul.f32 %v11439_v37, %v11439_v37  ;;  %v11449_v32 = vadd.f32 %v8534_v43, %v11012_v58  ;;  %v3125_v18 = vsel %vm2833_vm2, %v3015_v24, 0.0 }
 0x364   :  { %v2926_v22 = vadd.f32 %v2925_v16, %v2924_v30  ;;  %v3122_v38 = vadd.f32 %v3121_v36, %v3120_v39  ;;  %v2754_v11 = vpop.f32.mrf.mxu0 }
 0x365   :  { %16275 = vst [vmem:[#allocation14_spill] sm:$0xff] %v11449_v32  ;;  %v3123_v0 = vsel %vm2833_vm2, %v3014_v15, 0.0  ;;  %v11455_v23 = vadd.f32 %v2754_v11, %v11009_v62  ;;  %v3017_v58 = vmul.f32 %v11449_v32, %v11449_v32  ;;  %v2931_v24 = vsel %vm2833_vm2, %v11449_v32, 0.0 }
 0x366   :  { %v3124_v33 = vadd.f32 %v3123_v0, %v3122_v38  ;;  %v2928_v7 = vadd.f32 %v2927_v19, %v2926_v22  ;;  %v8537_v61 = vpop.f32.mrf.mxu0 }
 0x367   :  { %16276 = vst [vmem:[#allocation94_spill] sm:$0xff] %v11455_v23  ;;  %v2929_v39 = vsel %vm2833_vm2, %v11455_v23, 0.0  ;;  %v3016_v30 = vmul.f32 %v11455_v23, %v11455_v23  ;;  %v11465_v43 = vadd.f32 %v8537_v61, %v11018_v50  ;;  %v3129_v50 = vsel %vm2833_vm2, %v3017_v58, 0.0 }
 0x368   :  { %v2930_v36 = vadd.f32 %v2929_v39, %v2928_v7  ;;  %v3126_v62 = vadd.f32 %v3125_v18, %v3124_v33  ;;  %v2764_v16 = vpop.f32.mrf.mxu0 }
 0x369   :  { %16277 = vst [vmem:[#allocation16_spill] sm:$0xff] %v11465_v43  ;;  %v3127_v15 = vsel %vm2833_vm2, %v3016_v30, 0.0  ;;  %v11471_v22 = vadd.f32 %v2764_v16, %v11015_v3  ;;  %v3019_v11 = vmul.f32 %v11465_v43, %v11465_v43  ;;  %v2935_v30 = vsel %vm2833_vm2, %v11465_v43, 0.0 }
 0x36a   :  { %v3128_v38 = vadd.f32 %v3127_v15, %v3126_v62  ;;  %v2932_v19 = vadd.f32 %v2931_v24, %v2930_v36  ;;  %v8540_v0 = vpop.f32.mrf.mxu0 }
 0x36b   :  { %16278 = vst [vmem:[#allocation18_spill] sm:$0xff] %v11471_v22  ;;  %v2933_v18 = vsel %vm2833_vm2, %v11471_v22, 0.0  ;;  %v3018_v33 = vmul.f32 %v11471_v22, %v11471_v22  ;;  %v11481_v7 = vadd.f32 %v8540_v0, %v11024_v47  ;;  %v3133_v58 = vsel %vm2833_vm2, %v3019_v11, 0.0  ;;  %v16281_v0 = vld [vmem:[#allocation71_spill] sm:$0xff] }
 0x36c   :  { %v2934_v61 = vadd.f32 %v2933_v18, %v2932_v19  ;;  %v3130_v3 = vadd.f32 %v3129_v50, %v3128_v38  ;;  %v2774_v39 = vpop.f32.mrf.mxu0 }
 0x36d   :  { %16279 = vst [vmem:[#allocation95_spill] sm:$0xff] %v11481_v7  ;;  %v3131_v36 = vsel %vm2833_vm2, %v3018_v33, 0.0  ;;  %v11487_v62 = vadd.f32 %v2774_v39, %v11021_v27  ;;  %v3021_v47 = vmul.f32 %v11481_v7, %v11481_v7  ;;  %v2939_v11 = vsel %vm2833_vm2, %v11481_v7, 0.0 }
 0x36e   :  { %v3132_v16 = vadd.f32 %v3131_v36, %v3130_v3  ;;  %v2936_v24 = vadd.f32 %v2935_v30, %v2934_v61  ;;  %v8543_v15 = vpop.f32.mrf.mxu0  ;;  %v16283_v3 = vld [vmem:[#allocation63_spill] sm:$0xff] }
 0x36f   :  { %16280 = vst [vmem:[#allocation20_spill] sm:$0xff] %v11487_v62  ;;  %v2937_v38 = vsel %vm2833_vm2, %v11487_v62, 0.0  ;;  %v3020_v19 = vmul.f32 %v11487_v62, %v11487_v62  ;;  %v11497_v50 = vadd.f32 %v8543_v15, %v16281_v0  ;;  %v3137_v15 = vsel %vm2833_vm2, %v3021_v47, 0.0 }
 0x370   :  { %v2938_v18 = vadd.f32 %v2937_v38, %v2936_v24  ;;  %v3134_v27 = vadd.f32 %v3133_v58, %v3132_v16  ;;  %v2784_v33 = vpop.f32.mrf.mxu0  ;;  %v16285_v24 = vld [vmem:[#allocation74_spill] sm:$0xff] }
 0x371   :  { %16282 = vst [vmem:[#allocation21_spill] sm:$0xff] %v11497_v50  ;;  %v3135_v61 = vsel %vm2833_vm2, %v3020_v19, 0.0  ;;  %v11503_v39 = vadd.f32 %v2784_v33, %v16283_v3  ;;  %v3023_v36 = vmul.f32 %v11497_v50, %v11497_v50 }
 0x372   :  { %v3136_v30 = vadd.f32 %v3135_v61, %v3134_v27  ;;  %v2940_v43 = vadd.f32 %v2939_v11, %v2938_v18  ;;  %v8546_v62 = vpop.f32.mrf.mxu0  ;;  %v2943_v27 = vsel %vm2833_vm2, %v11497_v50, 0.0  ;;  %v16287_v11 = vld [vmem:[#allocation66_spill] sm:$0xff] }
 0x373   :  { %16284 = vst [vmem:[#allocation96_spill] sm:$0xff] %v11503_v39  ;;  %v2941_v58 = vsel %vm2833_vm2, %v11503_v39, 0.0  ;;  %v3022_v16 = vmul.f32 %v11503_v39, %v11503_v39  ;;  %v11513_v38 = vadd.f32 %v8546_v62, %v16285_v24  ;;  %v3141_v47 = vsel %vm2833_vm2, %v3023_v36, 0.0 }
 0x374   :  { %v2942_v19 = vadd.f32 %v2941_v58, %v2940_v43  ;;  %v3138_v0 = vadd.f32 %v3137_v15, %v3136_v30  ;;  %v2794_v33 = vpop.f32.mrf.mxu0  ;;  %v16289_v15 = vld [vmem:[#allocation77_spill] sm:$0xff] }
 0x375   :  { %16286 = vst [vmem:[#allocation97_spill] sm:$0xff] %v11513_v38  ;;  %v3139_v18 = vsel %vm2833_vm2, %v3022_v16, 0.0  ;;  %v11519_v61 = vadd.f32 %v2794_v33, %v16287_v11  ;;  %v3025_v62 = vmul.f32 %v11513_v38, %v11513_v38  ;;  %v2947_v36 = vsel %vm2833_vm2, %v11513_v38, 0.0 }
 0x376   :  { %v3140_v3 = vadd.f32 %v3139_v18, %v3138_v0  ;;  %v2944_v7 = vadd.f32 %v2943_v27, %v2942_v19  ;;  %v8549_v22 = vpop.f32.mrf.mxu0  ;;  %v16291_v0 = vld [vmem:[#allocation69_spill] sm:$0xff] }
 0x377   :  { %16288 = vst [vmem:[#allocation98_spill] sm:$0xff] %v11519_v61  ;;  %v2945_v43 = vsel %vm2833_vm2, %v11519_v61, 0.0  ;;  %v3024_v30 = vmul.f32 %v11519_v61, %v11519_v61  ;;  %v11529_v58 = vadd.f32 %v8549_v22, %v16289_v15  ;;  %v3145_v22 = vsel %vm2833_vm2, %v3025_v62, 0.0 }
 0x378   :  { %v2946_v16 = vadd.f32 %v2945_v43, %v2944_v7  ;;  %v3142_v24 = vadd.f32 %v3141_v47, %v3140_v3  ;;  %v2804_v33 = vpop.f32.mrf.mxu0  ;;  %v16293_v3 = vld [vmem:[#allocation80_spill] sm:$0xff] }
 0x379   :  { %16290 = vst [vmem:[#allocation99_spill] sm:$0xff] %v11529_v58  ;;  %v3143_v19 = vsel %vm2833_vm2, %v3024_v30, 0.0  ;;  %v11535_v27 = vadd.f32 %v2804_v33, %v16291_v0  ;;  %v3027_v11 = vmul.f32 %v11529_v58, %v11529_v58 }
 0x37a   :  { %v3144_v18 = vadd.f32 %v3143_v19, %v3142_v24  ;;  %v2948_v50 = vadd.f32 %v2947_v36, %v2946_v16  ;;  %v8552_v61 = vpop.f32.mrf.mxu0  ;;  %v2951_v24 = vsel %vm2833_vm2, %v11529_v58, 0.0  ;;  %v16295_v36 = vld [vmem:[#allocation72_spill] sm:$0xff] }
 0x37b   :  { %16292 = vst [vmem:[#allocation32_spill] sm:$0xff] %v11535_v27  ;;  %v2949_v7 = vsel %vm2833_vm2, %v11535_v27, 0.0  ;;  %v3026_v47 = vmul.f32 %v11535_v27, %v11535_v27  ;;  %v11545_v43 = vadd.f32 %v8552_v61, %v16293_v3  ;;  %v3149_v62 = vsel %vm2833_vm2, %v3027_v11, 0.0 }
 0x37c   :  { %v2950_v30 = vadd.f32 %v2949_v7, %v2948_v50  ;;  %v3146_v15 = vadd.f32 %v3145_v22, %v3144_v18  ;;  %v2814_v33 = vpop.f32.mrf.mxu0  ;;  %v16296_v18 = vld [vmem:[#allocation83_spill] sm:$0xff] }
 0x37d   :  { %16294 = vst [vmem:[#allocation34_spill] sm:$0xff] %v11545_v43  ;;  %v3147_v16 = vsel %vm2833_vm2, %v3026_v47, 0.0  ;;  %v2815_v19 = vadd.f32 %v2814_v33, %v16295_v36  ;;  %v3029_v27 = vmul.f32 %v11545_v43, %v11545_v43  ;;  %v2955_v47 = vsel %vm2833_vm2, %v11545_v43, 0.0 }
 0x37e   :  { %v3148_v0 = vadd.f32 %v3147_v16, %v3146_v15  ;;  %v2952_v38 = vadd.f32 %v2951_v24, %v2950_v30  ;;  %v8555_v39 = vpop.f32.mrf.mxu0  ;;  %v16298_v15 = vld [vmem:[#allocation75_spill] sm:$0xff] }
 0x37f   :  { %v2953_v61 = vsel %vm2833_vm2, %v2815_v19, 0.0  ;;  %v3028_v50 = vmul.f32 %v2815_v19, %v2815_v19  ;;  %v11556_v22 = vadd.f32 %v8555_v39, %v16296_v18  ;;  %v3153_v16 = vsel %vm2833_vm2, %v3029_v27, 0.0 }
 0x380   :  { %v2954_v7 = vadd.f32 %v2953_v61, %v2952_v38  ;;  %v3150_v3 = vadd.f32 %v3149_v62, %v3148_v0  ;;  %v2824_v58 = vpop.f32.mrf.mxu0 }
 0x381   :  { %16297 = vst [vmem:[#allocation100_spill] sm:$0xff] %v11556_v22  ;;  %v3151_v11 = vsel %vm2833_vm2, %v3028_v50, 0.0  ;;  %v2825_v30 = vadd.f32 %v2824_v58, %v16298_v15  ;;  %v3031_v36 = vmul.f32 %v11556_v22, %v11556_v22  ;;  %v2959_v0 = vsel %vm2833_vm2, %v11556_v22, 0.0 }
 0x382   :  { %v3152_v33 = vadd.f32 %v3151_v11, %v3150_v3  ;;  %v2956_v24 = vadd.f32 %v2955_v47, %v2954_v7 }
 0x383   :  { %v2957_v39 = vsel %vm2833_vm2, %v2825_v30, 0.0  ;;  %v3030_v18 = vmul.f32 %v2825_v30, %v2825_v30  ;;  %v3157_v58 = vsel %vm2833_vm2, %v3031_v36, 0.0  ;;  %v3174_v36 = vlaneseq }
 0x384   :  { %v2958_v38 = vadd.f32 %v2957_v39, %v2956_v24  ;;  %v3154_v62 = vadd.f32 %v3153_v16, %v3152_v33 }
 0x385   :  { %v3155_v61 = vsel %vm2833_vm2, %v3030_v18, 0.0 }
 0x386   :  { %v2960_v50 = vadd.f32 %v2959_v0, %v2958_v38  ;;  %v3156_v43 = vadd.f32 %v3155_v61, %v3154_v62  ;;  %v3175_v0 = vshrl.u32 %v3174_v36, 7 }
 0x388   :  { %v2961_v7 = vrot.slane %v2960_v50, 4  ;;  %v3158_v3 = vadd.f32 %v3157_v58, %v3156_v43  ;;  %v292_v43 = vld [vmem:[%s15568_s2] sm:$0x1]  ;;  %v11573_v61 = vsub.s32 0, %v3175_v0 }
 0x38a   :  { %v2962_v27 = vadd.f32 %v2961_v7, %v2960_v50  ;;  %v3159_v47 = vrot.slane %v3158_v3, 4  ;;  %16299 = vst [vmem:[#allocation36_spill] sm:$0xff] %v11573_v61 }
 0x38c   :  { %v2963_v11 = vrot.slane %v2962_v27, 2  ;;  %v3160_v15 = vadd.f32 %v3159_v47, %v3158_v3 }
 0x38e   :  { %v2964_v32 = vadd.f32 %v2963_v11, %v2962_v27  ;;  %v3161_v23 = vrot.slane %v3160_v15, 2 }
 0x390   :  { %v2965_v21 = vrot.slane %v2964_v32, 1  ;;  %v3162_v24 = vadd.f32 %v3161_v23, %v3160_v15  ;;  %v8707_v23 = vmov 1983009808  }
 0x392   :  { %v2966_v33 = vadd.f32 %v2965_v21, %v2964_v32  ;;  %v3163_v16 = vrot.slane %v3162_v24, 1  ;;  %v3507_v21 = vunpack.c.l.s4 %v8707_v23  ;;  %v293_v32 = vld [vmem:[%s15569_s3] sm:$0x1] }
 0x393   :  { %v16306_v23 = vld [vmem:[#allocation86_spill] sm:$0xff] }
 0x394   :  { %v2967_v39 = vmul.f32 0.001953125, %v2966_v33  ;;  %v3164_v22 = vadd.f32 %v3163_v16, %v3162_v24  ;;  %v3508_v47 = vunpack.c.0.s8 %v3507_v21  ;;  %v16301_v16 = vld [vmem:[#allocation81_spill] sm:$0xff] }
 0x396   :  { %v3165_v37 = vmul.f32 0.001953125, %v3164_v22  ;;  %v3166_v18 = vmul.f32 %v2967_v39, %v2967_v39  ;;  %v11588_v33 = vsub.s32 %v3508_v47, %v3175_v0  ;;  %v16305_v0 = vld [vmem:[#allocation89_spill] sm:$0xff] }
 0x398   :  { %v3167_v38 = vsub.f32 %v3165_v37, %v3166_v18  ;;  %16300 = vst [vmem:[#allocation38_spill] sm:$0xff] %v11588_v33  ;;  %v16302_v18 = vld [vmem:[#allocation78_spill] sm:$0xff] }
 0x39a   :  { %v3168_v62 = vadd.f32 1e-05, %v3167_v38 }
 0x39c   :  { %8642 = vrsqrt.f32 %v3168_v62  ;;  %v16304_v62 = vld [vmem:[#allocation88_spill] sm:$0xff] }
 0x3a9   :  { %v8643_v50 = vpop.eup %8642 }
 0x3aa   :  { %v3170_v58 = vmul.f32 %v8643_v50, %v292_v43 }
 0x3ac   :  { %v3171_v22 = vmul.f32 %v3170_v58, %v2967_v39  ;;  %v11579_v37 = vrot.slane %v3170_v58, %v11573_v61 }
 0x3ae   :  { %v3172_v7 = vsub.f32 %v293_v32, %v3171_v22  ;;  %v3239_v3 = vmul.f32 %v11579_v37, %v2815_v19  ;;  %v3241_v27 = vmul.f32 %v11579_v37, %v2825_v30  ;;  %v11592_v39 = vmul.f32 %v11579_v37, %v16301_v16  ;;  %v16303_v19 = vld [vmem:[#allocation84_spill] sm:$0xff] }
 0x3af   :  { %v11596_v38 = vmul.f32 %v11579_v37, %v16302_v18  ;;  %v11600_v30 = vmul.f32 %v11579_v37, %v16303_v19  ;;  %v11604_v36 = vmul.f32 %v11579_v37, %v16304_v62  ;;  %v11608_v58 = vmul.f32 %v11579_v37, %v16305_v0  ;;  %v16307_v22 = vld [vmem:[#allocation8_spill] sm:$0xff] }
 0x3b0   :  { %v11584_v11 = vrot.slane %v3172_v7, %v11573_v61  ;;  %v11612_v21 = vmul.f32 %v11579_v37, %v16306_v23  ;;  %v11616_v32 = vmul.f32 %v11579_v37, %v11119_v63  ;;  %v11620_v7 = vmul.f32 %v11579_v37, %v16307_v22  ;;  %v16311_v0 = vld [vmem:[#allocation12_spill] sm:$0xff]  ;;  %v16312_v23 = vld [vmem:[#allocation93_spill] sm:$0xff]  ;;  %v16316_v61 = vld [vmem:[#allocation18_spill] sm:$0xff] }
 0x3b1   :  { %v11628_v47 = vmul.f32 %v11579_v37, %v11129_v9  ;;  %v11634_v63 = vmul.f32 %v11579_v37, %v11151_v48  ;;  %v11638_v16 = vmul.f32 %v11579_v37, %v11145_v46  ;;  %v11644_v19 = vmul.f32 %v11579_v37, %v11167_v2 }
 0x3b2   :  { %v3309_v15 = vadd.f32 %v11584_v11, %v3239_v3  ;;  %v3311_v24 = vadd.f32 %v11584_v11, %v3241_v27  ;;  %v16308_v3 = vld [vmem:[#allocation10_spill] sm:$0xff]  ;;  %v11648_v9 = vmul.f32 %v11579_v37, %v11161_v49  ;;  %v11652_v62 = vmul.f32 %v11579_v37, %v11183_v53 }
 0x3b3   :  { %v11624_v27 = vmul.f32 %v11579_v37, %v16308_v3  ;;  %v11656_v48 = vmul.f32 %v11579_v37, %v11177_v35  ;;  %v11660_v46 = vmul.f32 %v11579_v37, %v11199_v13  ;;  %v11664_v2 = vmul.f32 %v11579_v37, %v11193_v54  ;;  %v16313_v3 = vld [vmem:[#allocation94_spill] sm:$0xff] }
 0x3b4   :  { %v3373_v43 = vmax.f32 %v3309_v15, 0.0  ;;  %v3375_v50 = vmax.f32 %v3311_v24, 0.0  ;;  %v11668_v49 = vmul.f32 %v11579_v37, %v11215_v56  ;;  %v11672_v53 = vmul.f32 %v11579_v37, %v11209_v6 }
 0x3b5   :  { %v11676_v35 = vmul.f32 %v11579_v37, %v11231_v10  ;;  %v11680_v13 = vmul.f32 %v11579_v37, %v11225_v59  ;;  %v11684_v54 = vmul.f32 %v11579_v37, %v11247_v20  ;;  %v11688_v56 = vmul.f32 %v11579_v37, %v11241_v4 }
 0x3b6   :  { %v3467_v15 = vsel %vm2833_vm2, %v3373_v43, -inf  ;;  %v3468_v24 = vsel %vm2833_vm2, %v3375_v50, -inf  ;;  %v11692_v6 = vmul.f32 %v11579_v37, %v11263_v60  ;;  %v11696_v10 = vmul.f32 %v11579_v37, %v11257_v55 }
 0x3b7   :  { %v11640_v18 = vmax.f32 %v3467_v15, %v3468_v24  ;;  %v11700_v59 = vmul.f32 %v11579_v37, %v11279_v1  ;;  %v11704_v20 = vmul.f32 %v11579_v37, %v11273_v5  ;;  %v11708_v4 = vmul.f32 %v11579_v37, %v11295_v14  ;;  %v5086_v24 = vld [vmem:[%s15567_s4 + $0x60] sm:$0xff] }
 0x3b8   :  { %v11712_v60 = vmul.f32 %v11579_v37, %v11289_v45  ;;  %v11716_v55 = vmul.f32 %v11579_v37, %v11311_v42  ;;  %v11726_v5 = vmul.f32 %v11579_v37, %v11305_v17  ;;  %v11730_v14 = vmul.f32 %v11579_v37, %v11327_v29  ;;  %v16314_v1 = vld [vmem:[#allocation14_spill] sm:$0xff] }
 0x3b9   :  { %16309 = vst [vmem:[#allocation101_spill] sm:$0xff] %v11640_v18  ;;  %v11722_v43 = vrot.slane %v11640_v18, %v11588_v33  ;;  %v11734_v45 = vmul.f32 %v11579_v37, %v11321_v44  ;;  %v11738_v42 = vmul.f32 %v11579_v37, %v11343_v34  ;;  %v11742_v50 = vmul.f32 %v11579_v37, %v11337_v57  ;;  %v16320_v18 = vld [vmem:[#allocation20_spill] sm:$0xff]  ;;  %v16322_v33 = vld [vmem:[#allocation95_spill] sm:$0xff] }
 0x3ba   :  { %v11746_v17 = vmul.f32 %v11579_v37, %v11359_v28  ;;  %v11750_v29 = vmul.f32 %v11579_v37, %v11353_v26  ;;  %v11754_v44 = vmul.f32 %v11579_v37, %v11375_v8  ;;  %v11758_v34 = vmul.f32 %v11579_v37, %v11369_v12 }
 0x3bb   :  { %16310 = vst [vmem:[#allocation40_spill] sm:$0xff] %v11722_v43  ;;  %v11762_v57 = vmul.f32 %v11579_v37, %v11391_v31  ;;  %v11766_v28 = vmul.f32 %v11579_v37, %v11385_v51  ;;  %v11770_v26 = vmul.f32 %v11579_v37, %v11407_v40  ;;  %v11774_v8 = vmul.f32 %v11579_v37, %v11401_v52  ;;  %v5103_v31 = vld [vmem:[%s15567_s4 + $0xe8] sm:$0xff]  ;;  %v5102_v40 = vld [vmem:[%s15567_s4 + $0xe0] sm:$0xff] }
 0x3bc   :  { %v11778_v12 = vmul.f32 %v11579_v37, %v11423_v25  ;;  %v5087_v51 = vld [vmem:[%s15567_s4 + $0x68] sm:$0xff]  ;;  %v11791_v52 = vmul.f32 %v11579_v37, %v11417_v41  ;;  %v11795_v25 = vmul.f32 %v11579_v37, %v16311_v0  ;;  %v11799_v22 = vmul.f32 %v11579_v37, %v16312_v23  ;;  %8218 = vmatprep.subr.mxu1 %v5103_v31  ;;  %v5101_v31 = vld [vmem:[%s15567_s4 + $0xd8] sm:$0xff] }
 0x3bd   :  { %v11803_v15 = vmul.f32 %v11579_v37, %v16313_v3  ;;  %v11810_v41 = vmul.f32 %v11579_v37, %v16314_v1  ;;  %v11814_v0 = vmul.f32 %v11579_v37, %v16316_v61  ;;  %v16318_v43 = vld [vmem:[#allocation16_spill] sm:$0xff]  ;;  %v11822_v3 = vmul.f32 %v11579_v37, %v16320_v18  ;;  %8219 = vmatpush3.msra.mxu1 %v5087_v51  ;;  %v5085_v51 = vld [vmem:[%s15567_s4 + $0x58] sm:$0xff] }
 0x3be   :  { %v11818_v23 = vmul.f32 %v11579_v37, %v16318_v43  ;;  %v11829_v1 = vmul.f32 %v11579_v37, %v16322_v33  ;;  %8220 = vmatprep.subr.mxu1 %v5102_v40  ;;  %v5100_v40 = vld [vmem:[%s15567_s4 + $0xd0] sm:$0xff] }
 0x3bf   :  { %16315 = vst [vmem:[#allocation42_spill] sm:$0xff] %v11810_v41  ;;  %16317 = vst [vmem:[#allocation3_spill] sm:$0xff] %v11814_v0  ;;  %v16324_v41 = vld [vmem:[#allocation96_spill] sm:$0xff]  ;;  %v16326_v0 = vld [vmem:[#allocation21_spill] sm:$0xff]  ;;  %8221 = vmatpush3.msra.mxu1 %v5086_v24 }
 0x3c0   :  { %16319 = vst [vmem:[#allocation44_spill] sm:$0xff] %v11818_v23  ;;  %16321 = vst [vmem:[#allocation46_spill] sm:$0xff] %v11822_v3  ;;  %v11833_v61 = vmul.f32 %v11579_v37, %v16324_v41  ;;  %v11837_v43 = vmul.f32 %v11579_v37, %v16326_v0  ;;  %v16328_v23 = vld [vmem:[#allocation98_spill] sm:$0xff]  ;;  %v16330_v3 = vld [vmem:[#allocation97_spill] sm:$0xff]  ;;  %8222 = vmatprep.subr.mxu1 %v5101_v31 }
 0x3c1   :  { %16323 = vst [vmem:[#allocation4_spill] sm:$0xff] %v11829_v1  ;;  %v11841_v18 = vmul.f32 %v11579_v37, %v16328_v23  ;;  %v11848_v33 = vmul.f32 %v11579_v37, %v16330_v3  ;;  %v16331_v1 = vld [vmem:[#allocation32_spill] sm:$0xff]  ;;  %8223 = vmatpush3.msra.mxu1 %v5085_v51  ;;  %v11940_v51 = vadd.f32 %v11584_v11, %v11656_v48 }
 0x3c2   :  { %16325 = vst [vmem:[#allocation48_spill] sm:$0xff] %v11833_v61  ;;  %16327 = vst [vmem:[#allocation50_spill] sm:$0xff] %v11837_v43  ;;  %v11852_v41 = vmul.f32 %v11579_v37, %v16331_v1  ;;  %v16332_v61 = vld [vmem:[#allocation99_spill] sm:$0xff]  ;;  %v16333_v43 = vld [vmem:[#allocation34_spill] sm:$0xff]  ;;  %v11871_v1 = vadd.f32 %v11584_v11, %v11592_v39  ;;  %v11890_v39 = vadd.f32 %v11584_v11, %v11608_v58  ;;  %8224 = vmatprep.subr.mxu1 %v5100_v40 }
 0x3c3   :  { %16329 = vst [vmem:[#allocation5_spill] sm:$0xff] %v11841_v18  ;;  %v11856_v0 = vmul.f32 %v11579_v37, %v16332_v61  ;;  %v11860_v23 = vmul.f32 %v11579_v37, %v16333_v43  ;;  %v16334_v18 = vld [vmem:[#allocation100_spill] sm:$0xff]  ;;  %v11875_v61 = vadd.f32 %v11584_v11, %v11596_v38  ;;  %v11879_v43 = vadd.f32 %v11584_v11, %v11600_v30 }
 0x3c4   :  { %v11867_v3 = vmul.f32 %v11579_v37, %v16334_v18  ;;  %v5084_v24 = vld [vmem:[%s15567_s4 + $0x50] sm:$0xff]  ;;  %v11886_v37 = vadd.f32 %v11584_v11, %v11604_v36  ;;  %v11894_v38 = vadd.f32 %v11584_v11, %v11612_v21  ;;  %v11898_v30 = vadd.f32 %v11584_v11, %v11616_v32  ;;  %v5099_v31 = vld [vmem:[%s15567_s4 + $0xc8] sm:$0xff] }
 0x3c5   :  { %v11905_v36 = vadd.f32 %v11584_v11, %v11620_v7  ;;  %v11909_v58 = vadd.f32 %v11584_v11, %v11624_v27  ;;  %v11913_v21 = vadd.f32 %v11584_v11, %v11628_v47  ;;  %v11917_v32 = vadd.f32 %v11584_v11, %v11634_v63  ;;  %v5083_v18 = vld [vmem:[%s15567_s4 + $0x48] sm:$0xff]  ;;  %8225 = vmatpush3.msra.mxu1 %v5084_v24 }
 0x3c6   :  { %v11924_v7 = vadd.f32 %v11584_v11, %v11638_v16  ;;  %v11928_v27 = vadd.f32 %v11584_v11, %v11644_v19  ;;  %v11932_v47 = vadd.f32 %v11584_v11, %v11648_v9  ;;  %v11936_v63 = vadd.f32 %v11584_v11, %v11652_v62  ;;  %8226 = vmatprep.subr.mxu1 %v5099_v31  ;;  %v16342_v40 = vld [vmem:[#allocation42_spill] sm:$0xff]  ;;  %v16344_v24 = vld [vmem:[#allocation3_spill] sm:$0xff] }
 0x3c7   :  { %v11944_v16 = vadd.f32 %v11584_v11, %v11660_v46  ;;  %v11948_v19 = vadd.f32 %v11584_v11, %v11664_v2  ;;  %v11952_v9 = vadd.f32 %v11584_v11, %v11668_v49  ;;  %v11956_v62 = vadd.f32 %v11584_v11, %v11672_v53  ;;  %8227 = vmatpush3.msra.mxu1 %v5083_v18  ;;  %v16346_v31 = vld [vmem:[#allocation44_spill] sm:$0xff]  ;;  %v16347_v18 = vld [vmem:[#allocation46_spill] sm:$0xff] }
 0x3c8   :  { %v11960_v48 = vadd.f32 %v11584_v11, %v11676_v35  ;;  %v11964_v46 = vadd.f32 %v11584_v11, %v11680_v13  ;;  %v11968_v2 = vadd.f32 %v11584_v11, %v11684_v54  ;;  %v11972_v49 = vadd.f32 %v11584_v11, %v11688_v56 }
 0x3c9   :  { %v11976_v53 = vadd.f32 %v11584_v11, %v11692_v6  ;;  %v11980_v35 = vadd.f32 %v11584_v11, %v11696_v10  ;;  %v11984_v13 = vadd.f32 %v11584_v11, %v11700_v59  ;;  %v11988_v54 = vadd.f32 %v11584_v11, %v11704_v20 }
 0x3ca   :  { %v11992_v56 = vadd.f32 %v11584_v11, %v11708_v4  ;;  %v11996_v6 = vadd.f32 %v11584_v11, %v11712_v60  ;;  %v12000_v10 = vadd.f32 %v11584_v11, %v11716_v55  ;;  %v12004_v59 = vadd.f32 %v11584_v11, %v11726_v5 }
 0x3cb   :  { %v12008_v20 = vadd.f32 %v11584_v11, %v11730_v14  ;;  %v12012_v4 = vadd.f32 %v11584_v11, %v11734_v45  ;;  %v12016_v60 = vadd.f32 %v11584_v11, %v11738_v42  ;;  %v12020_v55 = vadd.f32 %v11584_v11, %v11742_v50 }
 0x3cc   :  { %v12024_v5 = vadd.f32 %v11584_v11, %v11746_v17  ;;  %v12028_v14 = vadd.f32 %v11584_v11, %v11750_v29  ;;  %v12032_v45 = vadd.f32 %v11584_v11, %v11754_v44  ;;  %v12036_v42 = vadd.f32 %v11584_v11, %v11758_v34 }
 0x3cd   :  { %v12040_v50 = vadd.f32 %v11584_v11, %v11762_v57  ;;  %v12044_v17 = vadd.f32 %v11584_v11, %v11766_v28  ;;  %v12048_v29 = vadd.f32 %v11584_v11, %v11770_v26  ;;  %v12052_v44 = vadd.f32 %v11584_v11, %v11774_v8 }
 0x3ce   :  { %16335 = vst [vmem:[#allocation52_spill] sm:$0xff] %v12028_v14  ;;  %16336 = vst [vmem:[#allocation55_spill] sm:$0xff] %v12032_v45  ;;  %v12056_v34 = vadd.f32 %v11584_v11, %v11778_v12  ;;  %v12060_v57 = vadd.f32 %v11584_v11, %v11791_v52  ;;  %v12064_v28 = vadd.f32 %v11584_v11, %v11795_v25 }
 0x3cf   :  { %16337 = vst [vmem:[#allocation6_spill] sm:$0xff] %v12036_v42  ;;  %v12068_v26 = vadd.f32 %v11584_v11, %v11799_v22  ;;  %v12072_v8 = vadd.f32 %v11584_v11, %v11803_v15  ;;  %v12076_v12 = vadd.f32 %v11584_v11, %v16342_v40  ;;  %v12080_v52 = vadd.f32 %v11584_v11, %v16344_v24 }
 0x3d0   :  { %16338 = vst [vmem:[#allocation58_spill] sm:$0xff] %v12060_v57  ;;  %16339 = vst [vmem:[#allocation61_spill] sm:$0xff] %v12064_v28  ;;  %v12084_v25 = vadd.f32 %v11584_v11, %v16346_v31  ;;  %v12088_v22 = vadd.f32 %v11584_v11, %v16347_v18  ;;  %v12108_v18 = vadd.f32 %v11584_v11, %v11848_v33 }
 0x3d1   :  { %16340 = vst [vmem:[#allocation7_spill] sm:$0xff] %v12068_v26  ;;  %16341 = vst [vmem:[#allocation64_spill] sm:$0xff] %v12072_v8  ;;  %v16348_v26 = vld [vmem:[#allocation4_spill] sm:$0xff] }
 0x3d2   :  { %16343 = vst [vmem:[#allocation67_spill] sm:$0xff] %v12076_v12  ;;  %16345 = vst [vmem:[#allocation9_spill] sm:$0xff] %v12080_v52  ;;  %v12092_v15 = vadd.f32 %v11584_v11, %v16348_v26  ;;  %v16349_v8 = vld [vmem:[#allocation48_spill] sm:$0xff]  ;;  %v16350_v12 = vld [vmem:[#allocation50_spill] sm:$0xff]  ;;  %v12112_v26 = vadd.f32 %v11584_v11, %v11852_v41 }
 0x3d3   :  { %v12096_v40 = vadd.f32 %v11584_v11, %v16349_v8  ;;  %v12100_v24 = vadd.f32 %v11584_v11, %v16350_v12  ;;  %v16352_v52 = vld [vmem:[#allocation5_spill] sm:$0xff]  ;;  %16354 = vst [vmem:[#allocation11_spill] sm:$0xff] %v12108_v18  ;;  %v12116_v8 = vadd.f32 %v11584_v11, %v11856_v0  ;;  %v12120_v12 = vadd.f32 %v11584_v11, %v11860_v23 }
 0x3d4   :  { %v12104_v31 = vadd.f32 %v11584_v11, %v16352_v52  ;;  %16355 = vst [vmem:[#allocation76_spill] sm:$0xff] %v12112_v26  ;;  %v12124_v52 = vadd.f32 %v11584_v11, %v11867_v3  ;;  %v3315_v18 = vmax.f32 %v11879_v43, 0.0  ;;  %v16364_v33 = vmov %v12112_v26 }
 0x3d5   :  { %16351 = vst [vmem:[#allocation70_spill] sm:$0xff] %v12100_v24  ;;  %16356 = vst [vmem:[#allocation79_spill] sm:$0xff] %v12116_v8  ;;  %v3319_v8 = vmax.f32 %v11898_v30, 0.0  ;;  %v16366_v45 = vmov %v12120_v12  ;;  %v16367_v26 = vmax.f32 %v11875_v61, 0.0  ;;  %v16368_v23 = vmax.f32 %v11886_v37, 0.0 }
 0x3d6   :  { %16353 = vst [vmem:[#allocation73_spill] sm:$0xff] %v12104_v31  ;;  %16357 = vst [vmem:[#allocation13_spill] sm:$0xff] %v12120_v12  ;;  %v3313_v31 = vmax.f32 %v11871_v1, 0.0  ;;  %v3378_v41 = vsel %vm2833_vm2, %v3315_v18, -inf  ;;  %v16369_v11 = vmax.f32 %v11890_v39, 0.0  ;;  %v16370_v61 = vmax.f32 %v11894_v38, 0.0 }
 0x3d7   :  { %v3380_v0 = vsel %vm2833_vm2, %v16367_v26, -inf  ;;  %v3381_v12 = vsel %vm2833_vm2, %v16368_v23, -inf  ;;  %v3384_v1 = vsel %vm2833_vm2, %v3319_v8, -inf  ;;  %v16371_v26 = vmax.f32 %v11905_v36, 0.0 }
 0x3d8   :  { %v3377_v43 = vsel %vm2833_vm2, %v3313_v31, -inf  ;;  %v3383_v3 = vsel %vm2833_vm2, %v16369_v11, -inf  ;;  %v12202_v30 = vmax.f32 %v3380_v0, %v3381_v12  ;;  %v3386_v18 = vsel %vm2833_vm2, %v16370_v61, -inf }
 0x3d9   :  { %v16361_v42 = vld [vmem:[#allocation9_spill] sm:$0xff]  ;;  %v12193_v24 = vmax.f32 %v3377_v43, %v3378_v41  ;;  %v12204_v31 = vmax.f32 %v3383_v3, %v3384_v1  ;;  %v3387_v37 = vsel %vm2833_vm2, %v16371_v26, -inf  ;;  %v16373_v39 = vmax.f32 %v11909_v58, 0.0 }
 0x3da   :  { %v16363_v28 = vld [vmem:[#allocation11_spill] sm:$0xff]  ;;  %v12212_v41 = vmax.f32 %v3386_v18, %v3387_v37  ;;  %v16374_v8 = vmax.f32 %v11917_v32, 0.0  ;;  %v16375_v0 = vmax.f32 %v11913_v21, 0.0  ;;  %v16376_v36 = vmax.f32 %v11924_v7, 0.0 }
 0x3db   :  { %v3389_v23 = vsel %vm2833_vm2, %v16373_v39, -inf  ;;  %v16377_v1 = vmax.f32 %v11928_v27, 0.0  ;;  %v16378_v43 = vmax.f32 %v11936_v63, 0.0  ;;  %v16380_v21 = vmax.f32 %v11932_v47, 0.0 }
 0x3dc   :  { %v16365_v14 = vld [vmem:[#allocation79_spill] sm:$0xff]  ;;  %16372 = vst [vmem:[#allocation82_spill] sm:$0xff] %v12212_v41  ;;  %v3390_v12 = vsel %vm2833_vm2, %v16374_v8, -inf  ;;  %v3392_v38 = vsel %vm2833_vm2, %v16375_v0, -inf  ;;  %v3393_v3 = vsel %vm2833_vm2, %v16376_v36, -inf  ;;  %v16381_v7 = vmax.f32 %v11940_v51, 0.0 }
 0x3dd   :  { %v16362_v57 = vld [vmem:[#allocation73_spill] sm:$0xff]  ;;  %v12223_v11 = vmax.f32 %v3389_v23, %v3390_v12  ;;  %v3395_v58 = vsel %vm2833_vm2, %v16377_v1, -inf  ;;  %v3396_v32 = vsel %vm2833_vm2, %v16378_v43, -inf  ;;  %v12234_v61 = vmax.f32 %v3392_v38, %v3393_v3 }
 0x3de   :  { %v12236_v18 = vmax.f32 %v3395_v58, %v3396_v32  ;;  %v3398_v26 = vsel %vm2833_vm2, %v16380_v21, -inf  ;;  %v3399_v37 = vsel %vm2833_vm2, %v16381_v7, -inf  ;;  %v16383_v27 = vmax.f32 %v11944_v16, 0.0 }
 0x3df   :  { %16379 = vst [vmem:[#allocation85_spill] sm:$0xff] %v12234_v61  ;;  %v12244_v39 = vmax.f32 %v3398_v26, %v3399_v37  ;;  %v16384_v23 = vmax.f32 %v11952_v9, 0.0  ;;  %v16385_v12 = vmax.f32 %v11948_v19, 0.0  ;;  %v16386_v51 = vmax.f32 %v11956_v62, 0.0 }
 0x3e0   :  { %v3401_v63 = vsel %vm2833_vm2, %v16383_v27, -inf  ;;  %v16387_v36 = vmax.f32 %v11960_v48, 0.0  ;;  %v16388_v3 = vmax.f32 %v11968_v2, 0.0  ;;  %v16390_v19 = vmax.f32 %v11964_v46, 0.0 }
 0x3e1   :  { %16382 = vst [vmem:[#allocation15_spill] sm:$0xff] %v12244_v39  ;;  %v3402_v8 = vsel %vm2833_vm2, %v16384_v23, -inf  ;;  %v3404_v47 = vsel %vm2833_vm2, %v16385_v12, -inf  ;;  %v3405_v38 = vsel %vm2833_vm2, %v16386_v51, -inf  ;;  %v16391_v62 = vmax.f32 %v11972_v49, 0.0 }
 0x3e2   :  { %v12255_v0 = vmax.f32 %v3401_v63, %v3402_v8  ;;  %v3407_v16 = vsel %vm2833_vm2, %v16387_v36, -inf  ;;  %v3408_v9 = vsel %vm2833_vm2, %v16388_v3, -inf  ;;  %v12266_v1 = vmax.f32 %v3404_v47, %v3405_v38 }
 0x3e3   :  { %v12268_v58 = vmax.f32 %v3407_v16, %v3408_v9  ;;  %v3410_v43 = vsel %vm2833_vm2, %v16390_v19, -inf  ;;  %v3411_v32 = vsel %vm2833_vm2, %v16391_v62, -inf  ;;  %v16393_v48 = vmax.f32 %v11976_v53, 0.0 }
 0x3e4   :  { %16389 = vst [vmem:[#allocation87_spill] sm:$0xff] %v12266_v1  ;;  %v12276_v21 = vmax.f32 %v3410_v43, %v3411_v32  ;;  %v16394_v26 = vmax.f32 %v11984_v13, 0.0  ;;  %v16395_v37 = vmax.f32 %v11980_v35, 0.0  ;;  %v16396_v49 = vmax.f32 %v11988_v54, 0.0  ;;  %v16407_v32 = vld [vmem:[#allocation55_spill] sm:$0xff] }
 0x3e5   :  { %v3413_v2 = vsel %vm2833_vm2, %v16393_v48, -inf  ;;  %v16397_v23 = vmax.f32 %v11992_v56, 0.0  ;;  %v16398_v8 = vmax.f32 %v12000_v10, 0.0  ;;  %v16399_v35 = vmax.f32 %v11996_v6, 0.0 }
 0x3e6   :  { %16392 = vst [vmem:[#allocation90_spill] sm:$0xff] %v12276_v21  ;;  %v3414_v7 = vsel %vm2833_vm2, %v16394_v26, -inf  ;;  %v3416_v46 = vsel %vm2833_vm2, %v16395_v37, -inf  ;;  %v3417_v63 = vsel %vm2833_vm2, %v16396_v49, -inf  ;;  %v16400_v54 = vmax.f32 %v12004_v59, 0.0 }
 0x3e7   :  { %v12287_v27 = vmax.f32 %v3413_v2, %v3414_v7  ;;  %v3419_v53 = vsel %vm2833_vm2, %v16397_v23, -inf  ;;  %v3420_v13 = vsel %vm2833_vm2, %v16398_v8, -inf  ;;  %v12298_v12 = vmax.f32 %v3416_v46, %v3417_v63  ;;  %v16412_v46 = vld [vmem:[#allocation6_spill] sm:$0xff] }
 0x3e8   :  { %v12300_v47 = vmax.f32 %v3419_v53, %v3420_v13  ;;  %v3422_v51 = vsel %vm2833_vm2, %v16399_v35, -inf  ;;  %v3423_v38 = vsel %vm2833_vm2, %v16400_v54, -inf  ;;  %v16402_v56 = vmax.f32 %v12008_v20, 0.0 }
 0x3e9   :  { %v12308_v36 = vmax.f32 %v3422_v51, %v3423_v38  ;;  %v16403_v16 = vmax.f32 %v12016_v60, 0.0  ;;  %v16404_v9 = vmax.f32 %v12012_v4, 0.0  ;;  %v16405_v59 = vmax.f32 %v12020_v55, 0.0  ;;  %v16410_v4 = vld [vmem:[#allocation52_spill] sm:$0xff] }
 0x3ea   :  { %v3425_v10 = vsel %vm2833_vm2, %v16402_v56, -inf  ;;  %v16406_v62 = vmax.f32 %v12024_v5, 0.0  ;;  %v16408_v48 = vmax.f32 %v16407_v32, 0.0  ;;  %v16411_v7 = vmax.f32 %v16410_v4, 0.0 }
 0x3eb   :  { %16401 = vst [vmem:[#allocation17_spill] sm:$0xff] %v12308_v36  ;;  %v3426_v3 = vsel %vm2833_vm2, %v16403_v16, -inf  ;;  %v3428_v6 = vsel %vm2833_vm2, %v16404_v9, -inf  ;;  %v3429_v43 = vsel %vm2833_vm2, %v16405_v59, -inf  ;;  %v16413_v55 = vmax.f32 %v16412_v46, 0.0 }
 0x3ec   :  { %v12319_v19 = vmax.f32 %v3425_v10, %v3426_v3  ;;  %v3431_v20 = vsel %vm2833_vm2, %v16406_v62, -inf  ;;  %v3432_v60 = vsel %vm2833_vm2, %v16408_v48, -inf  ;;  %v12330_v2 = vmax.f32 %v3428_v6, %v3429_v43  ;;  %v16420_v10 = vld [vmem:[#allocation61_spill] sm:$0xff]  ;;  %v16425_v43 = vld [vmem:[#allocation7_spill] sm:$0xff] }
 0x3ed   :  { %v12332_v26 = vmax.f32 %v3431_v20, %v3432_v60  ;;  %v3434_v37 = vsel %vm2833_vm2, %v16411_v7, -inf  ;;  %v3435_v49 = vsel %vm2833_vm2, %v16413_v55, -inf  ;;  %v16415_v5 = vmax.f32 %v12040_v50, 0.0  ;;  %v16431_v7 = vld [vmem:[#allocation67_spill] sm:$0xff] }
 0x3ee   :  { %16409 = vst [vmem:[#allocation91_spill] sm:$0xff] %v12330_v2  ;;  %v12340_v63 = vmax.f32 %v3434_v37, %v3435_v49  ;;  %v16416_v53 = vmax.f32 %v12048_v29, 0.0  ;;  %v16417_v13 = vmax.f32 %v12044_v17, 0.0  ;;  %v16418_v54 = vmax.f32 %v12052_v44, 0.0  ;;  %v16423_v17 = vld [vmem:[#allocation58_spill] sm:$0xff] }
 0x3ef   :  { %v3437_v23 = vsel %vm2833_vm2, %v16415_v5, -inf  ;;  %v16419_v56 = vmax.f32 %v12056_v34, 0.0  ;;  %v16421_v16 = vmax.f32 %v16420_v10, 0.0  ;;  %v16424_v6 = vmax.f32 %v16423_v17, 0.0  ;;  %v16428_v34 = vld [vmem:[#allocation64_spill] sm:$0xff] }
 0x3f0   :  { %16414 = vst [vmem:[#allocation92_spill] sm:$0xff] %v12340_v63  ;;  %v3438_v8 = vsel %vm2833_vm2, %v16416_v53, -inf  ;;  %v3440_v35 = vsel %vm2833_vm2, %v16417_v13, -inf  ;;  %v3441_v38 = vsel %vm2833_vm2, %v16418_v54, -inf  ;;  %v16426_v44 = vmax.f32 %v16425_v43, 0.0 }
 0x3f1   :  { %v12351_v51 = vmax.f32 %v3437_v23, %v3438_v8  ;;  %v3443_v50 = vsel %vm2833_vm2, %v16419_v56, -inf  ;;  %v3444_v29 = vsel %vm2833_vm2, %v16421_v16, -inf  ;;  %v12362_v3 = vmax.f32 %v3440_v35, %v3441_v38  ;;  %v16438_v56 = vld [vmem:[#allocation70_spill] sm:$0xff] }
 0x3f2   :  { %v12364_v9 = vmax.f32 %v3443_v50, %v3444_v29  ;;  %v3446_v59 = vsel %vm2833_vm2, %v16424_v6, -inf  ;;  %v3447_v62 = vsel %vm2833_vm2, %v16426_v44, -inf  ;;  %v16429_v32 = vmax.f32 %v16428_v34, 0.0  ;;  %v16447_v34 = vld [vmem:[#allocation38_spill] sm:$0xff] }
 0x3f3   :  { %16422 = vst [vmem:[#allocation19_spill] sm:$0xff] %v12362_v3  ;;  %v12372_v20 = vmax.f32 %v3446_v59, %v3447_v62  ;;  %v16430_v60 = vmax.f32 %v16361_v42, 0.0  ;;  %v16432_v37 = vmax.f32 %v16431_v7, 0.0  ;;  %v16433_v49 = vmax.f32 %v12084_v25, 0.0 }
 0x3f4   :  { %v3449_v48 = vsel %vm2833_vm2, %v16429_v32, -inf  ;;  %v16434_v23 = vmax.f32 %v12088_v22, 0.0  ;;  %v16435_v8 = vmax.f32 %v12096_v40, 0.0  ;;  %v16437_v54 = vmax.f32 %v12092_v15, 0.0  ;;  %v16448_v32 = vld [vmem:[#allocation101_spill] sm:$0xff] }
 0x3f5   :  { %16427 = vst [vmem:[#allocation102_spill] sm:$0xff] %v12372_v20  ;;  %v3450_v4 = vsel %vm2833_vm2, %v16430_v60, -inf  ;;  %v3452_v46 = vsel %vm2833_vm2, %v16432_v37, -inf  ;;  %v3453_v5 = vsel %vm2833_vm2, %v16433_v49, -inf  ;;  %v16439_v25 = vmax.f32 %v16438_v56, 0.0  ;;  %v16451_v60 = vld [vmem:[#allocation40_spill] sm:$0xff] }
 0x3f6   :  { %v12383_v55 = vmax.f32 %v3449_v48, %v3450_v4  ;;  %v3455_v53 = vsel %vm2833_vm2, %v16434_v23, -inf  ;;  %v3456_v42 = vsel %vm2833_vm2, %v16435_v8, -inf  ;;  %v12394_v13 = vmax.f32 %v3452_v46, %v3453_v5 }
 0x3f7   :  { %v12396_v35 = vmax.f32 %v3455_v53, %v3456_v42  ;;  %v3458_v38 = vsel %vm2833_vm2, %v16437_v54, -inf  ;;  %v3459_v50 = vsel %vm2833_vm2, %v16439_v25, -inf  ;;  %v16441_v22 = vmax.f32 %v16362_v57, 0.0 }
 0x3f8   :  { %16436 = vst [vmem:[#allocation24_spill] sm:$0xff] %v12394_v13  ;;  %v12404_v10 = vmax.f32 %v3458_v38, %v3459_v50  ;;  %v16442_v16 = vmax.f32 %v16364_v33, 0.0  ;;  %v16443_v17 = vmax.f32 %v16363_v28, 0.0  ;;  %v16444_v59 = vmax.f32 %v16365_v14, 0.0 }
 0x3f9   :  { %v3461_v40 = vsel %vm2833_vm2, %v16441_v22, -inf  ;;  %v16445_v44 = vmax.f32 %v16366_v45, 0.0  ;;  %v16446_v62 = vmax.f32 %v12124_v52, 0.0  ;;  %v16449_v28 = vcombine.high %v16448_v32, %v16448_v32 }
 0x3fa   :  { %16440 = vst [vmem:[#allocation25_spill] sm:$0xff] %v12404_v10  ;;  %v3462_v29 = vsel %vm2833_vm2, %v16442_v16, -inf  ;;  %v3464_v15 = vsel %vm2833_vm2, %v16443_v17, -inf  ;;  %v3465_v43 = vsel %vm2833_vm2, %v16444_v59, -inf  ;;  %v4030_v4 = vcombine.high %v16451_v60, %v16451_v60 }
 0x3fb   :  { %v12415_v6 = vmax.f32 %v3461_v40, %v3462_v29  ;;  %v3470_v57 = vsel %vm2833_vm2, %v16445_v44, -inf  ;;  %v3471_v33 = vsel %vm2833_vm2, %v16446_v62, -inf  ;;  %v12430_v48 = vrot.slane %v16449_v28, %v16447_v34 }
 0x3fc   :  { %v12434_v14 = vmax.f32 %v3464_v15, %v3465_v43  ;;  %v12436_v7 = vmax.f32 %v3470_v57, %v3471_v33  ;;  %v5025_v45 = vsel %vm4177_vm3, %v4030_v4, -inf  ;;  %v3505_v49 = vcombine.high %v12193_v24, %v12193_v24 }
 0x3fd   :  { %16450 = vst [vmem:[#allocation22_spill] sm:$0xff] %v12430_v48  ;;  %v5032_v52 = vsel %vm4177_vm3, %v12430_v48, -inf  ;;  %v5026_v37 = vrot.slane %v5025_v45, 4  ;;  %v12445_v5 = vrot.slane %v12193_v24, %v16447_v34  ;;  %v12449_v23 = vrot.slane %v12202_v30, %v16447_v34 }
 0x3fe   :  { %16452 = vst [vmem:[#allocation26_spill] sm:$0xff] %v12436_v7  ;;  %v5033_v46 = vrot.slane %v5032_v52, 4  ;;  %v3573_v53 = vcombine.high %v12223_v11, %v12223_v11  ;;  %v3539_v8 = vcombine.high %v12204_v31, %v12204_v31  ;;  %v12457_v42 = vrot.slane %v12204_v31, %v16447_v34 }
 0x3ff   :  { %16453 = vst [vmem:[#allocation27_spill] sm:$0xff] %v12445_v5  ;;  %16454 = vst [vmem:[#allocation23_spill] sm:$0xff] %v12449_v23  ;;  %v12461_v38 = vmax.f32 %v5025_v45, %v5026_v37  ;;  %v12466_v56 = vrot.slane %v3505_v49, %v16447_v34  ;;  %v12476_v22 = vrot.slane %v12223_v11, %v16447_v34 }
 0x400   :  { %v12463_v24 = vmax.f32 %v5032_v52, %v5033_v46  ;;  %v12482_v16 = vrot.slane %v12212_v41, %v16447_v34  ;;  %v12485_v29 = vrot.slane %v3573_v53, %v16447_v34  ;;  %v3641_v17 = vcombine.high %v12255_v0, %v12255_v0 }
 0x401   :  { %16455 = vst [vmem:[#allocation28_spill] sm:$0xff] %v12461_v38  ;;  %16457 = vst [vmem:[#allocation30_spill] sm:$0xff] %v12466_v56  ;;  %v12490_v15 = vrot.slane %v3539_v8, %v16447_v34  ;;  %v3607_v59 = vcombine.high %v12236_v18, %v12236_v18  ;;  %v12498_v43 = vrot.slane %v12236_v18, %v16447_v34 }
 0x402   :  { %16456 = vst [vmem:[#allocation29_spill] sm:$0xff] %v12463_v24  ;;  %v12506_v62 = vrot.slane %v12255_v0, %v16447_v34  ;;  %v3675_v33 = vcombine.high %v12268_v58, %v12268_v58  ;;  %v12514_v18 = vrot.slane %v12234_v61, %v16447_v34  ;;  %v3709_v4 = vcombine.high %v12287_v27, %v12287_v27 }
 0x403   :  { %v12524_v45 = vrot.slane %v12244_v39, %v16447_v34  ;;  %v12527_v52 = vrot.slane %v3641_v17, %v16447_v34  ;;  %v12531_v37 = vrot.slane %v12268_v58, %v16447_v34  ;;  %v12534_v46 = vrot.slane %v3607_v59, %v16447_v34  ;;  %v5082_v17 = vld [vmem:[%s15567_s4 + $0x40] sm:$0xff] }
 0x404   :  { %v3743_v8 = vcombine.high %v12300_v47, %v12300_v47  ;;  %v12545_v54 = vrot.slane %v3675_v33, %v16447_v34  ;;  %v12549_v58 = vrot.slane %v12287_v27, %v16447_v34  ;;  %v3726_v59 = vcombine.high %v12298_v12, %v12298_v12 }
 0x405   :  { %v12555_v57 = vrot.slane %v12266_v1, %v16447_v34  ;;  %v12561_v28 = vrot.slane %v12276_v21, %v16447_v34  ;;  %v12564_v33 = vrot.slane %v3709_v4, %v16447_v34  ;;  %v12572_v40 = vrot.slane %v12300_v47, %v16447_v34 }
 0x406   :  { %v3777_v53 = vcombine.high %v12319_v19, %v12319_v19  ;;  %v12578_v44 = vrot.slane %v12298_v12, %v16447_v34  ;;  %v12581_v4 = vrot.slane %v3743_v8, %v16447_v34  ;;  %v12585_v50 = vrot.slane %v12308_v36, %v16447_v34  ;;  %v5098_v8 = vld [vmem:[%s15567_s4 + $0xc0] sm:$0xff] }
 0x407   :  { %16458 = vst [vmem:[#allocation31_spill] sm:$0xff] %v12564_v33  ;;  %16459 = vst [vmem:[#allocation33_spill] sm:$0xff] %v12572_v40  ;;  %v3811_v27 = vcombine.high %v12332_v26, %v12332_v26  ;;  %v12594_v31 = vrot.slane %v3726_v59, %v16447_v34  ;;  %v12598_v12 = vrot.slane %v12319_v19, %v16447_v34  ;;  %8228 = vmatprep.subr.mxu1 %v5098_v8 }
 0x408   :  { %16460 = vst [vmem:[#allocation35_spill] sm:$0xff] %v12578_v44  ;;  %16461 = vst [vmem:[#allocation37_spill] sm:$0xff] %v12581_v4  ;;  %v12612_v59 = vrot.slane %v12330_v2, %v16447_v34  ;;  %v3845_v19 = vcombine.high %v12351_v51, %v12351_v51  ;;  %v12619_v32 = vrot.slane %v3777_v53, %v16447_v34  ;;  %8229 = vmatpush3.msra.mxu1 %v5082_v17 }
 0x409   :  { %16462 = vst [vmem:[#allocation39_spill] sm:$0xff] %v12585_v50  ;;  %16463 = vst [vmem:[#allocation41_spill] sm:$0xff] %v12594_v31  ;;  %v12625_v0 = vrot.slane %v12332_v26, %v16447_v34  ;;  %v12632_v25 = vrot.slane %v3811_v27, %v16447_v34  ;;  %v12636_v53 = vrot.slane %v12340_v63, %v16447_v34  ;;  %v4234_v31 = vsel %vm4177_vm3, %v12457_v42, -inf }
 0x40a   :  { %16464 = vst [vmem:[#allocation43_spill] sm:$0xff] %v12598_v12  ;;  %16465 = vst [vmem:[#allocation45_spill] sm:$0xff] %v12612_v59  ;;  %v12644_v17 = vrot.slane %v12351_v51, %v16447_v34  ;;  %v3879_v8 = vcombine.high %v12364_v9, %v12364_v9  ;;  %v12651_v11 = vrot.slane %v3845_v19, %v16447_v34  ;;  %v4346_v61 = vsel %vm4177_vm3, %v12498_v43, -inf }
 0x40b   :  { %16466 = vst [vmem:[#allocation49_spill] sm:$0xff] %v12619_v32  ;;  %16467 = vst [vmem:[#allocation47_spill] sm:$0xff] %v12632_v25  ;;  %v12655_v49 = vrot.slane %v12364_v9, %v16447_v34  ;;  %v3913_v26 = vcombine.high %v12383_v55, %v12383_v55  ;;  %v12667_v19 = vrot.slane %v12372_v20, %v16447_v34  ;;  %v4402_v2 = vsel %vm4177_vm3, %v12506_v62, -inf }
 0x40c   :  { %16468 = vst [vmem:[#allocation53_spill] sm:$0xff] %v12636_v53  ;;  %16469 = vst [vmem:[#allocation51_spill] sm:$0xff] %v12651_v11  ;;  %v12675_v48 = vrot.slane %v12383_v55, %v16447_v34  ;;  %v3947_v51 = vcombine.high %v12396_v35, %v12396_v35  ;;  %v12683_v47 = vrot.slane %v12362_v3, %v16447_v34  ;;  %v4290_v3 = vsel %vm4177_vm3, %v12476_v22, -inf }
 0x40d   :  { %16470 = vst [vmem:[#allocation59_spill] sm:$0xff] %v12667_v19  ;;  %v12686_v24 = vrot.slane %v3879_v8, %v16447_v34  ;;  %v12695_v38 = vrot.slane %v3913_v26, %v16447_v34  ;;  %v12699_v60 = vrot.slane %v12396_v35, %v16447_v34  ;;  %v12707_v27 = vrot.slane %v12394_v13, %v16447_v34 }
 0x40e   :  { %16471 = vst [vmem:[#allocation56_spill] sm:$0xff] %v12683_v47  ;;  %v3981_v55 = vcombine.high %v12415_v6, %v12415_v6  ;;  %v12714_v9 = vrot.slane %v3947_v51, %v16447_v34  ;;  %v12718_v35 = vrot.slane %v12404_v10, %v16447_v34  ;;  %v16478_v51 = vcombine.high %v12445_v5, %v12445_v5 }
 0x40f   :  { %16472 = vst [vmem:[#allocation62_spill] sm:$0xff] %v12686_v24  ;;  %16473 = vst [vmem:[#allocation54_spill] sm:$0xff] %v12695_v38  ;;  %v3998_v8 = vcombine.high %v12434_v14, %v12434_v14  ;;  %v4192_v13 = vsel %vm4177_vm3, %v12466_v56, -inf  ;;  %v12747_v5 = vrot.slane %v12436_v7, %v16447_v34  ;;  %v12757_v20 = vrot.slane %v12434_v14, %v16447_v34 }
 0x410   :  { %16474 = vst [vmem:[#allocation65_spill] sm:$0xff] %v12707_v27  ;;  %16475 = vst [vmem:[#allocation57_spill] sm:$0xff] %v12714_v9  ;;  %v12728_v27 = vrot.slane %v12415_v6, %v16447_v34  ;;  %v4185_v26 = vsel %vm4177_vm3, %v16478_v51, -inf  ;;  %v12743_v6 = vrot.slane %v3981_v55, %v16447_v34  ;;  %v4235_v51 = vrot.slane %v4234_v31, 4 }
 0x411   :  { %16476 = vst [vmem:[#allocation68_spill] sm:$0xff] %v12718_v35  ;;  %16480 = vst [vmem:[#allocation63_spill] sm:$0xff] %v12747_v5  ;;  %v4186_v55 = vrot.slane %v4185_v26, 4  ;;  %v4193_v36 = vrot.slane %v4192_v13, 4  ;;  %v12766_v47 = vrot.slane %v3998_v8, %v16447_v34  ;;  %v12770_v10 = vsel %vm4177_vm3, %v12449_v23, -inf }
 0x412   :  { %16477 = vst [vmem:[#allocation60_spill] sm:$0xff] %v12728_v27  ;;  %16479 = vst [vmem:[#allocation71_spill] sm:$0xff] %v12743_v6  ;;  %v16484_v14 = vcombine.high %v12457_v42, %v12457_v42  ;;  %v4291_v63 = vrot.slane %v4290_v3, 4  ;;  %v12780_v27 = vmax.f32 %v4234_v31, %v4235_v51  ;;  %v16485_v8 = vcombine.high %v12476_v22, %v12476_v22 }
 0x413   :  { %16481 = vst [vmem:[#allocation74_spill] sm:$0xff] %v12757_v20  ;;  %16482 = vst [vmem:[#allocation66_spill] sm:$0xff] %v12766_v47  ;;  %v12786_v35 = vmax.f32 %v4185_v26, %v4186_v55  ;;  %v12790_v42 = vsel %vm4177_vm3, %v12490_v15, -inf  ;;  %v12794_v6 = vmax.f32 %v4192_v13, %v4193_v36  ;;  %v16486_v22 = vcombine.high %v12498_v43, %v12498_v43 }
 0x414   :  { %16483 = vst [vmem:[#allocation77_spill] sm:$0xff] %v12770_v10  ;;  %v4241_v20 = vsel %vm4177_vm3, %v16484_v14, -inf  ;;  %v4297_v47 = vsel %vm4177_vm3, %v16485_v8, -inf  ;;  %v4347_v14 = vrot.slane %v4346_v61, 4  ;;  %v12801_v26 = vmax.f32 %v4290_v3, %v4291_v63 }
 0x415   :  { %v4242_v51 = vrot.slane %v4241_v20, 4  ;;  %v4353_v8 = vsel %vm4177_vm3, %v16486_v22, -inf  ;;  %v4298_v55 = vrot.slane %v4297_v47, 4  ;;  %v12805_v7 = vsel %vm4177_vm3, %v12485_v29, -inf }
 0x416   :  { %v4458_v5 = vsel %vm4177_vm3, %v12531_v37, -inf  ;;  %v4403_v31 = vrot.slane %v4402_v2, 4  ;;  %v4514_v43 = vsel %vm4177_vm3, %v12549_v58, -inf  ;;  %v12813_v9 = vmax.f32 %v4346_v61, %v4347_v14 }
 0x417   :  { %v4354_v63 = vrot.slane %v4353_v8, 4  ;;  %v16487_v3 = vcombine.high %v12506_v62, %v12506_v62  ;;  %v16488_v1 = vcombine.high %v12531_v37, %v12531_v37  ;;  %v12823_v36 = vmax.f32 %v4241_v20, %v4242_v51 }
 0x418   :  { %v12828_v21 = vsel %vm4177_vm3, %v12534_v46, -inf  ;;  %v4459_v61 = vrot.slane %v4458_v5, 4  ;;  %v12831_v41 = vmax.f32 %v4297_v47, %v4298_v55  ;;  %v12835_v62 = vsel %vm4177_vm3, %v12527_v52, -inf }
 0x419   :  { %v4409_v22 = vsel %vm4177_vm3, %v16487_v3, -inf  ;;  %v4465_v39 = vsel %vm4177_vm3, %v16488_v1, -inf  ;;  %v4515_v37 = vrot.slane %v4514_v43, 4  ;;  %v12837_v3 = vmax.f32 %v4402_v2, %v4403_v31 }
 0x41a   :  { %v4410_v1 = vrot.slane %v4409_v22, 4  ;;  %v4466_v20 = vrot.slane %v4465_v39, 4  ;;  %v16489_v51 = vcombine.high %v12549_v58, %v12549_v58  ;;  %v12844_v23 = vmax.f32 %v4353_v8, %v4354_v63 }
 0x41b   :  { %v12849_v55 = vsel %vm4177_vm3, %v12545_v54, -inf  ;;  %v12852_v31 = vmax.f32 %v4458_v5, %v4459_v61  ;;  %v16490_v14 = vcombine.high %v12572_v40, %v12572_v40  ;;  %v12860_v8 = vmax.f32 %v4514_v43, %v4515_v37 }
 0x41c   :  { %v4521_v13 = vsel %vm4177_vm3, %v16489_v51, -inf  ;;  %v4584_v51 = vsel %vm4177_vm3, %v12581_v4, -inf  ;;  %v12864_v47 = vsel %vm4177_vm3, %v12564_v33, -inf  ;;  %v16492_v2 = vcombine.high %v12598_v12, %v12598_v12 }
 0x41d   :  { %v4577_v58 = vsel %vm4177_vm3, %v16490_v14, -inf  ;;  %v4522_v63 = vrot.slane %v4521_v13, 4  ;;  %16491 = vst [vmem:[#allocation69_spill] sm:$0xff] %v12864_v47  ;;  %v12871_v44 = vmax.f32 %v4409_v22, %v4410_v1  ;;  %v12873_v14 = vmax.f32 %v4465_v39, %v4466_v20 }
 0x41e   :  { %v4633_v5 = vsel %vm4177_vm3, %v16492_v2, -inf  ;;  %v4578_v43 = vrot.slane %v4577_v58, 4  ;;  %v4585_v37 = vrot.slane %v4584_v51, 4  ;;  %v4682_v4 = vsel %vm4177_vm3, %v12625_v0, -inf }
 0x41f   :  { %v4738_v33 = vsel %vm4177_vm3, %v12644_v17, -inf  ;;  %v12884_v22 = vsel %vm4177_vm3, %v12585_v50, -inf  ;;  %v4634_v39 = vrot.slane %v4633_v5, 4  ;;  %v12887_v20 = vmax.f32 %v4521_v13, %v4522_v63 }
 0x420   :  { %16493 = vst [vmem:[#allocation80_spill] sm:$0xff] %v12884_v22  ;;  %v4640_v61 = vsel %vm4177_vm3, %v12619_v32, -inf  ;;  %v16494_v40 = vcombine.high %v12625_v0, %v12625_v0  ;;  %v4683_v12 = vrot.slane %v4682_v4, 4  ;;  %v4696_v2 = vsel %vm4177_vm3, %v12632_v25, -inf }
 0x421   :  { %v4739_v47 = vrot.slane %v4738_v33, 4  ;;  %v4794_v50 = vsel %vm4177_vm3, %v12655_v49, -inf  ;;  %v12899_v56 = vmax.f32 %v4577_v58, %v4578_v43  ;;  %v12901_v13 = vmax.f32 %v4584_v51, %v4585_v37 }
 0x422   :  { %v4689_v10 = vsel %vm4177_vm3, %v16494_v40, -inf  ;;  %v12906_v1 = vsel %vm4177_vm3, %v12612_v59, -inf  ;;  %v12908_v0 = vmax.f32 %v4633_v5, %v4634_v39  ;;  %v4641_v40 = vrot.slane %v4640_v61, 4 }
 0x423   :  { %16495 = vst [vmem:[#allocation72_spill] sm:$0xff] %v12901_v13  ;;  %16496 = vst [vmem:[#allocation83_spill] sm:$0xff] %v12906_v1  ;;  %v16498_v25 = vcombine.high %v12644_v17, %v12644_v17  ;;  %v16499_v58 = vcombine.high %v12655_v49, %v12655_v49  ;;  %v4690_v43 = vrot.slane %v4689_v10, 4  ;;  %v4697_v37 = vrot.slane %v4696_v2, 4 }
 0x424   :  { %16497 = vst [vmem:[#allocation75_spill] sm:$0xff] %v12908_v0  ;;  %v4795_v63 = vrot.slane %v4794_v50, 4  ;;  %v4808_v59 = vsel %vm4177_vm3, %v12686_v24, -inf  ;;  %v12921_v39 = vmax.f32 %v4682_v4, %v4683_v12  ;;  %v12925_v17 = vsel %vm4177_vm3, %v12636_v53, -inf }
 0x425   :  { %v4745_v32 = vsel %vm4177_vm3, %v16498_v25, -inf  ;;  %v4801_v51 = vsel %vm4177_vm3, %v16499_v58, -inf  ;;  %v12927_v25 = vmax.f32 %v4738_v33, %v4739_v47  ;;  %v12931_v49 = vsel %vm4177_vm3, %v12651_v11, -inf }
 0x426   :  { %16500 = vst [vmem:[#allocation81_spill] sm:$0xff] %v12921_v39  ;;  %v4746_v0 = vrot.slane %v4745_v32, 4  ;;  %16502 = vst [vmem:[#allocation84_spill] sm:$0xff] %v12931_v49  ;;  %v4802_v58 = vrot.slane %v4801_v51, 4  ;;  %v4850_v22 = vsel %vm4177_vm3, %v12675_v48, -inf  ;;  %v12935_v24 = vmax.f32 %v4640_v61, %v4641_v40 }
 0x427   :  { %16501 = vst [vmem:[#allocation78_spill] sm:$0xff] %v12927_v25  ;;  %v4809_v5 = vrot.slane %v4808_v59, 4  ;;  %v12939_v4 = vsel %vm4177_vm3, %v12667_v19, -inf  ;;  %v16505_v33 = vcombine.high %v12675_v48, %v12675_v48  ;;  %v12947_v47 = vmax.f32 %v4689_v10, %v4690_v43 }
 0x428   :  { %16503 = vst [vmem:[#allocation88_spill] sm:$0xff] %v12935_v24  ;;  %16504 = vst [vmem:[#allocation89_spill] sm:$0xff] %v12939_v4  ;;  %v12949_v11 = vmax.f32 %v4696_v2, %v4697_v37  ;;  %v12952_v1 = vmax.f32 %v4794_v50, %v4795_v63  ;;  %v4851_v24 = vrot.slane %v4850_v22, 4  ;;  %v12957_v13 = vmax.f32 %v4745_v32, %v4746_v0 }
 0x429   :  { %v12945_v12 = vsel %vm4177_vm3, %v16505_v33, -inf  ;;  %v12959_v48 = vmax.f32 %v4801_v51, %v4802_v58  ;;  %v12963_v43 = vmax.f32 %v4808_v59, %v4809_v5  ;;  %v12967_v50 = vsel %vm4177_vm3, %v12695_v38, -inf }
 0x42a   :  { %16506 = vst [vmem:[#allocation86_spill] sm:$0xff] %v12952_v1  ;;  %16507 = vst [vmem:[#allocation8_spill] sm:$0xff] %v12957_v13  ;;  %v12971_v63 = vsel %vm4177_vm3, %v12699_v60, -inf  ;;  %v16510_v32 = vcombine.high %v12699_v60, %v12699_v60  ;;  %v3623_v59 = vcombine.high %v12534_v46, %v12534_v46  ;;  %v3639_v37 = vcombine.high %v12524_v45, %v12524_v45 }
 0x42b   :  { %16508 = vst [vmem:[#allocation10_spill] sm:$0xff] %v12959_v48  ;;  %16509 = vst [vmem:[#allocation12_spill] sm:$0xff] %v12963_v43  ;;  %v16511_v5 = vrot.slane %v12813_v9, 2  ;;  %v12987_v33 = vmax.f32 %v4850_v22, %v4851_v24  ;;  %v4356_v61 = vrot.slane %v12844_v23, 2  ;;  %v16512_v60 = vrot.slane %v12828_v21, 4 }
 0x42c   :  { %v12977_v0 = vsel %vm4177_vm3, %v16510_v32, -inf  ;;  %v4374_v51 = vsel %vm4177_vm3, %v12524_v45, -inf  ;;  %v4367_v46 = vsel %vm4177_vm3, %v3623_v59, -inf  ;;  %v4381_v10 = vsel %vm4177_vm3, %v3639_v37, -inf }
 0x42d   :  { %v4350_v58 = vmax.f32 %v12813_v9, %v16511_v5  ;;  %v4362_v32 = vmax.f32 %v12828_v21, %v16512_v60  ;;  %v4375_v40 = vrot.slane %v4374_v51, 4  ;;  %v4357_v53 = vmax.f32 %v12844_v23, %v4356_v61 }
 0x42e   :  { %v4368_v24 = vrot.slane %v4367_v46, 4  ;;  %v4382_v22 = vrot.slane %v4381_v10, 4 }
 0x42f   :  { %v4351_v19 = vrot.slane %v4350_v58, 1  ;;  %v4363_v9 = vrot.slane %v4362_v32, 2  ;;  %v4376_v2 = vmax.f32 %v4374_v51, %v4375_v40  ;;  %v4358_v38 = vrot.slane %v4357_v53, 1 }
 0x430   :  { %v4369_v60 = vmax.f32 %v4367_v46, %v4368_v24  ;;  %v4383_v1 = vmax.f32 %v4381_v10, %v4382_v22  ;;  %v3571_v40 = vcombine.high %v12482_v16, %v12482_v16  ;;  %v16513_v51 = vrot.slane %v12780_v27, 2 }
 0x431   :  { %v4352_v5 = vmax.f32 %v4350_v58, %v4351_v19  ;;  %v4364_v21 = vmax.f32 %v4362_v32, %v4363_v9  ;;  %v4377_v45 = vrot.slane %v4376_v2, 2  ;;  %v12998_v59 = vmax.f32 %v4357_v53, %v4358_v38  ;;  %v5097_v58 = vld [vmem:[%s15567_s4 + $0xb8] sm:$0xff] }
 0x432   :  { %v4370_v39 = vrot.slane %v4369_v60, 2  ;;  %v4384_v23 = vrot.slane %v4383_v1, 2  ;;  %v3555_v19 = vcombine.high %v12490_v15, %v12490_v15  ;;  %v4238_v10 = vmax.f32 %v12780_v27, %v16513_v51  ;;  %v5081_v38 = vld [vmem:[%s15567_s4 + $0x38] sm:$0xff]  ;;  %8230 = vmatprep.subr.mxu1 %v5097_v58 }
 0x433   :  { %v4365_v37 = vrot.slane %v4364_v21, 1  ;;  %v4378_v61 = vmax.f32 %v4376_v2, %v4377_v45  ;;  %v5240_v15 = vsel %vm5220_vm4, %v12998_v59, %v4352_v5  ;;  %v4244_v27 = vrot.slane %v12823_v36, 2  ;;  %8231 = vmatpush3.msra.mxu1 %v5081_v38 }
 0x434   :  { %v4371_v2 = vmax.f32 %v4369_v60, %v4370_v39  ;;  %v4385_v32 = vmax.f32 %v4383_v1, %v4384_v23  ;;  %v4239_v9 = vrot.slane %v4238_v10, 1  ;;  %v16515_v24 = vrot.slane %v12790_v42, 4 }
 0x435   :  { %v13013_v53 = vmax.f32 %v4364_v21, %v4365_v37  ;;  %v4379_v46 = vrot.slane %v4378_v61, 1  ;;  %v4255_v1 = vsel %vm4177_vm3, %v3555_v19, -inf  ;;  %v4245_v60 = vmax.f32 %v12823_v36, %v4244_v27 }
 0x436   :  { %v4250_v22 = vmax.f32 %v12790_v42, %v16515_v24  ;;  %v4372_v45 = vrot.slane %v4371_v2, 1  ;;  %v4386_v51 = vrot.slane %v4385_v32, 1  ;;  %v4240_v5 = vmax.f32 %v4238_v10, %v4239_v9 }
 0x437   :  { %16514 = vst [vmem:[#allocation93_spill] sm:$0xff] %v13013_v53  ;;  %v5241_v21 = vsel %vm5222_vm5, %v13013_v53, %v5240_v15  ;;  %v13024_v39 = vmax.f32 %v4378_v61, %v4379_v46  ;;  %v4256_v49 = vrot.slane %v4255_v1, 4  ;;  %v4262_v42 = vsel %vm4177_vm3, %v12482_v16, -inf }
 0x438   :  { %v4251_v37 = vrot.slane %v4250_v22, 2  ;;  %v13027_v23 = vmax.f32 %v4371_v2, %v4372_v45  ;;  %v13029_v58 = vmax.f32 %v4385_v32, %v4386_v51  ;;  %v4246_v38 = vrot.slane %v4245_v60, 1 }
 0x439   :  { %16516 = vst [vmem:[#allocation94_spill] sm:$0xff] %v13024_v39  ;;  %v4263_v13 = vrot.slane %v4262_v42, 4  ;;  %v4269_v15 = vsel %vm4177_vm3, %v3571_v40, -inf  ;;  %v4257_v19 = vmax.f32 %v4255_v1, %v4256_v49  ;;  %v3707_v36 = vcombine.high %v12561_v28, %v12561_v28 }
 0x43a   :  { %16517 = vst [vmem:[#allocation14_spill] sm:$0xff] %v13027_v23  ;;  %16518 = vst [vmem:[#allocation18_spill] sm:$0xff] %v13029_v58  ;;  %v4252_v24 = vmax.f32 %v4250_v22, %v4251_v37  ;;  %v5242_v61 = vsel %vm5224_vm6, %v13027_v23, %v5241_v21  ;;  %v4270_v10 = vrot.slane %v4269_v15, 4  ;;  %v13040_v32 = vmax.f32 %v4245_v60, %v4246_v38 }
 0x43b   :  { %v5243_v2 = vsel %vm5226_vm7, %v13024_v39, %v5242_v61  ;;  %v4264_v16 = vmax.f32 %v4262_v42, %v4263_v13  ;;  %v4258_v40 = vrot.slane %v4257_v19, 2  ;;  %v16520_v22 = vrot.slane %v12852_v31, 2 }
 0x43c   :  { %v4253_v46 = vrot.slane %v4252_v24, 1  ;;  %v13044_v9 = vsel %vm5228_vm8, %v13029_v58, %v5243_v2  ;;  %v4271_v27 = vmax.f32 %v4269_v15, %v4270_v10  ;;  %v5230_v13 = vsel %vm5220_vm4, %v13040_v32, %v4240_v5 }
 0x43d   :  { %16519 = vst [vmem:[#allocation16_spill] sm:$0xff] %v13044_v9  ;;  %v4462_v49 = vmax.f32 %v12852_v31, %v16520_v22  ;;  %5515 = vrot.lane.b32.xlu0 %v13044_v9, %s8708_s23  ;;  %v4265_v51 = vrot.slane %v4264_v16, 2  ;;  %v4468_v21 = vrot.slane %v12873_v14, 2  ;;  %v4259_v1 = vmax.f32 %v4257_v19, %v4258_v40 }
 0x43e   :  { %v13051_v45 = vmax.f32 %v4252_v24, %v4253_v46  ;;  %v4272_v60 = vrot.slane %v4271_v27, 2  ;;  %v16522_v42 = vrot.slane %v12849_v55, 4  ;;  %v16523_v61 = vcombine.high %v12545_v54, %v12545_v54 }
 0x43f   :  { %v4463_v37 = vrot.slane %v4462_v49, 1  ;;  %v4266_v31 = vmax.f32 %v4264_v16, %v4265_v51  ;;  %v4469_v24 = vmax.f32 %v12873_v14, %v4468_v21  ;;  %v4260_v10 = vrot.slane %v4259_v1, 1 }
 0x440   :  { %16521 = vst [vmem:[#allocation20_spill] sm:$0xff] %v13051_v45  ;;  %v4474_v38 = vmax.f32 %v12849_v55, %v16522_v42  ;;  %v5231_v15 = vsel %vm5222_vm5, %v13051_v45, %v5230_v13  ;;  %v4479_v5 = vsel %vm4177_vm3, %v16523_v61, -inf  ;;  %v4273_v2 = vmax.f32 %v4271_v27, %v4272_v60 }
 0x441   :  { %v4464_v19 = vmax.f32 %v4462_v49, %v4463_v37  ;;  %v4267_v40 = vrot.slane %v4266_v31, 1  ;;  %v4470_v22 = vrot.slane %v4469_v24, 1  ;;  %v4480_v9 = vrot.slane %v4479_v5, 4 }
 0x442   :  { %v4475_v46 = vrot.slane %v4474_v38, 2  ;;  %v4486_v55 = vsel %vm4177_vm3, %v12561_v28, -inf  ;;  %v13068_v16 = vmax.f32 %v4259_v1, %v4260_v10  ;;  %v4274_v51 = vrot.slane %v4273_v2, 1 }
 0x443   :  { %v4487_v14 = vrot.slane %v4486_v55, 4  ;;  %v13070_v21 = vmax.f32 %v4266_v31, %v4267_v40  ;;  %v13072_v54 = vmax.f32 %v4469_v24, %v4470_v22  ;;  %v4481_v42 = vmax.f32 %v4479_v5, %v4480_v9 }
 0x444   :  { %16524 = vst [vmem:[#allocation95_spill] sm:$0xff] %v13068_v16  ;;  %v4476_v13 = vmax.f32 %v4474_v38, %v4475_v46  ;;  %v4493_v27 = vsel %vm4177_vm3, %v3707_v36, -inf  ;;  %v13075_v49 = vmax.f32 %v4273_v2, %v4274_v51  ;;  %v5232_v60 = vsel %vm5224_vm6, %v13068_v16, %v5231_v15 }
 0x445   :  { %16525 = vst [vmem:[#allocation96_spill] sm:$0xff] %v13070_v21  ;;  %v4488_v61 = vmax.f32 %v4486_v55, %v4487_v14  ;;  %v5233_v28 = vsel %vm5226_vm7, %v13070_v21, %v5232_v60  ;;  %v4482_v1 = vrot.slane %v4481_v42, 2  ;;  %v4494_v38 = vrot.slane %v4493_v27, 4 }
 0x446   :  { %16526 = vst [vmem:[#allocation21_spill] sm:$0xff] %v13075_v49  ;;  %v4477_v37 = vrot.slane %v4476_v13, 1  ;;  %v5250_v31 = vsel %vm5220_vm4, %v13072_v54, %v4464_v19  ;;  %v13085_v9 = vsel %vm5228_vm8, %v13075_v49, %v5233_v28  ;;  %v3605_v15 = vcombine.high %v12514_v18, %v12514_v18 }
 0x447   :  { %16527 = vst [vmem:[#allocation98_spill] sm:$0xff] %v13085_v9  ;;  %v4489_v24 = vrot.slane %v4488_v61, 2  ;;  %5511 = vrot.lane.b32.xlu1 %v13085_v9, %s8708_s23  ;;  %v4483_v5 = vmax.f32 %v4481_v42, %v4482_v1  ;;  %v4495_v10 = vmax.f32 %v4493_v27, %v4494_v38  ;;  %v16529_v2 = vrot.slane %v12801_v26, 2 }
 0x448   :  { %v13087_v36 = vmax.f32 %v4476_v13, %v4477_v37  ;;  %v4300_v19 = vrot.slane %v12831_v41, 2  ;;  %v16530_v55 = vrot.slane %v12805_v7, 4  ;;  %v16531_v13 = vcombine.high %v12485_v29, %v12485_v29 }
 0x449   :  { %v4294_v46 = vmax.f32 %v12801_v26, %v16529_v2  ;;  %v4490_v40 = vmax.f32 %v4488_v61, %v4489_v24  ;;  %v4484_v42 = vrot.slane %v4483_v5, 1  ;;  %v4496_v27 = vrot.slane %v4495_v10, 2 }
 0x44a   :  { %16528 = vst [vmem:[#allocation97_spill] sm:$0xff] %v13087_v36  ;;  %v5251_v22 = vsel %vm5222_vm5, %v13087_v36, %v5250_v31  ;;  %v4306_v51 = vmax.f32 %v12805_v7, %v16530_v55  ;;  %v4311_v14 = vsel %vm4177_vm3, %v16531_v13, -inf  ;;  %v4301_v26 = vmax.f32 %v12831_v41, %v4300_v19 }
 0x44b   :  { %v4295_v60 = vrot.slane %v4294_v46, 1  ;;  %v4491_v37 = vrot.slane %v4490_v40, 1  ;;  %v4312_v61 = vrot.slane %v4311_v14, 4  ;;  %v4318_v1 = vsel %vm4177_vm3, %v12514_v18, -inf }
 0x44c   :  { %v4307_v28 = vrot.slane %v4306_v51, 2  ;;  %v13109_v38 = vmax.f32 %v4483_v5, %v4484_v42  ;;  %v4497_v31 = vmax.f32 %v4495_v10, %v4496_v27  ;;  %v4302_v24 = vrot.slane %v4301_v26, 1 }
 0x44d   :  { %v4296_v7 = vmax.f32 %v4294_v46, %v4295_v60  ;;  %v13111_v2 = vmax.f32 %v4490_v40, %v4491_v37  ;;  %v4313_v55 = vmax.f32 %v4311_v14, %v4312_v61  ;;  %v4319_v13 = vrot.slane %v4318_v1, 4 }
 0x44e   :  { %16532 = vst [vmem:[#allocation32_spill] sm:$0xff] %v13109_v38  ;;  %v4308_v29 = vmax.f32 %v4306_v51, %v4307_v28  ;;  %v4498_v9 = vrot.slane %v4497_v31, 1  ;;  %v5252_v41 = vsel %vm5224_vm6, %v13109_v38, %v5251_v22  ;;  %v13115_v19 = vmax.f32 %v4301_v26, %v4302_v24 }
 0x44f   :  { %16533 = vst [vmem:[#allocation99_spill] sm:$0xff] %v13111_v2  ;;  %v4325_v25 = vsel %vm4177_vm3, %v3605_v15, -inf  ;;  %v5253_v18 = vsel %vm5226_vm7, %v13111_v2, %v5252_v41  ;;  %v4314_v10 = vrot.slane %v4313_v55, 2  ;;  %v4320_v46 = vmax.f32 %v4318_v1, %v4319_v13 }
 0x450   :  { %v4309_v5 = vrot.slane %v4308_v29, 1  ;;  %v13120_v42 = vmax.f32 %v4497_v31, %v4498_v9  ;;  %v4326_v40 = vrot.slane %v4325_v25, 4  ;;  %v5235_v51 = vsel %vm5220_vm4, %v13115_v19, %v4296_v7 }
 0x451   :  { %v3673_v14 = vcombine.high %v12555_v57, %v12555_v57  ;;  %v4315_v27 = vmax.f32 %v4313_v55, %v4314_v10  ;;  %v4321_v60 = vrot.slane %v4320_v46, 2  ;;  %v16535_v15 = vrot.slane %v12837_v3, 2 }
 0x452   :  { %16534 = vst [vmem:[#allocation34_spill] sm:$0xff] %v13120_v42  ;;  %v13126_v22 = vmax.f32 %v4308_v29, %v4309_v5  ;;  %v13133_v37 = vsel %vm5228_vm8, %v13120_v42, %v5253_v18  ;;  %v4327_v9 = vmax.f32 %v4325_v25, %v4326_v40  ;;  %v4412_v28 = vrot.slane %v12871_v44, 2 }
 0x453   :  { %v4406_v26 = vmax.f32 %v12837_v3, %v16535_v15  ;;  %16536 = vst [vmem:[#allocation100_spill] sm:$0xff] %v13133_v37  ;;  %v16537_v61 = vrot.slane %v12835_v62, 4  ;;  %5519 = vrot.lane.b32.xlu0 %v13133_v37, %s8708_s23  ;;  %v4316_v31 = vrot.slane %v4315_v27, 1  ;;  %v4322_v7 = vmax.f32 %v4320_v46, %v4321_v60 }
 0x454   :  { %v5236_v24 = vsel %vm5222_vm5, %v13126_v22, %v5235_v51  ;;  %v4328_v29 = vrot.slane %v4327_v9, 2  ;;  %v4413_v55 = vmax.f32 %v12871_v44, %v4412_v28  ;;  %v16538_v25 = vcombine.high %v12527_v52, %v12527_v52 }
 0x455   :  { %v4418_v1 = vmax.f32 %v12835_v62, %v16537_v61  ;;  %v4407_v3 = vrot.slane %v4406_v26, 1  ;;  %v13148_v18 = vmax.f32 %v4315_v27, %v4316_v31  ;;  %v4323_v62 = vrot.slane %v4322_v7, 1 }
 0x456   :  { %v4423_v41 = vsel %vm4177_vm3, %v16538_v25, -inf  ;;  %v4329_v40 = vmax.f32 %v4327_v9, %v4328_v29  ;;  %v4414_v46 = vrot.slane %v4413_v55, 1  ;;  %v4430_v51 = vsel %vm4177_vm3, %v12555_v57, -inf }
 0x457   :  { %v4419_v13 = vrot.slane %v4418_v1, 2  ;;  %v4408_v5 = vmax.f32 %v4406_v26, %v4407_v3  ;;  %v4424_v10 = vrot.slane %v4423_v41, 4  ;;  %v13152_v15 = vmax.f32 %v4322_v7, %v4323_v62 }
 0x458   :  { %v5237_v44 = vsel %vm5224_vm6, %v13148_v18, %v5236_v24  ;;  %v4431_v52 = vrot.slane %v4430_v51, 4  ;;  %v4330_v61 = vrot.slane %v4329_v40, 1  ;;  %v13156_v25 = vmax.f32 %v4413_v55, %v4414_v46 }
 0x459   :  { %v4420_v60 = vmax.f32 %v4418_v1, %v4419_v13  ;;  %v4425_v28 = vmax.f32 %v4423_v41, %v4424_v10  ;;  %v4437_v26 = vsel %vm4177_vm3, %v3673_v14, -inf  ;;  %v5238_v9 = vsel %vm5226_vm7, %v13152_v15, %v5237_v44 }
 0x45a   :  { %v4432_v31 = vmax.f32 %v4430_v51, %v4431_v52  ;;  %v4438_v3 = vrot.slane %v4437_v26, 4  ;;  %v16539_v57 = vrot.slane %v12945_v12, 4  ;;  %v13166_v24 = vmax.f32 %v4329_v40, %v4330_v61  ;;  %v16544_v61 = vld [vmem:[#allocation30_spill] sm:$0xff] }
 0x45b   :  { %v4421_v27 = vrot.slane %v4420_v60, 1  ;;  %v4426_v1 = vrot.slane %v4425_v28, 2  ;;  %v5245_v55 = vsel %vm5220_vm4, %v13156_v25, %v4408_v5  ;;  %v4188_v62 = vrot.slane %v12786_v35, 2 }
 0x45c   :  { %v13164_v7 = vmax.f32 %v12945_v12, %v16539_v57  ;;  %v4433_v14 = vrot.slane %v4432_v31, 2  ;;  %v4439_v41 = vmax.f32 %v4437_v26, %v4438_v3  ;;  %v13175_v10 = vsel %vm5228_vm8, %v13166_v24, %v5238_v9  ;;  %v16548_v3 = vld [vmem:[#allocation23_spill] sm:$0xff] }
 0x45d   :  { %v13168_v29 = vmax.f32 %v4420_v60, %v4421_v27  ;;  %v4427_v13 = vmax.f32 %v4425_v28, %v4426_v1  ;;  %16541 = vst [vmem:[#allocation3_spill] sm:$0xff] %v13175_v10  ;;  %v16542_v40 = vcombine.high %v12202_v30, %v12202_v30  ;;  %v4195_v5 = vrot.slane %v12794_v6, 2  ;;  %5513 = vrot.lane.b32.xlu1 %v13175_v10, %s8708_s23  ;;  %v16546_v30 = vld [vmem:[#allocation77_spill] sm:$0xff] }
 0x45e   :  { %16540 = vst [vmem:[#allocation42_spill] sm:$0xff] %v13164_v7  ;;  %v4434_v51 = vmax.f32 %v4432_v31, %v4433_v14  ;;  %v4440_v44 = vrot.slane %v4439_v41, 2  ;;  %v4189_v28 = vmax.f32 %v12786_v35, %v4188_v62  ;;  %v16545_v27 = vcombine.high %v16544_v61, %v16544_v61 }
 0x45f   :  { %v5246_v12 = vsel %vm5222_vm5, %v13168_v29, %v5245_v55  ;;  %v13183_v46 = vrot.slane %v16542_v40, %v16447_v34  ;;  %v4428_v60 = vrot.slane %v4427_v13, 1  ;;  %v4196_v52 = vmax.f32 %v12794_v6, %v4195_v5 }
 0x460   :  { %v4199_v26 = vsel %vm4177_vm3, %v16545_v27, -inf  ;;  %v16547_v9 = vrot.slane %v16546_v30, 4  ;;  %v16549_v57 = vcombine.high %v16548_v3, %v16548_v3  ;;  %v4435_v14 = vrot.slane %v4434_v51, 1 }
 0x461   :  { %16543 = vst [vmem:[#allocation44_spill] sm:$0xff] %v13183_v46  ;;  %v13201_v31 = vmax.f32 %v4427_v13, %v4428_v60  ;;  %v4441_v35 = vmax.f32 %v4439_v41, %v4440_v44  ;;  %v4190_v62 = vrot.slane %v4189_v28, 1  ;;  %v4197_v6 = vrot.slane %v4196_v52, 1  ;;  %v16552_v44 = vld [vmem:[#allocation35_spill] sm:$0xff] }
 0x462   :  { %v4208_v1 = vmax.f32 %v16546_v30, %v16547_v9  ;;  %v4213_v55 = vsel %vm4177_vm3, %v16549_v57, -inf  ;;  %v4200_v40 = vrot.slane %v4199_v26, 4  ;;  %v13203_v10 = vmax.f32 %v4434_v51, %v4435_v14 }
 0x463   :  { %v4214_v61 = vrot.slane %v4213_v55, 4  ;;  %v4442_v27 = vrot.slane %v4441_v35, 1  ;;  %v5247_v30 = vsel %vm5224_vm6, %v13201_v31, %v5246_v12  ;;  %v13207_v9 = vmax.f32 %v4189_v28, %v4190_v62 }
 0x464   :  { %v4209_v5 = vrot.slane %v4208_v1, 2  ;;  %v13209_v3 = vmax.f32 %v4196_v52, %v4197_v6  ;;  %v4201_v57 = vmax.f32 %v4199_v26, %v4200_v40  ;;  %v5248_v41 = vsel %vm5226_vm7, %v13203_v10, %v5247_v30  ;;  %v5080_v30 = vld [vmem:[%s15567_s4 + $0x30] sm:$0xff] }
 0x465   :  { %16550 = vst [vmem:[#allocation46_spill] sm:$0xff] %v13207_v9  ;;  %v4215_v60 = vmax.f32 %v4213_v55, %v4214_v61  ;;  %v13211_v37 = vmax.f32 %v4441_v35, %v4442_v27  ;;  %v4220_v51 = vsel %vm4177_vm3, %v13183_v46, -inf  ;;  %v3741_v14 = vcombine.high %v16552_v44, %v16552_v44  ;;  %v5096_v27 = vld [vmem:[%s15567_s4 + $0xb0] sm:$0xff] }
 0x466   :  { %16551 = vst [vmem:[#allocation4_spill] sm:$0xff] %v13209_v3  ;;  %v4210_v13 = vmax.f32 %v4208_v1, %v4209_v5  ;;  %v4202_v7 = vrot.slane %v4201_v57, 2  ;;  %v4221_v62 = vrot.slane %v4220_v51, 4  ;;  %v5309_v26 = vsel %vm5220_vm4, %v13209_v3, %v13207_v9  ;;  %8232 = vmatprep.subr.mxu1 %v5096_v27 }
 0x467   :  { %v4216_v28 = vrot.slane %v4215_v60, 2  ;;  %v13221_v52 = vsel %vm5228_vm8, %v13211_v37, %v5248_v41  ;;  %v16554_v1 = vrot.slane %v12860_v8, 2  ;;  %v4524_v35 = vrot.slane %v12887_v20, 2  ;;  %8233 = vmatpush3.msra.mxu1 %v5080_v30 }
 0x468   :  { %v4211_v12 = vrot.slane %v4210_v13, 1  ;;  %16553 = vst [vmem:[#allocation48_spill] sm:$0xff] %v13221_v52  ;;  %5517 = vrot.lane.b32.xlu1 %v13221_v52, %s8708_s23  ;;  %v4203_v6 = vmax.f32 %v4201_v57, %v4202_v7  ;;  %v4222_v61 = vmax.f32 %v4220_v51, %v4221_v62  ;;  %v16558_v7 = vld [vmem:[#allocation31_spill] sm:$0xff]  ;;  %v4549_v43 = vsel %vm4177_vm3, %v3741_v14, -inf }
 0x469   :  { %v4518_v55 = vmax.f32 %v12860_v8, %v16554_v1  ;;  %v4217_v5 = vmax.f32 %v4215_v60, %v4216_v28  ;;  %v4525_v8 = vmax.f32 %v12887_v20, %v4524_v35  ;;  %v16556_v1 = vld [vmem:[#allocation69_spill] sm:$0xff]  ;;  %v16559_v57 = vcombine.high %v16558_v7, %v16558_v7 }
 0x46a   :  { %v13232_v40 = vmax.f32 %v4210_v13, %v4211_v12  ;;  %v16557_v9 = vrot.slane %v16556_v1, 4  ;;  %v4204_v60 = vrot.slane %v4203_v6, 1  ;;  %v4223_v12 = vrot.slane %v4222_v61, 2 }
 0x46b   :  { %v4519_v41 = vrot.slane %v4518_v55, 1  ;;  %v4535_v13 = vsel %vm4177_vm3, %v16559_v57, -inf  ;;  %v4218_v51 = vrot.slane %v4217_v5, 1  ;;  %v4526_v3 = vrot.slane %v4525_v8, 1 }
 0x46c   :  { %16555 = vst [vmem:[#allocation50_spill] sm:$0xff] %v13232_v40  ;;  %v4530_v52 = vmax.f32 %v16556_v1, %v16557_v9  ;;  %v4536_v28 = vrot.slane %v4535_v13, 4  ;;  %v4542_v20 = vsel %vm4177_vm3, %v16552_v44, -inf  ;;  %v13250_v35 = vmax.f32 %v4203_v6, %v4204_v60 }
 0x46d   :  { %v4520_v62 = vmax.f32 %v4518_v55, %v4519_v41  ;;  %v13252_v9 = vmax.f32 %v4217_v5, %v4218_v51  ;;  %v4224_v1 = vmax.f32 %v4222_v61, %v4223_v12  ;;  %v13254_v4 = vmax.f32 %v4525_v8, %v4526_v3 }
 0x46e   :  { %v4531_v46 = vrot.slane %v4530_v52, 2  ;;  %16560 = vst [vmem:[#allocation5_spill] sm:$0xff] %v13250_v35  ;;  %v4537_v7 = vmax.f32 %v4535_v13, %v4536_v28  ;;  %v4543_v57 = vrot.slane %v4542_v20, 4  ;;  %v5310_v55 = vsel %vm5222_vm5, %v13250_v35, %v5309_v26  ;;  %v16564_v13 = vld [vmem:[#allocation82_spill] sm:$0xff] }
 0x46f   :  { %16561 = vst [vmem:[#allocation9_spill] sm:$0xff] %v13252_v9  ;;  %16562 = vst [vmem:[#allocation73_spill] sm:$0xff] %v13254_v4  ;;  %v4225_v48 = vrot.slane %v4224_v1, 1  ;;  %v4550_v41 = vrot.slane %v4549_v43, 4  ;;  %v5311_v44 = vsel %vm5224_vm6, %v13232_v40, %v5310_v55  ;;  %v5501_v61 = vsel %vm5220_vm4, %v13254_v4, %v4520_v62 }
 0x470   :  { %v4532_v27 = vmax.f32 %v4530_v52, %v4531_v46  ;;  %v4538_v30 = vrot.slane %v4537_v7, 2  ;;  %v4544_v5 = vmax.f32 %v4542_v20, %v4543_v57  ;;  %v5312_v46 = vsel %vm5226_vm7, %v13252_v9, %v5311_v44  ;;  %v16567_v44 = vld [vmem:[#allocation90_spill] sm:$0xff] }
 0x471   :  { %v13263_v3 = vmax.f32 %v4224_v1, %v4225_v48  ;;  %v4551_v52 = vmax.f32 %v4549_v43, %v4550_v41  ;;  %v16565_v60 = vcombine.high %v16564_v13, %v16564_v13  ;;  %v5314_v12 = vsel %vm5220_vm4, %v13051_v45, %v13040_v32 }
 0x472   :  { %v4533_v6 = vrot.slane %v4532_v27, 1  ;;  %v4539_v14 = vmax.f32 %v4537_v7, %v4538_v30  ;;  %v4545_v26 = vrot.slane %v4544_v5, 2  ;;  %v5315_v43 = vsel %vm5222_vm5, %v13068_v16, %v5314_v12 }
 0x473   :  { %16563 = vst [vmem:[#allocation11_spill] sm:$0xff] %v13263_v3  ;;  %v13273_v51 = vrot.slane %v16565_v60, %v16447_v34  ;;  %v5313_v48 = vsel %vm5228_vm8, %v13263_v3, %v5312_v46  ;;  %v4552_v62 = vrot.slane %v4551_v52, 2  ;;  %v5316_v30 = vsel %vm5224_vm6, %v13070_v21, %v5315_v43 }
 0x474   :  { %v13267_v8 = vmax.f32 %v4532_v27, %v4533_v6  ;;  %v4540_v28 = vrot.slane %v4539_v14, 1  ;;  %5369 = vrot.lane.b32.xlu0 %v5313_v48, %s8708_s23  ;;  %v4546_v1 = vmax.f32 %v4544_v5, %v4545_v26  ;;  %v16568_v6 = vcombine.high %v16567_v44, %v16567_v44 }
 0x475   :  { %16566 = vst [vmem:[#allocation76_spill] sm:$0xff] %v13273_v51  ;;  %v4276_v27 = vsel %vm4177_vm3, %v13273_v51, -inf  ;;  %v4553_v57 = vmax.f32 %v4551_v52, %v4552_v62  ;;  %v5334_v5 = vsel %vm5220_vm4, %v13087_v36, %v13072_v54  ;;  %v16617_v45 = vrot.slane %v12925_v17, 4 }
 0x476   :  { %v5502_v7 = vsel %vm5222_vm5, %v13267_v8, %v5501_v61  ;;  %v13288_v32 = vmax.f32 %v4539_v14, %v4540_v28  ;;  %v4277_v55 = vrot.slane %v4276_v27, 4  ;;  %v4547_v41 = vrot.slane %v4546_v1, 1  ;;  %v16570_v61 = vld [vmem:[#allocation15_spill] sm:$0xff] }
 0x477   :  { %v13296_v46 = vrot.slane %v16568_v6, %v16447_v34  ;;  %v16571_v14 = vcombine.high %v16570_v61, %v16570_v61  ;;  %v4554_v13 = vrot.slane %v4553_v57, 1  ;;  %v5317_v28 = vsel %vm5226_vm7, %v13075_v49, %v5316_v30 }
 0x478   :  { %v5503_v60 = vsel %vm5224_vm6, %v13288_v32, %v5502_v7  ;;  %v4278_v12 = vmax.f32 %v4276_v27, %v4277_v55  ;;  %v13310_v48 = vmax.f32 %v4546_v1, %v4547_v41  ;;  %v5335_v61 = vsel %vm5222_vm5, %v13109_v38, %v5334_v5  ;;  %v16572_v55 = vld [vmem:[#allocation87_spill] sm:$0xff] }
 0x479   :  { %16569 = vst [vmem:[#allocation79_spill] sm:$0xff] %v13296_v46  ;;  %v13305_v52 = vrot.slane %v16571_v14, %v16447_v34  ;;  %v4500_v54 = vsel %vm4177_vm3, %v13296_v46, -inf  ;;  %v13318_v43 = vmax.f32 %v4553_v57, %v4554_v13  ;;  %v5324_v27 = vsel %vm5220_vm4, %v13013_v53, %v12998_v59  ;;  %v16604_v46 = vld [vmem:[#allocation83_spill] sm:$0xff] }
 0x47a   :  { %v4279_v44 = vrot.slane %v4278_v12, 2  ;;  %v4501_v6 = vrot.slane %v4500_v54, 4  ;;  %v5504_v1 = vsel %vm5226_vm7, %v13310_v48, %v5503_v60  ;;  %v16573_v30 = vcombine.high %v16572_v55, %v16572_v55 }
 0x47b   :  { %v4388_v62 = vsel %vm4177_vm3, %v13305_v52, -inf  ;;  %v13335_v57 = vsel %vm5228_vm8, %v13318_v43, %v5504_v1  ;;  %v5325_v13 = vsel %vm5222_vm5, %v13027_v23, %v5324_v27  ;;  %v5336_v59 = vsel %vm5224_vm6, %v13111_v2, %v5335_v61  ;;  %v16575_v61 = vld [vmem:[#allocation85_spill] sm:$0xff] }
 0x47c   :  { %v4389_v7 = vrot.slane %v4388_v62, 4  ;;  %v13331_v41 = vrot.slane %v16573_v30, %v16447_v34  ;;  %16574 = vst [vmem:[#allocation13_spill] sm:$0xff] %v13335_v57  ;;  %v4280_v14 = vmax.f32 %v4278_v12, %v4279_v44  ;;  %v4502_v5 = vmax.f32 %v4500_v54, %v4501_v6  ;;  %5521 = vrot.lane.b32.xlu1 %v13335_v57, %s8708_s23 }
 0x47d   :  { %v5329_v1 = vsel %vm5220_vm4, %v13168_v29, %v13156_v25  ;;  %v5326_v54 = vsel %vm5224_vm6, %v13024_v39, %v5325_v13  ;;  %v5319_v25 = vsel %vm5220_vm4, %v13126_v22, %v13115_v19  ;;  %v16605_v21 = vrot.slane %v16604_v46, 4 }
 0x47e   :  { %v4390_v60 = vmax.f32 %v4388_v62, %v4389_v7  ;;  %v4444_v55 = vsel %vm4177_vm3, %v13331_v41, -inf  ;;  %v4281_v30 = vrot.slane %v4280_v14, 1  ;;  %v4503_v12 = vrot.slane %v4502_v5, 2 }
 0x47f   :  { %v4445_v44 = vrot.slane %v4444_v55, 4  ;;  %v5330_v27 = vsel %vm5222_vm5, %v13201_v31, %v5329_v1  ;;  %v16576_v62 = vcombine.high %v16575_v61, %v16575_v61  ;;  %v5337_v1 = vsel %vm5226_vm7, %v13120_v42, %v5336_v59 }
 0x480   :  { %v4391_v6 = vrot.slane %v4390_v60, 2  ;;  %v13361_v20 = vmax.f32 %v4280_v14, %v4281_v30  ;;  %v4504_v26 = vmax.f32 %v4502_v5, %v4503_v12  ;;  %v5331_v13 = vsel %vm5224_vm6, %v13203_v10, %v5330_v27 }
 0x481   :  { %v13356_v7 = vrot.slane %v16576_v62, %v16447_v34  ;;  %v4446_v57 = vmax.f32 %v4444_v55, %v4445_v44  ;;  %v5320_v62 = vsel %vm5222_vm5, %v13148_v18, %v5319_v25  ;;  %v5327_v59 = vsel %vm5226_vm7, %v13029_v58, %v5326_v54 }
 0x482   :  { %16577 = vst [vmem:[#allocation55_spill] sm:$0xff] %v13361_v20  ;;  %v4392_v3 = vmax.f32 %v4390_v60, %v4391_v6  ;;  %v13373_v19 = vsel %vm5228_vm8, %v13361_v20, %v5317_v28  ;;  %v4505_v14 = vrot.slane %v4504_v26, 1  ;;  %v5332_v60 = vsel %vm5226_vm7, %v13211_v37, %v5331_v13  ;;  %v16583_v13 = vld [vmem:[#allocation72_spill] sm:$0xff] }
 0x483   :  { %v4332_v61 = vsel %vm4177_vm3, %v13356_v7, -inf  ;;  %16578 = vst [vmem:[#allocation52_spill] sm:$0xff] %v13373_v19  ;;  %v4447_v5 = vrot.slane %v4446_v57, 2  ;;  %5371 = vrot.lane.b32.xlu0 %v13373_v19, %s8708_s23  ;;  %v4580_v12 = vrot.slane %v12899_v56, 2  ;;  %v5321_v27 = vsel %vm5224_vm6, %v13152_v15, %v5320_v62  ;;  %v16581_v19 = vld [vmem:[#allocation17_spill] sm:$0xff] }
 0x484   :  { %v4333_v55 = vrot.slane %v4332_v61, 4  ;;  %v4393_v30 = vrot.slane %v4392_v3, 1  ;;  %v13382_v44 = vmax.f32 %v4504_v26, %v4505_v14  ;;  %v16582_v9 = vcombine.high %v16581_v19, %v16581_v19  ;;  %v16585_v14 = vld [vmem:[#allocation37_spill] sm:$0xff] }
 0x485   :  { %v4448_v6 = vmax.f32 %v4446_v57, %v4447_v5  ;;  %v4581_v54 = vmax.f32 %v12899_v56, %v4580_v12  ;;  %v4587_v35 = vrot.slane %v16583_v13, 2  ;;  %v4656_v58 = vmax.f32 %v16604_v46, %v16605_v21 }
 0x486   :  { %16579 = vst [vmem:[#allocation6_spill] sm:$0xff] %v13382_v44  ;;  %v4334_v28 = vmax.f32 %v4332_v61, %v4333_v55  ;;  %v13386_v25 = vmax.f32 %v4392_v3, %v4393_v30  ;;  %v13392_v40 = vrot.slane %v16582_v9, %v16447_v34  ;;  %v13398_v26 = vsel %vm5228_vm8, %v13382_v44, %v5337_v1  ;;  %v16588_v30 = vld [vmem:[#allocation80_spill] sm:$0xff]  ;;  %v16594_v44 = vld [vmem:[#allocation57_spill] sm:$0xff] }
 0x487   :  { %16584 = vst [vmem:[#allocation58_spill] sm:$0xff] %v13398_v26  ;;  %v4449_v57 = vrot.slane %v4448_v6, 1  ;;  %v16586_v3 = vcombine.high %v16585_v14, %v16585_v14  ;;  %5379 = vrot.lane.b32.xlu1 %v13398_v26, %s8708_s23  ;;  %v4582_v56 = vrot.slane %v4581_v54, 1  ;;  %v4588_v19 = vmax.f32 %v16583_v13, %v4587_v35 }
 0x488   :  { %16580 = vst [vmem:[#allocation61_spill] sm:$0xff] %v13386_v25  ;;  %v4335_v61 = vrot.slane %v4334_v28, 2  ;;  %v13408_v9 = vsel %vm5228_vm8, %v13386_v25, %v5327_v59  ;;  %v16589_v12 = vrot.slane %v16588_v30, 4  ;;  %v13441_v2 = vsel %vm4177_vm3, %v16594_v44, -inf }
 0x489   :  { %v4591_v62 = vsel %vm4177_vm3, %v16586_v3, -inf  ;;  %16587 = vst [vmem:[#allocation7_spill] sm:$0xff] %v13408_v9  ;;  %5375 = vrot.lane.b32.xlu0 %v13408_v9, %s8708_s23  ;;  %v13413_v1 = vmax.f32 %v4448_v6, %v4449_v57  ;;  %v16590_v3 = vld [vmem:[#allocation39_spill] sm:$0xff]  ;;  %v4589_v42 = vrot.slane %v4588_v19, 1  ;;  %v4612_v57 = vsel %vm4177_vm3, %v13392_v40, -inf }
 0x48a   :  { %v4592_v5 = vrot.slane %v4591_v62, 4  ;;  %v4336_v55 = vmax.f32 %v4334_v28, %v4335_v61  ;;  %v4600_v14 = vmax.f32 %v16588_v30, %v16589_v12  ;;  %v16591_v26 = vcombine.high %v16590_v3, %v16590_v3 }
 0x48b   :  { %v13425_v9 = vsel %vm5228_vm8, %v13413_v1, %v5332_v60  ;;  %v4613_v12 = vrot.slane %v4612_v57, 4  ;;  %v13437_v60 = vmax.f32 %v4588_v19, %v4589_v42  ;;  %v4712_v39 = vmax.f32 %v12925_v17, %v16617_v45 }
 0x48c   :  { %v4605_v59 = vsel %vm4177_vm3, %v16591_v26, -inf  ;;  %v4593_v35 = vmax.f32 %v4591_v62, %v4592_v5  ;;  %16592 = vst [vmem:[#allocation64_spill] sm:$0xff] %v13425_v9  ;;  %v4337_v6 = vrot.slane %v4336_v55, 1  ;;  %v4601_v28 = vrot.slane %v4600_v14, 2  ;;  %5377 = vrot.lane.b32.xlu1 %v13425_v9, %s8708_s23 }
 0x48d   :  { %v4606_v13 = vrot.slane %v4605_v59, 4  ;;  %v5322_v26 = vsel %vm5226_vm7, %v13166_v24, %v5321_v27  ;;  %v13435_v5 = vmax.f32 %v4581_v54, %v4582_v56  ;;  %v4614_v9 = vmax.f32 %v4612_v57, %v4613_v12  ;;  %v16595_v27 = vld [vmem:[#allocation68_spill] sm:$0xff]  ;;  %v16602_v12 = vld [vmem:[#allocation49_spill] sm:$0xff] }
 0x48e   :  { %v4594_v61 = vrot.slane %v4593_v35, 2  ;;  %v13433_v62 = vmax.f32 %v4336_v55, %v4337_v6  ;;  %v4602_v3 = vmax.f32 %v4600_v14, %v4601_v28  ;;  %v16597_v14 = vld [vmem:[#allocation91_spill] sm:$0xff]  ;;  %v16603_v36 = vcombine.high %v16602_v12, %v16602_v12 }
 0x48f   :  { %v4607_v30 = vmax.f32 %v4605_v59, %v4606_v13  ;;  %16593 = vst [vmem:[#allocation67_spill] sm:$0xff] %v13435_v5  ;;  %v13446_v59 = vsel %vm4177_vm3, %v16595_v27, -inf  ;;  %v4615_v55 = vrot.slane %v4614_v9, 2  ;;  %v5647_v6 = vsel %vm5220_vm4, %v13437_v60, %v13435_v5  ;;  %v16600_v28 = vld [vmem:[#allocation75_spill] sm:$0xff] }
 0x490   :  { %v4595_v20 = vmax.f32 %v4593_v35, %v4594_v61  ;;  %v13450_v54 = vsel %vm5228_vm8, %v13433_v62, %v5322_v26  ;;  %v4603_v42 = vrot.slane %v4602_v3, 1  ;;  %v16598_v35 = vcombine.high %v16597_v14, %v16597_v14  ;;  %v16601_v26 = vld [vmem:[#allocation88_spill] sm:$0xff] }
 0x491   :  { %v4608_v38 = vrot.slane %v4607_v30, 2  ;;  %16596 = vst [vmem:[#allocation70_spill] sm:$0xff] %v13450_v54  ;;  %5373 = vrot.lane.b32.xlu0 %v13450_v54, %s8708_s23  ;;  %v4636_v57 = vrot.slane %v16600_v28, 2  ;;  %v4643_v61 = vrot.slane %v16601_v26, 2  ;;  %v4616_v49 = vmax.f32 %v4614_v9, %v4615_v55 }
 0x492   :  { %v4596_v56 = vrot.slane %v4595_v20, 1  ;;  %v13458_v13 = vrot.slane %v16598_v35, %v16447_v34  ;;  %v13471_v35 = vmax.f32 %v4602_v3, %v4603_v42  ;;  %v4699_v42 = vrot.slane %v12949_v11, 2 }
 0x493   :  { %v4609_v19 = vmax.f32 %v4607_v30, %v4608_v38  ;;  %v4647_v38 = vsel %vm4177_vm3, %v16603_v36, -inf  ;;  %v4637_v25 = vmax.f32 %v16600_v28, %v4636_v57  ;;  %v4644_v5 = vmax.f32 %v16601_v26, %v4643_v61 }
 0x494   :  { %16599 = vst [vmem:[#allocation38_spill] sm:$0xff] %v13458_v13  ;;  %v13469_v30 = vmax.f32 %v4595_v20, %v4596_v56  ;;  %v4648_v14 = vrot.slane %v4647_v38, 4  ;;  %v4617_v12 = vrot.slane %v4616_v49, 1  ;;  %v16606_v20 = vld [vmem:[#allocation45_spill] sm:$0xff]  ;;  %v4657_v26 = vrot.slane %v4656_v58, 2 }
 0x495   :  { %v4610_v54 = vrot.slane %v4609_v19, 1  ;;  %v16607_v9 = vcombine.high %v16606_v20, %v16606_v20  ;;  %v4638_v55 = vrot.slane %v4637_v25, 1  ;;  %v4645_v28 = vrot.slane %v4644_v5, 1  ;;  %v16610_v20 = vld [vmem:[#allocation60_spill] sm:$0xff] }
 0x496   :  { %v5648_v36 = vsel %vm5222_vm5, %v13469_v30, %v5647_v6  ;;  %v13490_v46 = vmax.f32 %v4616_v49, %v4617_v12  ;;  %v4668_v49 = vsel %vm4177_vm3, %v13458_v13, -inf  ;;  %v4713_v53 = vrot.slane %v4712_v39, 2 }
 0x497   :  { %v13478_v4 = vmax.f32 %v4609_v19, %v4610_v54  ;;  %v4661_v3 = vsel %vm4177_vm3, %v16607_v9, -inf  ;;  %v5649_v56 = vsel %vm5224_vm6, %v13471_v35, %v5648_v36  ;;  %v4649_v19 = vmax.f32 %v4647_v38, %v4648_v14 }
 0x498   :  { %v13494_v6 = vmax.f32 %v4637_v25, %v4638_v55  ;;  %v13496_v57 = vmax.f32 %v4644_v5, %v4645_v28  ;;  %v4662_v61 = vrot.slane %v4661_v3, 4  ;;  %v13500_v9 = vsel %vm4177_vm3, %v16610_v20, -inf }
 0x499   :  { %v5650_v54 = vsel %vm5226_vm7, %v13478_v4, %v5649_v56  ;;  %v4650_v21 = vrot.slane %v4649_v19, 2  ;;  %v4658_v38 = vmax.f32 %v4656_v58, %v4657_v26  ;;  %v4669_v14 = vrot.slane %v4668_v49, 4  ;;  %v16611_v56 = vld [vmem:[#allocation92_spill] sm:$0xff] }
 0x49a   :  { %16608 = vst [vmem:[#allocation101_spill] sm:$0xff] %v13494_v6  ;;  %16609 = vst [vmem:[#allocation30_spill] sm:$0xff] %v13496_v57  ;;  %v5651_v36 = vsel %vm5228_vm8, %v13490_v46, %v5650_v54  ;;  %v4663_v25 = vmax.f32 %v4661_v3, %v4662_v61  ;;  %v5339_v5 = vsel %vm5220_vm4, %v13496_v57, %v13494_v6  ;;  %v4692_v54 = vrot.slane %v12947_v47, 2  ;;  %v16614_v3 = vld [vmem:[#allocation47_spill] sm:$0xff] }
 0x49b   :  { %5659 = vrot.lane.b32.xlu1 %v5651_v36, %s8708_s23  ;;  %v4651_v12 = vmax.f32 %v4649_v19, %v4650_v21  ;;  %v16612_v55 = vcombine.high %v16611_v56, %v16611_v56  ;;  %v4659_v13 = vrot.slane %v4658_v38, 1  ;;  %v4670_v58 = vmax.f32 %v4668_v49, %v4669_v14 }
 0x49c   :  { %v4664_v36 = vrot.slane %v4663_v25, 2  ;;  %v16615_v26 = vcombine.high %v16614_v3, %v16614_v3  ;;  %v4693_v21 = vmax.f32 %v12947_v47, %v4692_v54  ;;  %v4700_v19 = vmax.f32 %v12949_v11, %v4699_v42  ;;  %v16619_v47 = vld [vmem:[#allocation53_spill] sm:$0xff]  ;;  %v5095_v54 = vld [vmem:[%s15567_s4 + $0xa8] sm:$0xff] }
 0x49d   :  { %v13514_v28 = vrot.slane %v16612_v55, %v16447_v34  ;;  %v4652_v57 = vrot.slane %v4651_v12, 1  ;;  %v13524_v55 = vmax.f32 %v4658_v38, %v4659_v13  ;;  %v4671_v16 = vrot.slane %v4670_v58, 2  ;;  %8234 = vmatprep.subr.mxu1 %v5095_v54 }
 0x49e   :  { %v4703_v61 = vsel %vm4177_vm3, %v16615_v26, -inf  ;;  %v4665_v6 = vmax.f32 %v4663_v25, %v4664_v36  ;;  %v4694_v14 = vrot.slane %v4693_v21, 1  ;;  %v4701_v3 = vrot.slane %v4700_v19, 1 }
 0x49f   :  { %16613 = vst [vmem:[#allocation77_spill] sm:$0xff] %v13514_v28  ;;  %v4704_v56 = vrot.slane %v4703_v61, 4  ;;  %16616 = vst [vmem:[#allocation23_spill] sm:$0xff] %v13524_v55  ;;  %v13529_v49 = vmax.f32 %v4651_v12, %v4652_v57  ;;  %v4672_v23 = vmax.f32 %v4670_v58, %v4671_v16  ;;  %v16620_v11 = vcombine.high %v16619_v47, %v16619_v47  ;;  %v16626_v47 = vld [vmem:[#allocation10_spill] sm:$0xff] }
 0x4a0   :  { %v4666_v26 = vrot.slane %v4665_v6, 1  ;;  %v13537_v38 = vmax.f32 %v4693_v21, %v4694_v14  ;;  %v13539_v25 = vmax.f32 %v4700_v19, %v4701_v3  ;;  %v4714_v12 = vmax.f32 %v4712_v39, %v4713_v53 }
 0x4a1   :  { %16618 = vst [vmem:[#allocation35_spill] sm:$0xff] %v13529_v49  ;;  %v4705_v51 = vmax.f32 %v4703_v61, %v4704_v56  ;;  %v4717_v13 = vsel %vm4177_vm3, %v16620_v11, -inf  ;;  %v5340_v42 = vsel %vm5222_vm5, %v13529_v49, %v5339_v5  ;;  %v4673_v57 = vrot.slane %v4672_v23, 1  ;;  %v5079_v5 = vld [vmem:[%s15567_s4 + $0x28] sm:$0xff] }
 0x4a2   :  { %v13541_v45 = vmax.f32 %v4665_v6, %v4666_v26  ;;  %v5341_v16 = vsel %vm5224_vm6, %v13524_v55, %v5340_v42  ;;  %v4718_v58 = vrot.slane %v4717_v13, 4  ;;  %v4724_v61 = vsel %vm4177_vm3, %v13514_v28, -inf  ;;  %8235 = vmatpush3.msra.mxu1 %v5079_v5 }
 0x4a3   :  { %v4706_v17 = vrot.slane %v4705_v51, 2  ;;  %v5344_v6 = vsel %vm5220_vm4, %v13539_v25, %v13537_v38  ;;  %v13556_v21 = vmax.f32 %v4672_v23, %v4673_v57  ;;  %v4715_v39 = vrot.slane %v4714_v12, 1  ;;  %v16627_v57 = vld [vmem:[#allocation12_spill] sm:$0xff] }
 0x4a4   :  { %16621 = vst [vmem:[#allocation69_spill] sm:$0xff] %v13541_v45  ;;  %v5342_v53 = vsel %vm5226_vm7, %v13541_v45, %v5341_v16  ;;  %v4725_v19 = vrot.slane %v4724_v61, 4  ;;  %v4719_v14 = vmax.f32 %v4717_v13, %v4718_v58  ;;  %v4804_v11 = vrot.slane %v16626_v47, 2  ;;  %v16628_v58 = vld [vmem:[#allocation62_spill] sm:$0xff] }
 0x4a5   :  { %v4707_v36 = vmax.f32 %v4705_v51, %v4706_v17  ;;  %16622 = vst [vmem:[#allocation31_spill] sm:$0xff] %v13556_v21  ;;  %v16623_v51 = vld [vmem:[#allocation102_spill] sm:$0xff]  ;;  %v5343_v23 = vsel %vm5228_vm8, %v13556_v21, %v5342_v53  ;;  %v13569_v42 = vmax.f32 %v4714_v12, %v4715_v39  ;;  %v4811_v16 = vrot.slane %v16627_v57, 2  ;;  %v16630_v39 = vld [vmem:[#allocation89_spill] sm:$0xff] }
 0x4a6   :  { %v16624_v3 = vcombine.high %v16623_v51, %v16623_v51  ;;  %v4726_v17 = vmax.f32 %v4724_v61, %v4725_v19  ;;  %5381 = vrot.lane.b32.xlu0 %v5343_v23, %s8708_s23  ;;  %v4720_v13 = vrot.slane %v4719_v14, 2  ;;  %v4805_v5 = vmax.f32 %v16626_v47, %v4804_v11  ;;  %v16632_v23 = vld [vmem:[#allocation59_spill] sm:$0xff] }
 0x4a7   :  { %v4708_v56 = vrot.slane %v4707_v36, 1  ;;  %v16629_v51 = vcombine.high %v16628_v58, %v16628_v58  ;;  %v4812_v53 = vmax.f32 %v16627_v57, %v4811_v16  ;;  %v16631_v61 = vrot.slane %v16630_v39, 4 }
 0x4a8   :  { %v13564_v26 = vrot.slane %v16624_v3, %v16447_v34  ;;  %v4727_v45 = vrot.slane %v4726_v17, 2  ;;  %v4721_v21 = vmax.f32 %v4719_v14, %v4720_v13  ;;  %v16633_v47 = vcombine.high %v16632_v23, %v16632_v23 }
 0x4a9   :  { %v13573_v54 = vmax.f32 %v4707_v36, %v4708_v56  ;;  %v4815_v3 = vsel %vm4177_vm3, %v16629_v51, -inf  ;;  %v4824_v19 = vmax.f32 %v16630_v39, %v16631_v61  ;;  %v4806_v56 = vrot.slane %v4805_v5, 1 }
 0x4aa   :  { %16625 = vst [vmem:[#allocation82_spill] sm:$0xff] %v13564_v26  ;;  %v4816_v12 = vrot.slane %v4815_v3, 4  ;;  %v4829_v11 = vsel %vm4177_vm3, %v16633_v47, -inf  ;;  %v4728_v58 = vmax.f32 %v4726_v17, %v4727_v45  ;;  %v4813_v57 = vrot.slane %v4812_v53, 1 }
 0x4ab   :  { %v5345_v36 = vsel %vm5222_vm5, %v13573_v54, %v5344_v6  ;;  %v4722_v55 = vrot.slane %v4721_v21, 1  ;;  %v13592_v49 = vmax.f32 %v4805_v5, %v4806_v56  ;;  %v4825_v39 = vrot.slane %v4824_v19, 2 }
 0x4ac   :  { %v5346_v51 = vsel %vm5224_vm6, %v13569_v42, %v5345_v36  ;;  %v4817_v16 = vmax.f32 %v4815_v3, %v4816_v12  ;;  %v4830_v14 = vrot.slane %v4829_v11, 4  ;;  %v4729_v13 = vrot.slane %v4728_v58, 1 }
 0x4ad   :  { %v13594_v61 = vmax.f32 %v4812_v53, %v4813_v57  ;;  %v4836_v23 = vsel %vm4177_vm3, %v13564_v26, -inf  ;;  %v13598_v28 = vmax.f32 %v4721_v21, %v4722_v55  ;;  %v4826_v45 = vmax.f32 %v4824_v19, %v4825_v39 }
 0x4ae   :  { %v4818_v6 = vrot.slane %v4817_v16, 2  ;;  %v4831_v17 = vmax.f32 %v4829_v11, %v4830_v14  ;;  %v4837_v47 = vrot.slane %v4836_v23, 4  ;;  %v13600_v36 = vmax.f32 %v4728_v58, %v4729_v13 }
 0x4af   :  { %v5354_v5 = vsel %vm5220_vm4, %v13594_v61, %v13592_v49  ;;  %v3606_v53 = vcombine.high %v13356_v7, %v13356_v7  ;;  %v5347_v12 = vsel %vm5226_vm7, %v13598_v28, %v5346_v51  ;;  %v4827_v56 = vrot.slane %v4826_v45, 1 }
 0x4b0   :  { %16634 = vst [vmem:[#allocation90_spill] sm:$0xff] %v13600_v36  ;;  %v4819_v3 = vmax.f32 %v4817_v16, %v4818_v6  ;;  %v4832_v57 = vrot.slane %v4831_v17, 2  ;;  %v4838_v55 = vmax.f32 %v4836_v23, %v4837_v47  ;;  %v13611_v21 = vsel %vm5228_vm8, %v13600_v36, %v5347_v12  ;;  %v16636_v6 = vld [vmem:[#allocation56_spill] sm:$0xff]  ;;  %v16637_v47 = vld [vmem:[#allocation78_spill] sm:$0xff] }
 0x4b1   :  { %16635 = vst [vmem:[#allocation15_spill] sm:$0xff] %v13611_v21  ;;  %v4339_v11 = vsel %vm4177_vm3, %v3606_v53, -inf  ;;  %v5427_v58 = vsel %vm5220_vm4, %v13148_v18, %v13126_v22  ;;  %5383 = vrot.lane.b32.xlu1 %v13611_v21, %s8708_s23  ;;  %v13619_v7 = vmax.f32 %v4826_v45, %v4827_v56  ;;  %v3877_v23 = vcombine.high %v16636_v6, %v16636_v6  ;;  %v16639_v56 = vld [vmem:[#allocation8_spill] sm:$0xff] }
 0x4b2   :  { %v4820_v19 = vrot.slane %v4819_v3, 1  ;;  %v4833_v51 = vmax.f32 %v4831_v17, %v4832_v57  ;;  %v4839_v16 = vrot.slane %v4838_v55, 2  ;;  %v4340_v39 = vrot.slane %v4339_v11, 4 }
 0x4b3   :  { %v5428_v13 = vsel %vm5222_vm5, %v13152_v15, %v5427_v58  ;;  %v16638_v53 = vrot.slane %v16637_v47, 2  ;;  %v4748_v57 = vrot.slane %v16639_v56, 2 }
 0x4b4   :  { %v13621_v14 = vmax.f32 %v4819_v3, %v4820_v19  ;;  %v4834_v18 = vrot.slane %v4833_v51, 1  ;;  %v4840_v12 = vmax.f32 %v4838_v55, %v4839_v16  ;;  %v4341_v21 = vmax.f32 %v4339_v11, %v4340_v39 }
 0x4b5   :  { %v4742_v22 = vmax.f32 %v16637_v47, %v16638_v53  ;;  %v5429_v45 = vsel %vm5224_vm6, %v13166_v24, %v5428_v13  ;;  %v4749_v16 = vmax.f32 %v16639_v56, %v4748_v57  ;;  %v16640_v24 = vld [vmem:[#allocation84_spill] sm:$0xff]  ;;  %v16642_v13 = vld [vmem:[#allocation51_spill] sm:$0xff]  ;;  %v4773_v56 = vsel %vm4177_vm3, %v3877_v23, -inf }
 0x4b6   :  { %v5355_v17 = vsel %vm5222_vm5, %v13621_v14, %v5354_v5  ;;  %v5430_v3 = vsel %vm5226_vm7, %v13433_v62, %v5429_v45  ;;  %v13637_v19 = vmax.f32 %v4833_v51, %v4834_v18  ;;  %v4841_v58 = vrot.slane %v4840_v12, 1 }
 0x4b7   :  { %v4743_v15 = vrot.slane %v4742_v22, 1  ;;  %v5356_v47 = vsel %vm5224_vm6, %v13619_v7, %v5355_v17  ;;  %v4342_v55 = vrot.slane %v4341_v21, 2  ;;  %v16641_v39 = vrot.slane %v16640_v24, 4 }
 0x4b8   :  { %v16643_v62 = vcombine.high %v16642_v13, %v16642_v13  ;;  %v13649_v45 = vmax.f32 %v4840_v12, %v4841_v58  ;;  %v5357_v51 = vsel %vm5226_vm7, %v13637_v19, %v5356_v47  ;;  %v4750_v36 = vrot.slane %v4749_v16, 1 }
 0x4b9   :  { %v4744_v11 = vmax.f32 %v4742_v22, %v4743_v15  ;;  %v4754_v5 = vmax.f32 %v16640_v24, %v16641_v39  ;;  %v4343_v18 = vmax.f32 %v4341_v21, %v4342_v55  ;;  %v4766_v15 = vsel %vm4177_vm3, %v16636_v6, -inf  ;;  %v16646_v55 = vld [vmem:[#allocation81_spill] sm:$0xff] }
 0x4ba   :  { %v4759_v53 = vsel %vm4177_vm3, %v16643_v62, -inf  ;;  %16644 = vst [vmem:[#allocation87_spill] sm:$0xff] %v13649_v45  ;;  %v13658_v57 = vsel %vm5228_vm8, %v13649_v45, %v5357_v51  ;;  %v4767_v12 = vrot.slane %v4766_v15, 4  ;;  %v13662_v58 = vmax.f32 %v4749_v16, %v4750_v36 }
 0x4bb   :  { %v4760_v17 = vrot.slane %v4759_v53, 4  ;;  %v4755_v22 = vrot.slane %v4754_v5, 2  ;;  %16645 = vst [vmem:[#allocation85_spill] sm:$0xff] %v13658_v57  ;;  %v4344_v24 = vrot.slane %v4343_v18, 1  ;;  %5387 = vrot.lane.b32.xlu0 %v13658_v57, %s8708_s23  ;;  %v4774_v47 = vrot.slane %v4773_v56, 4 }
 0x4bc   :  { %v16647_v13 = vrot.slane %v16646_v55, 2  ;;  %v4768_v26 = vmax.f32 %v4766_v15, %v4767_v12  ;;  %v3674_v51 = vcombine.high %v13331_v41, %v13331_v41  ;;  %v16649_v41 = vrot.slane %v12977_v0, 4 }
 0x4bd   :  { %v4761_v39 = vmax.f32 %v4759_v53, %v4760_v17  ;;  %v4756_v21 = vmax.f32 %v4754_v5, %v4755_v22  ;;  %v4345_v62 = vmax.f32 %v4343_v18, %v4344_v24  ;;  %v4775_v53 = vmax.f32 %v4773_v56, %v4774_v47 }
 0x4be   :  { %v4686_v6 = vmax.f32 %v16646_v55, %v16647_v13  ;;  %v5265_v17 = vsel %vm5220_vm4, %v13662_v58, %v4744_v11  ;;  %v4769_v5 = vrot.slane %v4768_v26, 2  ;;  %v4451_v22 = vsel %vm4177_vm3, %v3674_v51, -inf }
 0x4bf   :  { %v4762_v23 = vrot.slane %v4761_v39, 2  ;;  %v4757_v45 = vrot.slane %v4756_v21, 1  ;;  %v13672_v36 = vsel %vm5228_vm8, %v4345_v62, %v5430_v3  ;;  %v16648_v18 = vrot.slane %v12971_v63, 4 }
 0x4c0   :  { %v4687_v57 = vrot.slane %v4686_v6, 1  ;;  %v4915_v56 = vmax.f32 %v12977_v0, %v16649_v41  ;;  %5585 = vrot.lane.b32.xlu1 %v13672_v36, %s8708_s23  ;;  %v4776_v3 = vrot.slane %v4775_v53, 2  ;;  %v4452_v47 = vrot.slane %v4451_v22, 4  ;;  %v5093_v41 = vld [vmem:[%s15567_s4 + $0x98] sm:$0xff] }
 0x4c1   :  { %v4763_v16 = vmax.f32 %v4761_v39, %v4762_v23  ;;  %v13678_v15 = vmax.f32 %v12971_v63, %v16648_v18  ;;  %v13685_v11 = vmax.f32 %v4756_v21, %v4757_v45  ;;  %v4770_v39 = vmax.f32 %v4768_v26, %v4769_v5  ;;  %v5078_v5 = vld [vmem:[%s15567_s4 + $0x20] sm:$0xff] }
 0x4c2   :  { %v4688_v12 = vmax.f32 %v4686_v6, %v4687_v57  ;;  %v3776_v63 = vcombine.high %v13392_v40, %v13392_v40  ;;  %v4777_v13 = vmax.f32 %v4775_v53, %v4776_v3  ;;  %v4453_v21 = vmax.f32 %v4451_v22, %v4452_v47 }
 0x4c3   :  { %v4764_v24 = vrot.slane %v4763_v16, 1  ;;  %v5266_v62 = vsel %vm5222_vm5, %v13685_v11, %v5265_v17  ;;  %v4771_v23 = vrot.slane %v4770_v39, 1  ;;  %v16650_v26 = vrot.slane %v13441_v2, 4 }
 0x4c4   :  { %v5260_v45 = vsel %vm5220_vm4, %v13537_v38, %v4688_v12  ;;  %v4778_v6 = vrot.slane %v4777_v13, 1  ;;  %v5437_v40 = vsel %vm5220_vm4, %v13201_v31, %v13168_v29  ;;  %v13717_v22 = vsel %vm4177_vm3, %v3776_v63, -inf }
 0x4c5   :  { %v13692_v0 = vmax.f32 %v4763_v16, %v4764_v24  ;;  %v4922_v57 = vmax.f32 %v13441_v2, %v16650_v26  ;;  %v5261_v51 = vsel %vm5222_vm5, %v13539_v25, %v5260_v45  ;;  %v13704_v53 = vmax.f32 %v4770_v39, %v4771_v23  ;;  %v5094_v2 = vld [vmem:[%s15567_s4 + $0xa0] sm:$0xff]  ;;  %v5092_v26 = vld [vmem:[%s15567_s4 + $0x90] sm:$0xff] }
 0x4c6   :  { %v5262_v38 = vsel %vm5224_vm6, %v13573_v54, %v5261_v51  ;;  %v4454_v16 = vrot.slane %v4453_v21, 2  ;;  %v13719_v29 = vmax.f32 %v4777_v13, %v4778_v6  ;;  %v5438_v18 = vsel %vm5222_vm5, %v13203_v10, %v5437_v40  ;;  %8236 = vmatprep.subr.mxu1 %v5094_v2  ;;  %v5077_v10 = vld [vmem:[%s15567_s4 + $0x18] sm:$0xff]  ;;  %v16655_v23 = vld [vmem:[#allocation19_spill] sm:$0xff] }
 0x4c7   :  { %v5267_v17 = vsel %vm5224_vm6, %v13692_v0, %v5266_v62  ;;  %v5263_v31 = vsel %vm5226_vm7, %v13569_v42, %v5262_v38  ;;  %v5439_v12 = vsel %vm5224_vm6, %v13211_v37, %v5438_v18  ;;  %8237 = vmatpush3.msra.mxu1 %v5078_v5  ;;  %v5671_v47 = vsel %vm5220_vm4, %v13469_v30, %v13437_v60  ;;  %v16653_v13 = vld [vmem:[#allocation86_spill] sm:$0xff]  ;;  %v5076_v38 = vld [vmem:[%s15567_s4 + $0x10] sm:$0xff] }
 0x4c8   :  { %v5268_v3 = vsel %vm5226_vm7, %v13704_v53, %v5267_v17  ;;  %v13732_v24 = vsel %vm5228_vm8, %v13598_v28, %v5263_v31  ;;  %v4455_v39 = vmax.f32 %v4453_v21, %v4454_v16  ;;  %v16654_v62 = vrot.slane %v16653_v13, 2  ;;  %8238 = vmatprep.subr.mxu1 %v5093_v41 }
 0x4c9   :  { %16651 = vst [vmem:[#allocation17_spill] sm:$0xff] %v13732_v24  ;;  %v13744_v63 = vsel %vm5228_vm8, %v13719_v29, %v5268_v3  ;;  %5523 = vrot.lane.b32.xlu1 %v13732_v24, %s8708_s23  ;;  %v16656_v45 = vcombine.high %v16655_v23, %v16655_v23  ;;  %v5440_v51 = vsel %vm5226_vm7, %v13413_v1, %v5439_v12  ;;  %v4916_v17 = vrot.slane %v4915_v56, 2  ;;  %v5091_v1 = vld [vmem:[%s15567_s4 + $0x88] sm:$0xff] }
 0x4ca   :  { %16652 = vst [vmem:[#allocation72_spill] sm:$0xff] %v13744_v63  ;;  %v4798_v37 = vmax.f32 %v16653_v13, %v16654_v62  ;;  %5525 = vrot.lane.b32.xlu0 %v13744_v63, %s8708_s23  ;;  %v4456_v6 = vrot.slane %v4455_v39, 1  ;;  %v5349_v40 = vsel %vm5220_vm4, %v13685_v11, %v13662_v58  ;;  %v4923_v31 = vrot.slane %v4922_v57, 2  ;;  %8239 = vmatpush3.msra.mxu1 %v5077_v10  ;;  %v5075_v12 = vld [vmem:[%s15567_s4 + $0x8] sm:$0xff] }
 0x4cb   :  { %v13755_v21 = vrot.slane %v16656_v45, %v16447_v34  ;;  %v5350_v5 = vsel %vm5222_vm5, %v13692_v0, %v5349_v40  ;;  %v4917_v3 = vmax.f32 %v4915_v56, %v4916_v17  ;;  %8240 = vmatprep.subr.mxu1 %v5092_v26  ;;  %v16657_v23 = vcombine.high %v16594_v44, %v16594_v44  ;;  %v5090_v56 = vld [vmem:[%s15567_s4 + $0x80] sm:$0xff]  ;;  %v16658_v17 = vld [vmem:[#allocation25_spill] sm:$0xff] }
 0x4cc   :  { %v4799_v16 = vrot.slane %v4798_v37, 1  ;;  %v4457_v58 = vmax.f32 %v4455_v39, %v4456_v6  ;;  %v5351_v41 = vsel %vm5224_vm6, %v13704_v53, %v5350_v5  ;;  %v4924_v10 = vmax.f32 %v4922_v57, %v4923_v31  ;;  %8241 = vmatpush3.msra.mxu1 %v5076_v38  ;;  %v5074_v57 = vld [vmem:[%s15567_s4] sm:$0xff] }
 0x4cd   :  { %v4780_v2 = vsel %vm4177_vm3, %v13755_v21, -inf  ;;  %v5352_v62 = vsel %vm5226_vm7, %v13719_v29, %v5351_v41  ;;  %v4927_v39 = vsel %vm4177_vm3, %v16657_v23, -inf  ;;  %v4918_v6 = vrot.slane %v4917_v3, 1  ;;  %8242 = vmatprep.subr.mxu1 %v5091_v1  ;;  %v16677_v24 = vld [vmem:[#allocation63_spill] sm:$0xff] }
 0x4ce   :  { %v4781_v18 = vrot.slane %v4780_v2, 4  ;;  %v4800_v13 = vmax.f32 %v4798_v37, %v4799_v16  ;;  %v13792_v45 = vsel %vm5228_vm8, %v4457_v58, %v5440_v51  ;;  %v4928_v37 = vrot.slane %v4927_v39, 4  ;;  %8243 = vmatpush3.msra.mxu1 %v5075_v12 }
 0x4cf   :  { %v4620_v44 = vrot.slane %v13717_v22, 4  ;;  %5589 = vrot.lane.b32.xlu0 %v13792_v45, %s8708_s23  ;;  %v16659_v51 = vcombine.high %v16658_v17, %v16658_v17  ;;  %v4925_v16 = vrot.slane %v4924_v10, 1  ;;  %8244 = vmatprep.subr.mxu1 %v5090_v56  ;;  %v13820_v41 = vmax.f32 %v4917_v3, %v4918_v6  ;;  %v16664_v17 = vld [vmem:[#allocation41_spill] sm:$0xff] }
 0x4d0   :  { %v4782_v26 = vmax.f32 %v4780_v2, %v4781_v18  ;;  %v5270_v40 = vsel %vm5220_vm4, %v13592_v49, %v4800_v13  ;;  %v16660_v2 = vcombine.high %v16610_v20, %v16610_v20  ;;  %v4929_v58 = vmax.f32 %v4927_v39, %v4928_v37  ;;  %8245 = vmatpush3.msra.mxu1 %v5074_v57 }
 0x4d1   :  { %v13806_v38 = vrot.slane %v16659_v51, %v16447_v34  ;;  %v5271_v31 = vsel %vm5222_vm5, %v13594_v61, %v5270_v40  ;;  %v5672_v49 = vsel %vm5222_vm5, %v13471_v35, %v5671_v47  ;;  %v13822_v12 = vmax.f32 %v4924_v10, %v4925_v16 }
 0x4d2   :  { %v13812_v5 = vsel %vm4177_vm3, %v16660_v2, -inf  ;;  %v4783_v1 = vrot.slane %v4782_v26, 2  ;;  %v5272_v18 = vsel %vm5224_vm6, %v13621_v14, %v5271_v31  ;;  %v4930_v23 = vrot.slane %v4929_v58, 2 }
 0x4d3   :  { %v5273_v20 = vsel %vm5226_vm7, %v13619_v7, %v5272_v18  ;;  %v16661_v40 = vrot.slane %v13446_v59, 4  ;;  %v4621_v56 = vmax.f32 %v13717_v22, %v4620_v44  ;;  %v16663_v3 = vcombine.high %v16595_v27, %v16595_v27 }
 0x4d4   :  { %v4784_v13 = vmax.f32 %v4782_v26, %v4783_v1  ;;  %v13832_v47 = vsel %vm5228_vm8, %v13637_v19, %v5273_v20  ;;  %v4948_v6 = vsel %vm4177_vm3, %v13806_v38, -inf  ;;  %v4931_v37 = vmax.f32 %v4929_v58, %v4930_v23 }
 0x4d5   :  { %v4936_v39 = vmax.f32 %v13446_v59, %v16661_v40  ;;  %16662 = vst [vmem:[#allocation37_spill] sm:$0xff] %v13832_v47  ;;  %v4941_v10 = vsel %vm4177_vm3, %v16663_v3, -inf  ;;  %5527 = vrot.lane.b32.xlu1 %v13832_v47, %s8708_s23  ;;  %v5673_v22 = vsel %vm5224_vm6, %v13478_v4, %v5672_v49  ;;  %v4949_v44 = vrot.slane %v4948_v6, 4 }
 0x4d6   :  { %v4785_v26 = vrot.slane %v4784_v13, 1  ;;  %v4942_v57 = vrot.slane %v4941_v10, 4  ;;  %v5364_v27 = vsel %vm5220_vm4, %v13822_v12, %v13820_v41  ;;  %v3742_v51 = vcombine.high %v16664_v17, %v16664_v17 }
 0x4d7   :  { %v4937_v59 = vrot.slane %v4936_v39, 2  ;;  %v4932_v2 = vrot.slane %v4931_v37, 1  ;;  %v4950_v18 = vmax.f32 %v4948_v6, %v4949_v44  ;;  %v4556_v58 = vsel %vm4177_vm3, %v16664_v17, -inf }
 0x4d8   :  { %v4786_v16 = vmax.f32 %v4784_v13, %v4785_v26  ;;  %v4943_v1 = vmax.f32 %v4941_v10, %v4942_v57  ;;  %v4563_v20 = vsel %vm4177_vm3, %v3742_v51, -inf  ;;  %v4622_v23 = vrot.slane %v4621_v56, 2 }
 0x4d9   :  { %v4938_v31 = vmax.f32 %v4936_v39, %v4937_v59  ;;  %v13855_v40 = vmax.f32 %v4931_v37, %v4932_v2  ;;  %v4951_v13 = vrot.slane %v4950_v18, 2  ;;  %v4557_v39 = vrot.slane %v4556_v58, 4 }
 0x4da   :  { %v13853_v49 = vsel %vm5228_vm8, %v4786_v16, %v5352_v62  ;;  %v4944_v55 = vrot.slane %v4943_v1, 2  ;;  %v4564_v10 = vrot.slane %v4563_v20, 4  ;;  %v4623_v6 = vmax.f32 %v4621_v56, %v4622_v23 }
 0x4db   :  { %16665 = vst [vmem:[#allocation80_spill] sm:$0xff] %v13853_v49  ;;  %v4939_v3 = vrot.slane %v4938_v31, 1  ;;  %5385 = vrot.lane.b32.xlu0 %v13853_v49, %s8708_s23  ;;  %v5365_v57 = vsel %vm5222_vm5, %v13855_v40, %v5364_v27  ;;  %v5573_v62 = vsel %vm5220_vm4, %v13288_v32, %v13267_v8  ;;  %v4952_v37 = vmax.f32 %v4950_v18, %v4951_v13 }
 0x4dc   :  { %v4945_v59 = vmax.f32 %v4943_v1, %v4944_v55  ;;  %v4558_v44 = vmax.f32 %v4556_v58, %v4557_v39  ;;  %v4565_v17 = vmax.f32 %v4563_v20, %v4564_v10  ;;  %v4624_v51 = vrot.slane %v4623_v6, 1 }
 0x4dd   :  { %v13859_v26 = vmax.f32 %v4938_v31, %v4939_v3  ;;  %v5674_v2 = vsel %vm5226_vm7, %v13490_v46, %v5673_v22  ;;  %v3878_v55 = vcombine.high %v13755_v21, %v13755_v21  ;;  %v4953_v31 = vrot.slane %v4952_v37, 1 }
 0x4de   :  { %v4946_v63 = vrot.slane %v4945_v59, 1  ;;  %v4559_v27 = vrot.slane %v4558_v44, 2  ;;  %v4566_v1 = vrot.slane %v4565_v17, 2  ;;  %v4625_v23 = vmax.f32 %v4623_v6, %v4624_v51 }
 0x4df   :  { %v5366_v56 = vsel %vm5224_vm6, %v13859_v26, %v5365_v57  ;;  %v5574_v18 = vsel %vm5222_vm5, %v13310_v48, %v5573_v62  ;;  %v4787_v58 = vsel %vm4177_vm3, %v3878_v55, -inf  ;;  %v5457_v46 = vsel %vm5220_vm4, %v13692_v0, %v13685_v11 }
 0x4e0   :  { %v13872_v3 = vmax.f32 %v4945_v59, %v4946_v63  ;;  %v13880_v22 = vmax.f32 %v4952_v37, %v4953_v31  ;;  %v4560_v20 = vmax.f32 %v4558_v44, %v4559_v27  ;;  %v4567_v13 = vmax.f32 %v4565_v17, %v4566_v1  ;;  %v16667_v63 = vld [vmem:[#allocation71_spill] sm:$0xff]  ;;  %v16671_v1 = vld [vmem:[#allocation65_spill] sm:$0xff] }
 0x4e1   :  { %v13883_v21 = vsel %vm5228_vm8, %v4625_v23, %v5674_v2  ;;  %v13888_v10 = vsel %vm4177_vm3, %v16667_v63, -inf  ;;  %v4788_v59 = vrot.slane %v4787_v58, 4  ;;  %v5458_v62 = vsel %vm5222_vm5, %v13704_v53, %v5457_v46 }
 0x4e2   :  { %16666 = vst [vmem:[#allocation39_spill] sm:$0xff] %v13883_v21  ;;  %v5367_v6 = vsel %vm5226_vm7, %v13872_v3, %v5366_v56  ;;  %v4561_v0 = vrot.slane %v4560_v20, 1  ;;  %v4568_v57 = vrot.slane %v4567_v13, 1  ;;  %v16669_v37 = vrot.slane %v13500_v9, 4  ;;  %v5137_v56 = vld [vmem:[%s15567_s4 + $0x1f8] sm:$0xff] }
 0x4e3   :  { %v13894_v11 = vsel %vm5228_vm8, %v13880_v22, %v5367_v6  ;;  %v5575_v17 = vsel %vm5224_vm6, %v13318_v43, %v5574_v18  ;;  %v4789_v51 = vmax.f32 %v4787_v58, %v4788_v59  ;;  %v5459_v2 = vsel %vm5224_vm6, %v13719_v29, %v5458_v62  ;;  %8273 = vmatprep.subr.mxu1 %v5137_v56  ;;  %v16673_v58 = vld [vmem:[#allocation42_spill] sm:$0xff] }
 0x4e4   :  { %16668 = vst [vmem:[#allocation57_spill] sm:$0xff] %v13894_v11  ;;  %v13901_v44 = vmax.f32 %v13500_v9, %v16669_v37  ;;  %5391 = vrot.lane.b32.xlu1 %v13894_v11, %s8708_s23  ;;  %v13912_v53 = vmax.f32 %v4560_v20, %v4561_v0  ;;  %v4569_v55 = vmax.f32 %v4567_v13, %v4568_v57  ;;  %v16672_v29 = vrot.slane %v12987_v33, 2  ;;  %v16675_v59 = vld [vmem:[#allocation54_spill] sm:$0xff] }
 0x4e5   :  { %v13916_v9 = vrot.slane %v13883_v21, %v16447_v34  ;;  %v5460_v31 = vsel %vm5226_vm7, %v4786_v16, %v5459_v2  ;;  %v4790_v27 = vrot.slane %v4789_v51, 2  ;;  %v3945_v23 = vcombine.high %v16671_v1, %v16671_v1 }
 0x4e6   :  { %v4854_v18 = vmax.f32 %v12987_v33, %v16672_v29  ;;  %v4860_v46 = vrot.slane %v16673_v58, 2  ;;  %v5576_v20 = vsel %vm5226_vm7, %v13912_v53, %v5575_v17  ;;  %v16674_v13 = vrot.slane %v12967_v50, 4 }
 0x4e7   :  { %16670 = vst [vmem:[#allocation68_spill] sm:$0xff] %v13916_v9  ;;  %v16676_v16 = vcombine.high %v16675_v59, %v16675_v59  ;;  %v4878_v57 = vsel %vm4177_vm3, %v16671_v1, -inf  ;;  %v5577_v62 = vsel %vm5228_vm8, %v4569_v55, %v5576_v20  ;;  %v4791_v33 = vmax.f32 %v4789_v51, %v4790_v27 }
 0x4e8   :  { %v4866_v6 = vmax.f32 %v12967_v50, %v16674_v13  ;;  %v4855_v37 = vrot.slane %v4854_v18, 1  ;;  %v4861_v2 = vmax.f32 %v16673_v58, %v4860_v46  ;;  %v6000_v56 = vcombine.high %v5577_v62, %v5577_v62  ;;  %5593 = vrot.lane.b32.xlu0 %v5577_v62, %s8708_s23 }
 0x4e9   :  { %v4871_v0 = vsel %vm4177_vm3, %v16676_v16, -inf  ;;  %v6007_v17 = vrot.slane %v5577_v62, %v16447_v34  ;;  %v4792_v13 = vrot.slane %v4791_v33, 1  ;;  %v4879_v16 = vrot.slane %v4878_v57, 4 }
 0x4ea   :  { %v4867_v50 = vrot.slane %v4866_v6, 2  ;;  %v4872_v29 = vrot.slane %v4871_v0, 4  ;;  %v4856_v59 = vmax.f32 %v4854_v18, %v4855_v37  ;;  %v4862_v39 = vrot.slane %v4861_v2, 1 }
 0x4eb   :  { %v6014_v21 = vrot.slane %v6000_v56, %v16447_v34  ;;  %v6015_v1 = vcombine.high %v6007_v17, %v6007_v17  ;;  %v4793_v51 = vmax.f32 %v4791_v33, %v4792_v13  ;;  %v4880_v20 = vmax.f32 %v4878_v57, %v4879_v16  ;;  %v16679_v13 = vld [vmem:[#allocation24_spill] sm:$0xff] }
 0x4ec   :  { %v4868_v11 = vmax.f32 %v4866_v6, %v4867_v50  ;;  %v4873_v55 = vmax.f32 %v4871_v0, %v4872_v29  ;;  %v4863_v27 = vmax.f32 %v4861_v2, %v4862_v39  ;;  %v4885_v58 = vsel %vm4177_vm3, %v3945_v23, -inf }
 0x4ed   :  { %v6568_v46 = vcombine.low %v6007_v17, %v6015_v1  ;;  %v6569_v49 = vcombine.low %v6014_v21, %v13916_v9  ;;  %v13945_v18 = vsel %vm4177_vm3, %v16677_v24, -inf  ;;  %v13948_v37 = vsel %vm5228_vm8, %v4793_v51, %v5460_v31 }
 0x4ee   :  { %v4869_v62 = vrot.slane %v4868_v11, 1  ;;  %v4874_v47 = vrot.slane %v4873_v55, 2  ;;  %v4881_v56 = vrot.slane %v4880_v20, 2  ;;  %v4886_v6 = vrot.slane %v4885_v58, 4  ;;  %5597 = vrot.lane.b32.xlu1 %v13948_v37, %s8708_s23 }
 0x4ef   :  { %v4909_v0 = vrot.slane %v13678_v15, 2  ;;  %v6576_v39 = vrot.slane %v6568_v46, %v16447_v34  ;;  %v6583_v23 = vrot.slane %v6569_v49, %v16447_v34  ;;  %v5275_v21 = vsel %vm5220_vm4, %v4863_v27, %v4856_v59 }
 0x4f0   :  { %v13956_v57 = vmax.f32 %v4868_v11, %v4869_v62  ;;  %v4875_v33 = vmax.f32 %v4873_v55, %v4874_v47  ;;  %v4882_v2 = vmax.f32 %v4880_v20, %v4881_v56  ;;  %v4887_v17 = vmax.f32 %v4885_v58, %v4886_v6 }
 0x4f1   :  { %v4965_v31 = vrot.slane %v13901_v44, 2  ;;  %v4977_v50 = vrot.slane %v13888_v10, 4  ;;  %v13960_v29 = vcombine.low %v6576_v39, %v6583_v23  ;;  %v16680_v49 = vcombine.high %v16679_v13, %v16679_v13 }
 0x4f2   :  { %v4876_v59 = vrot.slane %v4875_v33, 1  ;;  %v4883_v11 = vrot.slane %v4882_v2, 1  ;;  %v4888_v51 = vrot.slane %v4887_v17, 2  ;;  %v5276_v47 = vsel %vm5222_vm5, %v13956_v57, %v5275_v21 }
 0x4f3   :  { %16678 = vst [vmem:[#allocation91_spill] sm:$0xff] %v13960_v29  ;;  %v13966_v16 = vrot.slane %v16680_v49, %v16447_v34  ;;  %v5359_v20 = vsel %vm5220_vm4, %v13956_v57, %v4863_v27  ;;  %v4910_v58 = vmax.f32 %v13678_v15, %v4909_v0  ;;  %v16681_v46 = vrot.slane %v13812_v5, 4  ;;  %v16682_v49 = vld [vmem:[#allocation74_spill] sm:$0xff] }
 0x4f4   :  { %v4877_v56 = vmax.f32 %v4875_v33, %v4876_v59  ;;  %v4889_v6 = vmax.f32 %v4887_v17, %v4888_v51  ;;  %v4884_v23 = vmax.f32 %v4882_v2, %v4883_v11  ;;  %v4013_v21 = vcombine.high %v16682_v49, %v16682_v49 }
 0x4f5   :  { %v4892_v55 = vsel %vm4177_vm3, %v13966_v16, -inf  ;;  %v4971_v62 = vmax.f32 %v13812_v5, %v16681_v46  ;;  %v4911_v13 = vrot.slane %v4910_v58, 1  ;;  %v4966_v1 = vmax.f32 %v13901_v44, %v4965_v31 }
 0x4f6   :  { %v4893_v39 = vrot.slane %v4892_v55, 4  ;;  %v4890_v29 = vrot.slane %v4889_v6, 1  ;;  %v5277_v9 = vsel %vm5224_vm6, %v4877_v56, %v5276_v47  ;;  %v5360_v15 = vsel %vm5222_vm5, %v4877_v56, %v5359_v20 }
 0x4f7   :  { %v5278_v0 = vsel %vm5226_vm7, %v4884_v23, %v5277_v9  ;;  %v5361_v5 = vsel %vm5224_vm6, %v4884_v23, %v5360_v15  ;;  %v4912_v33 = vmax.f32 %v4910_v58, %v4911_v13  ;;  %v4967_v17 = vrot.slane %v4966_v1, 1 }
 0x4f8   :  { %v4894_v27 = vmax.f32 %v4892_v55, %v4893_v39  ;;  %v4891_v59 = vmax.f32 %v4889_v6, %v4890_v29  ;;  %v4972_v11 = vrot.slane %v4971_v62, 2  ;;  %v4978_v51 = vmax.f32 %v13888_v10, %v4977_v50 }
 0x4f9   :  { %v5280_v44 = vsel %vm5220_vm4, %v13820_v41, %v4912_v33  ;;  %v4968_v31 = vmax.f32 %v4966_v1, %v4967_v17  ;;  %v16683_v47 = vcombine.high %v16667_v63, %v16667_v63  ;;  %v4990_v9 = vsel %vm4177_vm3, %v16682_v49, -inf }
 0x4fa   :  { %v4895_v2 = vrot.slane %v4894_v27, 2  ;;  %v13996_v20 = vsel %vm5228_vm8, %v4891_v59, %v5278_v0  ;;  %v5362_v58 = vsel %vm5226_vm7, %v4891_v59, %v5361_v5  ;;  %v5281_v10 = vsel %vm5222_vm5, %v13822_v12, %v5280_v44 }
 0x4fb   :  { %v4983_v55 = vsel %vm4177_vm3, %v16683_v47, -inf  ;;  %5529 = vrot.lane.b32.xlu0 %v13996_v20, %s8708_s23  ;;  %v5282_v41 = vsel %vm5224_vm6, %v13855_v40, %v5281_v10  ;;  %v4973_v63 = vmax.f32 %v4971_v62, %v4972_v11  ;;  %v4979_v50 = vrot.slane %v4978_v51, 2 }
 0x4fc   :  { %v4896_v29 = vmax.f32 %v4894_v27, %v4895_v2  ;;  %v4984_v1 = vrot.slane %v4983_v55, 4  ;;  %v5283_v6 = vsel %vm5226_vm7, %v13859_v26, %v5282_v41  ;;  %v4991_v39 = vrot.slane %v4990_v9, 4 }
 0x4fd   :  { %v4997_v13 = vsel %vm4177_vm3, %v4013_v21, -inf  ;;  %v14010_v49 = vsel %vm5228_vm8, %v13872_v3, %v5283_v6  ;;  %v4974_v27 = vrot.slane %v4973_v63, 1  ;;  %v4980_v15 = vmax.f32 %v4978_v51, %v4979_v50 }
 0x4fe   :  { %v4897_v46 = vrot.slane %v4896_v29, 1  ;;  %16684 = vst [vmem:[#allocation75_spill] sm:$0xff] %v14010_v49  ;;  %v4985_v0 = vmax.f32 %v4983_v55, %v4984_v1  ;;  %v4992_v33 = vmax.f32 %v4990_v9, %v4991_v39  ;;  %v4998_v17 = vrot.slane %v4997_v13, 4 }
 0x4ff   :  { %v3946_v62 = vcombine.high %v13966_v16, %v13966_v16  ;;  %5531 = vrot.lane.b32.xlu0 %v14010_v49, %s8708_s23  ;;  %v14016_v2 = vmax.f32 %v4973_v63, %v4974_v27  ;;  %v4981_v11 = vrot.slane %v4980_v15, 1  ;;  %v5467_v44 = vsel %vm5220_vm4, %v4877_v56, %v13956_v57  ;;  %v16686_v56 = vld [vmem:[#allocation26_spill] sm:$0xff] }
 0x500   :  { %v4898_v5 = vmax.f32 %v4896_v29, %v4897_v46  ;;  %v4986_v21 = vrot.slane %v4985_v0, 2  ;;  %v4993_v51 = vrot.slane %v4992_v33, 2  ;;  %v4999_v55 = vmax.f32 %v4997_v13, %v4998_v17  ;;  %v16688_v17 = vld [vmem:[#allocation28_spill] sm:$0xff] }
 0x501   :  { %v4899_v9 = vsel %vm4177_vm3, %v3946_v62, -inf  ;;  %v14026_v16 = vmax.f32 %v4980_v15, %v4981_v11  ;;  %v5506_v10 = vsel %vm5220_vm4, %v14016_v2, %v4968_v31  ;;  %v5468_v57 = vsel %vm5222_vm5, %v4884_v23, %v5467_v44  ;;  %v16689_v11 = vld [vmem:[#allocation29_spill] sm:$0xff] }
 0x502   :  { %v14021_v47 = vsel %vm5228_vm8, %v4898_v5, %v5362_v58  ;;  %v4987_v29 = vmax.f32 %v4985_v0, %v4986_v21  ;;  %v4900_v41 = vrot.slane %v4899_v9, 4  ;;  %v4994_v63 = vmax.f32 %v4992_v33, %v4993_v51 }
 0x503   :  { %16685 = vst [vmem:[#allocation88_spill] sm:$0xff] %v14021_v47  ;;  %5389 = vrot.lane.b32.xlu1 %v14021_v47, %s8708_s23  ;;  %v5000_v50 = vrot.slane %v4999_v55, 2  ;;  %v16687_v58 = vcombine.high %v16686_v56, %v16686_v56  ;;  %v5507_v6 = vsel %vm5222_vm5, %v14026_v16, %v5506_v10  ;;  %v5469_v13 = vsel %vm5224_vm6, %v4891_v59, %v5468_v57  ;;  %v16690_v56 = vld [vmem:[#allocation22_spill] sm:$0xff] }
 0x504   :  { %v4988_v46 = vrot.slane %v4987_v29, 1  ;;  %v4901_v39 = vmax.f32 %v4899_v9, %v4900_v41  ;;  %v4995_v27 = vrot.slane %v4994_v63, 1  ;;  %v5470_v31 = vsel %vm5226_vm7, %v4898_v5, %v5469_v13 }
 0x505   :  { %v4046_v1 = vrot.slane %v16687_v58, %v16447_v34  ;;  %v5001_v15 = vmax.f32 %v4999_v55, %v5000_v50  ;;  %v5028_v62 = vrot.slane %v16688_v17, 2  ;;  %v5035_v21 = vrot.slane %v16689_v11, 2 }
 0x506   :  { %v14039_v33 = vmax.f32 %v4987_v29, %v4988_v46  ;;  %v4902_v23 = vrot.slane %v4901_v39, 2  ;;  %v14043_v44 = vmax.f32 %v4994_v63, %v4995_v27  ;;  %v16691_v9 = vcombine.high %v16690_v56, %v16690_v56 }
 0x507   :  { %v4048_v0 = vcombine.high %v4046_v1, %v4046_v1  ;;  %v5002_v51 = vrot.slane %v5001_v15, 1  ;;  %v16692_v55 = vrot.slane %v13945_v18, 4  ;;  %v5029_v41 = vmax.f32 %v16688_v17, %v5028_v62 }
 0x508   :  { %v5039_v59 = vsel %vm4177_vm3, %v16691_v9, -inf  ;;  %v5508_v29 = vsel %vm5224_vm6, %v14039_v33, %v5507_v6  ;;  %v4903_v10 = vmax.f32 %v4901_v39, %v4902_v23  ;;  %v5036_v50 = vmax.f32 %v16689_v11, %v5035_v21 }
 0x509   :  { %v5048_v5 = vmax.f32 %v13945_v18, %v16692_v55  ;;  %v14056_v63 = vmax.f32 %v5001_v15, %v5002_v51  ;;  %v5509_v57 = vsel %vm5226_vm7, %v14043_v44, %v5508_v29  ;;  %v5040_v58 = vrot.slane %v5039_v59, 4 }
 0x50a   :  { %v4904_v13 = vrot.slane %v4903_v10, 1  ;;  %v5030_v27 = vrot.slane %v5029_v41, 1  ;;  %v5037_v56 = vrot.slane %v5036_v50, 1  ;;  %v16693_v18 = vcombine.high %v16677_v24, %v16677_v24 }
 0x50b   :  { %v5049_v46 = vrot.slane %v5048_v5, 2  ;;  %v14066_v39 = vsel %vm5228_vm8, %v14056_v63, %v5509_v57  ;;  %v5041_v23 = vmax.f32 %v5039_v59, %v5040_v58  ;;  %v5060_v21 = vsel %vm4177_vm3, %v4046_v1, -inf }
 0x50c   :  { %v5053_v6 = vsel %vm4177_vm3, %v16693_v18, -inf  ;;  %16694 = vst [vmem:[#allocation49_spill] sm:$0xff] %v14066_v39  ;;  %5533 = vrot.lane.b32.xlu1 %v14066_v39, %s8708_s23  ;;  %v4905_v62 = vmax.f32 %v4903_v10, %v4904_v13  ;;  %v14070_v11 = vmax.f32 %v5029_v41, %v5030_v27  ;;  %v14073_v51 = vmax.f32 %v5036_v50, %v5037_v56 }
 0x50d   :  { %v5050_v15 = vmax.f32 %v5048_v5, %v5049_v46  ;;  %v5054_v17 = vrot.slane %v5053_v6, 4  ;;  %v5042_v24 = vrot.slane %v5041_v23, 2  ;;  %v5061_v55 = vrot.slane %v5060_v21, 4  ;;  %v16697_v5 = vld [vmem:[#allocation66_spill] sm:$0xff] }
 0x50e   :  { %16695 = vst [vmem:[#allocation83_spill] sm:$0xff] %v14070_v11  ;;  %16696 = vst [vmem:[#allocation45_spill] sm:$0xff] %v14073_v51  ;;  %v14076_v29 = vsel %vm5228_vm8, %v4905_v62, %v5470_v31  ;;  %v5067_v59 = vsel %vm4177_vm3, %v4048_v0, -inf  ;;  %v4014_v57 = vcombine.high %v16697_v5, %v16697_v5  ;;  %v5004_v46 = vsel %vm4177_vm3, %v16697_v5, -inf }
 0x50f   :  { %v5055_v9 = vmax.f32 %v5053_v6, %v5054_v17  ;;  %5601 = vrot.lane.b32.xlu0 %v14076_v29, %s8708_s23  ;;  %v5043_v10 = vmax.f32 %v5041_v23, %v5042_v24  ;;  %v5051_v41 = vrot.slane %v5050_v15, 1  ;;  %v5062_v1 = vmax.f32 %v5060_v21, %v5061_v55 }
 0x510   :  { %v5068_v50 = vrot.slane %v5067_v59, 4  ;;  %v5652_v31 = vsel %vm5220_vm4, %v14073_v51, %v14070_v11  ;;  %v5005_v0 = vrot.slane %v5004_v46, 4  ;;  %v5011_v6 = vsel %vm4177_vm3, %v4014_v57, -inf  ;;  %v16715_v11 = vld [vmem:[#allocation32_spill] sm:$0xff] }
 0x511   :  { %v5056_v58 = vrot.slane %v5055_v9, 2  ;;  %v5044_v13 = vrot.slane %v5043_v10, 1  ;;  %v5063_v56 = vrot.slane %v5062_v1, 2  ;;  %v14091_v23 = vmax.f32 %v5050_v15, %v5051_v41 }
 0x512   :  { %v5069_v18 = vmax.f32 %v5067_v59, %v5068_v50  ;;  %v5006_v62 = vmax.f32 %v5004_v46, %v5005_v0  ;;  %v5012_v21 = vrot.slane %v5011_v6, 4  ;;  %v5578_v39 = vsel %vm5220_vm4, %v14039_v33, %v14026_v16 }
 0x513   :  { %v5057_v27 = vmax.f32 %v5055_v9, %v5056_v58  ;;  %v14089_v17 = vmax.f32 %v5043_v10, %v5044_v13  ;;  %16699 = vst [vmem:[#allocation92_spill] sm:$0xff] %v14091_v23  ;;  %v5064_v55 = vmax.f32 %v5062_v1, %v5063_v56  ;;  %v5579_v13 = vsel %vm5222_vm5, %v14043_v44, %v5578_v39 }
 0x514   :  { %v5070_v5 = vrot.slane %v5069_v18, 2  ;;  %v5007_v57 = vrot.slane %v5006_v62, 2  ;;  %v5013_v50 = vmax.f32 %v5011_v6, %v5012_v21  ;;  %v5580_v56 = vsel %vm5224_vm6, %v14056_v63, %v5579_v13  ;;  %v16702_v21 = vld [vmem:[#allocation14_spill] sm:$0xff] }
 0x515   :  { %16698 = vst [vmem:[#allocation60_spill] sm:$0xff] %v14089_v17  ;;  %v5058_v24 = vrot.slane %v5057_v27, 1  ;;  %v5653_v9 = vsel %vm5222_vm5, %v14089_v17, %v5652_v31  ;;  %v5676_v59 = vsel %vm5220_vm4, %v14089_v17, %v14073_v51  ;;  %v5065_v15 = vrot.slane %v5064_v55, 1  ;;  %v16714_v51 = vld [vmem:[#allocation97_spill] sm:$0xff] }
 0x516   :  { %v5654_v41 = vsel %vm5224_vm6, %v14091_v23, %v5653_v9  ;;  %v5677_v58 = vsel %vm5222_vm5, %v14091_v23, %v5676_v59  ;;  %v5008_v1 = vmax.f32 %v5006_v62, %v5007_v57  ;;  %v5071_v46 = vmax.f32 %v5069_v18, %v5070_v5  ;;  %v16701_v62 = vld [vmem:[#allocation93_spill] sm:$0xff]  ;;  %v16703_v5 = vld [vmem:[#allocation76_spill] sm:$0xff]  ;;  %v14124_v57 = vpop.permute.xlu0 %5515 }
 0x517   :  { %v14101_v10 = vmax.f32 %v5057_v27, %v5058_v24  ;;  %v5066_v31 = vmax.f32 %v5064_v55, %v5065_v15  ;;  %v5014_v9 = vrot.slane %v5013_v50, 2  ;;  %v3640_v6 = vcombine.high %v13305_v52, %v13305_v52  ;;  %v14126_v15 = vpop.permute.xlu1 %5511 }
 0x518   :  { %v5009_v24 = vrot.slane %v5008_v1, 1  ;;  %v5072_v17 = vrot.slane %v5071_v46, 1  ;;  %v5432_v55 = vsel %vm5220_vm4, %v16702_v21, %v16701_v62  ;;  %v3572_v59 = vcombine.high %v16703_v5, %v16703_v5 }
 0x519   :  { %16700 = vst [vmem:[#allocation47_spill] sm:$0xff] %v14101_v10  ;;  %v5655_v0 = vsel %vm5226_vm7, %v14101_v10, %v5654_v41  ;;  %v5678_v27 = vsel %vm5224_vm6, %v14101_v10, %v5677_v58  ;;  %v5015_v52 = vmax.f32 %v5013_v50, %v5014_v9  ;;  %v4395_v13 = vsel %vm4177_vm3, %v3640_v6, -inf  ;;  %v16704_v10 = vld [vmem:[#allocation94_spill] sm:$0xff]  ;;  %v16705_v50 = vld [vmem:[#allocation20_spill] sm:$0xff]  ;;  %v16707_v9 = vld [vmem:[#allocation73_spill] sm:$0xff] }
 0x51a   :  { %v5656_v18 = vsel %vm5228_vm8, %v5066_v31, %v5655_v0  ;;  %v5679_v39 = vsel %vm5226_vm7, %v5066_v31, %v5678_v27  ;;  %v14129_v41 = vmax.f32 %v5008_v1, %v5009_v24  ;;  %v5073_v58 = vmax.f32 %v5071_v46, %v5072_v17  ;;  %v16706_v17 = vld [vmem:[#allocation95_spill] sm:$0xff]  ;;  %v14146_v23 = vpop.permute.xlu0 %5519 }
 0x51b   :  { %5663 = vrot.lane.b32.xlu1 %v5656_v18, %s8708_s23  ;;  %v4396_v31 = vrot.slane %v4395_v13, 4  ;;  %v4283_v0 = vsel %vm4177_vm3, %v3572_v59, -inf  ;;  %v5016_v27 = vrot.slane %v5015_v52, 1  ;;  %v5433_v18 = vsel %vm5222_vm5, %v16704_v10, %v5432_v55 }
 0x51c   :  { %v5581_v62 = vsel %vm5226_vm7, %v14129_v41, %v5580_v56  ;;  %v14136_v21 = vsel %vm5228_vm8, %v5073_v58, %v5679_v39  ;;  %v4284_v24 = vrot.slane %v4283_v0, 4  ;;  %v5422_v46 = vsel %vm5220_vm4, %v16706_v17, %v16705_v50  ;;  %v14148_v56 = vpop.permute.xlu1 %5513  ;;  %v16708_v58 = vld [vmem:[#allocation18_spill] sm:$0xff]  ;;  %v16710_v50 = vld [vmem:[#allocation27_spill] sm:$0xff] }
 0x51d   :  { %v4397_v5 = vmax.f32 %v4395_v13, %v4396_v31  ;;  %v5017_v1 = vmax.f32 %v5015_v52, %v5016_v27  ;;  %v5549_v6 = vsel %vm5220_vm4, %v13267_v8, %v16707_v9  ;;  %v5434_v10 = vsel %vm5224_vm6, %v16708_v58, %v5433_v18  ;;  %v16709_v8 = vld [vmem:[#allocation96_spill] sm:$0xff]  ;;  %v16711_v17 = vld [vmem:[#allocation79_spill] sm:$0xff]  ;;  %v16712_v9 = vld [vmem:[#allocation61_spill] sm:$0xff] }
 0x51e   :  { %v4285_v55 = vmax.f32 %v4283_v0, %v4284_v24  ;;  %v5423_v31 = vsel %vm5222_vm5, %v16709_v8, %v5422_v46  ;;  %v5550_v27 = vsel %vm5222_vm5, %v13288_v32, %v5549_v6  ;;  %v3708_v0 = vcombine.high %v16711_v17, %v16711_v17  ;;  %v16713_v32 = vld [vmem:[#allocation21_spill] sm:$0xff] }
 0x51f   :  { %v4398_v59 = vrot.slane %v4397_v5, 2  ;;  %v14151_v39 = vsel %vm5228_vm8, %v5017_v1, %v5581_v62  ;;  %v4178_v62 = vsel %vm4177_vm3, %v16710_v50, -inf  ;;  %v14172_v24 = vrot.slane %v14136_v21, %v16447_v34 }
 0x520   :  { %v6306_v52 = vcombine.high %v14151_v39, %v14151_v39  ;;  %5605 = vrot.lane.b32.xlu0 %v14151_v39, %s8708_s23  ;;  %v4286_v1 = vrot.slane %v4285_v55, 2  ;;  %v5435_v46 = vsel %vm5226_vm7, %v16712_v9, %v5434_v10  ;;  %v5424_v6 = vsel %vm5224_vm6, %v16713_v32, %v5423_v31  ;;  %v14186_v49 = vpop.permute.xlu1 %5517  ;;  %v14188_v10 = vpop.permute.xlu0 %5369  ;;  %v16716_v31 = vld [vmem:[#allocation82_spill] sm:$0xff] }
 0x521   :  { %v4399_v13 = vmax.f32 %v4397_v5, %v4398_v59  ;;  %v5551_v58 = vsel %vm5224_vm6, %v13310_v48, %v5550_v27  ;;  %v4507_v8 = vsel %vm4177_vm3, %v3708_v0, -inf  ;;  %v5442_v47 = vsel %vm5220_vm4, %v16715_v11, %v16714_v51  ;;  %v16717_v27 = vld [vmem:[#allocation55_spill] sm:$0xff] }
 0x522   :  { %v14168_v18 = vrot.slane %v6306_v52, %v16447_v34  ;;  %v4287_v59 = vmax.f32 %v4285_v55, %v4286_v1  ;;  %v4508_v17 = vrot.slane %v4507_v8, 4  ;;  %v3912_v1 = vcombine.high %v16716_v31, %v16716_v31  ;;  %v16718_v51 = vld [vmem:[#allocation99_spill] sm:$0xff] }
 0x523   :  { %v4400_v5 = vrot.slane %v4399_v13, 1  ;;  %v5425_v0 = vsel %vm5226_vm7, %v16717_v27, %v5424_v6  ;;  %v4179_v9 = vrot.slane %v4178_v62, 4  ;;  %v5443_v32 = vsel %vm5222_vm5, %v16718_v51, %v5442_v47  ;;  %v16719_v6 = vld [vmem:[#allocation77_spill] sm:$0xff] }
 0x524   :  { %v4288_v55 = vrot.slane %v4287_v59, 1  ;;  %v4843_v31 = vsel %vm4177_vm3, %v3912_v1, -inf  ;;  %v16721_v27 = vld [vmem:[#allocation33_spill] sm:$0xff] }
 0x525   :  { %v4401_v50 = vmax.f32 %v4399_v13, %v4400_v5  ;;  %v5552_v13 = vsel %vm5226_vm7, %v13318_v43, %v5551_v58  ;;  %v4509_v5 = vmax.f32 %v4507_v8, %v4508_v17  ;;  %v4844_v17 = vrot.slane %v4843_v31, 4 }
 0x526   :  { %v4289_v11 = vmax.f32 %v4287_v59, %v4288_v55  ;;  %v14214_v58 = vsel %vm5228_vm8, %v13912_v53, %v5552_v13  ;;  %v16720_v59 = vld [vmem:[#allocation34_spill] sm:$0xff]  ;;  %v14223_v55 = vpop.permute.xlu0 %5371  ;;  %v4180_v1 = vmax.f32 %v4178_v62, %v4179_v9  ;;  %v5554_v62 = vsel %vm5220_vm4, %v14026_v16, %v14016_v2  ;;  %v16722_v9 = vld [vmem:[#allocation43_spill] sm:$0xff] }
 0x527   :  { %v14193_v48 = vsel %vm5228_vm8, %v4401_v50, %v5435_v46  ;;  %v4510_v52 = vrot.slane %v4509_v5, 2  ;;  %v5462_v46 = vsel %vm5220_vm4, %v13621_v14, %v13594_v61  ;;  %v3844_v50 = vcombine.high %v16719_v6, %v16719_v6  ;;  %v14221_v14 = vpop.permute.xlu1 %5521 }
 0x528   :  { %5587 = vrot.lane.b32.xlu1 %v14193_v48, %s8708_s23  ;;  %v14210_v43 = vsel %vm5228_vm8, %v4289_v11, %v5425_v0  ;;  %v5444_v8 = vsel %vm5224_vm6, %v16720_v59, %v5443_v32  ;;  %v4570_v0 = vsel %vm4177_vm3, %v16721_v27, -inf  ;;  %v5463_v53 = vsel %vm5222_vm5, %v13619_v7, %v5462_v46  ;;  %v16723_v32 = vld [vmem:[#allocation6_spill] sm:$0xff]  ;;  %v16724_v46 = vld [vmem:[#allocation44_spill] sm:$0xff] }
 0x529   :  { %5583 = vrot.lane.b32.xlu0 %v14210_v43, %s8708_s23  ;;  %v4511_v47 = vmax.f32 %v4509_v5, %v4510_v52  ;;  %v4731_v61 = vsel %vm4177_vm3, %v3844_v50, -inf  ;;  %v4845_v5 = vmax.f32 %v4843_v31, %v4844_v17  ;;  %v5452_v11 = vsel %vm5220_vm4, %v13573_v54, %v13539_v25 }
 0x52a   :  { %v4732_v52 = vrot.slane %v4731_v61, 4  ;;  %v4626_v51 = vsel %vm4177_vm3, %v16722_v9, -inf  ;;  %v5445_v6 = vsel %vm5226_vm7, %v16723_v32, %v5444_v8  ;;  %v5453_v7 = vsel %vm5222_vm5, %v13569_v42, %v5452_v11  ;;  %v16725_v11 = vld [vmem:[#allocation87_spill] sm:$0xff]  ;;  %v16726_v9 = vld [vmem:[#allocation90_spill] sm:$0xff] }
 0x52b   :  { %v4512_v13 = vrot.slane %v4511_v47, 1  ;;  %v3538_v31 = vcombine.high %v16724_v46, %v16724_v46  ;;  %v4846_v17 = vrot.slane %v4845_v5, 2  ;;  %v5555_v25 = vsel %vm5222_vm5, %v14039_v33, %v5554_v62  ;;  %v14260_v27 = vpop.permute.xlu1 %5379 }
 0x52c   :  { %5657 = vrot.lane.b32.xlu1 %v14214_v58, %s8708_s23  ;;  %v4733_v50 = vmax.f32 %v4731_v61, %v4732_v52  ;;  %v5464_v54 = vsel %vm5224_vm6, %v13637_v19, %v5463_v53  ;;  %v5556_v16 = vsel %vm5224_vm6, %v14043_v44, %v5555_v25  ;;  %v3980_v8 = vcombine.high %v13806_v38, %v13806_v38  ;;  %v14262_v19 = vpop.permute.xlu0 %5375 }
 0x52d   :  { %v4513_v59 = vmax.f32 %v4511_v47, %v4512_v13  ;;  %v4847_v61 = vmax.f32 %v4845_v5, %v4846_v17  ;;  %v5454_v47 = vsel %vm5224_vm6, %v13598_v28, %v5453_v7  ;;  %v5557_v33 = vsel %vm5226_vm7, %v14056_v63, %v5556_v16 }
 0x52e   :  { %v4734_v2 = vrot.slane %v4733_v50, 2  ;;  %v14268_v38 = vsel %vm5228_vm8, %v14129_v41, %v5557_v33  ;;  %v4181_v53 = vrot.slane %v4180_v1, 2  ;;  %v4571_v52 = vrot.slane %v4570_v0, 4  ;;  %v16727_v33 = vld [vmem:[#allocation4_spill] sm:$0xff] }
 0x52f   :  { %v14254_v42 = vsel %vm5228_vm8, %v4513_v59, %v5445_v6  ;;  %v4848_v13 = vrot.slane %v4847_v61, 1  ;;  %v4955_v28 = vsel %vm4177_vm3, %v3980_v8, -inf  ;;  %v4627_v5 = vrot.slane %v4626_v51, 4 }
 0x530   :  { %5591 = vrot.lane.b32.xlu0 %v14254_v42, %s8708_s23  ;;  %v4735_v44 = vmax.f32 %v4733_v50, %v4734_v2  ;;  %v5465_v63 = vsel %vm5226_vm7, %v16725_v11, %v5464_v54  ;;  %v5455_v32 = vsel %vm5226_vm7, %v16726_v9, %v5454_v47  ;;  %v4956_v7 = vrot.slane %v4955_v28, 4  ;;  %v14282_v2 = vpop.permute.xlu1 %5377  ;;  %v14284_v54 = vpop.permute.xlu0 %5373 }
 0x531   :  { %v4849_v6 = vmax.f32 %v4847_v61, %v4848_v13  ;;  %v5472_v41 = vsel %vm5220_vm4, %v13855_v40, %v13822_v12  ;;  %v4227_v50 = vsel %vm4177_vm3, %v3538_v31, -inf  ;;  %v4182_v16 = vmax.f32 %v4180_v1, %v4181_v53 }
 0x532   :  { %v4736_v62 = vrot.slane %v4735_v44, 1  ;;  %v4957_v17 = vmax.f32 %v4955_v28, %v4956_v7  ;;  %v4228_v25 = vrot.slane %v4227_v50, 4  ;;  %v4572_v8 = vmax.f32 %v4570_v0, %v4571_v52 }
 0x533   :  { %v14280_v59 = vsel %vm5228_vm8, %v4849_v6, %v5465_v63  ;;  %v5473_v12 = vsel %vm5222_vm5, %v13859_v26, %v5472_v41  ;;  %v4628_v40 = vmax.f32 %v4626_v51, %v4627_v5  ;;  %v6313_v28 = vrot.slane %v14151_v39, %v16447_v34  ;;  %v16729_v26 = vld [vmem:[#allocation50_spill] sm:$0xff] }
 0x534   :  { %v4737_v46 = vmax.f32 %v4735_v44, %v4736_v62  ;;  %5599 = vrot.lane.b32.xlu1 %v14280_v59, %s8708_s23  ;;  %v4958_v31 = vrot.slane %v4957_v17, 2  ;;  %v4229_v47 = vmax.f32 %v4227_v50, %v4228_v25  ;;  %v16728_v44 = vld [vmem:[#allocation5_spill] sm:$0xff]  ;;  %v5474_v53 = vsel %vm5224_vm6, %v13872_v3, %v5473_v12  ;;  %v14306_v9 = vpop.permute.xlu1 %5659  ;;  %v16731_v12 = vld [vmem:[#allocation46_spill] sm:$0xff] }
 0x535   :  { %v5417_v1 = vsel %vm5220_vm4, %v16728_v44, %v16727_v33  ;;  %v4573_v13 = vrot.slane %v4572_v8, 2  ;;  %v4183_v5 = vrot.slane %v4182_v16, 1  ;;  %v4629_v11 = vrot.slane %v4628_v40, 2  ;;  %v16730_v50 = vld [vmem:[#allocation9_spill] sm:$0xff] }
 0x536   :  { %v14289_v61 = vsel %vm5228_vm8, %v4737_v46, %v5455_v32  ;;  %v4959_v0 = vmax.f32 %v4957_v17, %v4958_v31  ;;  %v4230_v52 = vrot.slane %v4229_v47, 2  ;;  %v5418_v51 = vsel %vm5222_vm5, %v16729_v26, %v5417_v1  ;;  %v14308_v32 = vpop.permute.xlu0 %5381 }
 0x537   :  { %5595 = vrot.lane.b32.xlu0 %v14289_v61, %s8708_s23  ;;  %v5475_v3 = vsel %vm5226_vm7, %v13880_v22, %v5474_v53  ;;  %v4184_v6 = vmax.f32 %v4182_v16, %v4183_v5  ;;  %v6357_v39 = vcombine.high %v14136_v21, %v14136_v21  ;;  %v5419_v46 = vsel %vm5224_vm6, %v16730_v50, %v5418_v51  ;;  %v16733_v22 = vld [vmem:[#allocation38_spill] sm:$0xff] }
 0x538   :  { %5661 = vrot.lane.b32.xlu1 %v14268_v38, %s8708_s23  ;;  %v4960_v63 = vrot.slane %v4959_v0, 1  ;;  %v4231_v62 = vmax.f32 %v4229_v47, %v4230_v52  ;;  %v4574_v17 = vmax.f32 %v4572_v8, %v4573_v13  ;;  %v6321_v25 = vcombine.high %v6313_v28, %v6313_v28  ;;  %v16732_v47 = vld [vmem:[#allocation98_spill] sm:$0xff]  ;;  %v16734_v8 = vld [vmem:[#allocation11_spill] sm:$0xff]  ;;  %v16735_v13 = vld [vmem:[#allocation100_spill] sm:$0xff] }
 0x539   :  { %v5221_v31 = vsel %vm5220_vm4, %v16731_v12, %v4184_v6  ;;  %v5682_v1 = vsel %vm2833_vm2, %v16732_v47, %v14223_v55  ;;  %v4630_v52 = vmax.f32 %v4628_v40, %v4629_v11  ;;  %v3810_v16 = vcombine.high %v16733_v22, %v16733_v22  ;;  %v5121_v22 = vld [vmem:[%s15567_s4 + $0x178] sm:$0xff] }
 0x53a   :  { %v4961_v7 = vmax.f32 %v4959_v0, %v4960_v63  ;;  %v4232_v41 = vrot.slane %v4231_v62, 1  ;;  %v5223_v0 = vsel %vm5222_vm5, %v16727_v33, %v5221_v31  ;;  %v5420_v53 = vsel %vm5226_vm7, %v16734_v8, %v5419_v46  ;;  %v14349_v6 = vpop.permute.xlu0 %5387  ;;  %v16736_v46 = vld [vmem:[#allocation16_spill] sm:$0xff] }
 0x53b   :  { %v5694_v55 = vsel %vm2833_vm2, %v14210_v43, %v14148_v56  ;;  %v5225_v40 = vsel %vm5224_vm6, %v16728_v44, %v5223_v0  ;;  %v14340_v51 = vsel %vm2833_vm2, %v16735_v13, %v14260_v27  ;;  %v14343_v33 = vrot.slane %v6357_v39, %v16447_v34 }
 0x53c   :  { %v14324_v21 = vsel %vm5228_vm8, %v4961_v7, %v5475_v3  ;;  %v4233_v5 = vmax.f32 %v4231_v62, %v4232_v41  ;;  %v5227_v11 = vsel %vm5226_vm7, %v16729_v26, %v5225_v40  ;;  %v5812_v63 = vcombine.low %v5682_v1, %v5694_v55  ;;  %v14347_v3 = vpop.permute.xlu1 %5383 }
 0x53d   :  { %5603 = vrot.lane.b32.xlu0 %v14324_v21, %s8708_s23  ;;  %v6372_v56 = vcombine.high %v14172_v24, %v14172_v24  ;;  %v14353_v43 = vcombine.low %v6313_v28, %v6321_v25  ;;  %v5698_v27 = vsel %vm2833_vm2, %v14254_v42, %v14221_v14  ;;  %v5813_v44 = vcombine.high %v5682_v1, %v5694_v55 }
 0x53e   :  { %v14361_v62 = vsel %vm2833_vm2, %v13672_v36, %v14124_v57  ;;  %v5421_v26 = vsel %vm5228_vm8, %v4233_v5, %v5420_v53  ;;  %v5229_v39 = vsel %vm5228_vm8, %v16730_v50, %v5227_v11  ;;  %v6016_v7 = vcombine.low %v14340_v51, %v5698_v27  ;;  %v14398_v40 = vpop.permute.xlu0 %5525 }
 0x53f   :  { %v6255_v28 = vcombine.high %v14324_v21, %v14324_v21  ;;  %v5693_v41 = vsel %vm2833_vm2, %v5421_v26, %v14126_v15  ;;  %v5681_v14 = vsel %vm2833_vm2, %v5229_v39, %v14188_v10  ;;  %v5684_v57 = vsel %vm2833_vm2, %v16736_v46, %v14262_v19  ;;  %v16738_v26 = vld [vmem:[#allocation3_spill] sm:$0xff] }
 0x540   :  { %v14378_v25 = vrot.slane %v14324_v21, %v16447_v34  ;;  %v5761_v50 = vcombine.low %v5681_v14, %v5693_v41  ;;  %v5762_v12 = vcombine.high %v5681_v14, %v5693_v41  ;;  %v14381_v31 = vrot.slane %v5812_v63, %v16447_v34  ;;  %v5586_v55 = vpop.permute.xlu1 %5585  ;;  %v16740_v14 = vld [vmem:[#allocation70_spill] sm:$0xff] }
 0x541   :  { %v5697_v15 = vsel %vm2833_vm2, %v13792_v45, %v14146_v23  ;;  %v5696_v10 = vsel %vm2833_vm2, %v14193_v48, %v14186_v49  ;;  %v14390_v47 = vrot.slane %v5813_v44, %v16447_v34  ;;  %v4575_v19 = vrot.slane %v4574_v17, 1  ;;  %v16737_v44 = vld [vmem:[#allocation48_spill] sm:$0xff] }
 0x542   :  { %v5771_v1 = vrot.slane %v5761_v50, %v16447_v34  ;;  %v5778_v0 = vrot.slane %v5762_v12, %v16447_v34  ;;  %v6017_v8 = vcombine.high %v14340_v51, %v5698_v27  ;;  %v14396_v53 = vrot.slane %v6016_v7, %v16447_v34  ;;  %v16739_v7 = vld [vmem:[#allocation67_spill] sm:$0xff] }
 0x543   :  { %v6269_v23 = vrot.slane %v6255_v28, %v16447_v34  ;;  %v5914_v13 = vcombine.low %v5684_v57, %v5696_v10  ;;  %v4576_v49 = vmax.f32 %v4574_v17, %v4575_v19  ;;  %v4631_v5 = vrot.slane %v4630_v52, 1 }
 0x544   :  { %v6270_v11 = vcombine.high %v14378_v25, %v14378_v25  ;;  %v8097_v63 = vcombine.low %v5778_v0, %v14381_v31  ;;  %v14407_v27 = vsel %vm2833_vm2, %v16737_v44, %v14282_v2  ;;  %v14412_v39 = vsel %vm2833_vm2, %v16738_v26, %v14284_v54  ;;  %v5590_v26 = vpop.permute.xlu0 %5589 }
 0x545   :  { %v5631_v28 = vsel %vm5220_vm4, %v16739_v7, %v4576_v49  ;;  %v4632_v17 = vmax.f32 %v4630_v52, %v4631_v5  ;;  %v6383_v41 = vrot.slane %v5771_v1, %v16447_v34  ;;  %v5706_v46 = vsel %vm2833_vm2, %v16740_v14, %v5586_v55  ;;  %v16741_v49 = vld [vmem:[#allocation101_spill] sm:$0xff] }
 0x546   :  { %v5632_v50 = vsel %vm5222_vm5, %v13437_v60, %v5631_v28  ;;  %v6397_v2 = vrot.slane %v8097_v63, %v16447_v34  ;;  %v5814_v12 = vcombine.low %v5706_v46, %v5684_v57  ;;  %v5815_v19 = vcombine.high %v5706_v46, %v5684_v57  ;;  %v14433_v63 = vpop.permute.xlu1 %5523 }
 0x547   :  { %v14423_v0 = vrot.slane %v6017_v8, %v16447_v34  ;;  %v5915_v54 = vcombine.high %v5684_v57, %v5696_v10  ;;  %v5965_v44 = vcombine.low %v14407_v27, %v5697_v15  ;;  %v5255_v52 = vsel %vm5220_vm4, %v16741_v49, %v4632_v17  ;;  %v16742_v17 = vld [vmem:[#allocation30_spill] sm:$0xff] }
 0x548   :  { %v5966_v1 = vcombine.high %v14407_v27, %v5697_v15  ;;  %v6405_v5 = vcombine.low %v6383_v41, %v6397_v2  ;;  %v6406_v55 = vcombine.high %v6383_v41, %v6397_v2  ;;  %v4675_v60 = vsel %vm4177_vm3, %v3810_v16, -inf  ;;  %v5136_v41 = vld [vmem:[%s15567_s4 + $0x1f0] sm:$0xff] }
 0x549   :  { %v5863_v57 = vcombine.low %v14412_v39, %v14361_v62  ;;  %v5633_v10 = vsel %vm5224_vm6, %v13469_v30, %v5632_v50  ;;  %v14440_v8 = vrot.slane %v5814_v12, %v16447_v34  ;;  %v14443_v15 = vrot.slane %v5815_v19, %v16447_v34  ;;  %v16743_v12 = vld [vmem:[#allocation35_spill] sm:$0xff] }
 0x54a   :  { %v14448_v16 = vcombine.low %v6270_v11, %v6269_v23  ;;  %v14451_v7 = vrot.slane %v5914_v13, %v16447_v34  ;;  %v5864_v28 = vcombine.high %v14412_v39, %v14361_v62  ;;  %v5256_v30 = vsel %vm5222_vm5, %v16742_v17, %v5255_v52  ;;  %6968 = vmatprep.mubr.f32.mxu1 %v6406_v55  ;;  %v5120_v62 = vld [vmem:[%s15567_s4 + $0x170] sm:$0xff]  ;;  %v16745_v55 = vld [vmem:[#allocation23_spill] sm:$0xff] }
 0x54b   :  { %v14461_v14 = vrot.slane %v5915_v54, %v16447_v34  ;;  %v14464_v23 = vrot.slane %v5965_v44, %v16447_v34  ;;  %6969 = vmatmul.mubr.f32.vlgmr.msra.gmra.mxu1 %v6405_v5  ;;  %v5846_v13 = vcombine.low %v14390_v47, %v14443_v15  ;;  %v4676_v11 = vrot.slane %v4675_v60, 4  ;;  %v5135_v54 = vld [vmem:[%s15567_s4 + $0x1e8] sm:$0xff] }
 0x54c   :  { %v5982_v46 = vrot.slane %v5966_v1, %v16447_v34  ;;  %v5634_v50 = vsel %vm5226_vm7, %v13471_v35, %v5633_v10  ;;  %v5845_v2 = vcombine.high %v14381_v31, %v14440_v8  ;;  %v5447_v19 = vsel %vm5220_vm4, %v16743_v12, %v16742_v17  ;;  %8274 = vmatpush3.msra.mxu1 %v5121_v22  ;;  %v16744_v1 = vld [vmem:[#allocation64_spill] sm:$0xff]  ;;  %v14495_v17 = vpop.permute.xlu1 %5527 }
 0x54d   :  { %v5873_v44 = vrot.slane %v5863_v57, %v16447_v34  ;;  %v5257_v49 = vsel %vm5224_vm6, %v16743_v12, %v5256_v30  ;;  %v4677_v52 = vmax.f32 %v4675_v60, %v4676_v11  ;;  %v5708_v35 = vsel %vm2833_vm2, %v16744_v1, %v5590_v26  ;;  %8275 = vmatprep.subr.mxu1 %v5136_v41  ;;  %v5119_v31 = vld [vmem:[%s15567_s4 + $0x168] sm:$0xff]  ;;  %v14497_v60 = vpop.permute.xlu0 %5385  ;;  %v5134_v26 = vld [vmem:[%s15567_s4 + $0x1e0] sm:$0xff] }
 0x54e   :  { %v5880_v5 = vrot.slane %v5864_v28, %v16447_v34  ;;  %v5448_v10 = vsel %vm5222_vm5, %v16745_v55, %v5447_v19  ;;  %v5916_v22 = vcombine.low %v5708_v35, %v14340_v51  ;;  %v5917_v57 = vcombine.high %v5708_v35, %v14340_v51  ;;  %8276 = vmatpush3.msra.mxu1 %v5120_v62  ;;  %v16746_v28 = vld [vmem:[#allocation17_spill] sm:$0xff]  ;;  %v5118_v62 = vld [vmem:[%s15567_s4 + $0x160] sm:$0xff] }
 0x54f   :  { %v5635_v30 = vsel %vm5228_vm8, %v13478_v4, %v5634_v50  ;;  %v14507_v41 = vsel %vm2833_vm2, %v16746_v28, %v14347_v3  ;;  %v14512_v51 = vsel %vm2833_vm2, %v14289_v61, %v14398_v40  ;;  %v4678_v11 = vrot.slane %v4677_v52, 2  ;;  %8277 = vmatprep.subr.mxu1 %v5135_v54  ;;  %v5133_v61 = vld [vmem:[%s15567_s4 + $0x1d8] sm:$0xff] }
 0x550   :  { %v5258_v12 = vsel %vm5226_vm7, %v16745_v55, %v5257_v49  ;;  %v14520_v4 = vrot.slane %v5916_v22, %v16447_v34  ;;  %v14523_v3 = vrot.slane %v5917_v57, %v16447_v34  ;;  %v8099_v50 = vcombine.low %v5845_v2, %v14390_v47  ;;  %8278 = vmatpush3.msra.mxu1 %v5119_v31  ;;  %v16747_v54 = vld [vmem:[#allocation69_spill] sm:$0xff] }
 0x551   :  { %v5718_v40 = vsel %vm2833_vm2, %v5635_v30, %v14306_v9  ;;  %v4679_v19 = vmax.f32 %v4677_v52, %v4678_v11  ;;  %v5449_v49 = vsel %vm5224_vm6, %v16747_v54, %v5448_v10  ;;  %v6450_v1 = vrot.slane %v5873_v44, %v16447_v34  ;;  %8279 = vmatprep.subr.mxu1 %v5134_v26  ;;  %v5117_v35 = vld [vmem:[%s15567_s4 + $0x158] sm:$0xff]  ;;  %v5132_v44 = vld [vmem:[%s15567_s4 + $0x1d0] sm:$0xff] }
 0x552   :  { %v5947_v2 = vcombine.high %v14451_v7, %v14520_v4  ;;  %v5948_v31 = vcombine.low %v14461_v14, %v14523_v3  ;;  %v6436_v55 = vrot.slane %v8099_v50, %v16447_v34  ;;  %v8101_v9 = vcombine.low %v5880_v5, %v14451_v7  ;;  %8280 = vmatpush3.msra.mxu1 %v5118_v62  ;;  %v5116_v26 = vld [vmem:[%s15567_s4 + $0x150] sm:$0xff]  ;;  %v16748_v7 = vld [vmem:[#allocation31_spill] sm:$0xff] }
 0x553   :  { %v5259_v52 = vsel %vm5228_vm8, %v16747_v54, %v5258_v12  ;;  %v6118_v10 = vcombine.low %v14507_v41, %v14512_v51  ;;  %v4680_v22 = vrot.slane %v4679_v19, 1  ;;  %v8105_v57 = vcombine.low %v5982_v46, %v14396_v53  ;;  %8281 = vmatprep.subr.mxu1 %v5133_v61  ;;  %v5131_v46 = vld [vmem:[%s15567_s4 + $0x1c8] sm:$0xff]  ;;  %v5144_v3 = vld [vmem:[%s15567_s4 + $0x230] sm:$0xff] }
 0x554   :  { %v5450_v5 = vsel %vm5226_vm7, %v16748_v7, %v5449_v49  ;;  %v6459_v11 = vcombine.high %v6436_v55, %v6450_v1  ;;  %v6458_v62 = vcombine.low %v6436_v55, %v6450_v1  ;;  %v8103_v12 = vcombine.low %v5947_v2, %v14461_v14  ;;  %8282 = vmatpush3.msra.mxu1 %v5117_v35  ;;  %v5115_v1 = vld [vmem:[%s15567_s4 + $0x148] sm:$0xff] }
 0x555   :  { %v4681_v50 = vmax.f32 %v4679_v19, %v4680_v22  ;;  %v6489_v54 = vrot.slane %v8101_v9, %v16447_v34  ;;  %v6556_v49 = vrot.slane %v8105_v57, %v16447_v34  ;;  %8283 = vmatprep.subr.mxu1 %v5132_v44  ;;  %v5130_v19 = vld [vmem:[%s15567_s4 + $0x1c0] sm:$0xff]  ;;  %v6542_v44 = vrot.slane %v14464_v23, %v16447_v34 }
 0x556   :  { %v14556_v30 = vpop.permute.xlu1 %5391  ;;  %6973 = vmatprep.mubr.f32.mxu1 %v6459_v11  ;;  %v6503_v35 = vrot.slane %v8103_v12, %v16447_v34  ;;  %8284 = vmatpush3.msra.mxu1 %v5116_v26  ;;  %v5129_v12 = vld [vmem:[%s15567_s4 + $0x1b8] sm:$0xff]  ;;  %v8104_v47 = vcombine.high %v14520_v4, %v5948_v31 }
 0x557   :  { %v5451_v9 = vsel %vm5228_vm8, %v4681_v50, %v5450_v5  ;;  %6974 = vmatmul.mubr.f32.gmra.mxu1 %v6458_v62  ;;  %8285 = vmatprep.subr.mxu1 %v5131_v46  ;;  %v6565_v62 = vcombine.high %v6542_v44, %v6556_v49  ;;  %v16750_v50 = vld [vmem:[#allocation80_spill] sm:$0xff] }
 0x558   :  { %v5699_v22 = vsel %vm2833_vm2, %v5451_v9, %v14433_v63  ;;  %8286 = vmatpush3.msra.mxu1 %v5115_v1  ;;  %v6511_v5 = vcombine.low %v6489_v54, %v6503_v35  ;;  %v6564_v9 = vcombine.low %v6542_v44, %v6556_v49  ;;  %v6788_v49 = vrot.slane %v14448_v16, %v16447_v34 }
 0x559   :  { %8287 = vmatprep.subr.mxu1 %v5130_v19  ;;  %v6128_v19 = vrot.slane %v6118_v10, %v16447_v34  ;;  %v6795_v10 = vrot.slane %v14353_v43, %v16447_v34  ;;  %v5126_v43 = vld [vmem:[%s15567_s4 + $0x1a0] sm:$0xff]  ;;  %v16751_v16 = vcombine.low %v14168_v18, %v14172_v24  ;;  %v5125_v18 = vld [vmem:[%s15567_s4 + $0x198] sm:$0xff] }
 0x55a   :  { %v5594_v28 = vpop.permute.xlu0 %5593  ;;  %v5109_v24 = vld [vmem:[%s15567_s4 + $0x118] sm:$0xff] }
 0x55b   :  { %v5710_v61 = vsel %vm2833_vm2, %v14214_v58, %v5594_v28  ;;  %v5687_v58 = vsel %vm2833_vm2, %v5259_v52, %v14308_v32  ;;  %v6512_v32 = vcombine.high %v6489_v54, %v6503_v35  ;;  %v6119_v52 = vcombine.high %v14507_v41, %v14512_v51  ;;  %v16749_v41 = vld [vmem:[#allocation37_spill] sm:$0xff] }
 0x55c   :  { %v6018_v55 = vcombine.low %v5710_v61, %v5718_v40  ;;  %v6019_v2 = vcombine.high %v5710_v61, %v5718_v40  ;;  %v5114_v40 = vld [vmem:[%s15567_s4 + $0x140] sm:$0xff]  ;;  %v6067_v23 = vcombine.low %v5687_v58, %v5699_v22  ;;  %v6068_v7 = vcombine.high %v5687_v58, %v5699_v22  ;;  %v5113_v54 = vld [vmem:[%s15567_s4 + $0x138] sm:$0xff] }
 0x55d   :  { %6978 = vmatprep.mubr.f32.mxu1 %v6512_v32  ;;  %8288 = vmatpush3.msra.mxu1 %v5114_v40  ;;  %v14601_v51 = vsel %vm2833_vm2, %v16749_v41, %v14349_v6  ;;  %v6834_v35 = vcombine.low %v6372_v56, %v14343_v33  ;;  %v14622_v58 = vrot.slane %v6119_v52, %v16447_v34  ;;  %v5112_v40 = vld [vmem:[%s15567_s4 + $0x130] sm:$0xff]  ;;  %v5127_v56 = vld [vmem:[%s15567_s4 + $0x1a8] sm:$0xff] }
 0x55e   :  { %v14584_v57 = vrot.slane %v6018_v55, %v16447_v34  ;;  %v14587_v26 = vrot.slane %v6019_v2, %v16447_v34  ;;  %v6077_v46 = vrot.slane %v6067_v23, %v16447_v34  ;;  %6979 = vmatmul.mubr.f32.gmra.mxu1 %v6511_v5  ;;  %v5128_v2 = vld [vmem:[%s15567_s4 + $0x1b0] sm:$0xff]  ;;  %8289 = vmatprep.subr.mxu1 %v5129_v12  ;;  %v5111_v52 = vld [vmem:[%s15567_s4 + $0x128] sm:$0xff]  ;;  %v5110_v12 = vld [vmem:[%s15567_s4 + $0x120] sm:$0xff] }
 0x55f   :  { %6983 = vmatprep.mubr.f32.mxu1 %v6565_v62  ;;  %8290 = vmatpush3.msra.mxu1 %v5113_v54  ;;  %v6841_v62 = vrot.slane %v16751_v16, %v16447_v34  ;;  %v5701_v41 = vsel %vm2833_vm2, %v13948_v37, %v14495_v17  ;;  %v14678_v54 = vcombine.low %v6788_v49, %v6795_v10  ;;  %v5107_v49 = vld [vmem:[%s15567_s4 + $0x108] sm:$0xff] }
 0x560   :  { %v6049_v28 = vcombine.high %v14396_v53, %v14584_v57  ;;  %v6050_v63 = vcombine.low %v14423_v0, %v14587_v26  ;;  %v5598_v11 = vpop.permute.xlu1 %5597  ;;  %v6084_v53 = vrot.slane %v6068_v7, %v16447_v34  ;;  %v6609_v33 = vrot.slane %v6077_v46, %v16447_v34  ;;  %8291 = vmatprep.subr.mxu1 %v5128_v2  ;;  %v16752_v46 = vld [vmem:[#allocation72_spill] sm:$0xff] }
 0x561   :  { %v5712_v61 = vsel %vm2833_vm2, %v16750_v50, %v5598_v11  ;;  %8292 = vmatpush3.msra.mxu1 %v5112_v40 }
 0x562   :  { %v6120_v1 = vcombine.low %v5712_v61, %v14601_v51  ;;  %v6121_v55 = vcombine.high %v5712_v61, %v14601_v51  ;;  %v8107_v6 = vcombine.low %v6049_v28, %v14423_v0  ;;  %v8109_v44 = vcombine.low %v6084_v53, %v6128_v19  ;;  %6984 = vmatmul.mubr.f32.gmra.mxu1 %v6564_v9  ;;  %v5141_v0 = vld [vmem:[%s15567_s4 + $0x218] sm:$0xff] }
 0x563   :  { %8293 = vmatprep.subr.mxu1 %v5127_v56  ;;  %v14664_v53 = vsel %vm2833_vm2, %v16752_v46, %v14497_v60  ;;  %v5124_v60 = vld [vmem:[%s15567_s4 + $0x190] sm:$0xff] }
 0x564   :  { %v14628_v22 = vrot.slane %v6120_v1, %v16447_v34  ;;  %v14631_v32 = vrot.slane %v6121_v55, %v16447_v34  ;;  %v6595_v23 = vrot.slane %v8107_v6, %v16447_v34  ;;  %8294 = vmatpush3.msra.mxu1 %v5111_v52  ;;  %v6648_v17 = vrot.slane %v8109_v44, %v16447_v34  ;;  %v16753_v55 = vld [vmem:[#allocation40_spill] sm:$0xff] }
 0x565   :  { %8295 = vmatprep.subr.mxu1 %v5126_v43  ;;  %v6848_v1 = vrot.slane %v6834_v35, %v16447_v34  ;;  %v5018_v6 = vsel %vm4177_vm3, %v16753_v55, -inf  ;;  %v6169_v2 = vcombine.low %v14664_v53, %v5701_v41  ;;  %v6170_v9 = vcombine.high %v14664_v53, %v5701_v41  ;;  %v5123_v35 = vld [vmem:[%s15567_s4 + $0x188] sm:$0xff] }
 0x566   :  { %v6151_v7 = vcombine.high %v6128_v19, %v14628_v22  ;;  %v6152_v5 = vcombine.low %v14622_v58, %v14631_v32  ;;  %v6618_v28 = vcombine.high %v6595_v23, %v6609_v33  ;;  %v6617_v11 = vcombine.low %v6595_v23, %v6609_v33  ;;  %8296 = vmatpush3.msra.mxu1 %v5110_v12  ;;  %v5108_v19 = vld [vmem:[%s15567_s4 + $0x110] sm:$0xff] }
 0x567   :  { %8297 = vmatprep.subr.mxu1 %v5125_v18  ;;  %v14691_v56 = vcombine.low %v6841_v62, %v6848_v1  ;;  %v5019_v44 = vrot.slane %v5018_v6, 4  ;;  %v6186_v43 = vrot.slane %v6170_v9, %v16447_v34  ;;  %v16754_v41 = vmov 0.0   ;;  %v16755_v9 = vld [vmem:[#allocation75_spill] sm:$0xff]  ;;  %v16769_v32 = vld [vmem:[#allocation57_spill] sm:$0xff] }
 0x568   :  { %6988 = vmatprep.mubr.f32.mxu1 %v6618_v28  ;;  %v8111_v50 = vcombine.low %v6151_v7, %v14622_v58  ;;  %8298 = vmatpush3.msra.mxu1 %v5109_v24  ;;  %v5122_v7 = vld [vmem:[%s15567_s4 + $0x180] sm:$0xff]  ;;  %v5139_v58 = vld [vmem:[%s15567_s4 + $0x208] sm:$0xff] }
 0x569   :  { %6989 = vmatmul.mubr.f32.gmra.mxu1 %v6617_v11  ;;  %8299 = vmatprep.subr.mxu1 %v5124_v60  ;;  %v5106_v28 = vld [vmem:[%s15567_s4 + $0x100] sm:$0xff]  ;;  %v6179_v11 = vrot.slane %v6169_v2, %v16447_v34  ;;  %v5020_v62 = vmax.f32 %v5018_v6, %v5019_v44 }
 0x56a   :  { %v6662_v61 = vrot.slane %v8111_v50, %v16447_v34  ;;  %8300 = vmatpush3.msra.mxu1 %v5108_v19 }
 0x56b   :  { %8301 = vmatprep.subr.mxu1 %v5123_v35  ;;  %v6701_v46 = vrot.slane %v6179_v11, %v16447_v34  ;;  %v5021_v18 = vrot.slane %v5020_v62, 2 }
 0x56c   :  { %v6671_v23 = vcombine.high %v6648_v17, %v6662_v61  ;;  %v6670_v33 = vcombine.low %v6648_v17, %v6662_v61  ;;  %8302 = vmatpush3.msra.mxu1 %v5107_v49 }
 0x56d   :  { %v5530_v40 = vpop.permute.xlu0 %5529  ;;  %8303 = vmatprep.subr.mxu1 %v5122_v7  ;;  %v5022_v60 = vmax.f32 %v5020_v62, %v5021_v18  ;;  %v16757_v7 = vld [vmem:[#allocation83_spill] sm:$0xff]  ;;  %v16759_v18 = vld [vmem:[#allocation60_spill] sm:$0xff] }
 0x56e   :  { %v5702_v10 = vsel %vm2833_vm2, %v14280_v59, %v5530_v40  ;;  %6993 = vmatprep.mubr.f32.mxu1 %v6671_v23  ;;  %8304 = vmatpush3.msra.mxu1 %v5106_v28  ;;  %v14720_v40 = vsel %vm2833_vm2, %v16755_v9, %v14556_v30  ;;  %v16756_v23 = vld [vmem:[#allocation88_spill] sm:$0xff]  ;;  %v16761_v9 = vld [vmem:[#allocation47_spill] sm:$0xff] }
 0x56f   :  { %v6220_v52 = vcombine.low %v14601_v51, %v5702_v10  ;;  %6994 = vmatmul.mubr.f32.gmra.mxu1 %v6670_v33  ;;  %8556 = vmatprep.subr.mxu1 %v16754_v41  ;;  %v5023_v2 = vrot.slane %v5022_v60, 1  ;;  %v6221_v35 = vcombine.high %v14601_v51, %v5702_v10  ;;  %v16758_v51 = vld [vmem:[#allocation45_spill] sm:$0xff] }
 0x571   :  { %v6230_v16 = vrot.slane %v6220_v52, %v16447_v34  ;;  %v5532_v61 = vpop.permute.xlu0 %5531  ;;  %v5024_v44 = vmax.f32 %v5022_v60, %v5023_v2  ;;  %v14736_v30 = vrot.slane %v6221_v35, %v16447_v34 }
 0x572   :  { %v5703_v6 = vsel %vm2833_vm2, %v14076_v29, %v5532_v61 }
 0x573   :  { %v8113_v12 = vcombine.low %v6186_v43, %v6230_v16  ;;  %v5636_v28 = vsel %vm5220_vm4, %v16757_v7, %v5024_v44 }
 0x574   :  { %v5637_v10 = vsel %vm5222_vm5, %v16758_v51, %v5636_v28 }
 0x575   :  { %v6715_v50 = vrot.slane %v8113_v12, %v16447_v34  ;;  %v5390_v1 = vpop.permute.xlu1 %5389 }
 0x576   :  { %v14713_v55 = vsel %vm2833_vm2, %v13996_v20, %v5390_v1  ;;  %v16760_v1 = vld [vmem:[#allocation92_spill] sm:$0xff] }
 0x577   :  { %v6724_v24 = vcombine.high %v6701_v46, %v6715_v50  ;;  %v6723_v17 = vcombine.low %v6701_v46, %v6715_v50  ;;  %v6271_v49 = vcombine.low %v14713_v55, %v5703_v6 }
 0x579   :  { %6998 = vmatprep.mubr.f32.mxu1 %v6724_v24  ;;  %v6281_v11 = vrot.slane %v6271_v49, %v16447_v34  ;;  %v5638_v24 = vsel %vm5224_vm6, %v16759_v18, %v5637_v10  ;;  %v6272_v49 = vcombine.high %v14713_v55, %v5703_v6  ;;  %v16762_v18 = vld [vmem:[#allocation7_spill] sm:$0xff] }
 0x57a   :  { %6999 = vmatmul.mubr.f32.gmra.mxu1 %v6723_v17 }
 0x57b   :  { %v6768_v50 = vrot.slane %v6281_v11, %v16447_v34 }
 0x57e   :  { %v5534_v12 = vpop.permute.xlu1 %5533 }
 0x57f   :  { %v5704_v60 = vsel %vm2833_vm2, %v14324_v21, %v5534_v12 }
 0x581   :  { %v5602_v19 = vpop.permute.xlu0 %5601 }
 0x582   :  { %v14724_v33 = vsel %vm2833_vm2, %v16756_v23, %v5602_v19  ;;  %v6322_v19 = vcombine.low %v14720_v40, %v5704_v60 }
 0x583   :  { %v6222_v20 = vcombine.low %v14724_v33, %v14720_v40 }
 0x584   :  { %v6332_v7 = vrot.slane %v6322_v19, %v16447_v34  ;;  %v16763_v19 = vld [vmem:[#allocation52_spill] sm:$0xff] }
 0x585   :  { %v14731_v52 = vrot.slane %v6222_v20, %v16447_v34  ;;  %v6323_v20 = vcombine.high %v14720_v40, %v5704_v60 }
 0x587   :  { %v6253_v43 = vcombine.high %v6230_v16, %v14731_v52  ;;  %v5639_v16 = vsel %vm5226_vm7, %v16760_v1, %v5638_v24  ;;  %v6339_v51 = vrot.slane %v6323_v20, %v16447_v34 }
 0x588   :  { %v5640_v23 = vsel %vm5228_vm8, %v16761_v9, %v5639_v16 }
 0x589   :  { %v8115_v62 = vcombine.low %v6253_v43, %v14736_v30  ;;  %v6288_v43 = vrot.slane %v6272_v49, %v16447_v34 }
 0x58b   :  { %v6754_v46 = vrot.slane %v8115_v62, %v16447_v34  ;;  %v8117_v6 = vcombine.low %v6288_v43, %v6332_v7  ;;  %v16764_v43 = vld [vmem:[#allocation13_spill] sm:$0xff] }
 0x58d   :  { %v6777_v17 = vcombine.high %v6754_v46, %v6768_v50  ;;  %v6776_v61 = vcombine.low %v6754_v46, %v6768_v50  ;;  %v5664_v2 = vpop.permute.xlu1 %5663  ;;  %v6807_v16 = vrot.slane %v8117_v6, %v16447_v34 }
 0x58e   :  { %v5720_v35 = vsel %vm2833_vm2, %v5640_v23, %v5664_v2 }
 0x58f   :  { %7003 = vmatprep.mubr.f32.mxu1 %v6777_v17 }
 0x590   :  { %7004 = vmatmul.mubr.f32.gmra.mxu1 %v6776_v61 }
 0x592   :  { %v5606_v44 = vpop.permute.xlu0 %5605 }
 0x593   :  { %v5716_v21 = vsel %vm2833_vm2, %v14268_v38, %v5606_v44 }
 0x594   :  { %v6324_v28 = vcombine.low %v5716_v21, %v5720_v35  ;;  %v6325_v11 = vcombine.high %v5716_v21, %v5720_v35 }
 0x596   :  { %v14763_v10 = vrot.slane %v6324_v28, %v16447_v34  ;;  %v6353_v62 = vrot.slane %v6325_v11, %v16447_v34 }
 0x598   :  { %v6355_v12 = vcombine.high %v6332_v7, %v14763_v10  ;;  %v6356_v46 = vcombine.low %v6339_v51, %v6353_v62 }
 0x59a   :  { %v5588_v50 = vpop.permute.xlu1 %5587  ;;  %v8119_v24 = vcombine.low %v6355_v12, %v6339_v51  ;;  %v14770_v17 = vcombine.high %v14763_v10, %v6356_v46  ;;  %v16765_v12 = vld [vmem:[#allocation58_spill] sm:$0xff] }
 0x59b   :  { %v5707_v38 = vsel %vm2833_vm2, %v16762_v18, %v5588_v50  ;;  %v5584_v1 = vpop.permute.xlu0 %5583 }
 0x59c   :  { %v5866_v61 = vcombine.high %v5707_v38, %v14407_v27  ;;  %v5865_v60 = vcombine.low %v5707_v38, %v14407_v27  ;;  %v6821_v2 = vrot.slane %v8119_v24, %v16447_v34  ;;  %v5705_v9 = vsel %vm2833_vm2, %v16763_v19, %v5584_v1  ;;  %v5145_v1 = vld [vmem:[%s15567_s4 + $0x238] sm:$0xff] }
 0x59d   :  { %v5763_v23 = vcombine.low %v5705_v9, %v14412_v39  ;;  %v5764_v35 = vcombine.high %v5705_v9, %v14412_v39  ;;  %v8100_v39 = vcombine.high %v14440_v8, %v5846_v13  ;;  %v16766_v9 = vld [vmem:[#allocation85_spill] sm:$0xff] }
 0x59e   :  { %v6830_v49 = vcombine.high %v6807_v16, %v6821_v2  ;;  %v5894_v20 = vrot.slane %v5866_v61, %v16447_v34  ;;  %v5658_v44 = vpop.permute.xlu1 %5657  ;;  %v6829_v21 = vcombine.low %v6807_v16, %v6821_v2  ;;  %v5887_v7 = vrot.slane %v5865_v60, %v16447_v34 }
 0x59f   :  { %v5785_v27 = vrot.slane %v5763_v23, %v16447_v34  ;;  %v5792_v28 = vrot.slane %v5764_v35, %v16447_v34  ;;  %v5717_v51 = vsel %vm2833_vm2, %v16764_v43, %v5658_v44  ;;  %v6443_v13 = vrot.slane %v8100_v39, %v16447_v34 }
 0x5a0   :  { %7008 = vmatprep.mubr.f32.mxu1 %v6830_v49  ;;  %v8102_v62 = vcombine.low %v5894_v20, %v14520_v4  ;;  %v6457_v38 = vrot.slane %v5887_v7, %v16447_v34  ;;  %v6510_v4 = vrot.slane %v8104_v47, %v16447_v34  ;;  %v16767_v49 = vld [vmem:[#allocation15_spill] sm:$0xff]  ;;  %v8108_v39 = vcombine.high %v14584_v57, %v6050_v63 }
 0x5a1   :  { %7009 = vmatmul.mubr.f32.gmra.mxu1 %v6829_v21  ;;  %v8098_v11 = vcombine.low %v5792_v28, %v14440_v8  ;;  %v6390_v50 = vrot.slane %v5785_v27, %v16447_v34  ;;  %v5143_v7 = vld [vmem:[%s15567_s4 + $0x228] sm:$0xff] }
 0x5a2   :  { %v5592_v6 = vpop.permute.xlu0 %5591  ;;  %v6496_v16 = vrot.slane %v8102_v62, %v16447_v34  ;;  %v6461_v2 = vcombine.high %v6443_v13, %v6457_v38  ;;  %v6460_v44 = vcombine.low %v6443_v13, %v6457_v38  ;;  %v5142_v62 = vld [vmem:[%s15567_s4 + $0x220] sm:$0xff]  ;;  %v5140_v38 = vld [vmem:[%s15567_s4 + $0x210] sm:$0xff] }
 0x5a3   :  { %v5709_v46 = vsel %vm2833_vm2, %v16765_v12, %v5592_v6  ;;  %v6404_v18 = vrot.slane %v8098_v11, %v16447_v34 }
 0x5a4   :  { %v5968_v24 = vcombine.high %v5709_v46, %v5717_v51  ;;  %v5967_v15 = vcombine.low %v5709_v46, %v5717_v51  ;;  %v6514_v21 = vcombine.high %v6496_v16, %v6510_v4  ;;  %v6223_v51 = vcombine.high %v14724_v33, %v14720_v40 }
 0x5a5   :  { %v6408_v8 = vcombine.high %v6390_v50, %v6404_v18  ;;  %v6407_v60 = vcombine.low %v6390_v50, %v6404_v18  ;;  %v6513_v33 = vcombine.low %v6496_v16, %v6510_v4  ;;  %v6602_v50 = vrot.slane %v8108_v39, %v16447_v34 }
 0x5a6   :  { %v5996_v61 = vrot.slane %v5968_v24, %v16447_v34  ;;  %v5600_v14 = vpop.permute.xlu1 %5599  ;;  %v5989_v31 = vrot.slane %v5967_v15, %v16447_v34  ;;  %v8112_v18 = vcombine.high %v14628_v22, %v6152_v5  ;;  %v6251_v24 = vrot.slane %v6223_v51, %v16447_v34  ;;  %v16768_v15 = vld [vmem:[#allocation49_spill] sm:$0xff] }
 0x5a7   :  { %7078 = vmatprep.mubr.f32.mxu1 %v6408_v8  ;;  %v5713_v23 = vsel %vm2833_vm2, %v16766_v9, %v5600_v14 }
 0x5a8   :  { %v8106_v19 = vcombine.low %v5996_v61, %v14584_v57  ;;  %7079 = vmatmul.mubr.f32.vlgmr.msra.gmra.mxu1 %v6407_v60  ;;  %v6172_v27 = vcombine.high %v5713_v23, %v14713_v55  ;;  %v6549_v12 = vrot.slane %v5989_v31, %v16447_v34  ;;  %v6171_v47 = vcombine.low %v5713_v23, %v14713_v55 }
 0x5a9   :  { %v5596_v35 = vpop.permute.xlu0 %5595  ;;  %7083 = vmatprep.mubr.f32.mxu1 %v6461_v2  ;;  %8557 = vmatpush3.msra.mxu1 %v5145_v1  ;;  %v5138_v2 = vld [vmem:[%s15567_s4 + $0x200] sm:$0xff]  ;;  %v6669_v4 = vrot.slane %v8112_v18, %v16447_v34 }
 0x5aa   :  { %v5711_v20 = vsel %vm2833_vm2, %v16767_v49, %v5596_v35  ;;  %8558 = vmatprep.subr.mxu1 %v16754_v41  ;;  %v6563_v43 = vrot.slane %v8106_v19, %v16447_v34  ;;  %v5662_v40 = vpop.permute.xlu1 %5661  ;;  %v6200_v57 = vrot.slane %v6172_v27, %v16447_v34  ;;  %v6254_v19 = vcombine.low %v14736_v30, %v6251_v24 }
 0x5ab   :  { %v6069_v28 = vcombine.low %v5711_v20, %v14664_v53  ;;  %v6070_v11 = vcombine.high %v5711_v20, %v14664_v53  ;;  %8559 = vmatpush3.msra.mxu1 %v5144_v3  ;;  %v5719_v8 = vsel %vm2833_vm2, %v16768_v15, %v5662_v40  ;;  %v6193_v14 = vrot.slane %v6171_v47, %v16447_v34 }
 0x5ac   :  { %7084 = vmatmul.mubr.f32.gmra.mxu1 %v6460_v44  ;;  %8560 = vmatprep.subr.mxu1 %v16754_v41  ;;  %v6567_v63 = vcombine.high %v6549_v12, %v6563_v43  ;;  %v6566_v61 = vcombine.low %v6549_v12, %v6563_v43  ;;  %v5803_v30 = vrot.slane %v13672_v36, %v16447_v34 }
 0x5ad   :  { %v6091_v53 = vrot.slane %v6069_v28, %v16447_v34  ;;  %v6098_v6 = vrot.slane %v6070_v11, %v16447_v34  ;;  %7088 = vmatprep.mubr.f32.mxu1 %v6514_v21  ;;  %8561 = vmatpush3.msra.mxu1 %v5143_v7  ;;  %v5796_v20 = vcombine.high %v13672_v36, %v13672_v36 }
 0x5ae   :  { %8562 = vmatprep.subr.mxu1 %v16754_v41  ;;  %v6708_v44 = vrot.slane %v6193_v14, %v16447_v34  ;;  %v8116_v21 = vcombine.high %v14731_v52, %v6254_v19  ;;  %v6828_v28 = vrot.slane %v14770_v17, %v16447_v34  ;;  %v5811_v51 = vcombine.high %v5803_v30, %v5803_v30 }
 0x5af   :  { %v8110_v26 = vcombine.low %v6098_v6, %v14628_v22  ;;  %v6616_v46 = vrot.slane %v6091_v53, %v16447_v34  ;;  %8563 = vmatpush3.msra.mxu1 %v5142_v62  ;;  %v5604_v13 = vpop.permute.xlu0 %5603  ;;  %v8114_v22 = vcombine.low %v6200_v57, %v14731_v52  ;;  %v5810_v36 = vrot.slane %v5796_v20, %v16447_v34 }
 0x5b0   :  { %7089 = vmatmul.mubr.f32.gmra.mxu1 %v6513_v33  ;;  %8564 = vmatprep.subr.mxu1 %v16754_v41  ;;  %v5715_v5 = vsel %vm2833_vm2, %v16769_v32, %v5604_v13  ;;  %v5905_v62 = vrot.slane %v13792_v45, %v16447_v34  ;;  %v5847_v52 = vcombine.high %v14193_v48, %v14193_v48  ;;  %v16770_v13 = vld [vmem:[#allocation39_spill] sm:$0xff] }
 0x5b1   :  { %7093 = vmatprep.mubr.f32.mxu1 %v6567_v63  ;;  %8565 = vmatpush3.msra.mxu1 %v5141_v0  ;;  %v6620_v60 = vcombine.high %v6602_v50, %v6616_v46  ;;  %v6655_v55 = vrot.slane %v8110_v26, %v16447_v34  ;;  %v6273_v1 = vcombine.low %v5715_v5, %v5719_v8 }
 0x5b2   :  { %8566 = vmatprep.subr.mxu1 %v16754_v41  ;;  %v6274_v16 = vcombine.high %v5715_v5, %v5719_v8  ;;  %v6619_v31 = vcombine.low %v6602_v50, %v6616_v46  ;;  %v6722_v35 = vrot.slane %v8114_v22, %v16447_v34  ;;  %v6761_v53 = vrot.slane %v8116_v21, %v16447_v34 }
 0x5b3   :  { %8567 = vmatpush3.msra.mxu1 %v5140_v38  ;;  %v6295_v9 = vrot.slane %v6273_v1, %v16447_v34  ;;  %v6673_v23 = vcombine.high %v6655_v55, %v6669_v4  ;;  %v6672_v7 = vcombine.low %v6655_v55, %v6669_v4  ;;  %v5854_v17 = vrot.slane %v14193_v48, %v16447_v34  ;;  %v16771_v1 = vld [vmem:[#allocation68_spill] sm:$0xff] }
 0x5b4   :  { %7094 = vmatmul.mubr.f32.gmra.mxu1 %v6566_v61  ;;  %8568 = vmatprep.subr.mxu1 %v16754_v41  ;;  %v6302_v3 = vrot.slane %v6274_v16, %v16447_v34  ;;  %v6726_v11 = vcombine.high %v6708_v44, %v6722_v35  ;;  %v6725_v6 = vcombine.low %v6708_v44, %v6722_v35 }
 0x5b5   :  { %7098 = vmatprep.mubr.f32.mxu1 %v6620_v60  ;;  %8569 = vmatpush3.msra.mxu1 %v5139_v58  ;;  %v6775_v43 = vrot.slane %v6295_v9, %v16447_v34  ;;  %v6409_v40 = vcombine.low %v5803_v30, %v5811_v51  ;;  %v5898_v33 = vcombine.high %v13792_v45, %v13792_v45  ;;  %v16772_v51 = vld [vmem:[#allocation91_spill] sm:$0xff] }
 0x5b6   :  { %8570 = vmatprep.subr.mxu1 %v16754_v41  ;;  %v8118_v49 = vcombine.low %v6302_v3, %v14763_v10  ;;  %v5913_v0 = vcombine.high %v5905_v62, %v5905_v62  ;;  %v5861_v57 = vrot.slane %v5847_v52, %v16447_v34  ;;  %v6410_v26 = vcombine.low %v5810_v36, %v5854_v17 }
 0x5b7   :  { %8571 = vmatpush3.msra.mxu1 %v5138_v2  ;;  %v6779_v12 = vcombine.high %v6761_v53, %v6775_v43  ;;  %v5862_v63 = vcombine.high %v5854_v17, %v5854_v17  ;;  %v5949_v46 = vcombine.high %v14254_v42, %v14254_v42  ;;  %v5956_v50 = vrot.slane %v14254_v42, %v16447_v34 }
 0x5b8   :  { %7099 = vmatmul.mubr.f32.gmra.mxu1 %v6619_v31  ;;  %v6814_v27 = vrot.slane %v8118_v49, %v16447_v34  ;;  %v6778_v48 = vcombine.low %v6761_v53, %v6775_v43  ;;  %v6417_v18 = vrot.slane %v6409_v40, %v16447_v34  ;;  %v5912_v38 = vrot.slane %v5898_v33, %v16447_v34 }
 0x5b9   :  { %7103 = vmatprep.mubr.f32.mxu1 %v6673_v23  ;;  %v6463_v24 = vcombine.low %v5905_v62, %v5913_v0  ;;  %v6424_v45 = vrot.slane %v6410_v26, %v16447_v34  ;;  %v6462_v47 = vcombine.low %v5862_v63, %v5861_v57  ;;  %v5963_v15 = vrot.slane %v5949_v46, %v16447_v34 }
 0x5ba   :  { %v6832_v10 = vcombine.high %v6814_v27, %v6828_v28  ;;  %v6831_v39 = vcombine.low %v6814_v27, %v6828_v28  ;;  %v5964_v8 = vcombine.high %v5956_v50, %v5956_v50  ;;  %v6051_v61 = vcombine.high %v16770_v13, %v16770_v13 }
 0x5bb   :  { %v6109_v42 = vrot.slane %v13948_v37, %v16447_v34  ;;  %v6515_v58 = vcombine.low %v5912_v38, %v5956_v50  ;;  %v6477_v22 = vrot.slane %v6463_v24, %v16447_v34  ;;  %v6425_v32 = vcombine.low %v6417_v18, %v6424_v45 }
 0x5bc   :  { %7104 = vmatmul.mubr.f32.gmra.mxu1 %v6672_v7  ;;  %v6470_v5 = vrot.slane %v6462_v47, %v16447_v34  ;;  %v6516_v60 = vcombine.low %v5964_v8, %v5963_v15  ;;  %v6065_v55 = vrot.slane %v6051_v61, %v16447_v34  ;;  %v6066_v16 = vcombine.high %v16771_v1, %v16771_v1 }
 0x5bd   :  { %7108 = vmatprep.mubr.f32.mxu1 %v6726_v11  ;;  %v6102_v2 = vcombine.high %v13948_v37, %v13948_v37  ;;  %v6117_v19 = vcombine.high %v6109_v42, %v6109_v42  ;;  %v6523_v14 = vrot.slane %v6515_v58, %v16447_v34  ;;  %v6153_v3 = vcombine.high %v14280_v59, %v14280_v59 }
 0x5be   :  { %v6530_v4 = vrot.slane %v6516_v60, %v16447_v34  ;;  %v6160_v31 = vrot.slane %v14280_v59, %v16447_v34  ;;  %v6478_v9 = vcombine.low %v6470_v5, %v6477_v22  ;;  %v6621_v23 = vcombine.low %v6066_v16, %v6065_v55 }
 0x5bf   :  { %v6116_v37 = vrot.slane %v6102_v2, %v16447_v34  ;;  %v6622_v35 = vcombine.low %v6109_v42, %v6117_v19  ;;  %v6211_v30 = vrot.slane %v14076_v29, %v16447_v34  ;;  %v6204_v49 = vcombine.high %v14076_v29, %v14076_v29 }
 0x5c0   :  { %7109 = vmatmul.mubr.f32.gmra.mxu1 %v6725_v6  ;;  %v6167_v20 = vrot.slane %v6153_v3, %v16447_v34  ;;  %v6168_v44 = vcombine.high %v6160_v31, %v6160_v31  ;;  %v6531_v59 = vcombine.low %v6523_v14, %v6530_v4  ;;  %v6629_v43 = vrot.slane %v6621_v23, %v16447_v34 }
 0x5c1   :  { %7113 = vmatprep.mubr.f32.mxu1 %v6779_v12  ;;  %v6636_v21 = vrot.slane %v6622_v35, %v16447_v34  ;;  %v6219_v7 = vcombine.high %v6211_v30, %v6211_v30  ;;  %v6218_v27 = vrot.slane %v6204_v49, %v16447_v34  ;;  %v6674_v28 = vcombine.low %v6116_v37, %v6160_v31 }
 0x5c2   :  { %v6675_v11 = vcombine.low %v6168_v44, %v6167_v20  ;;  %v7818_v44 = vld [vmem:[%s15570_s7 + $0x1f8] sm:$0xff] }
 0x5c3   :  { %v6727_v29 = vcombine.low %v6211_v30, %v6219_v7  ;;  %v6728_v36 = vcombine.low %v6218_v27, %v14378_v25  ;;  %v6637_v62 = vcombine.low %v6629_v43, %v6636_v21  ;;  %8384 = vmatprep.subr.mxu0 %v7818_v44 }
 0x5c4   :  { %7114 = vmatmul.mubr.f32.gmra.mxu1 %v6778_v48 }
 0x5c5   :  { %7118 = vmatprep.mubr.f32.mxu1 %v6832_v10  ;;  %v6682_v10 = vrot.slane %v6674_v28, %v16447_v34  ;;  %v6735_v52 = vrot.slane %v6727_v29, %v16447_v34  ;;  %v6742_v53 = vrot.slane %v6728_v36, %v16447_v34  ;;  %v7801_v29 = vld [vmem:[%s15570_s7 + $0x170] sm:$0xff] }
 0x5c7   :  { %v6743_v6 = vcombine.low %v6735_v52, %v6742_v53  ;;  %v7815_v53 = vld [vmem:[%s15570_s7 + $0x1e0] sm:$0xff] }
 0x5c8   :  { %7119 = vmatmul.mubr.f32.gmra.mxu1 %v6831_v39  ;;  %v6689_v39 = vrot.slane %v6675_v11, %v16447_v34 }
 0x5c9   :  { %8572 = vmatprep.mubr.msk.f32.mxu1 %vm8709_vm9, %v16754_v41 }
 0x5ca   :  { %v6690_v17 = vcombine.low %v6682_v10, %v6689_v39  ;;  %v7816_v10 = vld [vmem:[%s15570_s7 + $0x1e8] sm:$0xff] }
 0x5cc   :  { %8573 = vmatmul.mubr.msk.f32.vlgmr.msra.gmra.mxu1 %vm2833_vm2, %v6425_v32 }
 0x5cd   :  { %8575 = vmatprep.mubr.msk.f32.mxu1 %vm8709_vm9, %v16754_v41 }
 0x5d0   :  { %8576 = vmatmul.mubr.msk.f32.gmra.mxu1 %vm2833_vm2, %v6478_v9 }
 0x5d1   :  { %8578 = vmatprep.mubr.msk.f32.mxu1 %vm8709_vm9, %v16754_v41 }
 0x5d4   :  { %8579 = vmatmul.mubr.msk.f32.gmra.mxu1 %vm2833_vm2, %v6531_v59  ;;  %v7802_v59 = vld [vmem:[%s15570_s7 + $0x178] sm:$0xff] }
 0x5d5   :  { %8581 = vmatprep.mubr.msk.f32.mxu1 %vm8709_vm9, %v16754_v41  ;;  %8385 = vmatpush3.msra.mxu0 %v7802_v59  ;;  %v7811_v59 = vld [vmem:[%s15570_s7 + $0x1c0] sm:$0xff] }
 0x5d8   :  { %8582 = vmatmul.mubr.msk.f32.gmra.mxu1 %vm2833_vm2, %v16772_v51  ;;  %v7817_v51 = vld [vmem:[%s15570_s7 + $0x1f0] sm:$0xff] }
 0x5d9   :  { %8584 = vmatprep.mubr.msk.f32.mxu1 %vm8709_vm9, %v16754_v41  ;;  %8386 = vmatprep.subr.mxu0 %v7817_v51 }
 0x5da   :  { %8387 = vmatpush3.msra.mxu0 %v7801_v29  ;;  %v7810_v29 = vld [vmem:[%s15570_s7 + $0x1b8] sm:$0xff] }
 0x5db   :  { %8388 = vmatprep.subr.mxu0 %v7816_v10  ;;  %v7782_v10 = vld [vmem:[%s15570_s7 + $0xd8] sm:$0xff] }
 0x5dc   :  { %8585 = vmatmul.mubr.msk.f32.gmra.mxu1 %vm2833_vm2, %v6637_v62  ;;  %v7800_v62 = vld [vmem:[%s15570_s7 + $0x168] sm:$0xff] }
 0x5dd   :  { %8587 = vmatprep.mubr.msk.f32.mxu1 %vm8709_vm9, %v16754_v41  ;;  %8389 = vmatpush3.msra.mxu0 %v7800_v62  ;;  %v7794_v62 = vld [vmem:[%s15570_s7 + $0x138] sm:$0xff] }
 0x5de   :  { %8390 = vmatprep.subr.mxu0 %v7815_v53 }
 0x5e0   :  { %8588 = vmatmul.mubr.msk.f32.gmra.mxu1 %vm2833_vm2, %v6690_v17 }
 0x5e1   :  { %8590 = vmatprep.mubr.msk.f32.mxu1 %vm8709_vm9, %v16754_v41 }
 0x5e4   :  { %8591 = vmatmul.mubr.msk.f32.gmra.mxu1 %vm2833_vm2, %v6743_v6  ;;  %v7799_v6 = vld [vmem:[%s15570_s7 + $0x160] sm:$0xff] }
 0x5e5   :  { %8593 = vmatprep.mubr.msk.f32.mxu1 %vm8709_vm9, %v16754_v41  ;;  %8391 = vmatpush3.msra.mxu0 %v7799_v6 }
 0x5e8   :  { %8594 = vmatmul.mubr.msk.f32.gmra.mxu1 %vm2833_vm2, %v14678_v54 }
 0x5e9   :  { %8596 = vmatprep.mubr.msk.f32.mxu1 %vm8709_vm9, %v16754_v41 }
 0x5ec   :  { %8597 = vmatmul.mubr.msk.f32.gmra.mxu1 %vm2833_vm2, %v14691_v56 }
 0x60b   :  { %v8246_v25 = vpop.f32.mrf.mxu1 }
 0x60d   :  { %v8247_v12 = vpop.f32.mrf.mxu1 }
 0x60e   :  { %v8248_v40 = vadd.f32 %v8247_v12, %v8246_v25 }
 0x617   :  { %v8249_v33 = vpop.f32.mrf.mxu1 }
 0x619   :  { %v8250_v0 = vpop.f32.mrf.mxu1 }
 0x61a   :  { %v8251_v57 = vadd.f32 %v8250_v0, %v8249_v33 }
 0x61e   :  { %v8252_v26 = vpop.f32.mrf.mxu1 }
 0x620   :  { %v8253_v63 = vpop.f32.mrf.mxu1 }
 0x621   :  { %v14968_v46 = vadd.f32 %v8253_v63, %v8252_v26 }
 0x622   :  { %v8255_v50 = vpop.f32.mrf.mxu1 }
 0x624   :  { %v8256_v48 = vpop.f32.mrf.mxu1 }
 0x625   :  { %v14970_v18 = vadd.f32 %v8256_v48, %v8255_v50 }
 0x629   :  { %v8258_v54 = vpop.f32.mrf.mxu1 }
 0x62b   :  { %v8259_v38 = vpop.f32.mrf.mxu1 }
 0x62c   :  { %v14972_v24 = vadd.f32 %v8259_v38, %v8258_v54  ;;  %v7797_v54 = vld [vmem:[%s15570_s7 + $0x150] sm:$0xff]  ;;  %v7786_v38 = vld [vmem:[%s15570_s7 + $0xf8] sm:$0xff] }
 0x62d   :  { %8349 = vmatprep.subr.mxu1 %v7786_v38  ;;  %v7764_v38 = vld [vmem:[%s15570_s7 + $0x48] sm:$0xff] }
 0x62f   :  { %v8261_v45 = vpop.f32.mrf.mxu1 }
 0x631   :  { %v8262_v56 = vpop.f32.mrf.mxu1 }
 0x632   :  { %v14974_v47 = vadd.f32 %v8262_v56, %v8261_v45 }
 0x63a   :  { %v8264_v15 = vpop.f32.mrf.mxu1 }
 0x63c   :  { %v8265_v8 = vpop.f32.mrf.mxu1 }
 0x63d   :  { %v14976_v13 = vadd.f32 %v8265_v8, %v8264_v15  ;;  %v7770_v15 = vld [vmem:[%s15570_s7 + $0x78] sm:$0xff]  ;;  %v7785_v8 = vld [vmem:[%s15570_s7 + $0xf0] sm:$0xff] }
 0x63e   :  { %8350 = vmatpush3.msra.mxu1 %v7770_v15 }
 0x63f   :  { %8351 = vmatprep.subr.mxu1 %v7785_v8 }
 0x650   :  { %v8267_v61 = vpop.f32.mrf.mxu1 }
 0x652   :  { %v8268_v42 = vpop.f32.mrf.mxu1 }
 0x653   :  { %v14978_v58 = vadd.f32 %v8268_v42, %v8267_v61  ;;  %v7769_v61 = vld [vmem:[%s15570_s7 + $0x70] sm:$0xff] }
 0x654   :  { %8352 = vmatpush3.msra.mxu1 %v7769_v61  ;;  %v7807_v61 = vld [vmem:[%s15570_s7 + $0x1a0] sm:$0xff] }
 0x661   :  { %v8270_v22 = vpop.f32.mrf.mxu1 }
 0x663   :  { %v8271_v32 = vpop.f32.mrf.mxu1 }
 0x664   :  { %v14980_v5 = vadd.f32 %v8271_v32, %v8270_v22 }
 0x668   :  { %v8305_v60 = vpop.f32.mrf.mxu1 }
 0x66a   :  { %v8306_v55 = vpop.f32.mrf.mxu1 }
 0x66b   :  { %v8307_v20 = vadd.f32 %v8306_v55, %v8305_v60  ;;  %v7812_v60 = vld [vmem:[%s15570_s7 + $0x1c8] sm:$0xff] }
 0x66c   :  { %v8308_v1 = vpop.f32.mrf.mxu1  ;;  %v7784_v55 = vld [vmem:[%s15570_s7 + $0xe8] sm:$0xff] }
 0x66d   :  { %v7081_v28 = vadd.f32 %v8307_v20, %v8248_v40  ;;  %v7814_v40 = vld [vmem:[%s15570_s7 + $0x1d8] sm:$0xff]  ;;  %8353 = vmatprep.subr.mxu1 %v7784_v55 }
 0x66e   :  { %v8309_v16 = vpop.f32.mrf.mxu1  ;;  %8392 = vmatprep.subr.mxu0 %v7814_v40  ;;  %v7809_v40 = vld [vmem:[%s15570_s7 + $0x1b0] sm:$0xff] }
 0x66f   :  { %v8310_v27 = vadd.f32 %v8309_v16, %v8308_v1 }
 0x670   :  { %v8311_v2 = vpop.f32.mrf.mxu1 }
 0x671   :  { %v7086_v52 = vadd.f32 %v8310_v27, %v8251_v57  ;;  %v7798_v57 = vld [vmem:[%s15570_s7 + $0x158] sm:$0xff]  ;;  %v7783_v27 = vld [vmem:[%s15570_s7 + $0xe0] sm:$0xff] }
 0x672   :  { %v8312_v19 = vpop.f32.mrf.mxu1  ;;  %8393 = vmatpush3.msra.mxu0 %v7798_v57 }
 0x673   :  { %v8313_v39 = vadd.f32 %v8312_v19, %v8311_v2  ;;  %v7796_v2 = vld [vmem:[%s15570_s7 + $0x148] sm:$0xff] }
 0x674   :  { %v8314_v14 = vpop.f32.mrf.mxu1  ;;  %v7768_v19 = vld [vmem:[%s15570_s7 + $0x68] sm:$0xff] }
 0x675   :  { %v7091_v0 = vadd.f32 %v8313_v39, %v14968_v46  ;;  %v7813_v46 = vld [vmem:[%s15570_s7 + $0x1d0] sm:$0xff]  ;;  %8354 = vmatpush3.msra.mxu1 %v7768_v19 }
 0x676   :  { %v8315_v4 = vpop.f32.mrf.mxu1  ;;  %8394 = vmatprep.subr.mxu0 %v7813_v46  ;;  %8355 = vmatprep.subr.mxu1 %v7783_v27 }
 0x677   :  { %v8316_v26 = vadd.f32 %v8315_v4, %v8314_v14  ;;  %8395 = vmatpush3.msra.mxu0 %v7797_v54  ;;  %v7792_v54 = vld [vmem:[%s15570_s7 + $0x128] sm:$0xff] }
 0x678   :  { %v14982_v3 = vpop.f32.mrf.mxu1  ;;  %8396 = vmatprep.subr.mxu0 %v7812_v60 }
 0x679   :  { %v7096_v44 = vadd.f32 %v8316_v26, %v14970_v18  ;;  %v7767_v18 = vld [vmem:[%s15570_s7 + $0x60] sm:$0xff]  ;;  %8397 = vmatpush3.msra.mxu0 %v7796_v2 }
 0x67a   :  { %v14984_v31 = vpop.f32.mrf.mxu1  ;;  %8398 = vmatprep.subr.mxu0 %v7811_v59  ;;  %8356 = vmatpush3.msra.mxu1 %v7767_v18 }
 0x67b   :  { %v8319_v14 = vadd.f32 %v14984_v31, %v14982_v3  ;;  %v7795_v31 = vld [vmem:[%s15570_s7 + $0x140] sm:$0xff]  ;;  %8357 = vmatprep.subr.mxu1 %v7782_v10 }
 0x67c   :  { %v14986_v9 = vpop.f32.mrf.mxu1  ;;  %8399 = vmatpush3.msra.mxu0 %v7795_v31 }
 0x67d   :  { %8400 = vmatprep.subr.mxu0 %v7810_v29  ;;  %v7776_v29 = vld [vmem:[%s15570_s7 + $0xa8] sm:$0xff] }
 0x67e   :  { %v14988_v23 = vpop.f32.mrf.mxu1  ;;  %8401 = vmatpush3.msra.mxu0 %v7794_v62 }
 0x67f   :  { %v8322_v53 = vadd.f32 %v14988_v23, %v14986_v9  ;;  %v7793_v23 = vld [vmem:[%s15570_s7 + $0x130] sm:$0xff]  ;;  %8402 = vmatprep.subr.mxu0 %v7809_v40 }
 0x680   :  { %v14990_v37 = vpop.f32.mrf.mxu1  ;;  %8403 = vmatpush3.msra.mxu0 %v7793_v23 }
 0x681   :  { %v7106_v8 = vadd.f32 %v8322_v53, %v14974_v47  ;;  %v7763_v47 = vld [vmem:[%s15570_s7 + $0x40] sm:$0xff] }
 0x682   :  { %v14992_v35 = vpop.f32.mrf.mxu1 }
 0x684   :  { %v14994_v30 = vpop.f32.mrf.mxu1 }
 0x686   :  { %v14996_v49 = vpop.f32.mrf.mxu1 }
 0x688   :  { %v15004_v21 = vpop.f32.mrf.mxu1 }
 0x68a   :  { %v15006_v7 = vpop.f32.mrf.mxu1 }
 0x68b   :  { %v8331_v62 = vadd.f32 %v15006_v7, %v15004_v21  ;;  %v7759_v21 = vld [vmem:[%s15570_s7 + $0x20] sm:$0xff] }
 0x68c   :  { %v7190_v11 = vpop.f32.mrf.mxu1 }
 0x68d   :  { %v15008_v43 = vadd.f32 %v7190_v11, %v7081_v28 }
 0x68e   :  { %v8574_v36 = vpop.f32.mrf.mxu1 }
 0x68f   :  { %v7258_v25 = vmul.f32 %v15008_v43, %v15008_v43  ;;  %v7234_v63 = vsel %vm2833_vm2, %v15008_v43, 0.0 }
 0x690   :  { %v7195_v17 = vpop.f32.mrf.mxu1 }
 0x691   :  { %v15030_v12 = vadd.f32 %v7195_v17, %v7086_v52  ;;  %v7267_v42 = vsel %vm2833_vm2, %v7258_v25, 0.0  ;;  %v7766_v52 = vld [vmem:[%s15570_s7 + $0x58] sm:$0xff]  ;;  %v7101_v25 = vadd.f32 %v8319_v14, %v14972_v24  ;;  %v7765_v24 = vld [vmem:[%s15570_s7 + $0x50] sm:$0xff] }
 0x692   :  { %v8577_v33 = vpop.f32.mrf.mxu1  ;;  %8358 = vmatpush3.msra.mxu1 %v7766_v52  ;;  %v7790_v14 = vld [vmem:[%s15570_s7 + $0x118] sm:$0xff] }
 0x693   :  { %v7235_v50 = vsel %vm2833_vm2, %v15030_v12, 0.0  ;;  %v7259_v48 = vmul.f32 %v15030_v12, %v15030_v12  ;;  %v7781_v33 = vld [vmem:[%s15570_s7 + $0xd0] sm:$0xff] }
 0x694   :  { %v7236_v45 = vadd.f32 %v7235_v50, %v7234_v63  ;;  %v7200_v56 = vpop.f32.mrf.mxu1  ;;  %v7808_v63 = vld [vmem:[%s15570_s7 + $0x1a8] sm:$0xff]  ;;  %8359 = vmatprep.subr.mxu1 %v7781_v33 }
 0x695   :  { %v7268_v22 = vsel %vm2833_vm2, %v7259_v48, 0.0  ;;  %v15065_v32 = vadd.f32 %v7200_v56, %v7091_v0  ;;  %v7780_v50 = vld [vmem:[%s15570_s7 + $0xc8] sm:$0xff]  ;;  %8360 = vmatpush3.msra.mxu1 %v7765_v24  ;;  %8404 = vmatprep.subr.mxu0 %v7808_v63  ;;  %v7121_v24 = vadd.f32 %v8331_v62, %v14980_v5 }
 0x696   :  { %v7269_v1 = vadd.f32 %v7268_v22, %v7267_v42  ;;  %v8580_v16 = vpop.f32.mrf.mxu1  ;;  %v7779_v42 = vld [vmem:[%s15570_s7 + $0xc0] sm:$0xff]  ;;  %8361 = vmatprep.subr.mxu1 %v7780_v50  ;;  %8405 = vmatpush3.msra.mxu0 %v7792_v54 }
 0x697   :  { %v7237_v4 = vsel %vm2833_vm2, %v15065_v32, 0.0  ;;  %v7260_v20 = vmul.f32 %v15065_v32, %v15065_v32  ;;  %8362 = vmatpush3.msra.mxu1 %v7764_v38  ;;  %v7778_v16 = vld [vmem:[%s15570_s7 + $0xb8] sm:$0xff]  ;;  %8406 = vmatprep.subr.mxu0 %v7807_v61 }
 0x698   :  { %v7238_v28 = vadd.f32 %v7237_v4, %v7236_v45  ;;  %v7205_v3 = vpop.f32.mrf.mxu1  ;;  %v8325_v45 = vadd.f32 %v14992_v35, %v14990_v37  ;;  %v7791_v35 = vld [vmem:[%s15570_s7 + $0x120] sm:$0xff]  ;;  %8363 = vmatprep.subr.mxu1 %v7779_v42  ;;  %v7762_v4 = vld [vmem:[%s15570_s7 + $0x38] sm:$0xff] }
 0x699   :  { %v7270_v11 = vsel %vm2833_vm2, %v7260_v20, 0.0  ;;  %v15099_v51 = vadd.f32 %v7205_v3, %v7096_v44  ;;  %v8328_v20 = vadd.f32 %v14996_v49, %v14994_v30  ;;  %8407 = vmatpush3.msra.mxu0 %v7791_v35  ;;  %8364 = vmatpush3.msra.mxu1 %v7763_v47  ;;  %v7805_v3 = vld [vmem:[%s15570_s7 + $0x190] sm:$0xff] }
 0x69a   :  { %v7271_v39 = vadd.f32 %v7270_v11, %v7269_v1  ;;  %v8583_v36 = vpop.f32.mrf.mxu1  ;;  %v7806_v1 = vld [vmem:[%s15570_s7 + $0x198] sm:$0xff]  ;;  %v7111_v27 = vadd.f32 %v8325_v45, %v14976_v13  ;;  %8365 = vmatprep.subr.mxu1 %v7778_v16  ;;  %v7761_v49 = vld [vmem:[%s15570_s7 + $0x30] sm:$0xff] }
 0x69b   :  { %v7239_v17 = vsel %vm2833_vm2, %v15099_v51, 0.0  ;;  %v7261_v6 = vmul.f32 %v15099_v51, %v15099_v51  ;;  %8408 = vmatprep.subr.mxu0 %v7806_v1  ;;  %v7789_v13 = vld [vmem:[%s15570_s7 + $0x110] sm:$0xff]  ;;  %8366 = vmatpush3.msra.mxu1 %v7762_v4  ;;  %v7760_v36 = vld [vmem:[%s15570_s7 + $0x28] sm:$0xff] }
 0x69c   :  { %v7240_v0 = vadd.f32 %v7239_v17, %v7238_v28  ;;  %v7210_v9 = vpop.f32.mrf.mxu1  ;;  %v7777_v28 = vld [vmem:[%s15570_s7 + $0xb0] sm:$0xff]  ;;  %8409 = vmatpush3.msra.mxu0 %v7790_v14  ;;  %v7116_v17 = vadd.f32 %v8328_v20, %v14978_v58 }
 0x69d   :  { %v7272_v57 = vsel %vm2833_vm2, %v7261_v6, 0.0  ;;  %v15133_v26 = vadd.f32 %v7210_v9, %v7101_v25  ;;  %8367 = vmatprep.subr.mxu1 %v7777_v28  ;;  %8410 = vmatprep.subr.mxu0 %v7805_v3  ;;  %v7775_v6 = vld [vmem:[%s15570_s7 + $0xa0] sm:$0xff] }
 0x69e   :  { %v7273_v48 = vadd.f32 %v7272_v57, %v7271_v39  ;;  %v8586_v46 = vpop.f32.mrf.mxu1  ;;  %8368 = vmatpush3.msra.mxu1 %v7761_v49  ;;  %8411 = vmatpush3.msra.mxu0 %v7789_v13  ;;  %v16773_v49 = vld [vmem:[#allocation36_spill] sm:$0xff] }
 0x69f   :  { %v7241_v56 = vsel %vm2833_vm2, %v15133_v26, 0.0  ;;  %v7262_v15 = vmul.f32 %v15133_v26, %v15133_v26  ;;  %8369 = vmatprep.subr.mxu1 %v7776_v29 }
 0x6a0   :  { %v7242_v22 = vadd.f32 %v7241_v56, %v7240_v0  ;;  %v7215_v37 = vpop.f32.mrf.mxu1  ;;  %8370 = vmatpush3.msra.mxu1 %v7760_v36 }
 0x6a1   :  { %v7274_v60 = vsel %vm2833_vm2, %v7262_v15, 0.0  ;;  %v15167_v55 = vadd.f32 %v7215_v37, %v7106_v8  ;;  %8371 = vmatprep.subr.mxu1 %v7775_v6 }
 0x6a2   :  { %v7275_v2 = vadd.f32 %v7274_v60, %v7273_v48  ;;  %v8589_v19 = vpop.f32.mrf.mxu1  ;;  %8372 = vmatpush3.msra.mxu1 %v7759_v21 }
 0x6a3   :  { %v7243_v44 = vsel %vm2833_vm2, %v15167_v55, 0.0  ;;  %v7263_v59 = vmul.f32 %v15167_v55, %v15167_v55 }
 0x6a4   :  { %v7244_v31 = vadd.f32 %v7243_v44, %v7242_v22  ;;  %v7220_v30 = vpop.f32.mrf.mxu1 }
 0x6a5   :  { %v7276_v18 = vsel %vm2833_vm2, %v7263_v59, 0.0  ;;  %v15201_v11 = vadd.f32 %v7220_v30, %v7111_v27  ;;  %v5146_v27 = vld [vmem:[%s15571_s5] sm:$0x1] }
 0x6a6   :  { %v7277_v10 = vadd.f32 %v7276_v18, %v7275_v2  ;;  %v8592_v39 = vpop.f32.mrf.mxu1 }
 0x6a7   :  { %v7245_v52 = vsel %vm2833_vm2, %v15201_v11, 0.0  ;;  %v7264_v53 = vmul.f32 %v15201_v11, %v15201_v11 }
 0x6a8   :  { %v7246_v25 = vadd.f32 %v7245_v52, %v7244_v31  ;;  %v7225_v40 = vpop.f32.mrf.mxu1  ;;  %v5147_v31 = vld [vmem:[%s15572_s6] sm:$0x1] }
 0x6a9   :  { %v7278_v7 = vsel %vm2833_vm2, %v7264_v53, 0.0  ;;  %v7226_v33 = vadd.f32 %v7225_v40, %v7116_v17 }
 0x6aa   :  { %v7279_v0 = vadd.f32 %v7278_v7, %v7277_v10  ;;  %v8595_v9 = vpop.f32.mrf.mxu1 }
 0x6ab   :  { %v7247_v58 = vsel %vm2833_vm2, %v7226_v33, 0.0  ;;  %v7265_v23 = vmul.f32 %v7226_v33, %v7226_v33 }
 0x6ac   :  { %v7248_v57 = vadd.f32 %v7247_v58, %v7246_v25  ;;  %v7230_v63 = vpop.f32.mrf.mxu1 }
 0x6ad   :  { %v7280_v50 = vsel %vm2833_vm2, %v7265_v23, 0.0  ;;  %v7231_v48 = vadd.f32 %v7230_v63, %v7121_v24 }
 0x6ae   :  { %v7281_v46 = vadd.f32 %v7280_v50, %v7279_v0  ;;  %v8598_v54 = vpop.f32.mrf.mxu1 }
 0x6af   :  { %v7249_v38 = vsel %vm2833_vm2, %v7231_v48, 0.0  ;;  %v7266_v45 = vmul.f32 %v7231_v48, %v7231_v48 }
 0x6b0   :  { %v7250_v56 = vadd.f32 %v7249_v38, %v7248_v57 }
 0x6b1   :  { %v7282_v15 = vsel %vm2833_vm2, %v7266_v45, 0.0 }
 0x6b2   :  { %v7251_v8 = vrot.slane %v7250_v56, 4  ;;  %v7283_v61 = vadd.f32 %v7282_v15, %v7281_v46 }
 0x6b4   :  { %v7252_v42 = vadd.f32 %v7251_v8, %v7250_v56  ;;  %v7284_v22 = vrot.slane %v7283_v61, 4 }
 0x6b6   :  { %v7253_v37 = vrot.slane %v7252_v42, 2  ;;  %v7285_v5 = vadd.f32 %v7284_v22, %v7283_v61 }
 0x6b8   :  { %v7254_v35 = vadd.f32 %v7253_v37, %v7252_v42  ;;  %v7286_v47 = vrot.slane %v7285_v5, 2 }
 0x6ba   :  { %v7255_v60 = vrot.slane %v7254_v35, 1  ;;  %v7287_v1 = vadd.f32 %v7286_v47, %v7285_v5 }
 0x6bc   :  { %v7256_v16 = vadd.f32 %v7255_v60, %v7254_v35  ;;  %v7288_v2 = vrot.slane %v7287_v1, 1 }
 0x6be   :  { %v7257_v19 = vmul.f32 0.013888889, %v7256_v16  ;;  %v7289_v14 = vadd.f32 %v7288_v2, %v7287_v1 }
 0x6c0   :  { %v7290_v4 = vmul.f32 0.013888889, %v7289_v14  ;;  %v7291_v20 = vmul.f32 %v7257_v19, %v7257_v19 }
 0x6c2   :  { %v7292_v44 = vsub.f32 %v7290_v4, %v7291_v20 }
 0x6c4   :  { %v7293_v59 = vadd.f32 1e-05, %v7292_v44 }
 0x6c6   :  { %8644 = vrsqrt.f32 %v7293_v59 }
 0x6d3   :  { %v8645_v28 = vpop.eup %8644 }
 0x6d4   :  { %v7295_v3 = vmul.f32 %v8645_v28, %v5146_v27 }
 0x6d6   :  { %v7296_v30 = vmul.f32 %v7295_v3, %v7257_v19  ;;  %v7302_v13 = vrot.slane %v7295_v3, %v16773_v49 }
 0x6d8   :  { %v7297_v18 = vsub.f32 %v5147_v31, %v7296_v30  ;;  %v7311_v29 = vmul.f32 %v7302_v13, %v7226_v33  ;;  %v7312_v10 = vmul.f32 %v7302_v13, %v7231_v48  ;;  %v7304_v39 = vmul.f32 %v7302_v13, %v15008_v43 }
 0x6d9   :  { %v7305_v36 = vmul.f32 %v7302_v13, %v15030_v12  ;;  %v7306_v62 = vmul.f32 %v7302_v13, %v15065_v32  ;;  %v7308_v52 = vmul.f32 %v7302_v13, %v15133_v26  ;;  %v7309_v53 = vmul.f32 %v7302_v13, %v15167_v55 }
 0x6da   :  { %v7317_v17 = vrot.slane %v7297_v18, %v16773_v49  ;;  %v7310_v6 = vmul.f32 %v7302_v13, %v15201_v11  ;;  %v7307_v25 = vmul.f32 %v7302_v13, %v15099_v51 }
 0x6dc   :  { %v7326_v40 = vadd.f32 %v7317_v17, %v7311_v29  ;;  %v7327_v21 = vadd.f32 %v7317_v17, %v7312_v10  ;;  %v7319_v7 = vadd.f32 %v7317_v17, %v7304_v39  ;;  %v7320_v33 = vadd.f32 %v7317_v17, %v7305_v36 }
 0x6dd   :  { %v7321_v0 = vadd.f32 %v7317_v17, %v7306_v62  ;;  %v7323_v43 = vadd.f32 %v7317_v17, %v7308_v52  ;;  %v7324_v9 = vadd.f32 %v7317_v17, %v7309_v53  ;;  %v7325_v12 = vadd.f32 %v7317_v17, %v7310_v6 }
 0x6de   :  { %v15243_v58 = vmax.f32 %v7326_v40, 0.0  ;;  %v7336_v32 = vmax.f32 %v7327_v21, 0.0  ;;  %v15245_v26 = vmax.f32 %v7319_v7, 0.0  ;;  %v7329_v55 = vmax.f32 %v7320_v33, 0.0  ;;  %v7774_v7 = vld [vmem:[%s15570_s7 + $0x98] sm:$0xff] }
 0x6df   :  { %v15247_v23 = vmax.f32 %v7321_v0, 0.0  ;;  %v7332_v45 = vmax.f32 %v7323_v43, 0.0  ;;  %v15274_v61 = vmax.f32 %v7324_v9, 0.0  ;;  %v7334_v5 = vmax.f32 %v7325_v12, 0.0  ;;  %v7758_v33 = vld [vmem:[%s15570_s7 + $0x18] sm:$0xff]  ;;  %8373 = vmatprep.subr.mxu1 %v7774_v7 }
 0x6e0   :  { %v7465_v11 = vcombine.high %v15243_v58, %v15243_v58  ;;  %v7482_v51 = vcombine.high %v7336_v32, %v7336_v32  ;;  %v7489_v24 = vrot.slane %v7336_v32, %v16447_v34  ;;  %v15254_v57 = vrot.slane %v15245_v26, %v16447_v34  ;;  %8374 = vmatpush3.msra.mxu1 %v7758_v33 }
 0x6e1   :  { %v7363_v63 = vcombine.high %v7329_v55, %v7329_v55  ;;  %v15257_v50 = vrot.slane %v7329_v55, %v16447_v34  ;;  %v15261_v48 = vrot.slane %v15247_v23, %v16447_v34  ;;  %v7414_v44 = vcombine.high %v7332_v45, %v7332_v45 }
 0x6e2   :  { %v15264_v46 = vrot.slane %v7465_v11, %v16447_v34  ;;  %v7496_v54 = vrot.slane %v7482_v51, %v16447_v34  ;;  %v7497_v38 = vcombine.high %v7489_v24, %v7489_v24  ;;  %v7361_v56 = vcombine.high %v15254_v57, %v15254_v57 }
 0x6e3   :  { %v15270_v15 = vrot.slane %v7363_v63, %v16447_v34  ;;  %v7395_v8 = vcombine.high %v15261_v48, %v15261_v48  ;;  %v15286_v47 = vsel %vm4177_vm3, %v7489_v24, -inf  ;;  %v7539_v1 = vsel %vm4177_vm3, %v15257_v50, -inf }
 0x6e4   :  { %v7498_v42 = vcombine.high %v7496_v54, %v7496_v54  ;;  %v15278_v22 = vsel %vm4177_vm3, %v15264_v46, -inf  ;;  %v15281_v37 = vsel %vm4177_vm3, %v7497_v38, -inf  ;;  %v7538_v60 = vsel %vm4177_vm3, %v7361_v56, -inf }
 0x6e5   :  { %v7582_v35 = vmax.f32 %v15278_v22, %v15281_v37  ;;  %v7540_v2 = vmax.f32 %v7538_v60, %v7539_v1  ;;  %v7544_v19 = vsel %vm4177_vm3, %v15270_v15, -inf  ;;  %v7545_v14 = vsel %vm4177_vm3, %v7395_v8, -inf }
 0x6e6   :  { %v15292_v16 = vsel %vm4177_vm3, %v7498_v42, -inf  ;;  %v7546_v20 = vmax.f32 %v7544_v19, %v7545_v14  ;;  %v7431_v59 = vcombine.high %v15274_v61, %v15274_v61  ;;  %v7448_v28 = vcombine.high %v7334_v5, %v7334_v5 }
 0x6e7   :  { %v7588_v4 = vmax.f32 %v15286_v47, %v15292_v16  ;;  %v7596_v27 = vsel %vm4177_vm3, %v7540_v2, -inf  ;;  %v15303_v3 = vrot.slane %v7334_v5, %v16447_v34  ;;  %v7322_v31 = vadd.f32 %v7317_v17, %v7307_v25 }
 0x6e8   :  { %v7597_v30 = vrot.slane %v7596_v27, 4  ;;  %v7610_v49 = vsel %vm4177_vm3, %v7546_v20, -inf  ;;  %v15307_v13 = vrot.slane %v7414_v44, %v16447_v34  ;;  %v15310_v29 = vrot.slane %v7431_v59, %v16447_v34 }
 0x6e9   :  { %v7611_v18 = vrot.slane %v7610_v49, 4  ;;  %v7462_v10 = vrot.slane %v7448_v28, %v16447_v34  ;;  %v7346_v52 = vcombine.high %v15245_v26, %v15245_v26  ;;  %v7571_v17 = vsel %vm4177_vm3, %v15303_v3, -inf  ;;  %v7756_v26 = vld [vmem:[%s15570_s7 + $0x8] sm:$0xff] }
 0x6ea   :  { %v7598_v39 = vmax.f32 %v7596_v27, %v7597_v30  ;;  %v7430_v36 = vcombine.high %v15307_v13, %v15307_v13  ;;  %v7566_v40 = vsel %vm4177_vm3, %v15310_v29, -inf  ;;  %v15322_v21 = vmax.f32 %v7322_v31, 0.0 }
 0x6eb   :  { %v7612_v62 = vmax.f32 %v7610_v49, %v7611_v18  ;;  %v7464_v53 = vcombine.high %v7462_v10, %v7462_v10  ;;  %v7380_v12 = vcombine.high %v15247_v23, %v15247_v23  ;;  %v15334_v32 = vsel %vm4177_vm3, %v7496_v54, -inf }
 0x6ec   :  { %v7599_v6 = vrot.slane %v7598_v39, 2  ;;  %v7565_v25 = vsel %vm4177_vm3, %v7430_v36, -inf  ;;  %v15338_v51 = vrot.slane %v15322_v21, %v16447_v34  ;;  %v15345_v56 = vrot.slane %v7332_v45, %v16447_v34 }
 0x6ed   :  { %v7613_v0 = vrot.slane %v7612_v62, 2  ;;  %v7567_v43 = vmax.f32 %v7565_v25, %v7566_v40  ;;  %v7572_v9 = vsel %vm4177_vm3, %v7464_v53, -inf  ;;  %v15342_v38 = vrot.slane %v7380_v12, %v16447_v34  ;;  %v7773_v53 = vld [vmem:[%s15570_s7 + $0x90] sm:$0xff] }
 0x6ee   :  { %v7600_v55 = vmax.f32 %v7598_v39, %v7599_v6  ;;  %v7573_v11 = vmax.f32 %v7571_v17, %v7572_v9  ;;  %v7412_v42 = vcombine.high %v15338_v51, %v15338_v51  ;;  %v7379_v5 = vcombine.high %v15270_v15, %v15270_v15  ;;  %v7757_v17 = vld [vmem:[%s15570_s7 + $0x10] sm:$0xff]  ;;  %8375 = vmatprep.subr.mxu1 %v7773_v53 }
 0x6ef   :  { %v7614_v24 = vmax.f32 %v7612_v62, %v7613_v0  ;;  %v7659_v63 = vsel %vm4177_vm3, %v7567_v43, -inf  ;;  %v7396_v2 = vcombine.high %v15342_v38, %v15342_v38  ;;  %v7550_v45 = vsel %vm4177_vm3, %v15261_v48, -inf  ;;  %8376 = vmatpush3.msra.mxu1 %v7757_v17 }
 0x6f0   :  { %v7601_v23 = vrot.slane %v7600_v55, 1  ;;  %v7660_v8 = vrot.slane %v7659_v63, 4  ;;  %v7673_v54 = vsel %vm4177_vm3, %v7573_v11, -inf  ;;  %v7556_v20 = vsel %vm4177_vm3, %v7412_v42, -inf }
 0x6f1   :  { %v7615_v60 = vrot.slane %v7614_v24, 1  ;;  %v7674_v1 = vrot.slane %v7673_v54, 4  ;;  %v7551_v27 = vsel %vm4177_vm3, %v7396_v2, -inf  ;;  %v7557_v28 = vsel %vm4177_vm3, %v15345_v56, -inf }
 0x6f2   :  { %v7602_v19 = vmax.f32 %v7600_v55, %v7601_v23  ;;  %v7661_v14 = vmax.f32 %v7659_v63, %v7660_v8  ;;  %v7447_v31 = vcombine.high %v15310_v29, %v15310_v29  ;;  %v7552_v49 = vmax.f32 %v7550_v45, %v7551_v27  ;;  %v7804_v29 = vld [vmem:[%s15570_s7 + $0x188] sm:$0xff] }
 0x6f3   :  { %v7616_v44 = vmax.f32 %v7614_v24, %v7615_v60  ;;  %v7675_v59 = vmax.f32 %v7673_v54, %v7674_v1  ;;  %v7558_v18 = vmax.f32 %v7556_v20, %v7557_v28  ;;  %v15364_v48 = vrot.slane %v15243_v58, %v16447_v34  ;;  %8412 = vmatprep.subr.mxu0 %v7804_v29  ;;  %v7772_v60 = vld [vmem:[%s15570_s7 + $0x88] sm:$0xff] }
 0x6f4   :  { %v7662_v30 = vrot.slane %v7661_v14, 2  ;;  %v7481_v62 = vcombine.high %v15264_v46, %v15264_v46  ;;  %v7624_v25 = vsel %vm4177_vm3, %v7552_v49, -inf  ;;  %v7577_v40 = vsel %vm4177_vm3, %v7462_v10, -inf  ;;  %v7788_v46 = vld [vmem:[%s15570_s7 + $0x108] sm:$0xff]  ;;  %8377 = vmatprep.subr.mxu1 %v7772_v60 }
 0x6f5   :  { %v8627_v39 = vpack.i.bf16 %v7602_v19, %v7616_v44  ;;  %v7676_v36 = vrot.slane %v7675_v59, 2  ;;  %v7638_v58 = vsel %vm4177_vm3, %v7558_v18, -inf  ;;  %v7625_v33 = vrot.slane %v7624_v25, 4  ;;  %8413 = vmatpush3.msra.mxu0 %v7788_v46  ;;  %8378 = vmatpush3.msra.mxu1 %v7756_v26 }
 0x6f6   :  { %v7663_v6 = vmax.f32 %v7661_v14, %v7662_v30  ;;  %v7639_v0 = vrot.slane %v7638_v58, 4  ;;  %v7480_v43 = vcombine.high %v15364_v48, %v15364_v48  ;;  %v7583_v12 = vsel %vm4177_vm3, %v7481_v62, -inf }
 0x6f7   :  { %8628 = vrot.lane.b32.xlu1 %v8627_v39, %s8708_s23  ;;  %v7677_v7 = vmax.f32 %v7675_v59, %v7676_v36  ;;  %v15389_v10 = vsel %vm4177_vm3, %v15254_v57, -inf  ;;  %v15395_v55 = vrot.slane %v7346_v52, %v16447_v34  ;;  %v7626_v24 = vmax.f32 %v7624_v25, %v7625_v33  ;;  %v7755_v33 = vld [vmem:[%s15570_s7] sm:$0xff] }
 0x6f8   :  { %v7664_v9 = vrot.slane %v7663_v6, 1  ;;  %v7640_v63 = vmax.f32 %v7638_v58, %v7639_v0  ;;  %v7578_v23 = vsel %vm4177_vm3, %v7480_v43, -inf  ;;  %v7585_v42 = vmax.f32 %v7583_v12, %v15334_v32  ;;  %v7787_v12 = vld [vmem:[%s15570_s7 + $0x100] sm:$0xff] }
 0x6f9   :  { %v7678_v11 = vrot.slane %v7677_v7, 1  ;;  %v7579_v54 = vmax.f32 %v7577_v40, %v7578_v23  ;;  %v7362_v57 = vcombine.high %v15395_v55, %v15395_v55  ;;  %v7627_v1 = vrot.slane %v7626_v24, 2 }
 0x6fa   :  { %v7665_v8 = vmax.f32 %v7663_v6, %v7664_v9  ;;  %v7641_v2 = vrot.slane %v7640_v63, 2  ;;  %v7438_v19 = vrot.slane %v15274_v61, %v16447_v34  ;;  %v7701_v14 = vsel %vm4177_vm3, %v7585_v42, -inf  ;;  %v7803_v9 = vld [vmem:[%s15570_s7 + $0x180] sm:$0xff] }
 0x6fb   :  { %v7679_v52 = vmax.f32 %v7677_v7, %v7678_v11  ;;  %v7687_v32 = vsel %vm4177_vm3, %v7579_v54, -inf  ;;  %v15412_v45 = vsel %vm4177_vm3, %v7362_v57, -inf  ;;  %v15416_v20 = vsel %vm4177_vm3, %v15307_v13, -inf  ;;  %8414 = vmatprep.subr.mxu0 %v7803_v9 }
 0x6fc   :  { %v7628_v59 = vmax.f32 %v7626_v24, %v7627_v1  ;;  %v7642_v27 = vmax.f32 %v7640_v63, %v7641_v2  ;;  %v7688_v28 = vrot.slane %v7687_v32, 4  ;;  %v7702_v30 = vrot.slane %v7701_v14, 4  ;;  %8415 = vmatpush3.msra.mxu0 %v7787_v12 }
 0x6fd   :  { %v8622_v44 = vpack.i.bf16 %v7665_v8, %v7679_v52  ;;  %v7537_v61 = vmax.f32 %v15389_v10, %v15412_v45  ;;  %v7446_v49 = vcombine.high %v7438_v19, %v7438_v19  ;;  %v15421_v18 = vsel %vm4177_vm3, %v7438_v19, -inf }
 0x6fe   :  { %v7629_v39 = vrot.slane %v7628_v59, 1  ;;  %v7643_v36 = vrot.slane %v7642_v27, 1  ;;  %v7689_v62 = vmax.f32 %v7687_v32, %v7688_v28  ;;  %v15425_v13 = vsel %vm4177_vm3, %v7447_v31, -inf  ;;  %v7771_v31 = vld [vmem:[%s15570_s7 + $0x80] sm:$0xff] }
 0x6ff   :  { %8623 = vrot.lane.b32.xlu0 %v8622_v44, %s8708_s23  ;;  %v7703_v53 = vmax.f32 %v7701_v14, %v7702_v30  ;;  %v15428_v29 = vsel %vm4177_vm3, %v7446_v49, -inf  ;;  %v7570_v17 = vmax.f32 %v15421_v18, %v15425_v13  ;;  %v7463_v6 = vcombine.high %v15303_v3, %v15303_v3  ;;  %8379 = vmatprep.subr.mxu1 %v7771_v31 }
 0x700   :  { %v7630_v25 = vmax.f32 %v7628_v59, %v7629_v39  ;;  %v7644_v58 = vmax.f32 %v7642_v27, %v7643_v36  ;;  %v7690_v40 = vrot.slane %v7689_v62, 2  ;;  %v7564_v7 = vmax.f32 %v15416_v20, %v15428_v29  ;;  %8380 = vmatpush3.msra.mxu1 %v7755_v33 }
 0x701   :  { %v7704_v46 = vrot.slane %v7703_v53, 2  ;;  %v15446_v3 = vsel %vm4177_vm3, %v7379_v5, -inf  ;;  %v15457_v15 = vsel %vm4177_vm3, %v15342_v38, -inf  ;;  %v7574_v5 = vsel %vm4177_vm3, %v7463_v6, -inf  ;;  %8599 = vmatprep.subr.mxu1 %v16754_v41 }
 0x702   :  { %v8637_v0 = vpack.i.bf16 %v7630_v25, %v7644_v58  ;;  %v7691_v43 = vmax.f32 %v7689_v62, %v7690_v40  ;;  %v7708_v63 = vsel %vm4177_vm3, %v7588_v4, -inf  ;;  %v7549_v8 = vmax.f32 %v15446_v3, %v15457_v15 }
 0x703   :  { %v7705_v11 = vmax.f32 %v7703_v53, %v7704_v46  ;;  %v7378_v54 = vcombine.high %v15257_v50, %v15257_v50  ;;  %v7575_v38 = vsel %vm4177_vm3, %v15364_v48, -inf  ;;  %v7397_v42 = vcombine.high %v15322_v21, %v15322_v21 }
 0x704   :  { %8638 = vrot.lane.b32.xlu1 %v8637_v0, %s8708_s23  ;;  %v7692_v24 = vrot.slane %v7691_v43, 1  ;;  %v7576_v26 = vmax.f32 %v7574_v5, %v7575_v38  ;;  %v7709_v47 = vrot.slane %v7708_v63, 4  ;;  %v7429_v16 = vcombine.high %v15345_v56, %v15345_v56 }
 0x705   :  { %v7706_v23 = vrot.slane %v7705_v11, 1  ;;  %v7541_v52 = vsel %vm4177_vm3, %v15395_v55, -inf  ;;  %v7542_v50 = vsel %vm4177_vm3, %v7378_v54, -inf  ;;  %v7411_v48 = vrot.slane %v7397_v42, %v16447_v34 }
 0x706   :  { %v7693_v57 = vmax.f32 %v7691_v43, %v7692_v24  ;;  %v7710_v1 = vmax.f32 %v7708_v63, %v7709_v47  ;;  %v7543_v2 = vmax.f32 %v7541_v52, %v7542_v50  ;;  %v7560_v21 = vsel %vm4177_vm3, %v7429_v16, -inf }
 0x707   :  { %v7707_v60 = vmax.f32 %v7705_v11, %v7706_v23  ;;  %v7413_v19 = vcombine.high %v7411_v48, %v7411_v48  ;;  %v7559_v32 = vsel %vm4177_vm3, %v7411_v48, -inf  ;;  %v7553_v56 = vsel %vm4177_vm3, %v15338_v51, -inf }
 0x708   :  { %v7561_v55 = vmax.f32 %v7559_v32, %v7560_v21  ;;  %v7711_v44 = vrot.slane %v7710_v1, 2  ;;  %v7652_v51 = vsel %vm4177_vm3, %v7564_v7, -inf  ;;  %v7666_v25 = vsel %vm4177_vm3, %v7570_v17, -inf }
 0x709   :  { %v8632_v4 = vpack.i.bf16 %v7693_v57, %v7707_v60  ;;  %v7554_v14 = vsel %vm4177_vm3, %v7413_v19, -inf  ;;  %v7589_v58 = vsel %vm4177_vm3, %v7537_v61, -inf  ;;  %v7653_v40 = vrot.slane %v7652_v51, 4 }
 0x70a   :  { %v7555_v20 = vmax.f32 %v7553_v56, %v7554_v14  ;;  %v7645_v59 = vsel %vm4177_vm3, %v7561_v55, -inf  ;;  %v7712_v27 = vmax.f32 %v7710_v1, %v7711_v44  ;;  %v7667_v46 = vrot.slane %v7666_v25, 4 }
 0x70b   :  { %8633 = vrot.lane.b32.xlu0 %v8632_v4, %s8708_s23  ;;  %v7646_v28 = vrot.slane %v7645_v59, 4  ;;  %v7603_v31 = vsel %vm4177_vm3, %v7543_v2, -inf  ;;  %v7590_v33 = vrot.slane %v7589_v58, 4  ;;  %v7654_v43 = vmax.f32 %v7652_v51, %v7653_v40  ;;  %v7825_v51 = vld [vmem:[%s15570_s7 + $0x230] sm:$0xff] }
 0x70c   :  { %v7713_v34 = vrot.slane %v7712_v27, 1  ;;  %v7604_v0 = vrot.slane %v7603_v31, 4  ;;  %v7668_v3 = vmax.f32 %v7666_v25, %v7667_v46  ;;  %v7694_v18 = vsel %vm4177_vm3, %v7582_v35, -inf  ;;  %v7824_v46 = vld [vmem:[%s15570_s7 + $0x228] sm:$0xff] }
 0x70d   :  { %v7647_v30 = vmax.f32 %v7645_v59, %v7646_v28  ;;  %v7591_v9 = vmax.f32 %v7589_v58, %v7590_v33  ;;  %v7655_v12 = vrot.slane %v7654_v43, 2  ;;  %v7680_v10 = vsel %vm4177_vm3, %v7576_v26, -inf }
 0x70e   :  { %v7714_v39 = vmax.f32 %v7712_v27, %v7713_v34  ;;  %v7605_v7 = vmax.f32 %v7603_v31, %v7604_v0  ;;  %v7669_v11 = vrot.slane %v7668_v3, 2  ;;  %v7695_v61 = vrot.slane %v7694_v18, 4 }
 0x70f   :  { %v7648_v49 = vrot.slane %v7647_v30, 2  ;;  %v7592_v45 = vrot.slane %v7591_v9, 2  ;;  %v7656_v17 = vmax.f32 %v7654_v43, %v7655_v12  ;;  %v7617_v15 = vsel %vm4177_vm3, %v7549_v8, -inf  ;;  %v7823_v43 = vld [vmem:[%s15570_s7 + $0x220] sm:$0xff] }
 0x710   :  { %v7852_v53 = vrot.slane %v7714_v39, 7  ;;  %v7606_v13 = vrot.slane %v7605_v7, 2  ;;  %v7670_v24 = vmax.f32 %v7668_v3, %v7669_v11  ;;  %v7681_v5 = vrot.slane %v7680_v10, 4 }
 0x711   :  { %v7649_v36 = vmax.f32 %v7647_v30, %v7648_v49  ;;  %v7631_v63 = vsel %vm4177_vm3, %v7555_v20, -inf  ;;  %v7593_v23 = vmax.f32 %v7591_v9, %v7592_v45  ;;  %v7618_v54 = vrot.slane %v7617_v15, 4  ;;  %v7822_v45 = vld [vmem:[%s15570_s7 + $0x218] sm:$0xff] }
 0x712   :  { %v7696_v38 = vmax.f32 %v7694_v18, %v7695_v61  ;;  %v7607_v42 = vmax.f32 %v7605_v7, %v7606_v13  ;;  %v7657_v57 = vrot.slane %v7656_v17, 1  ;;  %v7671_v22 = vrot.slane %v7670_v24, 1 }
 0x713   :  { %v7650_v62 = vrot.slane %v7649_v36, 1  ;;  %v7682_v37 = vmax.f32 %v7680_v10, %v7681_v5  ;;  %v7632_v35 = vrot.slane %v7631_v63, 4  ;;  %v7594_v26 = vrot.slane %v7593_v23, 1 }
 0x714   :  { %v7619_v47 = vmax.f32 %v7617_v15, %v7618_v54  ;;  %v7697_v16 = vrot.slane %v7696_v38, 2  ;;  %v7608_v4 = vrot.slane %v7607_v42, 1  ;;  %v7658_v52 = vmax.f32 %v7656_v17, %v7657_v57  ;;  %v7821_v15 = vld [vmem:[%s15570_s7 + $0x210] sm:$0xff] }
 0x715   :  { %v7651_v29 = vmax.f32 %v7649_v36, %v7650_v62  ;;  %v7672_v50 = vmax.f32 %v7670_v24, %v7671_v22  ;;  %v7683_v8 = vrot.slane %v7682_v37, 2  ;;  %v7633_v1 = vmax.f32 %v7631_v63, %v7632_v35  ;;  %v7819_v22 = vld [vmem:[%s15570_s7 + $0x200] sm:$0xff] }
 0x716   :  { %v7595_v56 = vmax.f32 %v7593_v23, %v7594_v26  ;;  %v7609_v55 = vmax.f32 %v7607_v42, %v7608_v4  ;;  %v7620_v59 = vrot.slane %v7619_v47, 2  ;;  %v7698_v49 = vmax.f32 %v7696_v38, %v7697_v16  ;;  %v7820_v38 = vld [vmem:[%s15570_s7 + $0x208] sm:$0xff] }
 0x717   :  { %v15487_v6 = vsel %vm5220_vm4, %v7852_v53, %v7651_v29  ;;  %v7634_v28 = vrot.slane %v7633_v1, 2  ;;  %v7684_v30 = vmax.f32 %v7682_v37, %v7683_v8  ;;  %v7826_v53 = vld [vmem:[%s15570_s7 + $0x238] sm:$0xff]  ;;  %v16_v37 = vstv %s15573_s10 }
 0x718   :  { %v7621_v29 = vmax.f32 %v7619_v47, %v7620_v59  ;;  %v7699_v40 = vrot.slane %v7698_v49, 1  ;;  %17 = vst [vmem:[#allocation2] sm:$0x1] %v16_v37  ;;  %v8130_v47 = vld [vmem:[%s15574_s8] ss:$0 sm:$0xff] }
 0x719   :  { %v7635_v25 = vmax.f32 %v7633_v1, %v7634_v28  ;;  %v7685_v58 = vrot.slane %v7684_v30, 1  ;;  %v8132_v1 = vld [vmem:[%s15575_s9] ss:$0 sm:$0xff] }
 0x71a   :  { %v7622_v33 = vrot.slane %v7621_v29, 1  ;;  %v7700_v9 = vmax.f32 %v7698_v49, %v7699_v40 }
 0x71b   :  { %v7636_v0 = vrot.slane %v7635_v25, 1  ;;  %v7686_v3 = vmax.f32 %v7684_v30, %v7685_v58 }
 0x71c   :  { %v7623_v61 = vmax.f32 %v7621_v29, %v7622_v33 }
 0x71d   :  { %v7637_v24 = vmax.f32 %v7635_v25, %v7636_v0 }
 0x769   :  { %v8629_v60 = vpop.permute.xlu1 %8628 }
 0x76a   :  { %v8631_v2 = vunpack.i.h.bf16 %v8629_v60  ;;  %v8630_v21 = vunpack.i.l.bf16 %v8629_v60 }
 0x76c   :  { %v7747_v34 = vsel %vm2833_vm2, %v7595_v56, %v8631_v2  ;;  %v7749_v39 = vsel %vm2833_vm2, %v7609_v55, %v8630_v21 }
 0x771   :  { %v8624_v48 = vpop.permute.xlu0 %8623 }
 0x772   :  { %v8626_v19 = vunpack.i.h.bf16 %v8624_v48  ;;  %v8625_v32 = vunpack.i.l.bf16 %v8624_v48 }
 0x774   :  { %v7748_v14 = vsel %vm2833_vm2, %v7658_v52, %v8626_v19  ;;  %v7750_v20 = vsel %vm2833_vm2, %v7672_v50, %v8625_v32  ;;  %v8133_v32 = vld [vmem:[#allocation2] ss:$0 sm:$0xff] }
 0x775   :  { %v7844_v44 = vrot.slane %v7748_v14, 7  ;;  %v7846_v27 = vrot.slane %v7750_v20, 7 }
 0x776   :  { %v8639_v31 = vpop.permute.xlu1 %8638 }
 0x777   :  { %v7847_v36 = vsel %vm5220_vm4, %v7846_v27, %v7749_v39  ;;  %v7845_v62 = vsel %vm5220_vm4, %v7844_v44, %v7747_v34  ;;  %v8641_v12 = vunpack.i.h.bf16 %v8639_v31  ;;  %v8640_v11 = vunpack.i.l.bf16 %v8639_v31 }
 0x778   :  { %7924 = vmatprep.mubr.f32.mxu1 %v7847_v36 }
 0x779   :  { %7925 = vmatmul.mubr.f32.vlgmr.msra.gmra.mxu1 %v7845_v62  ;;  %v7751_v23 = vsel %vm2833_vm2, %v7623_v61, %v8641_v12  ;;  %v7753_v54 = vsel %vm2833_vm2, %v7637_v24, %v8640_v11 }
 0x77a   :  { %8600 = vmatpush3.msra.mxu1 %v7826_v53  ;;  %8615 = vmatprep.mubr.msk.f32.mxu1 %vm8709_vm9, %v16754_v41 }
 0x77b   :  { %8601 = vmatprep.subr.mxu1 %v16754_v41 }
 0x77c   :  { %8602 = vmatpush3.msra.mxu1 %v7825_v51 }
 0x77d   :  { %8603 = vmatprep.subr.mxu1 %v16754_v41  ;;  %v8634_v7 = vpop.permute.xlu0 %8633 }
 0x77e   :  { %8604 = vmatpush3.msra.mxu1 %v7824_v46  ;;  %v8636_v18 = vunpack.i.h.bf16 %v8634_v7  ;;  %v8635_v10 = vunpack.i.l.bf16 %v8634_v7 }
 0x77f   :  { %8605 = vmatprep.subr.mxu1 %v16754_v41 }
 0x780   :  { %8606 = vmatpush3.msra.mxu1 %v7823_v43  ;;  %v7752_v13 = vsel %vm2833_vm2, %v7686_v3, %v8636_v18  ;;  %v7754_v17 = vsel %vm2833_vm2, %v7700_v9, %v8635_v10 }
 0x781   :  { %8607 = vmatprep.subr.mxu1 %v16754_v41  ;;  %v7848_v5 = vrot.slane %v7752_v13, 7  ;;  %v7850_v63 = vrot.slane %v7754_v17, 7 }
 0x782   :  { %8608 = vmatpush3.msra.mxu1 %v7822_v45 }
 0x783   :  { %8609 = vmatprep.subr.mxu1 %v16754_v41  ;;  %v7851_v42 = vsel %vm5220_vm4, %v7850_v63, %v7753_v54  ;;  %v7849_v57 = vsel %vm5220_vm4, %v7848_v5, %v7751_v23 }
 0x784   :  { %8610 = vmatpush3.msra.mxu1 %v7821_v15  ;;  %7994 = vmatprep.mubr.f32.mxu0 %v7851_v42 }
 0x785   :  { %8611 = vmatprep.subr.mxu1 %v16754_v41  ;;  %7995 = vmatmul.mubr.f32.vlgmr.msra.gmra.mxu0 %v7849_v57 }
 0x786   :  { %8612 = vmatpush3.msra.mxu1 %v7820_v38 }
 0x787   :  { %8613 = vmatprep.subr.mxu1 %v16754_v41 }
 0x788   :  { %8614 = vmatpush3.msra.mxu1 %v7819_v22 }
 0x789   :  { %8616 = vmatmul.mubr.msk.f32.vlgmr.msra.gmra.mxu1 %vm2833_vm2, %v15487_v6 }
 0x839   :  { %v8381_v35 = vpop.f32.mrf.mxu1 }
 0x83b   :  { %v8382_v60 = vpop.f32.mrf.mxu1 }
 0x83c   :  { %v8383_v26 = vadd.f32 %v8382_v60, %v8381_v35 }
 0x83e   :  { %v7927_v52 = vadd.f32 %v8383_v26, %v8130_v47 }
 0x845   :  { %v8416_v16 = vpop.f32.mrf.mxu0 }
 0x847   :  { %v8417_v4 = vpop.f32.mrf.mxu0 }
 0x848   :  { %v8418_v41 = vadd.f32 %v8417_v4, %v8416_v16 }
 0x849   :  { %v8066_v50 = vpop.f32.mrf.mxu1 }
 0x84a   :  { %v7997_v48 = vadd.f32 %v8418_v41, %v7927_v52 }
 0x84b   :  { %v8617_v8 = vpop.f32.mrf.mxu1 }
 0x84c   :  { %v8067_v6 = vadd.f32 %v8066_v50, %v7997_v48 }
 0x84e   :  { %v8070_v2 = vmax.f32 %v8067_v6, 0.0 }
 0x850   :  { %v8078_v21 = vmul.f32 %v8132_v1, %v8070_v2 }
 0x852   :  { %v8080_v19 = vsel %vm8079_vm10, %v8078_v21, 0.0 }
 0x853   :  { %8081 = vadd.xlane.f32.xlu0 %v8080_v19 }
 0x8dc   :  { %v8082_v56 = vpop.xlane.xlu0 %8081 }
 0x8dd   :  { %v8090_v14 = vadd.f32 %v8133_v32, %v8082_v56 }
 0x8df   :  { %8092 = vst.msk [vmem:[%s15576_s11] sm:$0x3] %vm8091_vm11, %v8090_v14 }

</bundles_post_ra>
